<compile_context>
chip_gen: v7x
topology: tpu7x:2x2x1
jax: 0.10.0
libtpu: 0.0.40
codegen_flags: <defaults>
</compile_context>

<pallas_src>
import jax
import jax.numpy as jnp
from jax.experimental import pallas as pl
from jax.experimental.pallas import tpu as pltpu

HIDDEN = 35   # hard-coded in Encoder.forward (torch.zeros(2, batch, 35))
HP = 128      # hidden padded to one lane tile (each gate lane-aligned)
KP = 128      # fused contraction dim: two <=64-lane states packed into 128
GP = 4 * HP   # fused gate width: i, f, g, o each occupying 128 lanes
OFF2 = 64     # lane offset of the second packed state inside the 128-lane LHS

GATE_SCALE = (0.5, 0.5, 1.0, 0.5)   # i, f, g, o : fold sigmoid's 0.5 pre-scale


# ------------------------------ kernel ------------------------------
def lstm_ae_kernel(
    x_ref,                         # (T, Bp, HP) f32, time-major, lane-padded
    e_wih0, e_whh0, e_b0,          # encoder L0: (KP,GP) bf16 x2, (1,GP) f32
    e_w1, e_b1,                    # encoder L1 packed [h1@0 | h2@64]
    d_w0, d_b0_first, d_b0,        # decoder L0 packed [fc-fold(h2)@0 | h1@64]
    d_w1, d_b1,                    # decoder L1 packed [h1@0 | h2@64]
    fc_w, fc_b,                    # (HP,HP) bf16, (1,HP) f32
    out_ref,                       # (T, Bp, HP) f32, time-reversed
):
    T, Bp, _ = x_ref.shape

    # Hoist all weight/bias loads out of the time loops.
    Wih0, Whh0, B0 = e_wih0[...], e_whh0[...], e_b0[...]
    W1, B1 = e_w1[...], e_b1[...]
    Wd0, Bd0f, Bd0 = d_w0[...], d_b0_first[...], d_b0[...]
    Wd1, Bd1 = d_w1[...], d_b1[...]
    Wfc, Bfc = fc_w[...], fc_b[...]

    def gates_apply(z, c):
        # i/f/o columns were pre-scaled by 0.5 in the wrapper, so one tanh over
        # the whole z tile + one affine per gate reproduces sigmoid exactly.
        tz = jnp.tanh(z)
        i = 0.5 * tz[:, 0 * HP:1 * HP] + 0.5
        f = 0.5 * tz[:, 1 * HP:2 * HP] + 0.5
        g = tz[:, 2 * HP:3 * HP]
        o = 0.5 * tz[:, 3 * HP:4 * HP] + 0.5
        c_new = f * c + i * g
        h_new = o * jnp.tanh(c_new)
        return h_new, c_new

    def shift(h):
        # Move valid lanes [0:H] to [OFF2:OFF2+H]; XLU rotate, off the VPU path.
        return pltpu.roll(h, shift=OFF2, axis=1)

    # ---- Encoder layer-0 input projections for the whole sequence: ONE
    #      batched matmul, bias folded in. ----
    x_flat = x_ref[...].reshape(T * Bp, HP).astype(jnp.bfloat16)
    zx = (jnp.dot(x_flat, Wih0, preferred_element_type=jnp.float32)
          .reshape(T, Bp, GP) + B0)

    zeros = jnp.zeros((Bp, HP), jnp.float32)
    h1 = c1 = h2 = c2 = zeros            # padded lanes [H:] stay exactly 0

    # ---- Encoder: per step only the recurrent K=128 matmuls are serial. ----
    for t in range(T):
        z1 = zx[t] + jnp.dot(h1.astype(jnp.bfloat16), Whh0,
                             preferred_element_type=jnp.float32)
        h1, c1 = gates_apply(z1, c1)
        lhs = (h1 + shift(h2)).astype(jnp.bfloat16)
        z2 = jnp.dot(lhs, W1, preferred_element_type=jnp.float32) + B1
        h2, c2 = gates_apply(z2, c2)

    # ---- Decoder: FC folded into layer-0 input weights, so the feedback
    #      chain is two dependent K=128 matmuls per step. ----
    h2_hist = []
    for t in range(T):
        if t == 0:
            # temp_input = zeros at t=0: no input contribution, no fc-bias fold.
            lhs = shift(h1).astype(jnp.bfloat16)
            z1 = jnp.dot(lhs, Wd0, preferred_element_type=jnp.float32) + Bd0f
        else:
            # pred_{t-1} = h2_{t-1} @ Wfc + Bfc is folded into Wd0 / Bd0.
            lhs = (h2 + shift(h1)).astype(jnp.bfloat16)
            z1 = jnp.dot(lhs, Wd0, preferred_element_type=jnp.float32) + Bd0
        h1, c1 = gates_apply(z1, c1)
        lhs = (h1 + shift(h2)).astype(jnp.bfloat16)
        z2 = jnp.dot(lhs, Wd1, preferred_element_type=jnp.float32) + Bd1
        h2, c2 = gates_apply(z2, c2)
        h2_hist.append(h2)

    # One batched FC for all T predictions (off the feedback path); stacked
    # already time-reversed so the final write is a single dense store.
    hs = jnp.stack(h2_hist[::-1], axis=0).reshape(T * Bp, HP).astype(jnp.bfloat16)
    preds = jnp.dot(hs, Wfc, preferred_element_type=jnp.float32) + Bfc
    out_ref[...] = preds.reshape(T, Bp, HP)


# ---------------- wrapper-side weight packing ----------------
def _pack_W(blocks):
    """blocks: iterable of (row_offset, w4) with w4 of shape (4, in_dim, H).
    Gate k (i,f,g,o) occupies lanes [k*HP : k*HP+H]; i/f/o columns pre-scaled
    by 0.5 (sigmoid fold).  All padding is zero so padded hidden lanes stay 0
    through the recurrence."""
    W = jnp.zeros((KP, GP), jnp.float32)
    for off, w4 in blocks:
        d, H = w4.shape[1], w4.shape[2]
        for k in range(4):
            W = W.at[off:off + d, k * HP:k * HP + H].set(GATE_SCALE[k] * w4[k])
    return W.astype(jnp.bfloat16)


def _pack_b(b4):
    H = b4.shape[2]
    bias = jnp.zeros((1, GP), jnp.float32)
    for k in range(4):
        bias = bias.at[:, k * HP:k * HP + H].set(GATE_SCALE[k] * b4[k])
    return bias


def pack_params(params):
    (e_wih0, e_whh0, e_b0, e_wih1, e_whh1, e_b1,
     d_wih0, d_whh0, d_b0, d_wih1, d_whh1, d_b1, fc_w, fc_b) = params
    H, V = fc_w.shape
    assert H <= OFF2 and V <= OFF2, "state packing needs H, V <= 64"

    # Encoder L0: input and recurrent weights kept separable (input projection
    # is precomputed for the whole sequence inside the kernel).
    We0_ih = _pack_W([(0, e_wih0)])
    We0_hh = _pack_W([(0, e_whh0)])
    Be0 = _pack_b(e_b0)

    # Encoder L1: input h1 at lane offset 0, hidden h2 at lane offset 64.
    We1 = _pack_W([(0, e_wih1), (OFF2, e_whh1)])
    Be1 = _pack_b(e_b1)

    # Decoder L0: fold the FC into the input weights (feedback input becomes
    # h2_{t-1} directly).  W' = Wfc @ W_ih, b' = b + Bfc @ W_ih.
    d_wih0_fold = jnp.einsum('hv,kvj->khj', fc_w, d_wih0)          # (4, H, H)
    d_b0_fold = d_b0 + jnp.einsum('ov,kvj->koj', fc_b, d_wih0)     # (4, 1, H)
    Wd0 = _pack_W([(0, d_wih0_fold), (OFF2, d_whh0)])
    Bd0_first = _pack_b(d_b0)       # step 0: zero input, plain LSTM bias
    Bd0 = _pack_b(d_b0_fold)        # steps >=1: fc bias folded in

    # Decoder L1.
    Wd1 = _pack_W([(0, d_wih1), (OFF2, d_whh1)])
    Bd1 = _pack_b(d_b1)

    # Output FC (unscaled) for the off-critical-path prediction matmul.
    Wfc = jnp.zeros((HP, HP), jnp.float32).at[0:H, 0:V].set(fc_w).astype(jnp.bfloat16)
    Bfc = jnp.zeros((1, HP), jnp.float32).at[:, 0:V].set(fc_b)

    return (We0_ih, We0_hh, Be0, We1, Be1,
            Wd0, Bd0_first, Bd0, Wd1, Bd1, Wfc, Bfc)


def lstm_model_forward(batch, packed_params):
    """batch: (B, T, V) float32, batch_first like the PyTorch module."""
    B, T, V = batch.shape
    Bp = ((B + 7) // 8) * 8                                  # sublane-tile pad

    x_tm = jnp.transpose(batch, (1, 0, 2)).astype(jnp.float32)    # (T, B, V)
    x_pad = jnp.zeros((T, Bp, HP), jnp.float32).at[:, :B, :V].set(x_tm)

    vmem = pl.BlockSpec(memory_space=pltpu.MemorySpace.VMEM)
    out_tm = pl.pallas_call(
        lstm_ae_kernel,
        out_shape=jax.ShapeDtypeStruct((T, Bp, HP), jnp.float32),
        in_specs=[vmem] * (1 + len(packed_params)),
        out_specs=vmem,
    )(x_pad, *packed_params)

    # Un-pad and return batch_first; time reversal already done in-kernel.
    return jnp.transpose(out_tm[:, :B, :V], (1, 0, 2))            # (B, T, V)


# ---------------- deterministic parameter construction ----------------
def _init_lstm_layer(key, in_dim, H):
    k = 1.0 / float(H) ** 0.5
    k1, k2, k3 = jax.random.split(key, 3)
    wih = jax.random.uniform(k1, (4, in_dim, H), jnp.float32, -k, k)
    whh = jax.random.uniform(k2, (4, H, H), jnp.float32, -k, k)
    b = jax.random.uniform(k3, (4, 1, H), jnp.float32, -k, k)  # b_ih + b_hh combined
    return wih, whh, b


def init_params(key, V, H):
    keys = jax.random.split(key, 6)
    e0 = _init_lstm_layer(keys[0], V, H)
    e1 = _init_lstm_layer(keys[1], H, H)
    d0 = _init_lstm_layer(keys[2], V, H)
    d1 = _init_lstm_layer(keys[3], H, H)
    k = 1.0 / float(H) ** 0.5
    fc_w = jax.random.uniform(keys[4], (H, V), jnp.float32, -k, k)
    fc_b = jax.random.uniform(keys[5], (1, V), jnp.float32, -k, k)
    return (*e0, *e1, *d0, *d1, fc_w, fc_b)


# ---------------- pure-JAX reference (for correctness check) ----------------
def _cell_ref(x, h, c, wih, whh, b):
    g = [x @ wih[k] + h @ whh[k] + b[k] for k in range(4)]
    i, f = jax.nn.sigmoid(g[0]), jax.nn.sigmoid(g[1])
    gg, o = jnp.tanh(g[2]), jax.nn.sigmoid(g[3])
    c_new = f * c + i * gg
    return o * jnp.tanh(c_new), c_new


def ref_forward(batch, params):
    (e_wih0, e_whh0, e_b0, e_wih1, e_whh1, e_b1,
     d_wih0, d_whh0, d_b0, d_wih1, d_whh1, d_b1, fc_w, fc_b) = params
    B, T, V = batch.shape
    H = e_whh0.shape[1]
    h1 = c1 = h2 = c2 = jnp.zeros((B, H), jnp.float32)
    for t in range(T):
        h1, c1 = _cell_ref(batch[:, t, :], h1, c1, e_wih0, e_whh0, e_b0)
        h2, c2 = _cell_ref(h1, h2, c2, e_wih1, e_whh1, e_b1)
    dec_in = jnp.zeros((B, V), jnp.float32)
    outs = []
    for t in range(T):
        h1, c1 = _cell_ref(dec_in, h1, c1, d_wih0, d_whh0, d_b0)
        h2, c2 = _cell_ref(h1, h2, c2, d_wih1, d_whh1, d_b1)
        dec_in = h2 @ fc_w + fc_b
        outs.append(dec_in)
    out = jnp.stack(outs, axis=1)          # (B, T, V)
    return out[:, ::-1, :]                 # reverse time (inv_idx)


if __name__ == "__main__":
    B, T, V = 2, 8, 4

    key = jax.random.PRNGKey(0)
    k_data, k_params = jax.random.split(key)
    batch = jax.random.normal(k_data, (B, T, V), dtype=jnp.float32)
    params = init_params(k_params, V, HIDDEN)
    packed = pack_params(params)

    out = jax.block_until_ready(lstm_model_forward(batch, packed))
    assert out.shape == (B, T, V), out.shape

    ref = jax.block_until_ready(ref_forward(batch, params))
    # bf16 matmul operands (explicit, one-pass MXU); the f32 reference is
    # matched to a tolerance that covers compounded rounding over 16 cells.
    assert jnp.allclose(out, ref, atol=1e-2, rtol=1e-2), \
        float(jnp.max(jnp.abs(out - ref)))

    print("KERNEL_OK")
</pallas_src>

<mosaic_0001>
module attributes {stable_mosaic.version = 11 : i64} {
  func.func @lstm_ae_kernel(%arg0: memref<8x8x128xf32, #tpu.memory_space<vmem>>, %arg1: memref<128x512xbf16, #tpu.memory_space<vmem>>, %arg2: memref<128x512xbf16, #tpu.memory_space<vmem>>, %arg3: memref<1x512xf32, #tpu.memory_space<vmem>>, %arg4: memref<128x512xbf16, #tpu.memory_space<vmem>>, %arg5: memref<1x512xf32, #tpu.memory_space<vmem>>, %arg6: memref<128x512xbf16, #tpu.memory_space<vmem>>, %arg7: memref<1x512xf32, #tpu.memory_space<vmem>>, %arg8: memref<1x512xf32, #tpu.memory_space<vmem>>, %arg9: memref<128x512xbf16, #tpu.memory_space<vmem>>, %arg10: memref<1x512xf32, #tpu.memory_space<vmem>>, %arg11: memref<128x128xbf16, #tpu.memory_space<vmem>>, %arg12: memref<1x128xf32, #tpu.memory_space<vmem>>, %arg13: memref<8x8x128xf32, #tpu.memory_space<vmem>>) attributes {dimension_semantics = [], scalar_prefetch = 0 : i64, scratch_operands = 0 : i64, tpu.core_type = #tpu.core_type<tc>} {
    %c0 = arith.constant 0 : index
    %c0_0 = arith.constant 0 : index
    %0 = vector.load %arg1[%c0, %c0_0] : memref<128x512xbf16, #tpu.memory_space<vmem>>, vector<128x512xbf16>
    %c0_1 = arith.constant 0 : index
    %c0_2 = arith.constant 0 : index
    %1 = vector.load %arg2[%c0_1, %c0_2] : memref<128x512xbf16, #tpu.memory_space<vmem>>, vector<128x512xbf16>
    %c0_3 = arith.constant 0 : index
    %c0_4 = arith.constant 0 : index
    %2 = vector.load %arg3[%c0_3, %c0_4] : memref<1x512xf32, #tpu.memory_space<vmem>>, vector<1x512xf32>
    %c0_5 = arith.constant 0 : index
    %c0_6 = arith.constant 0 : index
    %3 = vector.load %arg4[%c0_5, %c0_6] : memref<128x512xbf16, #tpu.memory_space<vmem>>, vector<128x512xbf16>
    %c0_7 = arith.constant 0 : index
    %c0_8 = arith.constant 0 : index
    %4 = vector.load %arg5[%c0_7, %c0_8] : memref<1x512xf32, #tpu.memory_space<vmem>>, vector<1x512xf32>
    %c0_9 = arith.constant 0 : index
    %c0_10 = arith.constant 0 : index
    %5 = vector.load %arg6[%c0_9, %c0_10] : memref<128x512xbf16, #tpu.memory_space<vmem>>, vector<128x512xbf16>
    %c0_11 = arith.constant 0 : index
    %c0_12 = arith.constant 0 : index
    %6 = vector.load %arg7[%c0_11, %c0_12] : memref<1x512xf32, #tpu.memory_space<vmem>>, vector<1x512xf32>
    %c0_13 = arith.constant 0 : index
    %c0_14 = arith.constant 0 : index
    %7 = vector.load %arg8[%c0_13, %c0_14] : memref<1x512xf32, #tpu.memory_space<vmem>>, vector<1x512xf32>
    %c0_15 = arith.constant 0 : index
    %c0_16 = arith.constant 0 : index
    %8 = vector.load %arg9[%c0_15, %c0_16] : memref<128x512xbf16, #tpu.memory_space<vmem>>, vector<128x512xbf16>
    %c0_17 = arith.constant 0 : index
    %c0_18 = arith.constant 0 : index
    %9 = vector.load %arg10[%c0_17, %c0_18] : memref<1x512xf32, #tpu.memory_space<vmem>>, vector<1x512xf32>
    %c0_19 = arith.constant 0 : index
    %c0_20 = arith.constant 0 : index
    %10 = vector.load %arg11[%c0_19, %c0_20] : memref<128x128xbf16, #tpu.memory_space<vmem>>, vector<128x128xbf16>
    %c0_21 = arith.constant 0 : index
    %c0_22 = arith.constant 0 : index
    %11 = vector.load %arg12[%c0_21, %c0_22] : memref<1x128xf32, #tpu.memory_space<vmem>>, vector<1x128xf32>
    %c0_23 = arith.constant 0 : index
    %c0_24 = arith.constant 0 : index
    %c0_25 = arith.constant 0 : index
    %12 = vector.load %arg0[%c0_23, %c0_24, %c0_25] : memref<8x8x128xf32, #tpu.memory_space<vmem>>, vector<8x8x128xf32>
    %13 = vector.shape_cast %12 : vector<8x8x128xf32> to vector<64x128xf32>
    %14 = arith.truncf %13 : vector<64x128xf32> to vector<64x128xbf16>
    %cst = arith.constant dense<0.000000e+00> : vector<64x512xf32>
    %15 = tpu.matmul %14, %0, %cst {dimension_numbers = #tpu.dot_dimension_numbers<[1], [0], [0], [1], [0, 0, 1, 1], [], []>} : vector<64x128xbf16>, vector<128x512xbf16>, vector<64x512xf32> -> vector<64x512xf32>
    %16 = vector.shape_cast %15 : vector<64x512xf32> to vector<8x8x512xf32>
    %17 = vector.shape_cast %2 : vector<1x512xf32> to vector<1x1x512xf32>
    %18 = vector.broadcast %17 : vector<1x1x512xf32> to vector<8x8x512xf32>
    %19 = arith.addf %16, %18 : vector<8x8x512xf32>
    %cst_26 = arith.constant 0.000000e+00 : f32
    %20 = vector.broadcast %cst_26 : f32 to vector<8x128xf32>
    %21 = vector.extract_strided_slice %19 {offsets = [0, 0, 0], sizes = [1, 8, 512], strides = [1, 1, 1]} : vector<8x8x512xf32> to vector<1x8x512xf32>
    %22 = vector.shape_cast %21 : vector<1x8x512xf32> to vector<8x512xf32>
    %23 = arith.truncf %20 : vector<8x128xf32> to vector<8x128xbf16>
    %cst_27 = arith.constant dense<0.000000e+00> : vector<8x512xf32>
    %24 = tpu.matmul %23, %1, %cst_27 {dimension_numbers = #tpu.dot_dimension_numbers<[1], [0], [0], [1], [0, 0, 1, 1], [], []>} : vector<8x128xbf16>, vector<128x512xbf16>, vector<8x512xf32> -> vector<8x512xf32>
    %25 = arith.addf %22, %24 : vector<8x512xf32>
    %26 = math.tanh %25 : vector<8x512xf32>
    %27 = vector.extract_strided_slice %26 {offsets = [0, 0], sizes = [8, 128], strides = [1, 1]} : vector<8x512xf32> to vector<8x128xf32>
    %cst_28 = arith.constant 5.000000e-01 : f32
    %28 = vector.broadcast %cst_28 : f32 to vector<8x128xf32>
    %29 = arith.mulf %28, %27 : vector<8x128xf32>
    %cst_29 = arith.constant 5.000000e-01 : f32
    %30 = vector.broadcast %cst_29 : f32 to vector<8x128xf32>
    %31 = arith.addf %29, %30 : vector<8x128xf32>
    %32 = vector.extract_strided_slice %26 {offsets = [0, 128], sizes = [8, 128], strides = [1, 1]} : vector<8x512xf32> to vector<8x128xf32>
    %cst_30 = arith.constant 5.000000e-01 : f32
    %33 = vector.broadcast %cst_30 : f32 to vector<8x128xf32>
    %34 = arith.mulf %33, %32 : vector<8x128xf32>
    %cst_31 = arith.constant 5.000000e-01 : f32
    %35 = vector.broadcast %cst_31 : f32 to vector<8x128xf32>
    %36 = arith.addf %34, %35 : vector<8x128xf32>
    %37 = vector.extract_strided_slice %26 {offsets = [0, 256], sizes = [8, 128], strides = [1, 1]} : vector<8x512xf32> to vector<8x128xf32>
    %38 = vector.extract_strided_slice %26 {offsets = [0, 384], sizes = [8, 128], strides = [1, 1]} : vector<8x512xf32> to vector<8x128xf32>
    %cst_32 = arith.constant 5.000000e-01 : f32
    %39 = vector.broadcast %cst_32 : f32 to vector<8x128xf32>
    %40 = arith.mulf %39, %38 : vector<8x128xf32>
    %cst_33 = arith.constant 5.000000e-01 : f32
    %41 = vector.broadcast %cst_33 : f32 to vector<8x128xf32>
    %42 = arith.addf %40, %41 : vector<8x128xf32>
    %43 = arith.mulf %36, %20 : vector<8x128xf32>
    %44 = arith.mulf %31, %37 : vector<8x128xf32>
    %45 = arith.addf %43, %44 : vector<8x128xf32>
    %46 = math.tanh %45 : vector<8x128xf32>
    %47 = arith.mulf %42, %46 : vector<8x128xf32>
    %c64_i32 = arith.constant 64 : i32
    %48 = tpu.dynamic_rotate %20 by %c64_i32 dim 1 : vector<8x128xf32>, i32 -> vector<8x128xf32>
    %49 = arith.addf %47, %48 : vector<8x128xf32>
    %50 = arith.truncf %49 : vector<8x128xf32> to vector<8x128xbf16>
    %cst_34 = arith.constant dense<0.000000e+00> : vector<8x512xf32>
    %51 = tpu.matmul %50, %3, %cst_34 {dimension_numbers = #tpu.dot_dimension_numbers<[1], [0], [0], [1], [0, 0, 1, 1], [], []>} : vector<8x128xbf16>, vector<128x512xbf16>, vector<8x512xf32> -> vector<8x512xf32>
    %52 = vector.broadcast %4 : vector<1x512xf32> to vector<8x512xf32>
    %53 = arith.addf %51, %52 : vector<8x512xf32>
    %54 = math.tanh %53 : vector<8x512xf32>
    %55 = vector.extract_strided_slice %54 {offsets = [0, 0], sizes = [8, 128], strides = [1, 1]} : vector<8x512xf32> to vector<8x128xf32>
    %cst_35 = arith.constant 5.000000e-01 : f32
    %56 = vector.broadcast %cst_35 : f32 to vector<8x128xf32>
    %57 = arith.mulf %56, %55 : vector<8x128xf32>
    %cst_36 = arith.constant 5.000000e-01 : f32
    %58 = vector.broadcast %cst_36 : f32 to vector<8x128xf32>
    %59 = arith.addf %57, %58 : vector<8x128xf32>
    %60 = vector.extract_strided_slice %54 {offsets = [0, 128], sizes = [8, 128], strides = [1, 1]} : vector<8x512xf32> to vector<8x128xf32>
    %cst_37 = arith.constant 5.000000e-01 : f32
    %61 = vector.broadcast %cst_37 : f32 to vector<8x128xf32>
    %62 = arith.mulf %61, %60 : vector<8x128xf32>
    %cst_38 = arith.constant 5.000000e-01 : f32
    %63 = vector.broadcast %cst_38 : f32 to vector<8x128xf32>
    %64 = arith.addf %62, %63 : vector<8x128xf32>
    %65 = vector.extract_strided_slice %54 {offsets = [0, 256], sizes = [8, 128], strides = [1, 1]} : vector<8x512xf32> to vector<8x128xf32>
    %66 = vector.extract_strided_slice %54 {offsets = [0, 384], sizes = [8, 128], strides = [1, 1]} : vector<8x512xf32> to vector<8x128xf32>
    %cst_39 = arith.constant 5.000000e-01 : f32
    %67 = vector.broadcast %cst_39 : f32 to vector<8x128xf32>
    %68 = arith.mulf %67, %66 : vector<8x128xf32>
    %cst_40 = arith.constant 5.000000e-01 : f32
    %69 = vector.broadcast %cst_40 : f32 to vector<8x128xf32>
    %70 = arith.addf %68, %69 : vector<8x128xf32>
    %71 = arith.mulf %64, %20 : vector<8x128xf32>
    %72 = arith.mulf %59, %65 : vector<8x128xf32>
    %73 = arith.addf %71, %72 : vector<8x128xf32>
    %74 = math.tanh %73 : vector<8x128xf32>
    %75 = arith.mulf %70, %74 : vector<8x128xf32>
    %76 = vector.extract_strided_slice %19 {offsets = [1, 0, 0], sizes = [1, 8, 512], strides = [1, 1, 1]} : vector<8x8x512xf32> to vector<1x8x512xf32>
    %77 = vector.shape_cast %76 : vector<1x8x512xf32> to vector<8x512xf32>
    %78 = arith.truncf %47 : vector<8x128xf32> to vector<8x128xbf16>
    %cst_41 = arith.constant dense<0.000000e+00> : vector<8x512xf32>
    %79 = tpu.matmul %78, %1, %cst_41 {dimension_numbers = #tpu.dot_dimension_numbers<[1], [0], [0], [1], [0, 0, 1, 1], [], []>} : vector<8x128xbf16>, vector<128x512xbf16>, vector<8x512xf32> -> vector<8x512xf32>
    %80 = arith.addf %77, %79 : vector<8x512xf32>
    %81 = math.tanh %80 : vector<8x512xf32>
    %82 = vector.extract_strided_slice %81 {offsets = [0, 0], sizes = [8, 128], strides = [1, 1]} : vector<8x512xf32> to vector<8x128xf32>
    %cst_42 = arith.constant 5.000000e-01 : f32
    %83 = vector.broadcast %cst_42 : f32 to vector<8x128xf32>
    %84 = arith.mulf %83, %82 : vector<8x128xf32>
    %cst_43 = arith.constant 5.000000e-01 : f32
    %85 = vector.broadcast %cst_43 : f32 to vector<8x128xf32>
    %86 = arith.addf %84, %85 : vector<8x128xf32>
    %87 = vector.extract_strided_slice %81 {offsets = [0, 128], sizes = [8, 128], strides = [1, 1]} : vector<8x512xf32> to vector<8x128xf32>
    %cst_44 = arith.constant 5.000000e-01 : f32
    %88 = vector.broadcast %cst_44 : f32 to vector<8x128xf32>
    %89 = arith.mulf %88, %87 : vector<8x128xf32>
    %cst_45 = arith.constant 5.000000e-01 : f32
    %90 = vector.broadcast %cst_45 : f32 to vector<8x128xf32>
    %91 = arith.addf %89, %90 : vector<8x128xf32>
    %92 = vector.extract_strided_slice %81 {offsets = [0, 256], sizes = [8, 128], strides = [1, 1]} : vector<8x512xf32> to vector<8x128xf32>
    %93 = vector.extract_strided_slice %81 {offsets = [0, 384], sizes = [8, 128], strides = [1, 1]} : vector<8x512xf32> to vector<8x128xf32>
    %cst_46 = arith.constant 5.000000e-01 : f32
    %94 = vector.broadcast %cst_46 : f32 to vector<8x128xf32>
    %95 = arith.mulf %94, %93 : vector<8x128xf32>
    %cst_47 = arith.constant 5.000000e-01 : f32
    %96 = vector.broadcast %cst_47 : f32 to vector<8x128xf32>
    %97 = arith.addf %95, %96 : vector<8x128xf32>
    %98 = arith.mulf %91, %45 : vector<8x128xf32>
    %99 = arith.mulf %86, %92 : vector<8x128xf32>
    %100 = arith.addf %98, %99 : vector<8x128xf32>
    %101 = math.tanh %100 : vector<8x128xf32>
    %102 = arith.mulf %97, %101 : vector<8x128xf32>
    %c64_i32_48 = arith.constant 64 : i32
    %103 = tpu.dynamic_rotate %75 by %c64_i32_48 dim 1 : vector<8x128xf32>, i32 -> vector<8x128xf32>
    %104 = arith.addf %102, %103 : vector<8x128xf32>
    %105 = arith.truncf %104 : vector<8x128xf32> to vector<8x128xbf16>
    %cst_49 = arith.constant dense<0.000000e+00> : vector<8x512xf32>
    %106 = tpu.matmul %105, %3, %cst_49 {dimension_numbers = #tpu.dot_dimension_numbers<[1], [0], [0], [1], [0, 0, 1, 1], [], []>} : vector<8x128xbf16>, vector<128x512xbf16>, vector<8x512xf32> -> vector<8x512xf32>
    %107 = vector.broadcast %4 : vector<1x512xf32> to vector<8x512xf32>
    %108 = arith.addf %106, %107 : vector<8x512xf32>
    %109 = math.tanh %108 : vector<8x512xf32>
    %110 = vector.extract_strided_slice %109 {offsets = [0, 0], sizes = [8, 128], strides = [1, 1]} : vector<8x512xf32> to vector<8x128xf32>
    %cst_50 = arith.constant 5.000000e-01 : f32
    %111 = vector.broadcast %cst_50 : f32 to vector<8x128xf32>
    %112 = arith.mulf %111, %110 : vector<8x128xf32>
    %cst_51 = arith.constant 5.000000e-01 : f32
    %113 = vector.broadcast %cst_51 : f32 to vector<8x128xf32>
    %114 = arith.addf %112, %113 : vector<8x128xf32>
    %115 = vector.extract_strided_slice %109 {offsets = [0, 128], sizes = [8, 128], strides = [1, 1]} : vector<8x512xf32> to vector<8x128xf32>
    %cst_52 = arith.constant 5.000000e-01 : f32
    %116 = vector.broadcast %cst_52 : f32 to vector<8x128xf32>
    %117 = arith.mulf %116, %115 : vector<8x128xf32>
    %cst_53 = arith.constant 5.000000e-01 : f32
    %118 = vector.broadcast %cst_53 : f32 to vector<8x128xf32>
    %119 = arith.addf %117, %118 : vector<8x128xf32>
    %120 = vector.extract_strided_slice %109 {offsets = [0, 256], sizes = [8, 128], strides = [1, 1]} : vector<8x512xf32> to vector<8x128xf32>
    %121 = vector.extract_strided_slice %109 {offsets = [0, 384], sizes = [8, 128], strides = [1, 1]} : vector<8x512xf32> to vector<8x128xf32>
    %cst_54 = arith.constant 5.000000e-01 : f32
    %122 = vector.broadcast %cst_54 : f32 to vector<8x128xf32>
    %123 = arith.mulf %122, %121 : vector<8x128xf32>
    %cst_55 = arith.constant 5.000000e-01 : f32
    %124 = vector.broadcast %cst_55 : f32 to vector<8x128xf32>
    %125 = arith.addf %123, %124 : vector<8x128xf32>
    %126 = arith.mulf %119, %73 : vector<8x128xf32>
    %127 = arith.mulf %114, %120 : vector<8x128xf32>
    %128 = arith.addf %126, %127 : vector<8x128xf32>
    %129 = math.tanh %128 : vector<8x128xf32>
    %130 = arith.mulf %125, %129 : vector<8x128xf32>
    %131 = vector.extract_strided_slice %19 {offsets = [2, 0, 0], sizes = [1, 8, 512], strides = [1, 1, 1]} : vector<8x8x512xf32> to vector<1x8x512xf32>
    %132 = vector.shape_cast %131 : vector<1x8x512xf32> to vector<8x512xf32>
    %133 = arith.truncf %102 : vector<8x128xf32> to vector<8x128xbf16>
    %cst_56 = arith.constant dense<0.000000e+00> : vector<8x512xf32>
    %134 = tpu.matmul %133, %1, %cst_56 {dimension_numbers = #tpu.dot_dimension_numbers<[1], [0], [0], [1], [0, 0, 1, 1], [], []>} : vector<8x128xbf16>, vector<128x512xbf16>, vector<8x512xf32> -> vector<8x512xf32>
    %135 = arith.addf %132, %134 : vector<8x512xf32>
    %136 = math.tanh %135 : vector<8x512xf32>
    %137 = vector.extract_strided_slice %136 {offsets = [0, 0], sizes = [8, 128], strides = [1, 1]} : vector<8x512xf32> to vector<8x128xf32>
    %cst_57 = arith.constant 5.000000e-01 : f32
    %138 = vector.broadcast %cst_57 : f32 to vector<8x128xf32>
    %139 = arith.mulf %138, %137 : vector<8x128xf32>
    %cst_58 = arith.constant 5.000000e-01 : f32
    %140 = vector.broadcast %cst_58 : f32 to vector<8x128xf32>
    %141 = arith.addf %139, %140 : vector<8x128xf32>
    %142 = vector.extract_strided_slice %136 {offsets = [0, 128], sizes = [8, 128], strides = [1, 1]} : vector<8x512xf32> to vector<8x128xf32>
    %cst_59 = arith.constant 5.000000e-01 : f32
    %143 = vector.broadcast %cst_59 : f32 to vector<8x128xf32>
    %144 = arith.mulf %143, %142 : vector<8x128xf32>
    %cst_60 = arith.constant 5.000000e-01 : f32
    %145 = vector.broadcast %cst_60 : f32 to vector<8x128xf32>
    %146 = arith.addf %144, %145 : vector<8x128xf32>
    %147 = vector.extract_strided_slice %136 {offsets = [0, 256], sizes = [8, 128], strides = [1, 1]} : vector<8x512xf32> to vector<8x128xf32>
    %148 = vector.extract_strided_slice %136 {offsets = [0, 384], sizes = [8, 128], strides = [1, 1]} : vector<8x512xf32> to vector<8x128xf32>
    %cst_61 = arith.constant 5.000000e-01 : f32
    %149 = vector.broadcast %cst_61 : f32 to vector<8x128xf32>
    %150 = arith.mulf %149, %148 : vector<8x128xf32>
    %cst_62 = arith.constant 5.000000e-01 : f32
    %151 = vector.broadcast %cst_62 : f32 to vector<8x128xf32>
    %152 = arith.addf %150, %151 : vector<8x128xf32>
    %153 = arith.mulf %146, %100 : vector<8x128xf32>
    %154 = arith.mulf %141, %147 : vector<8x128xf32>
    %155 = arith.addf %153, %154 : vector<8x128xf32>
    %156 = math.tanh %155 : vector<8x128xf32>
    %157 = arith.mulf %152, %156 : vector<8x128xf32>
    %c64_i32_63 = arith.constant 64 : i32
    %158 = tpu.dynamic_rotate %130 by %c64_i32_63 dim 1 : vector<8x128xf32>, i32 -> vector<8x128xf32>
    %159 = arith.addf %157, %158 : vector<8x128xf32>
    %160 = arith.truncf %159 : vector<8x128xf32> to vector<8x128xbf16>
    %cst_64 = arith.constant dense<0.000000e+00> : vector<8x512xf32>
    %161 = tpu.matmul %160, %3, %cst_64 {dimension_numbers = #tpu.dot_dimension_numbers<[1], [0], [0], [1], [0, 0, 1, 1], [], []>} : vector<8x128xbf16>, vector<128x512xbf16>, vector<8x512xf32> -> vector<8x512xf32>
    %162 = vector.broadcast %4 : vector<1x512xf32> to vector<8x512xf32>
    %163 = arith.addf %161, %162 : vector<8x512xf32>
    %164 = math.tanh %163 : vector<8x512xf32>
    %165 = vector.extract_strided_slice %164 {offsets = [0, 0], sizes = [8, 128], strides = [1, 1]} : vector<8x512xf32> to vector<8x128xf32>
    %cst_65 = arith.constant 5.000000e-01 : f32
    %166 = vector.broadcast %cst_65 : f32 to vector<8x128xf32>
    %167 = arith.mulf %166, %165 : vector<8x128xf32>
    %cst_66 = arith.constant 5.000000e-01 : f32
    %168 = vector.broadcast %cst_66 : f32 to vector<8x128xf32>
    %169 = arith.addf %167, %168 : vector<8x128xf32>
    %170 = vector.extract_strided_slice %164 {offsets = [0, 128], sizes = [8, 128], strides = [1, 1]} : vector<8x512xf32> to vector<8x128xf32>
    %cst_67 = arith.constant 5.000000e-01 : f32
    %171 = vector.broadcast %cst_67 : f32 to vector<8x128xf32>
    %172 = arith.mulf %171, %170 : vector<8x128xf32>
    %cst_68 = arith.constant 5.000000e-01 : f32
    %173 = vector.broadcast %cst_68 : f32 to vector<8x128xf32>
    %174 = arith.addf %172, %173 : vector<8x128xf32>
    %175 = vector.extract_strided_slice %164 {offsets = [0, 256], sizes = [8, 128], strides = [1, 1]} : vector<8x512xf32> to vector<8x128xf32>
    %176 = vector.extract_strided_slice %164 {offsets = [0, 384], sizes = [8, 128], strides = [1, 1]} : vector<8x512xf32> to vector<8x128xf32>
    %cst_69 = arith.constant 5.000000e-01 : f32
    %177 = vector.broadcast %cst_69 : f32 to vector<8x128xf32>
    %178 = arith.mulf %177, %176 : vector<8x128xf32>
    %cst_70 = arith.constant 5.000000e-01 : f32
    %179 = vector.broadcast %cst_70 : f32 to vector<8x128xf32>
    %180 = arith.addf %178, %179 : vector<8x128xf32>
    %181 = arith.mulf %174, %128 : vector<8x128xf32>
    %182 = arith.mulf %169, %175 : vector<8x128xf32>
    %183 = arith.addf %181, %182 : vector<8x128xf32>
    %184 = math.tanh %183 : vector<8x128xf32>
    %185 = arith.mulf %180, %184 : vector<8x128xf32>
    %186 = vector.extract_strided_slice %19 {offsets = [3, 0, 0], sizes = [1, 8, 512], strides = [1, 1, 1]} : vector<8x8x512xf32> to vector<1x8x512xf32>
    %187 = vector.shape_cast %186 : vector<1x8x512xf32> to vector<8x512xf32>
    %188 = arith.truncf %157 : vector<8x128xf32> to vector<8x128xbf16>
    %cst_71 = arith.constant dense<0.000000e+00> : vector<8x512xf32>
    %189 = tpu.matmul %188, %1, %cst_71 {dimension_numbers = #tpu.dot_dimension_numbers<[1], [0], [0], [1], [0, 0, 1, 1], [], []>} : vector<8x128xbf16>, vector<128x512xbf16>, vector<8x512xf32> -> vector<8x512xf32>
    %190 = arith.addf %187, %189 : vector<8x512xf32>
    %191 = math.tanh %190 : vector<8x512xf32>
    %192 = vector.extract_strided_slice %191 {offsets = [0, 0], sizes = [8, 128], strides = [1, 1]} : vector<8x512xf32> to vector<8x128xf32>
    %cst_72 = arith.constant 5.000000e-01 : f32
    %193 = vector.broadcast %cst_72 : f32 to vector<8x128xf32>
    %194 = arith.mulf %193, %192 : vector<8x128xf32>
    %cst_73 = arith.constant 5.000000e-01 : f32
    %195 = vector.broadcast %cst_73 : f32 to vector<8x128xf32>
    %196 = arith.addf %194, %195 : vector<8x128xf32>
    %197 = vector.extract_strided_slice %191 {offsets = [0, 128], sizes = [8, 128], strides = [1, 1]} : vector<8x512xf32> to vector<8x128xf32>
    %cst_74 = arith.constant 5.000000e-01 : f32
    %198 = vector.broadcast %cst_74 : f32 to vector<8x128xf32>
    %199 = arith.mulf %198, %197 : vector<8x128xf32>
    %cst_75 = arith.constant 5.000000e-01 : f32
    %200 = vector.broadcast %cst_75 : f32 to vector<8x128xf32>
    %201 = arith.addf %199, %200 : vector<8x128xf32>
    %202 = vector.extract_strided_slice %191 {offsets = [0, 256], sizes = [8, 128], strides = [1, 1]} : vector<8x512xf32> to vector<8x128xf32>
    %203 = vector.extract_strided_slice %191 {offsets = [0, 384], sizes = [8, 128], strides = [1, 1]} : vector<8x512xf32> to vector<8x128xf32>
    %cst_76 = arith.constant 5.000000e-01 : f32
    %204 = vector.broadcast %cst_76 : f32 to vector<8x128xf32>
    %205 = arith.mulf %204, %203 : vector<8x128xf32>
    %cst_77 = arith.constant 5.000000e-01 : f32
    %206 = vector.broadcast %cst_77 : f32 to vector<8x128xf32>
    %207 = arith.addf %205, %206 : vector<8x128xf32>
    %208 = arith.mulf %201, %155 : vector<8x128xf32>
    %209 = arith.mulf %196, %202 : vector<8x128xf32>
    %210 = arith.addf %208, %209 : vector<8x128xf32>
    %211 = math.tanh %210 : vector<8x128xf32>
    %212 = arith.mulf %207, %211 : vector<8x128xf32>
    %c64_i32_78 = arith.constant 64 : i32
    %213 = tpu.dynamic_rotate %185 by %c64_i32_78 dim 1 : vector<8x128xf32>, i32 -> vector<8x128xf32>
    %214 = arith.addf %212, %213 : vector<8x128xf32>
    %215 = arith.truncf %214 : vector<8x128xf32> to vector<8x128xbf16>
    %cst_79 = arith.constant dense<0.000000e+00> : vector<8x512xf32>
    %216 = tpu.matmul %215, %3, %cst_79 {dimension_numbers = #tpu.dot_dimension_numbers<[1], [0], [0], [1], [0, 0, 1, 1], [], []>} : vector<8x128xbf16>, vector<128x512xbf16>, vector<8x512xf32> -> vector<8x512xf32>
    %217 = vector.broadcast %4 : vector<1x512xf32> to vector<8x512xf32>
    %218 = arith.addf %216, %217 : vector<8x512xf32>
    %219 = math.tanh %218 : vector<8x512xf32>
    %220 = vector.extract_strided_slice %219 {offsets = [0, 0], sizes = [8, 128], strides = [1, 1]} : vector<8x512xf32> to vector<8x128xf32>
    %cst_80 = arith.constant 5.000000e-01 : f32
    %221 = vector.broadcast %cst_80 : f32 to vector<8x128xf32>
    %222 = arith.mulf %221, %220 : vector<8x128xf32>
    %cst_81 = arith.constant 5.000000e-01 : f32
    %223 = vector.broadcast %cst_81 : f32 to vector<8x128xf32>
    %224 = arith.addf %222, %223 : vector<8x128xf32>
    %225 = vector.extract_strided_slice %219 {offsets = [0, 128], sizes = [8, 128], strides = [1, 1]} : vector<8x512xf32> to vector<8x128xf32>
    %cst_82 = arith.constant 5.000000e-01 : f32
    %226 = vector.broadcast %cst_82 : f32 to vector<8x128xf32>
    %227 = arith.mulf %226, %225 : vector<8x128xf32>
    %cst_83 = arith.constant 5.000000e-01 : f32
    %228 = vector.broadcast %cst_83 : f32 to vector<8x128xf32>
    %229 = arith.addf %227, %228 : vector<8x128xf32>
    %230 = vector.extract_strided_slice %219 {offsets = [0, 256], sizes = [8, 128], strides = [1, 1]} : vector<8x512xf32> to vector<8x128xf32>
    %231 = vector.extract_strided_slice %219 {offsets = [0, 384], sizes = [8, 128], strides = [1, 1]} : vector<8x512xf32> to vector<8x128xf32>
    %cst_84 = arith.constant 5.000000e-01 : f32
    %232 = vector.broadcast %cst_84 : f32 to vector<8x128xf32>
    %233 = arith.mulf %232, %231 : vector<8x128xf32>
    %cst_85 = arith.constant 5.000000e-01 : f32
    %234 = vector.broadcast %cst_85 : f32 to vector<8x128xf32>
    %235 = arith.addf %233, %234 : vector<8x128xf32>
    %236 = arith.mulf %229, %183 : vector<8x128xf32>
    %237 = arith.mulf %224, %230 : vector<8x128xf32>
    %238 = arith.addf %236, %237 : vector<8x128xf32>
    %239 = math.tanh %238 : vector<8x128xf32>
    %240 = arith.mulf %235, %239 : vector<8x128xf32>
    %241 = vector.extract_strided_slice %19 {offsets = [4, 0, 0], sizes = [1, 8, 512], strides = [1, 1, 1]} : vector<8x8x512xf32> to vector<1x8x512xf32>
    %242 = vector.shape_cast %241 : vector<1x8x512xf32> to vector<8x512xf32>
    %243 = arith.truncf %212 : vector<8x128xf32> to vector<8x128xbf16>
    %cst_86 = arith.constant dense<0.000000e+00> : vector<8x512xf32>
    %244 = tpu.matmul %243, %1, %cst_86 {dimension_numbers = #tpu.dot_dimension_numbers<[1], [0], [0], [1], [0, 0, 1, 1], [], []>} : vector<8x128xbf16>, vector<128x512xbf16>, vector<8x512xf32> -> vector<8x512xf32>
    %245 = arith.addf %242, %244 : vector<8x512xf32>
    %246 = math.tanh %245 : vector<8x512xf32>
    %247 = vector.extract_strided_slice %246 {offsets = [0, 0], sizes = [8, 128], strides = [1, 1]} : vector<8x512xf32> to vector<8x128xf32>
    %cst_87 = arith.constant 5.000000e-01 : f32
    %248 = vector.broadcast %cst_87 : f32 to vector<8x128xf32>
    %249 = arith.mulf %248, %247 : vector<8x128xf32>
    %cst_88 = arith.constant 5.000000e-01 : f32
    %250 = vector.broadcast %cst_88 : f32 to vector<8x128xf32>
    %251 = arith.addf %249, %250 : vector<8x128xf32>
    %252 = vector.extract_strided_slice %246 {offsets = [0, 128], sizes = [8, 128], strides = [1, 1]} : vector<8x512xf32> to vector<8x128xf32>
    %cst_89 = arith.constant 5.000000e-01 : f32
    %253 = vector.broadcast %cst_89 : f32 to vector<8x128xf32>
    %254 = arith.mulf %253, %252 : vector<8x128xf32>
    %cst_90 = arith.constant 5.000000e-01 : f32
    %255 = vector.broadcast %cst_90 : f32 to vector<8x128xf32>
    %256 = arith.addf %254, %255 : vector<8x128xf32>
    %257 = vector.extract_strided_slice %246 {offsets = [0, 256], sizes = [8, 128], strides = [1, 1]} : vector<8x512xf32> to vector<8x128xf32>
    %258 = vector.extract_strided_slice %246 {offsets = [0, 384], sizes = [8, 128], strides = [1, 1]} : vector<8x512xf32> to vector<8x128xf32>
    %cst_91 = arith.constant 5.000000e-01 : f32
    %259 = vector.broadcast %cst_91 : f32 to vector<8x128xf32>
    %260 = arith.mulf %259, %258 : vector<8x128xf32>
    %cst_92 = arith.constant 5.000000e-01 : f32
    %261 = vector.broadcast %cst_92 : f32 to vector<8x128xf32>
    %262 = arith.addf %260, %261 : vector<8x128xf32>
    %263 = arith.mulf %256, %210 : vector<8x128xf32>
    %264 = arith.mulf %251, %257 : vector<8x128xf32>
    %265 = arith.addf %263, %264 : vector<8x128xf32>
    %266 = math.tanh %265 : vector<8x128xf32>
    %267 = arith.mulf %262, %266 : vector<8x128xf32>
    %c64_i32_93 = arith.constant 64 : i32
    %268 = tpu.dynamic_rotate %240 by %c64_i32_93 dim 1 : vector<8x128xf32>, i32 -> vector<8x128xf32>
    %269 = arith.addf %267, %268 : vector<8x128xf32>
    %270 = arith.truncf %269 : vector<8x128xf32> to vector<8x128xbf16>
    %cst_94 = arith.constant dense<0.000000e+00> : vector<8x512xf32>
    %271 = tpu.matmul %270, %3, %cst_94 {dimension_numbers = #tpu.dot_dimension_numbers<[1], [0], [0], [1], [0, 0, 1, 1], [], []>} : vector<8x128xbf16>, vector<128x512xbf16>, vector<8x512xf32> -> vector<8x512xf32>
    %272 = vector.broadcast %4 : vector<1x512xf32> to vector<8x512xf32>
    %273 = arith.addf %271, %272 : vector<8x512xf32>
    %274 = math.tanh %273 : vector<8x512xf32>
    %275 = vector.extract_strided_slice %274 {offsets = [0, 0], sizes = [8, 128], strides = [1, 1]} : vector<8x512xf32> to vector<8x128xf32>
    %cst_95 = arith.constant 5.000000e-01 : f32
    %276 = vector.broadcast %cst_95 : f32 to vector<8x128xf32>
    %277 = arith.mulf %276, %275 : vector<8x128xf32>
    %cst_96 = arith.constant 5.000000e-01 : f32
    %278 = vector.broadcast %cst_96 : f32 to vector<8x128xf32>
    %279 = arith.addf %277, %278 : vector<8x128xf32>
    %280 = vector.extract_strided_slice %274 {offsets = [0, 128], sizes = [8, 128], strides = [1, 1]} : vector<8x512xf32> to vector<8x128xf32>
    %cst_97 = arith.constant 5.000000e-01 : f32
    %281 = vector.broadcast %cst_97 : f32 to vector<8x128xf32>
    %282 = arith.mulf %281, %280 : vector<8x128xf32>
    %cst_98 = arith.constant 5.000000e-01 : f32
    %283 = vector.broadcast %cst_98 : f32 to vector<8x128xf32>
    %284 = arith.addf %282, %283 : vector<8x128xf32>
    %285 = vector.extract_strided_slice %274 {offsets = [0, 256], sizes = [8, 128], strides = [1, 1]} : vector<8x512xf32> to vector<8x128xf32>
    %286 = vector.extract_strided_slice %274 {offsets = [0, 384], sizes = [8, 128], strides = [1, 1]} : vector<8x512xf32> to vector<8x128xf32>
    %cst_99 = arith.constant 5.000000e-01 : f32
    %287 = vector.broadcast %cst_99 : f32 to vector<8x128xf32>
    %288 = arith.mulf %287, %286 : vector<8x128xf32>
    %cst_100 = arith.constant 5.000000e-01 : f32
    %289 = vector.broadcast %cst_100 : f32 to vector<8x128xf32>
    %290 = arith.addf %288, %289 : vector<8x128xf32>
    %291 = arith.mulf %284, %238 : vector<8x128xf32>
    %292 = arith.mulf %279, %285 : vector<8x128xf32>
    %293 = arith.addf %291, %292 : vector<8x128xf32>
    %294 = math.tanh %293 : vector<8x128xf32>
    %295 = arith.mulf %290, %294 : vector<8x128xf32>
    %296 = vector.extract_strided_slice %19 {offsets = [5, 0, 0], sizes = [1, 8, 512], strides = [1, 1, 1]} : vector<8x8x512xf32> to vector<1x8x512xf32>
    %297 = vector.shape_cast %296 : vector<1x8x512xf32> to vector<8x512xf32>
    %298 = arith.truncf %267 : vector<8x128xf32> to vector<8x128xbf16>
    %cst_101 = arith.constant dense<0.000000e+00> : vector<8x512xf32>
    %299 = tpu.matmul %298, %1, %cst_101 {dimension_numbers = #tpu.dot_dimension_numbers<[1], [0], [0], [1], [0, 0, 1, 1], [], []>} : vector<8x128xbf16>, vector<128x512xbf16>, vector<8x512xf32> -> vector<8x512xf32>
    %300 = arith.addf %297, %299 : vector<8x512xf32>
    %301 = math.tanh %300 : vector<8x512xf32>
    %302 = vector.extract_strided_slice %301 {offsets = [0, 0], sizes = [8, 128], strides = [1, 1]} : vector<8x512xf32> to vector<8x128xf32>
    %cst_102 = arith.constant 5.000000e-01 : f32
    %303 = vector.broadcast %cst_102 : f32 to vector<8x128xf32>
    %304 = arith.mulf %303, %302 : vector<8x128xf32>
    %cst_103 = arith.constant 5.000000e-01 : f32
    %305 = vector.broadcast %cst_103 : f32 to vector<8x128xf32>
    %306 = arith.addf %304, %305 : vector<8x128xf32>
    %307 = vector.extract_strided_slice %301 {offsets = [0, 128], sizes = [8, 128], strides = [1, 1]} : vector<8x512xf32> to vector<8x128xf32>
    %cst_104 = arith.constant 5.000000e-01 : f32
    %308 = vector.broadcast %cst_104 : f32 to vector<8x128xf32>
    %309 = arith.mulf %308, %307 : vector<8x128xf32>
    %cst_105 = arith.constant 5.000000e-01 : f32
    %310 = vector.broadcast %cst_105 : f32 to vector<8x128xf32>
    %311 = arith.addf %309, %310 : vector<8x128xf32>
    %312 = vector.extract_strided_slice %301 {offsets = [0, 256], sizes = [8, 128], strides = [1, 1]} : vector<8x512xf32> to vector<8x128xf32>
    %313 = vector.extract_strided_slice %301 {offsets = [0, 384], sizes = [8, 128], strides = [1, 1]} : vector<8x512xf32> to vector<8x128xf32>
    %cst_106 = arith.constant 5.000000e-01 : f32
    %314 = vector.broadcast %cst_106 : f32 to vector<8x128xf32>
    %315 = arith.mulf %314, %313 : vector<8x128xf32>
    %cst_107 = arith.constant 5.000000e-01 : f32
    %316 = vector.broadcast %cst_107 : f32 to vector<8x128xf32>
    %317 = arith.addf %315, %316 : vector<8x128xf32>
    %318 = arith.mulf %311, %265 : vector<8x128xf32>
    %319 = arith.mulf %306, %312 : vector<8x128xf32>
    %320 = arith.addf %318, %319 : vector<8x128xf32>
    %321 = math.tanh %320 : vector<8x128xf32>
    %322 = arith.mulf %317, %321 : vector<8x128xf32>
    %c64_i32_108 = arith.constant 64 : i32
    %323 = tpu.dynamic_rotate %295 by %c64_i32_108 dim 1 : vector<8x128xf32>, i32 -> vector<8x128xf32>
    %324 = arith.addf %322, %323 : vector<8x128xf32>
    %325 = arith.truncf %324 : vector<8x128xf32> to vector<8x128xbf16>
    %cst_109 = arith.constant dense<0.000000e+00> : vector<8x512xf32>
    %326 = tpu.matmul %325, %3, %cst_109 {dimension_numbers = #tpu.dot_dimension_numbers<[1], [0], [0], [1], [0, 0, 1, 1], [], []>} : vector<8x128xbf16>, vector<128x512xbf16>, vector<8x512xf32> -> vector<8x512xf32>
    %327 = vector.broadcast %4 : vector<1x512xf32> to vector<8x512xf32>
    %328 = arith.addf %326, %327 : vector<8x512xf32>
    %329 = math.tanh %328 : vector<8x512xf32>
    %330 = vector.extract_strided_slice %329 {offsets = [0, 0], sizes = [8, 128], strides = [1, 1]} : vector<8x512xf32> to vector<8x128xf32>
    %cst_110 = arith.constant 5.000000e-01 : f32
    %331 = vector.broadcast %cst_110 : f32 to vector<8x128xf32>
    %332 = arith.mulf %331, %330 : vector<8x128xf32>
    %cst_111 = arith.constant 5.000000e-01 : f32
    %333 = vector.broadcast %cst_111 : f32 to vector<8x128xf32>
    %334 = arith.addf %332, %333 : vector<8x128xf32>
    %335 = vector.extract_strided_slice %329 {offsets = [0, 128], sizes = [8, 128], strides = [1, 1]} : vector<8x512xf32> to vector<8x128xf32>
    %cst_112 = arith.constant 5.000000e-01 : f32
    %336 = vector.broadcast %cst_112 : f32 to vector<8x128xf32>
    %337 = arith.mulf %336, %335 : vector<8x128xf32>
    %cst_113 = arith.constant 5.000000e-01 : f32
    %338 = vector.broadcast %cst_113 : f32 to vector<8x128xf32>
    %339 = arith.addf %337, %338 : vector<8x128xf32>
    %340 = vector.extract_strided_slice %329 {offsets = [0, 256], sizes = [8, 128], strides = [1, 1]} : vector<8x512xf32> to vector<8x128xf32>
    %341 = vector.extract_strided_slice %329 {offsets = [0, 384], sizes = [8, 128], strides = [1, 1]} : vector<8x512xf32> to vector<8x128xf32>
    %cst_114 = arith.constant 5.000000e-01 : f32
    %342 = vector.broadcast %cst_114 : f32 to vector<8x128xf32>
    %343 = arith.mulf %342, %341 : vector<8x128xf32>
    %cst_115 = arith.constant 5.000000e-01 : f32
    %344 = vector.broadcast %cst_115 : f32 to vector<8x128xf32>
    %345 = arith.addf %343, %344 : vector<8x128xf32>
    %346 = arith.mulf %339, %293 : vector<8x128xf32>
    %347 = arith.mulf %334, %340 : vector<8x128xf32>
    %348 = arith.addf %346, %347 : vector<8x128xf32>
    %349 = math.tanh %348 : vector<8x128xf32>
    %350 = arith.mulf %345, %349 : vector<8x128xf32>
    %351 = vector.extract_strided_slice %19 {offsets = [6, 0, 0], sizes = [1, 8, 512], strides = [1, 1, 1]} : vector<8x8x512xf32> to vector<1x8x512xf32>
    %352 = vector.shape_cast %351 : vector<1x8x512xf32> to vector<8x512xf32>
    %353 = arith.truncf %322 : vector<8x128xf32> to vector<8x128xbf16>
    %cst_116 = arith.constant dense<0.000000e+00> : vector<8x512xf32>
    %354 = tpu.matmul %353, %1, %cst_116 {dimension_numbers = #tpu.dot_dimension_numbers<[1], [0], [0], [1], [0, 0, 1, 1], [], []>} : vector<8x128xbf16>, vector<128x512xbf16>, vector<8x512xf32> -> vector<8x512xf32>
    %355 = arith.addf %352, %354 : vector<8x512xf32>
    %356 = math.tanh %355 : vector<8x512xf32>
    %357 = vector.extract_strided_slice %356 {offsets = [0, 0], sizes = [8, 128], strides = [1, 1]} : vector<8x512xf32> to vector<8x128xf32>
    %cst_117 = arith.constant 5.000000e-01 : f32
    %358 = vector.broadcast %cst_117 : f32 to vector<8x128xf32>
    %359 = arith.mulf %358, %357 : vector<8x128xf32>
    %cst_118 = arith.constant 5.000000e-01 : f32
    %360 = vector.broadcast %cst_118 : f32 to vector<8x128xf32>
    %361 = arith.addf %359, %360 : vector<8x128xf32>
    %362 = vector.extract_strided_slice %356 {offsets = [0, 128], sizes = [8, 128], strides = [1, 1]} : vector<8x512xf32> to vector<8x128xf32>
    %cst_119 = arith.constant 5.000000e-01 : f32
    %363 = vector.broadcast %cst_119 : f32 to vector<8x128xf32>
    %364 = arith.mulf %363, %362 : vector<8x128xf32>
    %cst_120 = arith.constant 5.000000e-01 : f32
    %365 = vector.broadcast %cst_120 : f32 to vector<8x128xf32>
    %366 = arith.addf %364, %365 : vector<8x128xf32>
    %367 = vector.extract_strided_slice %356 {offsets = [0, 256], sizes = [8, 128], strides = [1, 1]} : vector<8x512xf32> to vector<8x128xf32>
    %368 = vector.extract_strided_slice %356 {offsets = [0, 384], sizes = [8, 128], strides = [1, 1]} : vector<8x512xf32> to vector<8x128xf32>
    %cst_121 = arith.constant 5.000000e-01 : f32
    %369 = vector.broadcast %cst_121 : f32 to vector<8x128xf32>
    %370 = arith.mulf %369, %368 : vector<8x128xf32>
    %cst_122 = arith.constant 5.000000e-01 : f32
    %371 = vector.broadcast %cst_122 : f32 to vector<8x128xf32>
    %372 = arith.addf %370, %371 : vector<8x128xf32>
    %373 = arith.mulf %366, %320 : vector<8x128xf32>
    %374 = arith.mulf %361, %367 : vector<8x128xf32>
    %375 = arith.addf %373, %374 : vector<8x128xf32>
    %376 = math.tanh %375 : vector<8x128xf32>
    %377 = arith.mulf %372, %376 : vector<8x128xf32>
    %c64_i32_123 = arith.constant 64 : i32
    %378 = tpu.dynamic_rotate %350 by %c64_i32_123 dim 1 : vector<8x128xf32>, i32 -> vector<8x128xf32>
    %379 = arith.addf %377, %378 : vector<8x128xf32>
    %380 = arith.truncf %379 : vector<8x128xf32> to vector<8x128xbf16>
    %cst_124 = arith.constant dense<0.000000e+00> : vector<8x512xf32>
    %381 = tpu.matmul %380, %3, %cst_124 {dimension_numbers = #tpu.dot_dimension_numbers<[1], [0], [0], [1], [0, 0, 1, 1], [], []>} : vector<8x128xbf16>, vector<128x512xbf16>, vector<8x512xf32> -> vector<8x512xf32>
    %382 = vector.broadcast %4 : vector<1x512xf32> to vector<8x512xf32>
    %383 = arith.addf %381, %382 : vector<8x512xf32>
    %384 = math.tanh %383 : vector<8x512xf32>
    %385 = vector.extract_strided_slice %384 {offsets = [0, 0], sizes = [8, 128], strides = [1, 1]} : vector<8x512xf32> to vector<8x128xf32>
    %cst_125 = arith.constant 5.000000e-01 : f32
    %386 = vector.broadcast %cst_125 : f32 to vector<8x128xf32>
    %387 = arith.mulf %386, %385 : vector<8x128xf32>
    %cst_126 = arith.constant 5.000000e-01 : f32
    %388 = vector.broadcast %cst_126 : f32 to vector<8x128xf32>
    %389 = arith.addf %387, %388 : vector<8x128xf32>
    %390 = vector.extract_strided_slice %384 {offsets = [0, 128], sizes = [8, 128], strides = [1, 1]} : vector<8x512xf32> to vector<8x128xf32>
    %cst_127 = arith.constant 5.000000e-01 : f32
    %391 = vector.broadcast %cst_127 : f32 to vector<8x128xf32>
    %392 = arith.mulf %391, %390 : vector<8x128xf32>
    %cst_128 = arith.constant 5.000000e-01 : f32
    %393 = vector.broadcast %cst_128 : f32 to vector<8x128xf32>
    %394 = arith.addf %392, %393 : vector<8x128xf32>
    %395 = vector.extract_strided_slice %384 {offsets = [0, 256], sizes = [8, 128], strides = [1, 1]} : vector<8x512xf32> to vector<8x128xf32>
    %396 = vector.extract_strided_slice %384 {offsets = [0, 384], sizes = [8, 128], strides = [1, 1]} : vector<8x512xf32> to vector<8x128xf32>
    %cst_129 = arith.constant 5.000000e-01 : f32
    %397 = vector.broadcast %cst_129 : f32 to vector<8x128xf32>
    %398 = arith.mulf %397, %396 : vector<8x128xf32>
    %cst_130 = arith.constant 5.000000e-01 : f32
    %399 = vector.broadcast %cst_130 : f32 to vector<8x128xf32>
    %400 = arith.addf %398, %399 : vector<8x128xf32>
    %401 = arith.mulf %394, %348 : vector<8x128xf32>
    %402 = arith.mulf %389, %395 : vector<8x128xf32>
    %403 = arith.addf %401, %402 : vector<8x128xf32>
    %404 = math.tanh %403 : vector<8x128xf32>
    %405 = arith.mulf %400, %404 : vector<8x128xf32>
    %406 = vector.extract_strided_slice %19 {offsets = [7, 0, 0], sizes = [1, 8, 512], strides = [1, 1, 1]} : vector<8x8x512xf32> to vector<1x8x512xf32>
    %407 = vector.shape_cast %406 : vector<1x8x512xf32> to vector<8x512xf32>
    %408 = arith.truncf %377 : vector<8x128xf32> to vector<8x128xbf16>
    %cst_131 = arith.constant dense<0.000000e+00> : vector<8x512xf32>
    %409 = tpu.matmul %408, %1, %cst_131 {dimension_numbers = #tpu.dot_dimension_numbers<[1], [0], [0], [1], [0, 0, 1, 1], [], []>} : vector<8x128xbf16>, vector<128x512xbf16>, vector<8x512xf32> -> vector<8x512xf32>
    %410 = arith.addf %407, %409 : vector<8x512xf32>
    %411 = math.tanh %410 : vector<8x512xf32>
    %412 = vector.extract_strided_slice %411 {offsets = [0, 0], sizes = [8, 128], strides = [1, 1]} : vector<8x512xf32> to vector<8x128xf32>
    %cst_132 = arith.constant 5.000000e-01 : f32
    %413 = vector.broadcast %cst_132 : f32 to vector<8x128xf32>
    %414 = arith.mulf %413, %412 : vector<8x128xf32>
    %cst_133 = arith.constant 5.000000e-01 : f32
    %415 = vector.broadcast %cst_133 : f32 to vector<8x128xf32>
    %416 = arith.addf %414, %415 : vector<8x128xf32>
    %417 = vector.extract_strided_slice %411 {offsets = [0, 128], sizes = [8, 128], strides = [1, 1]} : vector<8x512xf32> to vector<8x128xf32>
    %cst_134 = arith.constant 5.000000e-01 : f32
    %418 = vector.broadcast %cst_134 : f32 to vector<8x128xf32>
    %419 = arith.mulf %418, %417 : vector<8x128xf32>
    %cst_135 = arith.constant 5.000000e-01 : f32
    %420 = vector.broadcast %cst_135 : f32 to vector<8x128xf32>
    %421 = arith.addf %419, %420 : vector<8x128xf32>
    %422 = vector.extract_strided_slice %411 {offsets = [0, 256], sizes = [8, 128], strides = [1, 1]} : vector<8x512xf32> to vector<8x128xf32>
    %423 = vector.extract_strided_slice %411 {offsets = [0, 384], sizes = [8, 128], strides = [1, 1]} : vector<8x512xf32> to vector<8x128xf32>
    %cst_136 = arith.constant 5.000000e-01 : f32
    %424 = vector.broadcast %cst_136 : f32 to vector<8x128xf32>
    %425 = arith.mulf %424, %423 : vector<8x128xf32>
    %cst_137 = arith.constant 5.000000e-01 : f32
    %426 = vector.broadcast %cst_137 : f32 to vector<8x128xf32>
    %427 = arith.addf %425, %426 : vector<8x128xf32>
    %428 = arith.mulf %421, %375 : vector<8x128xf32>
    %429 = arith.mulf %416, %422 : vector<8x128xf32>
    %430 = arith.addf %428, %429 : vector<8x128xf32>
    %431 = math.tanh %430 : vector<8x128xf32>
    %432 = arith.mulf %427, %431 : vector<8x128xf32>
    %c64_i32_138 = arith.constant 64 : i32
    %433 = tpu.dynamic_rotate %405 by %c64_i32_138 dim 1 : vector<8x128xf32>, i32 -> vector<8x128xf32>
    %434 = arith.addf %432, %433 : vector<8x128xf32>
    %435 = arith.truncf %434 : vector<8x128xf32> to vector<8x128xbf16>
    %cst_139 = arith.constant dense<0.000000e+00> : vector<8x512xf32>
    %436 = tpu.matmul %435, %3, %cst_139 {dimension_numbers = #tpu.dot_dimension_numbers<[1], [0], [0], [1], [0, 0, 1, 1], [], []>} : vector<8x128xbf16>, vector<128x512xbf16>, vector<8x512xf32> -> vector<8x512xf32>
    %437 = vector.broadcast %4 : vector<1x512xf32> to vector<8x512xf32>
    %438 = arith.addf %436, %437 : vector<8x512xf32>
    %439 = math.tanh %438 : vector<8x512xf32>
    %440 = vector.extract_strided_slice %439 {offsets = [0, 0], sizes = [8, 128], strides = [1, 1]} : vector<8x512xf32> to vector<8x128xf32>
    %cst_140 = arith.constant 5.000000e-01 : f32
    %441 = vector.broadcast %cst_140 : f32 to vector<8x128xf32>
    %442 = arith.mulf %441, %440 : vector<8x128xf32>
    %cst_141 = arith.constant 5.000000e-01 : f32
    %443 = vector.broadcast %cst_141 : f32 to vector<8x128xf32>
    %444 = arith.addf %442, %443 : vector<8x128xf32>
    %445 = vector.extract_strided_slice %439 {offsets = [0, 128], sizes = [8, 128], strides = [1, 1]} : vector<8x512xf32> to vector<8x128xf32>
    %cst_142 = arith.constant 5.000000e-01 : f32
    %446 = vector.broadcast %cst_142 : f32 to vector<8x128xf32>
    %447 = arith.mulf %446, %445 : vector<8x128xf32>
    %cst_143 = arith.constant 5.000000e-01 : f32
    %448 = vector.broadcast %cst_143 : f32 to vector<8x128xf32>
    %449 = arith.addf %447, %448 : vector<8x128xf32>
    %450 = vector.extract_strided_slice %439 {offsets = [0, 256], sizes = [8, 128], strides = [1, 1]} : vector<8x512xf32> to vector<8x128xf32>
    %451 = vector.extract_strided_slice %439 {offsets = [0, 384], sizes = [8, 128], strides = [1, 1]} : vector<8x512xf32> to vector<8x128xf32>
    %cst_144 = arith.constant 5.000000e-01 : f32
    %452 = vector.broadcast %cst_144 : f32 to vector<8x128xf32>
    %453 = arith.mulf %452, %451 : vector<8x128xf32>
    %cst_145 = arith.constant 5.000000e-01 : f32
    %454 = vector.broadcast %cst_145 : f32 to vector<8x128xf32>
    %455 = arith.addf %453, %454 : vector<8x128xf32>
    %456 = arith.mulf %449, %403 : vector<8x128xf32>
    %457 = arith.mulf %444, %450 : vector<8x128xf32>
    %458 = arith.addf %456, %457 : vector<8x128xf32>
    %459 = math.tanh %458 : vector<8x128xf32>
    %460 = arith.mulf %455, %459 : vector<8x128xf32>
    %c64_i32_146 = arith.constant 64 : i32
    %461 = tpu.dynamic_rotate %432 by %c64_i32_146 dim 1 : vector<8x128xf32>, i32 -> vector<8x128xf32>
    %462 = arith.truncf %461 : vector<8x128xf32> to vector<8x128xbf16>
    %cst_147 = arith.constant dense<0.000000e+00> : vector<8x512xf32>
    %463 = tpu.matmul %462, %5, %cst_147 {dimension_numbers = #tpu.dot_dimension_numbers<[1], [0], [0], [1], [0, 0, 1, 1], [], []>} : vector<8x128xbf16>, vector<128x512xbf16>, vector<8x512xf32> -> vector<8x512xf32>
    %464 = vector.broadcast %6 : vector<1x512xf32> to vector<8x512xf32>
    %465 = arith.addf %463, %464 : vector<8x512xf32>
    %466 = math.tanh %465 : vector<8x512xf32>
    %467 = vector.extract_strided_slice %466 {offsets = [0, 0], sizes = [8, 128], strides = [1, 1]} : vector<8x512xf32> to vector<8x128xf32>
    %cst_148 = arith.constant 5.000000e-01 : f32
    %468 = vector.broadcast %cst_148 : f32 to vector<8x128xf32>
    %469 = arith.mulf %468, %467 : vector<8x128xf32>
    %cst_149 = arith.constant 5.000000e-01 : f32
    %470 = vector.broadcast %cst_149 : f32 to vector<8x128xf32>
    %471 = arith.addf %469, %470 : vector<8x128xf32>
    %472 = vector.extract_strided_slice %466 {offsets = [0, 128], sizes = [8, 128], strides = [1, 1]} : vector<8x512xf32> to vector<8x128xf32>
    %cst_150 = arith.constant 5.000000e-01 : f32
    %473 = vector.broadcast %cst_150 : f32 to vector<8x128xf32>
    %474 = arith.mulf %473, %472 : vector<8x128xf32>
    %cst_151 = arith.constant 5.000000e-01 : f32
    %475 = vector.broadcast %cst_151 : f32 to vector<8x128xf32>
    %476 = arith.addf %474, %475 : vector<8x128xf32>
    %477 = vector.extract_strided_slice %466 {offsets = [0, 256], sizes = [8, 128], strides = [1, 1]} : vector<8x512xf32> to vector<8x128xf32>
    %478 = vector.extract_strided_slice %466 {offsets = [0, 384], sizes = [8, 128], strides = [1, 1]} : vector<8x512xf32> to vector<8x128xf32>
    %cst_152 = arith.constant 5.000000e-01 : f32
    %479 = vector.broadcast %cst_152 : f32 to vector<8x128xf32>
    %480 = arith.mulf %479, %478 : vector<8x128xf32>
    %cst_153 = arith.constant 5.000000e-01 : f32
    %481 = vector.broadcast %cst_153 : f32 to vector<8x128xf32>
    %482 = arith.addf %480, %481 : vector<8x128xf32>
    %483 = arith.mulf %476, %430 : vector<8x128xf32>
    %484 = arith.mulf %471, %477 : vector<8x128xf32>
    %485 = arith.addf %483, %484 : vector<8x128xf32>
    %486 = math.tanh %485 : vector<8x128xf32>
    %487 = arith.mulf %482, %486 : vector<8x128xf32>
    %c64_i32_154 = arith.constant 64 : i32
    %488 = tpu.dynamic_rotate %460 by %c64_i32_154 dim 1 : vector<8x128xf32>, i32 -> vector<8x128xf32>
    %489 = arith.addf %487, %488 : vector<8x128xf32>
    %490 = arith.truncf %489 : vector<8x128xf32> to vector<8x128xbf16>
    %cst_155 = arith.constant dense<0.000000e+00> : vector<8x512xf32>
    %491 = tpu.matmul %490, %8, %cst_155 {dimension_numbers = #tpu.dot_dimension_numbers<[1], [0], [0], [1], [0, 0, 1, 1], [], []>} : vector<8x128xbf16>, vector<128x512xbf16>, vector<8x512xf32> -> vector<8x512xf32>
    %492 = vector.broadcast %9 : vector<1x512xf32> to vector<8x512xf32>
    %493 = arith.addf %491, %492 : vector<8x512xf32>
    %494 = math.tanh %493 : vector<8x512xf32>
    %495 = vector.extract_strided_slice %494 {offsets = [0, 0], sizes = [8, 128], strides = [1, 1]} : vector<8x512xf32> to vector<8x128xf32>
    %cst_156 = arith.constant 5.000000e-01 : f32
    %496 = vector.broadcast %cst_156 : f32 to vector<8x128xf32>
    %497 = arith.mulf %496, %495 : vector<8x128xf32>
    %cst_157 = arith.constant 5.000000e-01 : f32
    %498 = vector.broadcast %cst_157 : f32 to vector<8x128xf32>
    %499 = arith.addf %497, %498 : vector<8x128xf32>
    %500 = vector.extract_strided_slice %494 {offsets = [0, 128], sizes = [8, 128], strides = [1, 1]} : vector<8x512xf32> to vector<8x128xf32>
    %cst_158 = arith.constant 5.000000e-01 : f32
    %501 = vector.broadcast %cst_158 : f32 to vector<8x128xf32>
    %502 = arith.mulf %501, %500 : vector<8x128xf32>
    %cst_159 = arith.constant 5.000000e-01 : f32
    %503 = vector.broadcast %cst_159 : f32 to vector<8x128xf32>
    %504 = arith.addf %502, %503 : vector<8x128xf32>
    %505 = vector.extract_strided_slice %494 {offsets = [0, 256], sizes = [8, 128], strides = [1, 1]} : vector<8x512xf32> to vector<8x128xf32>
    %506 = vector.extract_strided_slice %494 {offsets = [0, 384], sizes = [8, 128], strides = [1, 1]} : vector<8x512xf32> to vector<8x128xf32>
    %cst_160 = arith.constant 5.000000e-01 : f32
    %507 = vector.broadcast %cst_160 : f32 to vector<8x128xf32>
    %508 = arith.mulf %507, %506 : vector<8x128xf32>
    %cst_161 = arith.constant 5.000000e-01 : f32
    %509 = vector.broadcast %cst_161 : f32 to vector<8x128xf32>
    %510 = arith.addf %508, %509 : vector<8x128xf32>
    %511 = arith.mulf %504, %458 : vector<8x128xf32>
    %512 = arith.mulf %499, %505 : vector<8x128xf32>
    %513 = arith.addf %511, %512 : vector<8x128xf32>
    %514 = math.tanh %513 : vector<8x128xf32>
    %515 = arith.mulf %510, %514 : vector<8x128xf32>
    %c64_i32_162 = arith.constant 64 : i32
    %516 = tpu.dynamic_rotate %487 by %c64_i32_162 dim 1 : vector<8x128xf32>, i32 -> vector<8x128xf32>
    %517 = arith.addf %515, %516 : vector<8x128xf32>
    %518 = arith.truncf %517 : vector<8x128xf32> to vector<8x128xbf16>
    %cst_163 = arith.constant dense<0.000000e+00> : vector<8x512xf32>
    %519 = tpu.matmul %518, %5, %cst_163 {dimension_numbers = #tpu.dot_dimension_numbers<[1], [0], [0], [1], [0, 0, 1, 1], [], []>} : vector<8x128xbf16>, vector<128x512xbf16>, vector<8x512xf32> -> vector<8x512xf32>
    %520 = vector.broadcast %7 : vector<1x512xf32> to vector<8x512xf32>
    %521 = arith.addf %519, %520 : vector<8x512xf32>
    %522 = math.tanh %521 : vector<8x512xf32>
    %523 = vector.extract_strided_slice %522 {offsets = [0, 0], sizes = [8, 128], strides = [1, 1]} : vector<8x512xf32> to vector<8x128xf32>
    %cst_164 = arith.constant 5.000000e-01 : f32
    %524 = vector.broadcast %cst_164 : f32 to vector<8x128xf32>
    %525 = arith.mulf %524, %523 : vector<8x128xf32>
    %cst_165 = arith.constant 5.000000e-01 : f32
    %526 = vector.broadcast %cst_165 : f32 to vector<8x128xf32>
    %527 = arith.addf %525, %526 : vector<8x128xf32>
    %528 = vector.extract_strided_slice %522 {offsets = [0, 128], sizes = [8, 128], strides = [1, 1]} : vector<8x512xf32> to vector<8x128xf32>
    %cst_166 = arith.constant 5.000000e-01 : f32
    %529 = vector.broadcast %cst_166 : f32 to vector<8x128xf32>
    %530 = arith.mulf %529, %528 : vector<8x128xf32>
    %cst_167 = arith.constant 5.000000e-01 : f32
    %531 = vector.broadcast %cst_167 : f32 to vector<8x128xf32>
    %532 = arith.addf %530, %531 : vector<8x128xf32>
    %533 = vector.extract_strided_slice %522 {offsets = [0, 256], sizes = [8, 128], strides = [1, 1]} : vector<8x512xf32> to vector<8x128xf32>
    %534 = vector.extract_strided_slice %522 {offsets = [0, 384], sizes = [8, 128], strides = [1, 1]} : vector<8x512xf32> to vector<8x128xf32>
    %cst_168 = arith.constant 5.000000e-01 : f32
    %535 = vector.broadcast %cst_168 : f32 to vector<8x128xf32>
    %536 = arith.mulf %535, %534 : vector<8x128xf32>
    %cst_169 = arith.constant 5.000000e-01 : f32
    %537 = vector.broadcast %cst_169 : f32 to vector<8x128xf32>
    %538 = arith.addf %536, %537 : vector<8x128xf32>
    %539 = arith.mulf %532, %485 : vector<8x128xf32>
    %540 = arith.mulf %527, %533 : vector<8x128xf32>
    %541 = arith.addf %539, %540 : vector<8x128xf32>
    %542 = math.tanh %541 : vector<8x128xf32>
    %543 = arith.mulf %538, %542 : vector<8x128xf32>
    %c64_i32_170 = arith.constant 64 : i32
    %544 = tpu.dynamic_rotate %515 by %c64_i32_170 dim 1 : vector<8x128xf32>, i32 -> vector<8x128xf32>
    %545 = arith.addf %543, %544 : vector<8x128xf32>
    %546 = arith.truncf %545 : vector<8x128xf32> to vector<8x128xbf16>
    %cst_171 = arith.constant dense<0.000000e+00> : vector<8x512xf32>
    %547 = tpu.matmul %546, %8, %cst_171 {dimension_numbers = #tpu.dot_dimension_numbers<[1], [0], [0], [1], [0, 0, 1, 1], [], []>} : vector<8x128xbf16>, vector<128x512xbf16>, vector<8x512xf32> -> vector<8x512xf32>
    %548 = vector.broadcast %9 : vector<1x512xf32> to vector<8x512xf32>
    %549 = arith.addf %547, %548 : vector<8x512xf32>
    %550 = math.tanh %549 : vector<8x512xf32>
    %551 = vector.extract_strided_slice %550 {offsets = [0, 0], sizes = [8, 128], strides = [1, 1]} : vector<8x512xf32> to vector<8x128xf32>
    %cst_172 = arith.constant 5.000000e-01 : f32
    %552 = vector.broadcast %cst_172 : f32 to vector<8x128xf32>
    %553 = arith.mulf %552, %551 : vector<8x128xf32>
    %cst_173 = arith.constant 5.000000e-01 : f32
    %554 = vector.broadcast %cst_173 : f32 to vector<8x128xf32>
    %555 = arith.addf %553, %554 : vector<8x128xf32>
    %556 = vector.extract_strided_slice %550 {offsets = [0, 128], sizes = [8, 128], strides = [1, 1]} : vector<8x512xf32> to vector<8x128xf32>
    %cst_174 = arith.constant 5.000000e-01 : f32
    %557 = vector.broadcast %cst_174 : f32 to vector<8x128xf32>
    %558 = arith.mulf %557, %556 : vector<8x128xf32>
    %cst_175 = arith.constant 5.000000e-01 : f32
    %559 = vector.broadcast %cst_175 : f32 to vector<8x128xf32>
    %560 = arith.addf %558, %559 : vector<8x128xf32>
    %561 = vector.extract_strided_slice %550 {offsets = [0, 256], sizes = [8, 128], strides = [1, 1]} : vector<8x512xf32> to vector<8x128xf32>
    %562 = vector.extract_strided_slice %550 {offsets = [0, 384], sizes = [8, 128], strides = [1, 1]} : vector<8x512xf32> to vector<8x128xf32>
    %cst_176 = arith.constant 5.000000e-01 : f32
    %563 = vector.broadcast %cst_176 : f32 to vector<8x128xf32>
    %564 = arith.mulf %563, %562 : vector<8x128xf32>
    %cst_177 = arith.constant 5.000000e-01 : f32
    %565 = vector.broadcast %cst_177 : f32 to vector<8x128xf32>
    %566 = arith.addf %564, %565 : vector<8x128xf32>
    %567 = arith.mulf %560, %513 : vector<8x128xf32>
    %568 = arith.mulf %555, %561 : vector<8x128xf32>
    %569 = arith.addf %567, %568 : vector<8x128xf32>
    %570 = math.tanh %569 : vector<8x128xf32>
    %571 = arith.mulf %566, %570 : vector<8x128xf32>
    %c64_i32_178 = arith.constant 64 : i32
    %572 = tpu.dynamic_rotate %543 by %c64_i32_178 dim 1 : vector<8x128xf32>, i32 -> vector<8x128xf32>
    %573 = arith.addf %571, %572 : vector<8x128xf32>
    %574 = arith.truncf %573 : vector<8x128xf32> to vector<8x128xbf16>
    %cst_179 = arith.constant dense<0.000000e+00> : vector<8x512xf32>
    %575 = tpu.matmul %574, %5, %cst_179 {dimension_numbers = #tpu.dot_dimension_numbers<[1], [0], [0], [1], [0, 0, 1, 1], [], []>} : vector<8x128xbf16>, vector<128x512xbf16>, vector<8x512xf32> -> vector<8x512xf32>
    %576 = vector.broadcast %7 : vector<1x512xf32> to vector<8x512xf32>
    %577 = arith.addf %575, %576 : vector<8x512xf32>
    %578 = math.tanh %577 : vector<8x512xf32>
    %579 = vector.extract_strided_slice %578 {offsets = [0, 0], sizes = [8, 128], strides = [1, 1]} : vector<8x512xf32> to vector<8x128xf32>
    %cst_180 = arith.constant 5.000000e-01 : f32
    %580 = vector.broadcast %cst_180 : f32 to vector<8x128xf32>
    %581 = arith.mulf %580, %579 : vector<8x128xf32>
    %cst_181 = arith.constant 5.000000e-01 : f32
    %582 = vector.broadcast %cst_181 : f32 to vector<8x128xf32>
    %583 = arith.addf %581, %582 : vector<8x128xf32>
    %584 = vector.extract_strided_slice %578 {offsets = [0, 128], sizes = [8, 128], strides = [1, 1]} : vector<8x512xf32> to vector<8x128xf32>
    %cst_182 = arith.constant 5.000000e-01 : f32
    %585 = vector.broadcast %cst_182 : f32 to vector<8x128xf32>
    %586 = arith.mulf %585, %584 : vector<8x128xf32>
    %cst_183 = arith.constant 5.000000e-01 : f32
    %587 = vector.broadcast %cst_183 : f32 to vector<8x128xf32>
    %588 = arith.addf %586, %587 : vector<8x128xf32>
    %589 = vector.extract_strided_slice %578 {offsets = [0, 256], sizes = [8, 128], strides = [1, 1]} : vector<8x512xf32> to vector<8x128xf32>
    %590 = vector.extract_strided_slice %578 {offsets = [0, 384], sizes = [8, 128], strides = [1, 1]} : vector<8x512xf32> to vector<8x128xf32>
    %cst_184 = arith.constant 5.000000e-01 : f32
    %591 = vector.broadcast %cst_184 : f32 to vector<8x128xf32>
    %592 = arith.mulf %591, %590 : vector<8x128xf32>
    %cst_185 = arith.constant 5.000000e-01 : f32
    %593 = vector.broadcast %cst_185 : f32 to vector<8x128xf32>
    %594 = arith.addf %592, %593 : vector<8x128xf32>
    %595 = arith.mulf %588, %541 : vector<8x128xf32>
    %596 = arith.mulf %583, %589 : vector<8x128xf32>
    %597 = arith.addf %595, %596 : vector<8x128xf32>
    %598 = math.tanh %597 : vector<8x128xf32>
    %599 = arith.mulf %594, %598 : vector<8x128xf32>
    %c64_i32_186 = arith.constant 64 : i32
    %600 = tpu.dynamic_rotate %571 by %c64_i32_186 dim 1 : vector<8x128xf32>, i32 -> vector<8x128xf32>
    %601 = arith.addf %599, %600 : vector<8x128xf32>
    %602 = arith.truncf %601 : vector<8x128xf32> to vector<8x128xbf16>
    %cst_187 = arith.constant dense<0.000000e+00> : vector<8x512xf32>
    %603 = tpu.matmul %602, %8, %cst_187 {dimension_numbers = #tpu.dot_dimension_numbers<[1], [0], [0], [1], [0, 0, 1, 1], [], []>} : vector<8x128xbf16>, vector<128x512xbf16>, vector<8x512xf32> -> vector<8x512xf32>
    %604 = vector.broadcast %9 : vector<1x512xf32> to vector<8x512xf32>
    %605 = arith.addf %603, %604 : vector<8x512xf32>
    %606 = math.tanh %605 : vector<8x512xf32>
    %607 = vector.extract_strided_slice %606 {offsets = [0, 0], sizes = [8, 128], strides = [1, 1]} : vector<8x512xf32> to vector<8x128xf32>
    %cst_188 = arith.constant 5.000000e-01 : f32
    %608 = vector.broadcast %cst_188 : f32 to vector<8x128xf32>
    %609 = arith.mulf %608, %607 : vector<8x128xf32>
    %cst_189 = arith.constant 5.000000e-01 : f32
    %610 = vector.broadcast %cst_189 : f32 to vector<8x128xf32>
    %611 = arith.addf %609, %610 : vector<8x128xf32>
    %612 = vector.extract_strided_slice %606 {offsets = [0, 128], sizes = [8, 128], strides = [1, 1]} : vector<8x512xf32> to vector<8x128xf32>
    %cst_190 = arith.constant 5.000000e-01 : f32
    %613 = vector.broadcast %cst_190 : f32 to vector<8x128xf32>
    %614 = arith.mulf %613, %612 : vector<8x128xf32>
    %cst_191 = arith.constant 5.000000e-01 : f32
    %615 = vector.broadcast %cst_191 : f32 to vector<8x128xf32>
    %616 = arith.addf %614, %615 : vector<8x128xf32>
    %617 = vector.extract_strided_slice %606 {offsets = [0, 256], sizes = [8, 128], strides = [1, 1]} : vector<8x512xf32> to vector<8x128xf32>
    %618 = vector.extract_strided_slice %606 {offsets = [0, 384], sizes = [8, 128], strides = [1, 1]} : vector<8x512xf32> to vector<8x128xf32>
    %cst_192 = arith.constant 5.000000e-01 : f32
    %619 = vector.broadcast %cst_192 : f32 to vector<8x128xf32>
    %620 = arith.mulf %619, %618 : vector<8x128xf32>
    %cst_193 = arith.constant 5.000000e-01 : f32
    %621 = vector.broadcast %cst_193 : f32 to vector<8x128xf32>
    %622 = arith.addf %620, %621 : vector<8x128xf32>
    %623 = arith.mulf %616, %569 : vector<8x128xf32>
    %624 = arith.mulf %611, %617 : vector<8x128xf32>
    %625 = arith.addf %623, %624 : vector<8x128xf32>
    %626 = math.tanh %625 : vector<8x128xf32>
    %627 = arith.mulf %622, %626 : vector<8x128xf32>
    %c64_i32_194 = arith.constant 64 : i32
    %628 = tpu.dynamic_rotate %599 by %c64_i32_194 dim 1 : vector<8x128xf32>, i32 -> vector<8x128xf32>
    %629 = arith.addf %627, %628 : vector<8x128xf32>
    %630 = arith.truncf %629 : vector<8x128xf32> to vector<8x128xbf16>
    %cst_195 = arith.constant dense<0.000000e+00> : vector<8x512xf32>
    %631 = tpu.matmul %630, %5, %cst_195 {dimension_numbers = #tpu.dot_dimension_numbers<[1], [0], [0], [1], [0, 0, 1, 1], [], []>} : vector<8x128xbf16>, vector<128x512xbf16>, vector<8x512xf32> -> vector<8x512xf32>
    %632 = vector.broadcast %7 : vector<1x512xf32> to vector<8x512xf32>
    %633 = arith.addf %631, %632 : vector<8x512xf32>
    %634 = math.tanh %633 : vector<8x512xf32>
    %635 = vector.extract_strided_slice %634 {offsets = [0, 0], sizes = [8, 128], strides = [1, 1]} : vector<8x512xf32> to vector<8x128xf32>
    %cst_196 = arith.constant 5.000000e-01 : f32
    %636 = vector.broadcast %cst_196 : f32 to vector<8x128xf32>
    %637 = arith.mulf %636, %635 : vector<8x128xf32>
    %cst_197 = arith.constant 5.000000e-01 : f32
    %638 = vector.broadcast %cst_197 : f32 to vector<8x128xf32>
    %639 = arith.addf %637, %638 : vector<8x128xf32>
    %640 = vector.extract_strided_slice %634 {offsets = [0, 128], sizes = [8, 128], strides = [1, 1]} : vector<8x512xf32> to vector<8x128xf32>
    %cst_198 = arith.constant 5.000000e-01 : f32
    %641 = vector.broadcast %cst_198 : f32 to vector<8x128xf32>
    %642 = arith.mulf %641, %640 : vector<8x128xf32>
    %cst_199 = arith.constant 5.000000e-01 : f32
    %643 = vector.broadcast %cst_199 : f32 to vector<8x128xf32>
    %644 = arith.addf %642, %643 : vector<8x128xf32>
    %645 = vector.extract_strided_slice %634 {offsets = [0, 256], sizes = [8, 128], strides = [1, 1]} : vector<8x512xf32> to vector<8x128xf32>
    %646 = vector.extract_strided_slice %634 {offsets = [0, 384], sizes = [8, 128], strides = [1, 1]} : vector<8x512xf32> to vector<8x128xf32>
    %cst_200 = arith.constant 5.000000e-01 : f32
    %647 = vector.broadcast %cst_200 : f32 to vector<8x128xf32>
    %648 = arith.mulf %647, %646 : vector<8x128xf32>
    %cst_201 = arith.constant 5.000000e-01 : f32
    %649 = vector.broadcast %cst_201 : f32 to vector<8x128xf32>
    %650 = arith.addf %648, %649 : vector<8x128xf32>
    %651 = arith.mulf %644, %597 : vector<8x128xf32>
    %652 = arith.mulf %639, %645 : vector<8x128xf32>
    %653 = arith.addf %651, %652 : vector<8x128xf32>
    %654 = math.tanh %653 : vector<8x128xf32>
    %655 = arith.mulf %650, %654 : vector<8x128xf32>
    %c64_i32_202 = arith.constant 64 : i32
    %656 = tpu.dynamic_rotate %627 by %c64_i32_202 dim 1 : vector<8x128xf32>, i32 -> vector<8x128xf32>
    %657 = arith.addf %655, %656 : vector<8x128xf32>
    %658 = arith.truncf %657 : vector<8x128xf32> to vector<8x128xbf16>
    %cst_203 = arith.constant dense<0.000000e+00> : vector<8x512xf32>
    %659 = tpu.matmul %658, %8, %cst_203 {dimension_numbers = #tpu.dot_dimension_numbers<[1], [0], [0], [1], [0, 0, 1, 1], [], []>} : vector<8x128xbf16>, vector<128x512xbf16>, vector<8x512xf32> -> vector<8x512xf32>
    %660 = vector.broadcast %9 : vector<1x512xf32> to vector<8x512xf32>
    %661 = arith.addf %659, %660 : vector<8x512xf32>
    %662 = math.tanh %661 : vector<8x512xf32>
    %663 = vector.extract_strided_slice %662 {offsets = [0, 0], sizes = [8, 128], strides = [1, 1]} : vector<8x512xf32> to vector<8x128xf32>
    %cst_204 = arith.constant 5.000000e-01 : f32
    %664 = vector.broadcast %cst_204 : f32 to vector<8x128xf32>
    %665 = arith.mulf %664, %663 : vector<8x128xf32>
    %cst_205 = arith.constant 5.000000e-01 : f32
    %666 = vector.broadcast %cst_205 : f32 to vector<8x128xf32>
    %667 = arith.addf %665, %666 : vector<8x128xf32>
    %668 = vector.extract_strided_slice %662 {offsets = [0, 128], sizes = [8, 128], strides = [1, 1]} : vector<8x512xf32> to vector<8x128xf32>
    %cst_206 = arith.constant 5.000000e-01 : f32
    %669 = vector.broadcast %cst_206 : f32 to vector<8x128xf32>
    %670 = arith.mulf %669, %668 : vector<8x128xf32>
    %cst_207 = arith.constant 5.000000e-01 : f32
    %671 = vector.broadcast %cst_207 : f32 to vector<8x128xf32>
    %672 = arith.addf %670, %671 : vector<8x128xf32>
    %673 = vector.extract_strided_slice %662 {offsets = [0, 256], sizes = [8, 128], strides = [1, 1]} : vector<8x512xf32> to vector<8x128xf32>
    %674 = vector.extract_strided_slice %662 {offsets = [0, 384], sizes = [8, 128], strides = [1, 1]} : vector<8x512xf32> to vector<8x128xf32>
    %cst_208 = arith.constant 5.000000e-01 : f32
    %675 = vector.broadcast %cst_208 : f32 to vector<8x128xf32>
    %676 = arith.mulf %675, %674 : vector<8x128xf32>
    %cst_209 = arith.constant 5.000000e-01 : f32
    %677 = vector.broadcast %cst_209 : f32 to vector<8x128xf32>
    %678 = arith.addf %676, %677 : vector<8x128xf32>
    %679 = arith.mulf %672, %625 : vector<8x128xf32>
    %680 = arith.mulf %667, %673 : vector<8x128xf32>
    %681 = arith.addf %679, %680 : vector<8x128xf32>
    %682 = math.tanh %681 : vector<8x128xf32>
    %683 = arith.mulf %678, %682 : vector<8x128xf32>
    %c64_i32_210 = arith.constant 64 : i32
    %684 = tpu.dynamic_rotate %655 by %c64_i32_210 dim 1 : vector<8x128xf32>, i32 -> vector<8x128xf32>
    %685 = arith.addf %683, %684 : vector<8x128xf32>
    %686 = arith.truncf %685 : vector<8x128xf32> to vector<8x128xbf16>
    %cst_211 = arith.constant dense<0.000000e+00> : vector<8x512xf32>
    %687 = tpu.matmul %686, %5, %cst_211 {dimension_numbers = #tpu.dot_dimension_numbers<[1], [0], [0], [1], [0, 0, 1, 1], [], []>} : vector<8x128xbf16>, vector<128x512xbf16>, vector<8x512xf32> -> vector<8x512xf32>
    %688 = vector.broadcast %7 : vector<1x512xf32> to vector<8x512xf32>
    %689 = arith.addf %687, %688 : vector<8x512xf32>
    %690 = math.tanh %689 : vector<8x512xf32>
    %691 = vector.extract_strided_slice %690 {offsets = [0, 0], sizes = [8, 128], strides = [1, 1]} : vector<8x512xf32> to vector<8x128xf32>
    %cst_212 = arith.constant 5.000000e-01 : f32
    %692 = vector.broadcast %cst_212 : f32 to vector<8x128xf32>
    %693 = arith.mulf %692, %691 : vector<8x128xf32>
    %cst_213 = arith.constant 5.000000e-01 : f32
    %694 = vector.broadcast %cst_213 : f32 to vector<8x128xf32>
    %695 = arith.addf %693, %694 : vector<8x128xf32>
    %696 = vector.extract_strided_slice %690 {offsets = [0, 128], sizes = [8, 128], strides = [1, 1]} : vector<8x512xf32> to vector<8x128xf32>
    %cst_214 = arith.constant 5.000000e-01 : f32
    %697 = vector.broadcast %cst_214 : f32 to vector<8x128xf32>
    %698 = arith.mulf %697, %696 : vector<8x128xf32>
    %cst_215 = arith.constant 5.000000e-01 : f32
    %699 = vector.broadcast %cst_215 : f32 to vector<8x128xf32>
    %700 = arith.addf %698, %699 : vector<8x128xf32>
    %701 = vector.extract_strided_slice %690 {offsets = [0, 256], sizes = [8, 128], strides = [1, 1]} : vector<8x512xf32> to vector<8x128xf32>
    %702 = vector.extract_strided_slice %690 {offsets = [0, 384], sizes = [8, 128], strides = [1, 1]} : vector<8x512xf32> to vector<8x128xf32>
    %cst_216 = arith.constant 5.000000e-01 : f32
    %703 = vector.broadcast %cst_216 : f32 to vector<8x128xf32>
    %704 = arith.mulf %703, %702 : vector<8x128xf32>
    %cst_217 = arith.constant 5.000000e-01 : f32
    %705 = vector.broadcast %cst_217 : f32 to vector<8x128xf32>
    %706 = arith.addf %704, %705 : vector<8x128xf32>
    %707 = arith.mulf %700, %653 : vector<8x128xf32>
    %708 = arith.mulf %695, %701 : vector<8x128xf32>
    %709 = arith.addf %707, %708 : vector<8x128xf32>
    %710 = math.tanh %709 : vector<8x128xf32>
    %711 = arith.mulf %706, %710 : vector<8x128xf32>
    %c64_i32_218 = arith.constant 64 : i32
    %712 = tpu.dynamic_rotate %683 by %c64_i32_218 dim 1 : vector<8x128xf32>, i32 -> vector<8x128xf32>
    %713 = arith.addf %711, %712 : vector<8x128xf32>
    %714 = arith.truncf %713 : vector<8x128xf32> to vector<8x128xbf16>
    %cst_219 = arith.constant dense<0.000000e+00> : vector<8x512xf32>
    %715 = tpu.matmul %714, %8, %cst_219 {dimension_numbers = #tpu.dot_dimension_numbers<[1], [0], [0], [1], [0, 0, 1, 1], [], []>} : vector<8x128xbf16>, vector<128x512xbf16>, vector<8x512xf32> -> vector<8x512xf32>
    %716 = vector.broadcast %9 : vector<1x512xf32> to vector<8x512xf32>
    %717 = arith.addf %715, %716 : vector<8x512xf32>
    %718 = math.tanh %717 : vector<8x512xf32>
    %719 = vector.extract_strided_slice %718 {offsets = [0, 0], sizes = [8, 128], strides = [1, 1]} : vector<8x512xf32> to vector<8x128xf32>
    %cst_220 = arith.constant 5.000000e-01 : f32
    %720 = vector.broadcast %cst_220 : f32 to vector<8x128xf32>
    %721 = arith.mulf %720, %719 : vector<8x128xf32>
    %cst_221 = arith.constant 5.000000e-01 : f32
    %722 = vector.broadcast %cst_221 : f32 to vector<8x128xf32>
    %723 = arith.addf %721, %722 : vector<8x128xf32>
    %724 = vector.extract_strided_slice %718 {offsets = [0, 128], sizes = [8, 128], strides = [1, 1]} : vector<8x512xf32> to vector<8x128xf32>
    %cst_222 = arith.constant 5.000000e-01 : f32
    %725 = vector.broadcast %cst_222 : f32 to vector<8x128xf32>
    %726 = arith.mulf %725, %724 : vector<8x128xf32>
    %cst_223 = arith.constant 5.000000e-01 : f32
    %727 = vector.broadcast %cst_223 : f32 to vector<8x128xf32>
    %728 = arith.addf %726, %727 : vector<8x128xf32>
    %729 = vector.extract_strided_slice %718 {offsets = [0, 256], sizes = [8, 128], strides = [1, 1]} : vector<8x512xf32> to vector<8x128xf32>
    %730 = vector.extract_strided_slice %718 {offsets = [0, 384], sizes = [8, 128], strides = [1, 1]} : vector<8x512xf32> to vector<8x128xf32>
    %cst_224 = arith.constant 5.000000e-01 : f32
    %731 = vector.broadcast %cst_224 : f32 to vector<8x128xf32>
    %732 = arith.mulf %731, %730 : vector<8x128xf32>
    %cst_225 = arith.constant 5.000000e-01 : f32
    %733 = vector.broadcast %cst_225 : f32 to vector<8x128xf32>
    %734 = arith.addf %732, %733 : vector<8x128xf32>
    %735 = arith.mulf %728, %681 : vector<8x128xf32>
    %736 = arith.mulf %723, %729 : vector<8x128xf32>
    %737 = arith.addf %735, %736 : vector<8x128xf32>
    %738 = math.tanh %737 : vector<8x128xf32>
    %739 = arith.mulf %734, %738 : vector<8x128xf32>
    %c64_i32_226 = arith.constant 64 : i32
    %740 = tpu.dynamic_rotate %711 by %c64_i32_226 dim 1 : vector<8x128xf32>, i32 -> vector<8x128xf32>
    %741 = arith.addf %739, %740 : vector<8x128xf32>
    %742 = arith.truncf %741 : vector<8x128xf32> to vector<8x128xbf16>
    %cst_227 = arith.constant dense<0.000000e+00> : vector<8x512xf32>
    %743 = tpu.matmul %742, %5, %cst_227 {dimension_numbers = #tpu.dot_dimension_numbers<[1], [0], [0], [1], [0, 0, 1, 1], [], []>} : vector<8x128xbf16>, vector<128x512xbf16>, vector<8x512xf32> -> vector<8x512xf32>
    %744 = vector.broadcast %7 : vector<1x512xf32> to vector<8x512xf32>
    %745 = arith.addf %743, %744 : vector<8x512xf32>
    %746 = math.tanh %745 : vector<8x512xf32>
    %747 = vector.extract_strided_slice %746 {offsets = [0, 0], sizes = [8, 128], strides = [1, 1]} : vector<8x512xf32> to vector<8x128xf32>
    %cst_228 = arith.constant 5.000000e-01 : f32
    %748 = vector.broadcast %cst_228 : f32 to vector<8x128xf32>
    %749 = arith.mulf %748, %747 : vector<8x128xf32>
    %cst_229 = arith.constant 5.000000e-01 : f32
    %750 = vector.broadcast %cst_229 : f32 to vector<8x128xf32>
    %751 = arith.addf %749, %750 : vector<8x128xf32>
    %752 = vector.extract_strided_slice %746 {offsets = [0, 128], sizes = [8, 128], strides = [1, 1]} : vector<8x512xf32> to vector<8x128xf32>
    %cst_230 = arith.constant 5.000000e-01 : f32
    %753 = vector.broadcast %cst_230 : f32 to vector<8x128xf32>
    %754 = arith.mulf %753, %752 : vector<8x128xf32>
    %cst_231 = arith.constant 5.000000e-01 : f32
    %755 = vector.broadcast %cst_231 : f32 to vector<8x128xf32>
    %756 = arith.addf %754, %755 : vector<8x128xf32>
    %757 = vector.extract_strided_slice %746 {offsets = [0, 256], sizes = [8, 128], strides = [1, 1]} : vector<8x512xf32> to vector<8x128xf32>
    %758 = vector.extract_strided_slice %746 {offsets = [0, 384], sizes = [8, 128], strides = [1, 1]} : vector<8x512xf32> to vector<8x128xf32>
    %cst_232 = arith.constant 5.000000e-01 : f32
    %759 = vector.broadcast %cst_232 : f32 to vector<8x128xf32>
    %760 = arith.mulf %759, %758 : vector<8x128xf32>
    %cst_233 = arith.constant 5.000000e-01 : f32
    %761 = vector.broadcast %cst_233 : f32 to vector<8x128xf32>
    %762 = arith.addf %760, %761 : vector<8x128xf32>
    %763 = arith.mulf %756, %709 : vector<8x128xf32>
    %764 = arith.mulf %751, %757 : vector<8x128xf32>
    %765 = arith.addf %763, %764 : vector<8x128xf32>
    %766 = math.tanh %765 : vector<8x128xf32>
    %767 = arith.mulf %762, %766 : vector<8x128xf32>
    %c64_i32_234 = arith.constant 64 : i32
    %768 = tpu.dynamic_rotate %739 by %c64_i32_234 dim 1 : vector<8x128xf32>, i32 -> vector<8x128xf32>
    %769 = arith.addf %767, %768 : vector<8x128xf32>
    %770 = arith.truncf %769 : vector<8x128xf32> to vector<8x128xbf16>
    %cst_235 = arith.constant dense<0.000000e+00> : vector<8x512xf32>
    %771 = tpu.matmul %770, %8, %cst_235 {dimension_numbers = #tpu.dot_dimension_numbers<[1], [0], [0], [1], [0, 0, 1, 1], [], []>} : vector<8x128xbf16>, vector<128x512xbf16>, vector<8x512xf32> -> vector<8x512xf32>
    %772 = vector.broadcast %9 : vector<1x512xf32> to vector<8x512xf32>
    %773 = arith.addf %771, %772 : vector<8x512xf32>
    %774 = math.tanh %773 : vector<8x512xf32>
    %775 = vector.extract_strided_slice %774 {offsets = [0, 0], sizes = [8, 128], strides = [1, 1]} : vector<8x512xf32> to vector<8x128xf32>
    %cst_236 = arith.constant 5.000000e-01 : f32
    %776 = vector.broadcast %cst_236 : f32 to vector<8x128xf32>
    %777 = arith.mulf %776, %775 : vector<8x128xf32>
    %cst_237 = arith.constant 5.000000e-01 : f32
    %778 = vector.broadcast %cst_237 : f32 to vector<8x128xf32>
    %779 = arith.addf %777, %778 : vector<8x128xf32>
    %780 = vector.extract_strided_slice %774 {offsets = [0, 128], sizes = [8, 128], strides = [1, 1]} : vector<8x512xf32> to vector<8x128xf32>
    %cst_238 = arith.constant 5.000000e-01 : f32
    %781 = vector.broadcast %cst_238 : f32 to vector<8x128xf32>
    %782 = arith.mulf %781, %780 : vector<8x128xf32>
    %cst_239 = arith.constant 5.000000e-01 : f32
    %783 = vector.broadcast %cst_239 : f32 to vector<8x128xf32>
    %784 = arith.addf %782, %783 : vector<8x128xf32>
    %785 = vector.extract_strided_slice %774 {offsets = [0, 256], sizes = [8, 128], strides = [1, 1]} : vector<8x512xf32> to vector<8x128xf32>
    %786 = vector.extract_strided_slice %774 {offsets = [0, 384], sizes = [8, 128], strides = [1, 1]} : vector<8x512xf32> to vector<8x128xf32>
    %cst_240 = arith.constant 5.000000e-01 : f32
    %787 = vector.broadcast %cst_240 : f32 to vector<8x128xf32>
    %788 = arith.mulf %787, %786 : vector<8x128xf32>
    %cst_241 = arith.constant 5.000000e-01 : f32
    %789 = vector.broadcast %cst_241 : f32 to vector<8x128xf32>
    %790 = arith.addf %788, %789 : vector<8x128xf32>
    %791 = arith.mulf %784, %737 : vector<8x128xf32>
    %792 = arith.mulf %779, %785 : vector<8x128xf32>
    %793 = arith.addf %791, %792 : vector<8x128xf32>
    %794 = math.tanh %793 : vector<8x128xf32>
    %795 = arith.mulf %790, %794 : vector<8x128xf32>
    %c64_i32_242 = arith.constant 64 : i32
    %796 = tpu.dynamic_rotate %767 by %c64_i32_242 dim 1 : vector<8x128xf32>, i32 -> vector<8x128xf32>
    %797 = arith.addf %795, %796 : vector<8x128xf32>
    %798 = arith.truncf %797 : vector<8x128xf32> to vector<8x128xbf16>
    %cst_243 = arith.constant dense<0.000000e+00> : vector<8x512xf32>
    %799 = tpu.matmul %798, %5, %cst_243 {dimension_numbers = #tpu.dot_dimension_numbers<[1], [0], [0], [1], [0, 0, 1, 1], [], []>} : vector<8x128xbf16>, vector<128x512xbf16>, vector<8x512xf32> -> vector<8x512xf32>
    %800 = vector.broadcast %7 : vector<1x512xf32> to vector<8x512xf32>
    %801 = arith.addf %799, %800 : vector<8x512xf32>
    %802 = math.tanh %801 : vector<8x512xf32>
    %803 = vector.extract_strided_slice %802 {offsets = [0, 0], sizes = [8, 128], strides = [1, 1]} : vector<8x512xf32> to vector<8x128xf32>
    %cst_244 = arith.constant 5.000000e-01 : f32
    %804 = vector.broadcast %cst_244 : f32 to vector<8x128xf32>
    %805 = arith.mulf %804, %803 : vector<8x128xf32>
    %cst_245 = arith.constant 5.000000e-01 : f32
    %806 = vector.broadcast %cst_245 : f32 to vector<8x128xf32>
    %807 = arith.addf %805, %806 : vector<8x128xf32>
    %808 = vector.extract_strided_slice %802 {offsets = [0, 128], sizes = [8, 128], strides = [1, 1]} : vector<8x512xf32> to vector<8x128xf32>
    %cst_246 = arith.constant 5.000000e-01 : f32
    %809 = vector.broadcast %cst_246 : f32 to vector<8x128xf32>
    %810 = arith.mulf %809, %808 : vector<8x128xf32>
    %cst_247 = arith.constant 5.000000e-01 : f32
    %811 = vector.broadcast %cst_247 : f32 to vector<8x128xf32>
    %812 = arith.addf %810, %811 : vector<8x128xf32>
    %813 = vector.extract_strided_slice %802 {offsets = [0, 256], sizes = [8, 128], strides = [1, 1]} : vector<8x512xf32> to vector<8x128xf32>
    %814 = vector.extract_strided_slice %802 {offsets = [0, 384], sizes = [8, 128], strides = [1, 1]} : vector<8x512xf32> to vector<8x128xf32>
    %cst_248 = arith.constant 5.000000e-01 : f32
    %815 = vector.broadcast %cst_248 : f32 to vector<8x128xf32>
    %816 = arith.mulf %815, %814 : vector<8x128xf32>
    %cst_249 = arith.constant 5.000000e-01 : f32
    %817 = vector.broadcast %cst_249 : f32 to vector<8x128xf32>
    %818 = arith.addf %816, %817 : vector<8x128xf32>
    %819 = arith.mulf %812, %765 : vector<8x128xf32>
    %820 = arith.mulf %807, %813 : vector<8x128xf32>
    %821 = arith.addf %819, %820 : vector<8x128xf32>
    %822 = math.tanh %821 : vector<8x128xf32>
    %823 = arith.mulf %818, %822 : vector<8x128xf32>
    %c64_i32_250 = arith.constant 64 : i32
    %824 = tpu.dynamic_rotate %795 by %c64_i32_250 dim 1 : vector<8x128xf32>, i32 -> vector<8x128xf32>
    %825 = arith.addf %823, %824 : vector<8x128xf32>
    %826 = arith.truncf %825 : vector<8x128xf32> to vector<8x128xbf16>
    %cst_251 = arith.constant dense<0.000000e+00> : vector<8x512xf32>
    %827 = tpu.matmul %826, %8, %cst_251 {dimension_numbers = #tpu.dot_dimension_numbers<[1], [0], [0], [1], [0, 0, 1, 1], [], []>} : vector<8x128xbf16>, vector<128x512xbf16>, vector<8x512xf32> -> vector<8x512xf32>
    %828 = vector.broadcast %9 : vector<1x512xf32> to vector<8x512xf32>
    %829 = arith.addf %827, %828 : vector<8x512xf32>
    %830 = math.tanh %829 : vector<8x512xf32>
    %831 = vector.extract_strided_slice %830 {offsets = [0, 0], sizes = [8, 128], strides = [1, 1]} : vector<8x512xf32> to vector<8x128xf32>
    %cst_252 = arith.constant 5.000000e-01 : f32
    %832 = vector.broadcast %cst_252 : f32 to vector<8x128xf32>
    %833 = arith.mulf %832, %831 : vector<8x128xf32>
    %cst_253 = arith.constant 5.000000e-01 : f32
    %834 = vector.broadcast %cst_253 : f32 to vector<8x128xf32>
    %835 = arith.addf %833, %834 : vector<8x128xf32>
    %836 = vector.extract_strided_slice %830 {offsets = [0, 128], sizes = [8, 128], strides = [1, 1]} : vector<8x512xf32> to vector<8x128xf32>
    %cst_254 = arith.constant 5.000000e-01 : f32
    %837 = vector.broadcast %cst_254 : f32 to vector<8x128xf32>
    %838 = arith.mulf %837, %836 : vector<8x128xf32>
    %cst_255 = arith.constant 5.000000e-01 : f32
    %839 = vector.broadcast %cst_255 : f32 to vector<8x128xf32>
    %840 = arith.addf %838, %839 : vector<8x128xf32>
    %841 = vector.extract_strided_slice %830 {offsets = [0, 256], sizes = [8, 128], strides = [1, 1]} : vector<8x512xf32> to vector<8x128xf32>
    %842 = vector.extract_strided_slice %830 {offsets = [0, 384], sizes = [8, 128], strides = [1, 1]} : vector<8x512xf32> to vector<8x128xf32>
    %cst_256 = arith.constant 5.000000e-01 : f32
    %843 = vector.broadcast %cst_256 : f32 to vector<8x128xf32>
    %844 = arith.mulf %843, %842 : vector<8x128xf32>
    %cst_257 = arith.constant 5.000000e-01 : f32
    %845 = vector.broadcast %cst_257 : f32 to vector<8x128xf32>
    %846 = arith.addf %844, %845 : vector<8x128xf32>
    %847 = arith.mulf %840, %793 : vector<8x128xf32>
    %848 = arith.mulf %835, %841 : vector<8x128xf32>
    %849 = arith.addf %847, %848 : vector<8x128xf32>
    %850 = math.tanh %849 : vector<8x128xf32>
    %851 = arith.mulf %846, %850 : vector<8x128xf32>
    %c64_i32_258 = arith.constant 64 : i32
    %852 = tpu.dynamic_rotate %823 by %c64_i32_258 dim 1 : vector<8x128xf32>, i32 -> vector<8x128xf32>
    %853 = arith.addf %851, %852 : vector<8x128xf32>
    %854 = arith.truncf %853 : vector<8x128xf32> to vector<8x128xbf16>
    %cst_259 = arith.constant dense<0.000000e+00> : vector<8x512xf32>
    %855 = tpu.matmul %854, %5, %cst_259 {dimension_numbers = #tpu.dot_dimension_numbers<[1], [0], [0], [1], [0, 0, 1, 1], [], []>} : vector<8x128xbf16>, vector<128x512xbf16>, vector<8x512xf32> -> vector<8x512xf32>
    %856 = vector.broadcast %7 : vector<1x512xf32> to vector<8x512xf32>
    %857 = arith.addf %855, %856 : vector<8x512xf32>
    %858 = math.tanh %857 : vector<8x512xf32>
    %859 = vector.extract_strided_slice %858 {offsets = [0, 0], sizes = [8, 128], strides = [1, 1]} : vector<8x512xf32> to vector<8x128xf32>
    %cst_260 = arith.constant 5.000000e-01 : f32
    %860 = vector.broadcast %cst_260 : f32 to vector<8x128xf32>
    %861 = arith.mulf %860, %859 : vector<8x128xf32>
    %cst_261 = arith.constant 5.000000e-01 : f32
    %862 = vector.broadcast %cst_261 : f32 to vector<8x128xf32>
    %863 = arith.addf %861, %862 : vector<8x128xf32>
    %864 = vector.extract_strided_slice %858 {offsets = [0, 128], sizes = [8, 128], strides = [1, 1]} : vector<8x512xf32> to vector<8x128xf32>
    %cst_262 = arith.constant 5.000000e-01 : f32
    %865 = vector.broadcast %cst_262 : f32 to vector<8x128xf32>
    %866 = arith.mulf %865, %864 : vector<8x128xf32>
    %cst_263 = arith.constant 5.000000e-01 : f32
    %867 = vector.broadcast %cst_263 : f32 to vector<8x128xf32>
    %868 = arith.addf %866, %867 : vector<8x128xf32>
    %869 = vector.extract_strided_slice %858 {offsets = [0, 256], sizes = [8, 128], strides = [1, 1]} : vector<8x512xf32> to vector<8x128xf32>
    %870 = vector.extract_strided_slice %858 {offsets = [0, 384], sizes = [8, 128], strides = [1, 1]} : vector<8x512xf32> to vector<8x128xf32>
    %cst_264 = arith.constant 5.000000e-01 : f32
    %871 = vector.broadcast %cst_264 : f32 to vector<8x128xf32>
    %872 = arith.mulf %871, %870 : vector<8x128xf32>
    %cst_265 = arith.constant 5.000000e-01 : f32
    %873 = vector.broadcast %cst_265 : f32 to vector<8x128xf32>
    %874 = arith.addf %872, %873 : vector<8x128xf32>
    %875 = arith.mulf %868, %821 : vector<8x128xf32>
    %876 = arith.mulf %863, %869 : vector<8x128xf32>
    %877 = arith.addf %875, %876 : vector<8x128xf32>
    %878 = math.tanh %877 : vector<8x128xf32>
    %879 = arith.mulf %874, %878 : vector<8x128xf32>
    %c64_i32_266 = arith.constant 64 : i32
    %880 = tpu.dynamic_rotate %851 by %c64_i32_266 dim 1 : vector<8x128xf32>, i32 -> vector<8x128xf32>
    %881 = arith.addf %879, %880 : vector<8x128xf32>
    %882 = arith.truncf %881 : vector<8x128xf32> to vector<8x128xbf16>
    %cst_267 = arith.constant dense<0.000000e+00> : vector<8x512xf32>
    %883 = tpu.matmul %882, %8, %cst_267 {dimension_numbers = #tpu.dot_dimension_numbers<[1], [0], [0], [1], [0, 0, 1, 1], [], []>} : vector<8x128xbf16>, vector<128x512xbf16>, vector<8x512xf32> -> vector<8x512xf32>
    %884 = vector.broadcast %9 : vector<1x512xf32> to vector<8x512xf32>
    %885 = arith.addf %883, %884 : vector<8x512xf32>
    %886 = math.tanh %885 : vector<8x512xf32>
    %887 = vector.extract_strided_slice %886 {offsets = [0, 0], sizes = [8, 128], strides = [1, 1]} : vector<8x512xf32> to vector<8x128xf32>
    %cst_268 = arith.constant 5.000000e-01 : f32
    %888 = vector.broadcast %cst_268 : f32 to vector<8x128xf32>
    %889 = arith.mulf %888, %887 : vector<8x128xf32>
    %cst_269 = arith.constant 5.000000e-01 : f32
    %890 = vector.broadcast %cst_269 : f32 to vector<8x128xf32>
    %891 = arith.addf %889, %890 : vector<8x128xf32>
    %892 = vector.extract_strided_slice %886 {offsets = [0, 128], sizes = [8, 128], strides = [1, 1]} : vector<8x512xf32> to vector<8x128xf32>
    %cst_270 = arith.constant 5.000000e-01 : f32
    %893 = vector.broadcast %cst_270 : f32 to vector<8x128xf32>
    %894 = arith.mulf %893, %892 : vector<8x128xf32>
    %cst_271 = arith.constant 5.000000e-01 : f32
    %895 = vector.broadcast %cst_271 : f32 to vector<8x128xf32>
    %896 = arith.addf %894, %895 : vector<8x128xf32>
    %897 = vector.extract_strided_slice %886 {offsets = [0, 256], sizes = [8, 128], strides = [1, 1]} : vector<8x512xf32> to vector<8x128xf32>
    %898 = vector.extract_strided_slice %886 {offsets = [0, 384], sizes = [8, 128], strides = [1, 1]} : vector<8x512xf32> to vector<8x128xf32>
    %cst_272 = arith.constant 5.000000e-01 : f32
    %899 = vector.broadcast %cst_272 : f32 to vector<8x128xf32>
    %900 = arith.mulf %899, %898 : vector<8x128xf32>
    %cst_273 = arith.constant 5.000000e-01 : f32
    %901 = vector.broadcast %cst_273 : f32 to vector<8x128xf32>
    %902 = arith.addf %900, %901 : vector<8x128xf32>
    %903 = arith.mulf %896, %849 : vector<8x128xf32>
    %904 = arith.mulf %891, %897 : vector<8x128xf32>
    %905 = arith.addf %903, %904 : vector<8x128xf32>
    %906 = math.tanh %905 : vector<8x128xf32>
    %907 = arith.mulf %902, %906 : vector<8x128xf32>
    %908 = vector.shape_cast %907 : vector<8x128xf32> to vector<1x8x128xf32>
    %909 = vector.shape_cast %851 : vector<8x128xf32> to vector<1x8x128xf32>
    %910 = vector.shape_cast %795 : vector<8x128xf32> to vector<1x8x128xf32>
    %911 = vector.shape_cast %739 : vector<8x128xf32> to vector<1x8x128xf32>
    %912 = vector.shape_cast %683 : vector<8x128xf32> to vector<1x8x128xf32>
    %913 = vector.shape_cast %627 : vector<8x128xf32> to vector<1x8x128xf32>
    %914 = vector.shape_cast %571 : vector<8x128xf32> to vector<1x8x128xf32>
    %915 = vector.shape_cast %515 : vector<8x128xf32> to vector<1x8x128xf32>
    %916 = tpu.concatenate %908, %909, %910, %911, %912, %913, %914, %915 in 0 : vector<1x8x128xf32>, vector<1x8x128xf32>, vector<1x8x128xf32>, vector<1x8x128xf32>, vector<1x8x128xf32>, vector<1x8x128xf32>, vector<1x8x128xf32>, vector<1x8x128xf32> -> vector<8x8x128xf32>
    %917 = vector.shape_cast %916 : vector<8x8x128xf32> to vector<64x128xf32>
    %918 = arith.truncf %917 : vector<64x128xf32> to vector<64x128xbf16>
    %cst_274 = arith.constant dense<0.000000e+00> : vector<64x128xf32>
    %919 = tpu.matmul %918, %10, %cst_274 {dimension_numbers = #tpu.dot_dimension_numbers<[1], [0], [0], [1], [0, 0, 1, 1], [], []>} : vector<64x128xbf16>, vector<128x128xbf16>, vector<64x128xf32> -> vector<64x128xf32>
    %920 = vector.broadcast %11 : vector<1x128xf32> to vector<64x128xf32>
    %921 = arith.addf %919, %920 : vector<64x128xf32>
    %922 = vector.shape_cast %921 : vector<64x128xf32> to vector<8x8x128xf32>
    %c0_275 = arith.constant 0 : index
    %c0_276 = arith.constant 0 : index
    %c0_277 = arith.constant 0 : index
    %923 = vector.load %arg13[%c0_275, %c0_276, %c0_277] : memref<8x8x128xf32, #tpu.memory_space<vmem>>, vector<8x8x128xf32>
    tpu.vector_store %arg13[%c0_275, %c0_276, %c0_277], %922 {strides = array<i32>} : memref<8x8x128xf32, #tpu.memory_space<vmem>>, vector<8x8x128xf32>,
    return
  }
}

</mosaic_0001>

<bundles_post_ra>
// kernel: tpu_custom_call.1
= control target key start
LH: loop header
LB: loop body
LE: loop exit
PB: predicated region body
PF: predicated region fallthrough
CT: control target
= control target key end

     0   :  { %18 = vsyncpa [#allocation3], 0  ;;  %s8205_s0 = inlined_call_operand.hbm [shape: f32[8,8,128], index: 0, kind: input, shape index: {}]   ;;  %s8206_s1 = inlined_call_operand.hbm [shape: bf16[128,512], index: 1, kind: input, shape index: {}]   ;;  %s8207_s2 = inlined_call_operand.hbm [shape: bf16[128,512], index: 2, kind: input, shape index: {}]   ;;  %s8208_s3 = inlined_call_operand.vmem [shape: f32[1,512], index: 3, kind: input, shape index: {}]   ;;  %s8209_s4 = inlined_call_operand.hbm [shape: bf16[128,512], index: 4, kind: input, shape index: {}]   ;;  %s8210_s5 = inlined_call_operand.vmem [shape: f32[1,512], index: 5, kind: input, shape index: {}]   ;;  %s8211_s6 = inlined_call_operand.hbm [shape: bf16[128,512], index: 6, kind: input, shape index: {}]   ;;  %s8212_s7 = inlined_call_operand.vmem [shape: f32[1,512], index: 7, kind: input, shape index: {}]   ;;  %s8213_s8 = inlined_call_operand.vmem [shape: f32[1,512], index: 8, kind: input, shape index: {}]   ;;  %s8214_s9 = inlined_call_operand.hbm [shape: bf16[128,512], index: 9, kind: input, shape index: {}]   ;;  %s8215_s10 = inlined_call_operand.vmem [shape: f32[1,512], index: 10, kind: input, shape index: {}]   ;;  %s8216_s11 = inlined_call_operand.hbm [shape: bf16[128,128], index: 11, kind: input, shape index: {}]   ;;  %s8217_s12 = inlined_call_operand.vmem [shape: f32[1,128], index: 12, kind: input, shape index: {}]   ;;  %s8218_s13 = inlined_call_operand.hbm [shape: f32[8,8,128], index: 13, kind: output, shape index: {}]  }
   0x1   :  { %19 = vsyncpa [#allocation6], 0 }
   0x2   :  { %20 = vsyncpa [#allocation9], 0 }
   0x3   :  { %21 = vsyncpa [#allocation12], 0 }
   0x4   :  { %22 = vsyncpa [#allocation4], 0  ;;  %s5939_s25 = smov [#allocation5]   ;;  %s5753_s29 = scalar_lea.hbm %s8206_s1, 4096 }
   0x5   :  { %s40_s26 = sshll.u32 %s5939_s25, 4  ;;  %p5754_p0 = scmp.ne.s32.totalorder %s8206_s1, %s5753_s29  ;;  %s41_s26 = int_to_ptr.vmem [resolvable:$true] %s40_s26 }
   0x6   :  { %p5757_p1 = scmp.lt.u32.totalorder %s5753_s29, %s8206_s1 }
   0x8   :  { %p5759_p2 = pnand %p5757_p1, %p5754_p0 }
   0xa   :  { %5762 = shalt.err (!%p5759_p2)
}
   0xb   :  { %s5763_s17 = scalar_lea.vmem %s41_s26, 4096  ;;  %p5768_p4 = scmp.lt.s32.totalorder %s41_s26, %s41_s26 }
   0xc   :  { %p5764_p3 = scmp.ne.s32.totalorder %s41_s26, %s5763_s17  ;;  %p5769_p5 = scmp.lt.s32.totalorder %s5763_s17, %s5763_s17 }
   0xe   :  { %p5770_p6 = por %p5769_p5, %p5768_p4 }
  0x10   :  { %p5771_p7 = pnand %p5770_p6, %p5764_p3 }
  0x12   :  { %5774 = shalt.err (!%p5771_p7)
}
  0x13   :  { %s5940_s18 = smov 256   ;;  %s5941_s19 = smov 16  }
  0x14   :  { %46 = dma.hbm_to_vmem [thread:$0]  %s8206_s1, 4096, %s41_s26, [#allocation6], %s5940_s18, %s5940_s18, %s5941_s19  }
  0x15   :  { %s5942_s22 = smov [#allocation8]   ;;  %s5943_s24 = smov [#allocation11]  }
  0x16   :  { %s66_s23 = sshll.u32 %s5942_s22, 4  ;;  %s96_s25 = sshll.u32 %s5943_s24, 4  ;;  %s67_s23 = int_to_ptr.vmem [resolvable:$true] %s66_s23  ;;  %s97_s25 = int_to_ptr.vmem [resolvable:$true] %s96_s25 }
  0x17   :  { %s5775_s29 = scalar_lea.hbm %s8209_s4, 4096 }
  0x18   :  { %p5776_p8 = scmp.ne.s32.totalorder %s8209_s4, %s5775_s29  ;;  %p5779_p9 = scmp.lt.u32.totalorder %s5775_s29, %s8209_s4 }
  0x1a   :  { %p5781_p10 = pnand %p5779_p9, %p5776_p8 }
  0x1c   :  { %5784 = shalt.err (!%p5781_p10)
}
  0x1d   :  { %s5785_s1 = scalar_lea.vmem %s67_s23, 4096  ;;  %p5790_p12 = scmp.lt.s32.totalorder %s67_s23, %s67_s23 }
  0x1e   :  { %p5786_p11 = scmp.ne.s32.totalorder %s67_s23, %s5785_s1  ;;  %p5791_p13 = scmp.lt.s32.totalorder %s5785_s1, %s5785_s1 }
  0x20   :  { %p5792_p0 = por %p5791_p13, %p5790_p12 }
  0x22   :  { %p5793_p1 = pnand %p5792_p0, %p5786_p11 }
  0x24   :  { %5796 = shalt.err (!%p5793_p1)
}
  0x25   :  { %72 = dma.hbm_to_vmem [thread:$0]  %s8209_s4, 4096, %s67_s23, [#allocation9], %s5940_s18, %s5940_s18, %s5941_s19  }
  0x26   :  { %s5797_s22 = scalar_lea.hbm %s8214_s9, 4096 }
  0x27   :  { %p5798_p2 = scmp.ne.s32.totalorder %s8214_s9, %s5797_s22  ;;  %p5801_p3 = scmp.lt.u32.totalorder %s5797_s22, %s8214_s9 }
  0x29   :  { %p5803_p4 = pnand %p5801_p3, %p5798_p2 }
  0x2b   :  { %5806 = shalt.err (!%p5803_p4)
}
  0x2c   :  { %s5807_s30 = scalar_lea.vmem %s97_s25, 4096  ;;  %p5812_p6 = scmp.lt.s32.totalorder %s97_s25, %s97_s25 }
  0x2d   :  { %p5808_p5 = scmp.ne.s32.totalorder %s97_s25, %s5807_s30  ;;  %p5813_p7 = scmp.lt.s32.totalorder %s5807_s30, %s5807_s30 }
  0x2f   :  { %p5814_p8 = por %p5813_p7, %p5812_p6 }
  0x31   :  { %p5815_p9 = pnand %p5814_p8, %p5808_p5 }
  0x33   :  { %5818 = shalt.err (!%p5815_p9)
}
  0x34   :  { %102 = dma.hbm_to_vmem [thread:$0]  %s8214_s9, 4096, %s97_s25, [#allocation12], %s5940_s18, %s5940_s18, %s5941_s19  }
  0x35   :  { %s5944_s14 = smov [#allocation2]   ;;  %s5819_s26 = scalar_lea.hbm %s8205_s0, 1024 }
  0x36   :  { %s28_s15 = sshll.u32 %s5944_s14, 4  ;;  %p5820_p10 = scmp.ne.s32.totalorder %s8205_s0, %s5819_s26  ;;  %s29_s15 = int_to_ptr.vmem [resolvable:$true] %s28_s15 }
  0x37   :  { %p5823_p11 = scmp.lt.u32.totalorder %s5819_s26, %s8205_s0 }
  0x39   :  { %p5825_p12 = pnand %p5823_p11, %p5820_p10 }
  0x3b   :  { %5828 = shalt.err (!%p5825_p12)
}
  0x3c   :  { %s5829_s24 = scalar_lea.vmem %s29_s15, 1024  ;;  %p5834_p0 = scmp.lt.s32.totalorder %s29_s15, %s29_s15 }
  0x3d   :  { %p5830_p13 = scmp.ne.s32.totalorder %s29_s15, %s5829_s24  ;;  %p5835_p1 = scmp.lt.s32.totalorder %s5829_s24, %s5829_s24 }
  0x3f   :  { %p5836_p2 = por %p5835_p1, %p5834_p0 }
  0x41   :  { %p5837_p3 = pnand %p5836_p2, %p5830_p13 }
  0x43   :  { %5840 = shalt.err (!%p5837_p3)
}
  0x44   :  { %s5945_s9 = smov 128   ;;  %s5946_s25 = smov 8  }
  0x45   :  { %34 = dma.hbm_to_vmem [thread:$0]  %s8205_s0, 1024, %s29_s15, [#allocation3], %s5945_s9, %s5945_s9, %s5946_s25  }
  0x46   :  { %s5947_s29 = smov [#allocation7]   ;;  %s5948_s4 = smov [#allocation10]  }
  0x47   :  { %s52_s30 = sshll.u32 %s5947_s29, 4  ;;  %s80_s23 = sshll.u32 %s5948_s4, 4  ;;  %s53_s30 = int_to_ptr.vmem [resolvable:$true] %s52_s30  ;;  %s6085_s23 = int_to_ptr.vmem [resolvable:$true] %s80_s23 }
  0x48   :  { %s5841_s1 = scalar_lea.hbm %s8207_s2, 4096 }
  0x49   :  { %p5842_p4 = scmp.ne.s32.totalorder %s8207_s2, %s5841_s1  ;;  %p5845_p5 = scmp.lt.u32.totalorder %s5841_s1, %s8207_s2 }
  0x4b   :  { %p5847_p6 = pnand %p5845_p5, %p5842_p4 }
  0x4d   :  { %5850 = shalt.err (!%p5847_p6)
}
  0x4e   :  { %s5851_s0 = scalar_lea.vmem %s53_s30, 4096  ;;  %p5856_p8 = scmp.lt.s32.totalorder %s53_s30, %s53_s30 }
  0x4f   :  { %p5852_p7 = scmp.ne.s32.totalorder %s53_s30, %s5851_s0  ;;  %p5857_p9 = scmp.lt.s32.totalorder %s5851_s0, %s5851_s0 }
  0x51   :  { %p5858_p10 = por %p5857_p9, %p5856_p8 }
  0x53   :  { %p5859_p11 = pnand %p5858_p10, %p5852_p7 }
  0x55   :  { %5862 = shalt.err (!%p5859_p11)
}
  0x56   :  { %58 = dma.hbm_to_vmem [thread:$0]  %s8207_s2, 4096, %s53_s30, [#allocation6], %s5940_s18, %s5940_s18, %s5941_s19  }
  0x57   :  { %s5863_s28 = scalar_lea.hbm %s8211_s6, 4096 }
  0x58   :  { %p5864_p12 = scmp.ne.s32.totalorder %s8211_s6, %s5863_s28  ;;  %p5867_p13 = scmp.lt.u32.totalorder %s5863_s28, %s8211_s6 }
  0x5a   :  { %p5869_p0 = pnand %p5867_p13, %p5864_p12 }
  0x5c   :  { %5872 = shalt.err (!%p5869_p0)
}
  0x5d   :  { %s5873_s1 = scalar_lea.vmem %s6085_s23, 4096  ;;  %p5878_p2 = scmp.lt.s32.totalorder %s6085_s23, %s6085_s23 }
  0x5e   :  { %p5874_p1 = scmp.ne.s32.totalorder %s6085_s23, %s5873_s1  ;;  %p5879_p3 = scmp.lt.s32.totalorder %s5873_s1, %s5873_s1 }
  0x60   :  { %p5880_p4 = por %p5879_p3, %p5878_p2 }
  0x62   :  { %p5881_p5 = pnand %p5880_p4, %p5874_p1 }
  0x64   :  { %5884 = shalt.err (!%p5881_p5)
}
  0x65   :  { %86 = dma.hbm_to_vmem [thread:$0]  %s8211_s6, 4096, %s6085_s23, [#allocation9], %s5940_s18, %s5940_s18, %s5941_s19  }
  0x66   :  { %s5949_s26 = smov [#allocation13]   ;;  %s5885_s0 = scalar_lea.hbm %s8216_s11, 1024 }
  0x67   :  { %s110_s17 = sshll.u32 %s5949_s26, 4  ;;  %p5886_p6 = scmp.ne.s32.totalorder %s8216_s11, %s5885_s0  ;;  %s111_s17 = int_to_ptr.vmem [resolvable:$true] %s110_s17 }
  0x68   :  { %p5889_p7 = scmp.lt.u32.totalorder %s5885_s0, %s8216_s11 }
  0x6a   :  { %p5891_p8 = pnand %p5889_p7, %p5886_p6 }
  0x6c   :  { %5894 = shalt.err (!%p5891_p8)
}
  0x6d   :  { %s5895_s28 = scalar_lea.vmem %s111_s17, 1024  ;;  %p5900_p10 = scmp.lt.s32.totalorder %s111_s17, %s111_s17 }
  0x6e   :  { %p5896_p9 = scmp.ne.s32.totalorder %s111_s17, %s5895_s28  ;;  %p5901_p11 = scmp.lt.s32.totalorder %s5895_s28, %s5895_s28 }
  0x70   :  { %p5902_p12 = por %p5901_p11, %p5900_p10 }
  0x72   :  { %p5903_p13 = pnand %p5902_p12, %p5896_p9 }
  0x74   :  { %5906 = shalt.err (!%p5903_p13)
}
  0x75   :  { %s5950_s6 = smov 64   ;;  %s5951_s18 = smov 4  }
  0x76   :  { %116 = dma.hbm_to_vmem [thread:$0]  %s8216_s11, 1024, %s111_s17, [#allocation12], %s5950_s6, %s5950_s6, %s5951_s18  }
  0x77   :  { %5929 = dma.done.wait [#allocation3], 1024  }
  0x78   :  { %5930 = vsyncadd [#allocation3], 4294966272 }
  0x79   :  { %5931 = dma.done.wait [#allocation6], 8192  }
  0x7a   :  { %5932 = vsyncadd [#allocation6], 4294959104 }
  0x7b   :  { %5933 = dma.done.wait [#allocation9], 8192  }
  0x7c   :  { %5934 = vsyncadd [#allocation9], 4294959104 }
  0x7d   :  { %5935 = dma.done.wait [#allocation12], 5120  }
  0x7e   :  { %5936 = vsyncadd [#allocation12], 4294962176  ;;  %v8219_v0 = vmov 0   ;;  %v5953_v1 = vmov 0.0   ;;  %v5028_v2 = vld [vmem:[#allocation5 + $0x4] ss:$16 sps:$4 sm:$0xff]  }
  0x7f   :  { %527 = vmatprep.mubr.bf16.mxu1 %v8219_v0  ;;  %886 = vmatprep.mubr.bf16.mxu0 %v8219_v0  ;;  %v5030_v3 = vld [vmem:[#allocation5] ss:$16 sps:$4 sm:$0xff]   ;;  %v6139_v4 = vld [vmem:[#allocation7 + $0x4] ss:$16 sps:$4 sm:$0xff]   ;;  %v324_v34 = vld [vmem:[#allocation2 + $0x8] sm:$0xff]  ;;  %s5954_s30 = smov [#allocation14]  }
  0x80   :  { %955 = vrot.lane.b32.xlu0 %v5953_v1, %s5950_s6  ;;  %495 = vmatprep.subr.bf16.mxu1 %v5028_v2  ;;  %v6141_v5 = vld [vmem:[#allocation7] ss:$16 sps:$4 sm:$0xff]   ;;  %v5034_v6 = vld [vmem:[#allocation5 + $0x24] ss:$16 sps:$4 sm:$0xff]   ;;  %v5078_v35 = vld [vmem:[#allocation5 + $0xc] ss:$16 sps:$4 sm:$0xff]  }
  0x81   :  { %496 = vmatpush1.bf16.msra.mxu1 %v5030_v3  ;;  %v5036_v7 = vld [vmem:[#allocation5 + $0x20] ss:$16 sps:$4 sm:$0xff]   ;;  %854 = vmatprep.subr.bf16.mxu0 %v6139_v4  ;;  %v6144_v8 = vld [vmem:[#allocation7 + $0x24] ss:$16 sps:$4 sm:$0xff]   ;;  %v5076_v38 = vld [vmem:[#allocation5 + $0x8] ss:$16 sps:$4 sm:$0xff]  }
  0x82   :  { %855 = vmatpush1.bf16.msra.mxu0 %v6141_v5  ;;  %497 = vmatprep.subr.bf16.mxu1 %v5034_v6  ;;  %v6147_v9 = vld [vmem:[#allocation7 + $0x20] ss:$16 sps:$4 sm:$0xff]   ;;  %v5040_v10 = vld [vmem:[#allocation5 + $0x44] ss:$16 sps:$4 sm:$0xff]   ;;  %v5081_v39 = vld [vmem:[#allocation5 + $0x2c] ss:$16 sps:$4 sm:$0xff]  }
  0x83   :  { %856 = vmatprep.subr.bf16.mxu0 %v6144_v8  ;;  %v5042_v11 = vld [vmem:[#allocation5 + $0x40] ss:$16 sps:$4 sm:$0xff]   ;;  %v6150_v12 = vld [vmem:[#allocation7 + $0x44] ss:$16 sps:$4 sm:$0xff]   ;;  %v5079_v40 = vld [vmem:[#allocation5 + $0x28] ss:$16 sps:$4 sm:$0xff]  }
  0x84   :  { %v5046_v13 = vld [vmem:[#allocation5 + $0x64] ss:$16 sps:$4 sm:$0xff]   ;;  %v6153_v14 = vld [vmem:[#allocation7 + $0x40] ss:$16 sps:$4 sm:$0xff]   ;;  %v326_v42 = vld [vmem:[#allocation2 + $0x18] sm:$0xff]  ;;  %s4792_s26 = sshll.u32 %s5954_s30, 4  ;;  %s4793_s26 = int_to_ptr.vmem [resolvable:$true] %s4792_s26 }
  0x85   :  { %498 = vmatpush1.bf16.msra.mxu1 %v5036_v7  ;;  %v6156_v15 = vld [vmem:[#allocation7 + $0x64] ss:$16 sps:$4 sm:$0xff]   ;;  %v5048_v16 = vld [vmem:[#allocation5 + $0x60] ss:$16 sps:$4 sm:$0xff]   ;;  %v5084_v43 = vld [vmem:[#allocation5 + $0x4c] ss:$16 sps:$4 sm:$0xff]   ;;  %p5912_p1 = scmp.lt.s32.totalorder %s4793_s26, %s4793_s26 }
  0x86   :  { %499 = vmatprep.subr.bf16.mxu1 %v5040_v10  ;;  %857 = vmatpush1.bf16.msra.mxu0 %v6147_v9  ;;  %v5052_v17 = vld [vmem:[#allocation5 + $0x84] ss:$16 sps:$4 sm:$0xff]   ;;  %v6159_v18 = vld [vmem:[#allocation7 + $0x60] ss:$16 sps:$4 sm:$0xff]   ;;  %v5082_v45 = vld [vmem:[#allocation5 + $0x48] ss:$16 sps:$4 sm:$0xff]  }
  0x87   :  { %858 = vmatprep.subr.bf16.mxu0 %v6150_v12  ;;  %v6162_v19 = vld [vmem:[#allocation7 + $0x84] ss:$16 sps:$4 sm:$0xff]   ;;  %v5054_v20 = vld [vmem:[#allocation5 + $0x80] ss:$16 sps:$4 sm:$0xff]   ;;  %v5087_v46 = vld [vmem:[#allocation5 + $0x6c] ss:$16 sps:$4 sm:$0xff]  }
  0x88   :  { %v5058_v21 = vld [vmem:[#allocation5 + $0xa4] ss:$16 sps:$4 sm:$0xff]   ;;  %v6165_v22 = vld [vmem:[#allocation7 + $0x80] ss:$16 sps:$4 sm:$0xff]   ;;  %v5085_v47 = vld [vmem:[#allocation5 + $0x68] ss:$16 sps:$4 sm:$0xff]  }
  0x89   :  { %500 = vmatpush1.bf16.msra.mxu1 %v5042_v11  ;;  %v6168_v23 = vld [vmem:[#allocation7 + $0xa4] ss:$16 sps:$4 sm:$0xff]   ;;  %v5060_v24 = vld [vmem:[#allocation5 + $0xa0] ss:$16 sps:$4 sm:$0xff]   ;;  %v328_v49 = vld [vmem:[#allocation2 + $0x28] sm:$0xff] }
  0x8a   :  { %501 = vmatprep.subr.bf16.mxu1 %v5046_v13  ;;  %859 = vmatpush1.bf16.msra.mxu0 %v6153_v14  ;;  %v5064_v25 = vld [vmem:[#allocation5 + $0xc4] ss:$16 sps:$4 sm:$0xff]   ;;  %v6171_v26 = vld [vmem:[#allocation7 + $0xa0] ss:$16 sps:$4 sm:$0xff]   ;;  %v5090_v50 = vld [vmem:[#allocation5 + $0x8c] ss:$16 sps:$4 sm:$0xff]  }
  0x8b   :  { %860 = vmatprep.subr.bf16.mxu0 %v6156_v15  ;;  %v6174_v27 = vld [vmem:[#allocation7 + $0xc4] ss:$16 sps:$4 sm:$0xff]   ;;  %v5066_v28 = vld [vmem:[#allocation5 + $0xc0] ss:$16 sps:$4 sm:$0xff]   ;;  %v5088_v51 = vld [vmem:[#allocation5 + $0x88] ss:$16 sps:$4 sm:$0xff]  }
  0x8c   :  { %v5070_v29 = vld [vmem:[#allocation5 + $0xe4] ss:$16 sps:$4 sm:$0xff]   ;;  %v6177_v30 = vld [vmem:[#allocation7 + $0xc0] ss:$16 sps:$4 sm:$0xff]   ;;  %v5093_v53 = vld [vmem:[#allocation5 + $0xac] ss:$16 sps:$4 sm:$0xff]  }
  0x8d   :  { %502 = vmatpush1.bf16.msra.mxu1 %v5048_v16  ;;  %v5072_v31 = vld [vmem:[#allocation5 + $0xe0] ss:$16 sps:$4 sm:$0xff]   ;;  %v6180_v32 = vld [vmem:[#allocation7 + $0xe4] ss:$16 sps:$4 sm:$0xff]   ;;  %v5091_v54 = vld [vmem:[#allocation5 + $0xa8] ss:$16 sps:$4 sm:$0xff]  }
  0x8e   :  { %503 = vmatprep.subr.bf16.mxu1 %v5052_v17  ;;  %861 = vmatpush1.bf16.msra.mxu0 %v6159_v18  ;;  %v323_v33 = vld [vmem:[#allocation2] sm:$0xff]  ;;  %v325_v41 = vld [vmem:[#allocation2 + $0x10] sm:$0xff]  ;;  %v330_v56 = vld [vmem:[#allocation2 + $0x38] sm:$0xff] }
  0x8f   :  { %862 = vmatprep.subr.bf16.mxu0 %v6162_v19  ;;  %v6183_v36 = vld [vmem:[#allocation7 + $0xe0] ss:$16 sps:$4 sm:$0xff]   ;;  %v331_v37 = vpack.c.bf16 %v324_v34, %v323_v33  ;;  %v332_v44 = vpack.c.bf16 %v326_v42, %v325_v41  ;;  %v5096_v57 = vld [vmem:[#allocation5 + $0xcc] ss:$16 sps:$4 sm:$0xff]   ;;  %v5094_v58 = vld [vmem:[#allocation5 + $0xc8] ss:$16 sps:$4 sm:$0xff]  }
  0x90   :  { %v327_v48 = vld [vmem:[#allocation2 + $0x20] sm:$0xff]  ;;  %v329_v55 = vld [vmem:[#allocation2 + $0x30] sm:$0xff]  ;;  %v5099_v60 = vld [vmem:[#allocation5 + $0xec] ss:$16 sps:$4 sm:$0xff]  }
  0x91   :  { %504 = vmatpush1.bf16.msra.mxu1 %v5054_v20  ;;  %v333_v52 = vpack.c.bf16 %v328_v49, %v327_v48  ;;  %v334_v59 = vpack.c.bf16 %v330_v56, %v329_v55  ;;  %v5097_v61 = vld [vmem:[#allocation5 + $0xe8] ss:$16 sps:$4 sm:$0xff]   ;;  %v6192_v62 = vld [vmem:[#allocation7 + $0xc] ss:$16 sps:$4 sm:$0xff]   ;;  %v6259_v34 = vld [vmem:[#allocation8 + $0x24] ss:$16 sps:$4 sm:$0xff]  }
  0x92   :  { %505 = vmatprep.subr.bf16.mxu1 %v5058_v21  ;;  %863 = vmatpush1.bf16.msra.mxu0 %v6165_v22  ;;  %8474 = vst [vmem:[#allocation20_spill] sm:$0xff] %v6192_v62  ;;  %v6195_v63 = vld [vmem:[#allocation7 + $0x8] ss:$16 sps:$4 sm:$0xff]   ;;  %v6197_v1 = vld [vmem:[#allocation7 + $0x2c] ss:$16 sps:$4 sm:$0xff]  }
  0x93   :  { %864 = vmatprep.subr.bf16.mxu0 %v6168_v23  ;;  %v6200_v2 = vld [vmem:[#allocation7 + $0x28] ss:$16 sps:$4 sm:$0xff]   ;;  %v6202_v3 = vld [vmem:[#allocation7 + $0x4c] ss:$16 sps:$4 sm:$0xff]   ;;  %v6275_v41 = vld [vmem:[#allocation8 + $0x40] ss:$16 sps:$4 sm:$0xff]  }
  0x94   :  { %v6207_v6 = vld [vmem:[#allocation7 + $0x48] ss:$16 sps:$4 sm:$0xff]   ;;  %v6209_v7 = vld [vmem:[#allocation7 + $0x6c] ss:$16 sps:$4 sm:$0xff]   ;;  %v6299_v49 = vld [vmem:[#allocation8 + $0x80] ss:$16 sps:$4 sm:$0xff]  }
  0x95   :  { %506 = vmatpush1.bf16.msra.mxu1 %v5060_v24  ;;  %v6213_v10 = vld [vmem:[#allocation7 + $0x68] ss:$16 sps:$4 sm:$0xff]   ;;  %v6215_v11 = vld [vmem:[#allocation7 + $0x8c] ss:$16 sps:$4 sm:$0xff]   ;;  %8482 = vst [vmem:[#allocation28_spill] sm:$0xff] %v6299_v49 }
  0x96   :  { %507 = vmatprep.subr.bf16.mxu1 %v5064_v25  ;;  %865 = vmatpush1.bf16.msra.mxu0 %v6171_v26  ;;  %v6220_v13 = vld [vmem:[#allocation7 + $0x88] ss:$16 sps:$4 sm:$0xff]   ;;  %v6222_v16 = vld [vmem:[#allocation7 + $0xac] ss:$16 sps:$4 sm:$0xff]   ;;  %v6317_v55 = vld [vmem:[#allocation8 + $0xc4] ss:$16 sps:$4 sm:$0xff]  }
  0x97   :  { %866 = vmatprep.subr.bf16.mxu0 %v6174_v27  ;;  %v6227_v17 = vld [vmem:[#allocation7 + $0xa8] ss:$16 sps:$4 sm:$0xff]   ;;  %v6231_v20 = vld [vmem:[#allocation7 + $0xcc] ss:$16 sps:$4 sm:$0xff]   ;;  %8488 = vst [vmem:[#allocation34_spill] sm:$0xff] %v6317_v55 }
  0x98   :  { %v6234_v21 = vld [vmem:[#allocation7 + $0xc8] ss:$16 sps:$4 sm:$0xff]   ;;  %v6237_v24 = vld [vmem:[#allocation7 + $0xec] ss:$16 sps:$4 sm:$0xff]  }
  0x99   :  { %508 = vmatpush1.bf16.msra.mxu1 %v5066_v28  ;;  %v6240_v25 = vld [vmem:[#allocation7 + $0xe8] ss:$16 sps:$4 sm:$0xff]   ;;  %v6247_v28 = vld [vmem:[#allocation8 + $0x4] ss:$16 sps:$4 sm:$0xff]   ;;  %v6297_v48 = vld [vmem:[#allocation8 + $0x8c] ss:$16 sps:$4 sm:$0xff]  }
  0x9a   :  { %509 = vmatprep.subr.bf16.mxu1 %v5070_v29  ;;  %867 = vmatpush1.bf16.msra.mxu0 %v6177_v30  ;;  %v6249_v29 = vld [vmem:[#allocation8 + $0xc] ss:$16 sps:$4 sm:$0xff]   ;;  %v6253_v33 = vld [vmem:[#allocation8 + $0x8] ss:$16 sps:$4 sm:$0xff]   ;;  %8481 = vst [vmem:[#allocation27_spill] sm:$0xff] %v6297_v48 }
  0x9b   :  { %868 = vmatprep.subr.bf16.mxu0 %v6180_v32  ;;  %v6277_v42 = vld [vmem:[#allocation8 + $0x48] ss:$16 sps:$4 sm:$0xff]   ;;  %v6319_v56 = vld [vmem:[#allocation8 + $0xcc] ss:$16 sps:$4 sm:$0xff]  }
  0x9c   :  { %8475 = vst [vmem:[#allocation21_spill] sm:$0xff] %v6277_v42  ;;  %8489 = vst [vmem:[#allocation35_spill] sm:$0xff] %v6319_v56 }
  0x9d   :  { %510 = vmatpush1.bf16.msra.mxu1 %v5072_v31  ;;  %v6251_v31 = vld [vmem:[#allocation8] ss:$16 sps:$4 sm:$0xff]  }
  0x9e   :  { %568 = vmatprep.subr.bf16.mxu1 %v5078_v35  ;;  %869 = vmatpush1.bf16.msra.mxu0 %v6183_v36  ;;  %v6261_v35 = vld [vmem:[#allocation8 + $0x2c] ss:$16 sps:$4 sm:$0xff]  }
  0x9f   :  { %1140 = vmatprep.subr.bf16.mxu0 %v6247_v28 }
  0xa0   :  { %528 = vmatmul.mubr.bf16.vlgmr.msra.gmra.mrb[0].mxu1 %v331_v37 }
  0xa1   :  { %569 = vmatpush1.bf16.msra.mxu1 %v5076_v38  ;;  %537 = vmatprep.mubr.bf16.mxu1 %v8219_v0  ;;  %v6265_v38 = vld [vmem:[#allocation8 + $0x28] ss:$16 sps:$4 sm:$0xff]  }
  0xa2   :  { %887 = vmatmul.mubr.bf16.vlgmr.msra.gmra.mrb[0].mxu0 %v8219_v0  ;;  %570 = vmatprep.subr.bf16.mxu1 %v5081_v39  ;;  %v6271_v39 = vld [vmem:[#allocation8 + $0x44] ss:$16 sps:$4 sm:$0xff]  }
  0xa3   :  { %1172 = vmatprep.mubr.bf16.mxu0 %v8219_v0  ;;  %1141 = vmatpush1.bf16.msra.mxu0 %v6251_v31 }
  0xa4   :  { %1142 = vmatprep.subr.bf16.mxu0 %v6259_v34 }
  0xa5   :  { %571 = vmatpush1.bf16.msra.mxu1 %v5079_v40  ;;  %v6273_v40 = vld [vmem:[#allocation8 + $0x4c] ss:$16 sps:$4 sm:$0xff]  }
  0xa6   :  { %572 = vmatprep.subr.bf16.mxu1 %v5084_v43  ;;  %v6283_v43 = vld [vmem:[#allocation8 + $0x64] ss:$16 sps:$4 sm:$0xff]  }
  0xa7   :  { %8476 = vst [vmem:[#allocation22_spill] sm:$0xff] %v6283_v43 }
  0xa8   :  { %538 = vmatmul.mubr.bf16.gmra.mrb[4].mxu1 %v332_v44 }
  0xa9   :  { %573 = vmatpush1.bf16.msra.mxu1 %v5082_v45  ;;  %547 = vmatprep.mubr.bf16.mxu1 %v8219_v0  ;;  %v6287_v45 = vld [vmem:[#allocation8 + $0x60] ss:$16 sps:$4 sm:$0xff]  }
  0xaa   :  { %574 = vmatprep.subr.bf16.mxu1 %v5087_v46  ;;  %8478 = vst [vmem:[#allocation24_spill] sm:$0xff] %v6287_v45  ;;  %v6289_v46 = vld [vmem:[#allocation8 + $0x68] ss:$16 sps:$4 sm:$0xff]  }
  0xab   :  { %8479 = vst [vmem:[#allocation25_spill] sm:$0xff] %v6289_v46 }
  0xad   :  { %575 = vmatpush1.bf16.msra.mxu1 %v5085_v47  ;;  %v6295_v47 = vld [vmem:[#allocation8 + $0x84] ss:$16 sps:$4 sm:$0xff]  }
  0xae   :  { %576 = vmatprep.subr.bf16.mxu1 %v5090_v50  ;;  %8480 = vst [vmem:[#allocation26_spill] sm:$0xff] %v6295_v47  ;;  %v6301_v50 = vld [vmem:[#allocation8 + $0x88] ss:$16 sps:$4 sm:$0xff]  }
  0xaf   :  { %8483 = vst [vmem:[#allocation29_spill] sm:$0xff] %v6301_v50 }
  0xb0   :  { %548 = vmatmul.mubr.bf16.gmra.mrb[8].mxu1 %v333_v52 }
  0xb1   :  { %577 = vmatpush1.bf16.msra.mxu1 %v5088_v51  ;;  %557 = vmatprep.mubr.bf16.mxu1 %v8219_v0  ;;  %v6303_v51 = vld [vmem:[#allocation8 + $0xa4] ss:$16 sps:$4 sm:$0xff]  }
  0xb2   :  { %578 = vmatprep.subr.bf16.mxu1 %v5093_v53  ;;  %8484 = vst [vmem:[#allocation30_spill] sm:$0xff] %v6303_v51  ;;  %v6311_v53 = vld [vmem:[#allocation8 + $0xa0] ss:$16 sps:$4 sm:$0xff]  }
  0xb3   :  { %8486 = vst [vmem:[#allocation32_spill] sm:$0xff] %v6311_v53 }
  0xb5   :  { %579 = vmatpush1.bf16.msra.mxu1 %v5091_v54  ;;  %v6313_v54 = vld [vmem:[#allocation8 + $0xa8] ss:$16 sps:$4 sm:$0xff]  }
  0xb6   :  { %580 = vmatprep.subr.bf16.mxu1 %v5096_v57  ;;  %8487 = vst [vmem:[#allocation33_spill] sm:$0xff] %v6313_v54  ;;  %v6323_v57 = vld [vmem:[#allocation8 + $0xc0] ss:$16 sps:$4 sm:$0xff]  }
  0xb7   :  { %8490 = vst [vmem:[#allocation36_spill] sm:$0xff] %v6323_v57 }
  0xb8   :  { %558 = vmatmul.mubr.bf16.gmra.mrb[12].mxu1 %v334_v59 }
  0xb9   :  { %581 = vmatpush1.bf16.msra.mxu1 %v5094_v58  ;;  %600 = vmatprep.mubr.bf16.mxu1 %v8219_v0  ;;  %v6325_v58 = vld [vmem:[#allocation8 + $0xc8] ss:$16 sps:$4 sm:$0xff]  }
  0xba   :  { %582 = vmatprep.subr.bf16.mxu1 %v5099_v60  ;;  %8491 = vst [vmem:[#allocation37_spill] sm:$0xff] %v6325_v58  ;;  %v6333_v60 = vld [vmem:[#allocation8 + $0xec] ss:$16 sps:$4 sm:$0xff]  }
  0xbb   :  { %8493 = vst [vmem:[#allocation39_spill] sm:$0xff] %v6333_v60 }
  0xbd   :  { %583 = vmatpush1.bf16.msra.mxu1 %v5097_v61  ;;  %v6335_v61 = vld [vmem:[#allocation8 + $0xe0] ss:$16 sps:$4 sm:$0xff]  }
  0xbe   :  { %895 = vmatprep.subr.bf16.mxu1 %v6192_v62  ;;  %8494 = vst [vmem:[#allocation40_spill] sm:$0xff] %v6335_v61 }
  0xc0   :  { %601 = vmatmul.mubr.bf16.vlgmr.msra.gmra.mrb[16].mxu1 %v331_v37  ;;  %v6263_v37 = vld [vmem:[#allocation8 + $0x20] ss:$16 sps:$4 sm:$0xff]  }
  0xc1   :  { %896 = vmatpush1.bf16.msra.mxu1 %v6195_v63  ;;  %610 = vmatprep.mubr.bf16.mxu1 %v8219_v0 }
  0xc2   :  { %897 = vmatprep.subr.bf16.mxu1 %v6197_v1  ;;  %1143 = vmatpush1.bf16.msra.mxu0 %v6263_v37 }
  0xc3   :  { %1144 = vmatprep.subr.bf16.mxu0 %v6271_v39 }
  0xc5   :  { %898 = vmatpush1.bf16.msra.mxu1 %v6200_v2 }
  0xc6   :  { %899 = vmatprep.subr.bf16.mxu1 %v6202_v3  ;;  %1145 = vmatpush1.bf16.msra.mxu0 %v6275_v41 }
  0xc7   :  { %1146 = vmatprep.subr.bf16.mxu0 %v6283_v43 }
  0xc8   :  { %611 = vmatmul.mubr.bf16.gmra.mrb[20].mxu1 %v332_v44  ;;  %v6285_v44 = vld [vmem:[#allocation8 + $0x6c] ss:$16 sps:$4 sm:$0xff]  }
  0xc9   :  { %900 = vmatpush1.bf16.msra.mxu1 %v6207_v6  ;;  %620 = vmatprep.mubr.bf16.mxu1 %v8219_v0  ;;  %8477 = vst [vmem:[#allocation23_spill] sm:$0xff] %v6285_v44 }
  0xca   :  { %901 = vmatprep.subr.bf16.mxu1 %v6209_v7  ;;  %1147 = vmatpush1.bf16.msra.mxu0 %v6287_v45 }
  0xcb   :  { %1148 = vmatprep.subr.bf16.mxu0 %v6295_v47 }
  0xcd   :  { %902 = vmatpush1.bf16.msra.mxu1 %v6213_v10 }
  0xce   :  { %903 = vmatprep.subr.bf16.mxu1 %v6215_v11  ;;  %1149 = vmatpush1.bf16.msra.mxu0 %v6299_v49 }
  0xcf   :  { %1150 = vmatprep.subr.bf16.mxu0 %v6303_v51 }
  0xd0   :  { %621 = vmatmul.mubr.bf16.gmra.mrb[24].mxu1 %v333_v52  ;;  %v6307_v52 = vld [vmem:[#allocation8 + $0xac] ss:$16 sps:$4 sm:$0xff]  }
  0xd1   :  { %904 = vmatpush1.bf16.msra.mxu1 %v6220_v13  ;;  %630 = vmatprep.mubr.bf16.mxu1 %v8219_v0  ;;  %8485 = vst [vmem:[#allocation31_spill] sm:$0xff] %v6307_v52 }
  0xd2   :  { %905 = vmatprep.subr.bf16.mxu1 %v6222_v16  ;;  %1151 = vmatpush1.bf16.msra.mxu0 %v6311_v53 }
  0xd3   :  { %1152 = vmatprep.subr.bf16.mxu0 %v6317_v55  ;;  %v205_v55 = vld [vmem:[%s8208_s3] sm:$0xf] }
  0xd5   :  { %906 = vmatpush1.bf16.msra.mxu1 %v6227_v17 }
  0xd6   :  { %907 = vmatprep.subr.bf16.mxu1 %v6231_v20  ;;  %1153 = vmatpush1.bf16.msra.mxu0 %v6323_v57 }
  0xd8   :  { %631 = vmatmul.mubr.bf16.gmra.mrb[28].mxu1 %v334_v59  ;;  %v6331_v59 = vld [vmem:[#allocation8 + $0xe4] ss:$16 sps:$4 sm:$0xff]  }
  0xd9   :  { %908 = vmatpush1.bf16.msra.mxu1 %v6234_v21  ;;  %927 = vmatprep.mubr.bf16.mxu1 %v8219_v0  ;;  %8492 = vst [vmem:[#allocation38_spill] sm:$0xff] %v6331_v59 }
  0xda   :  { %909 = vmatprep.subr.bf16.mxu1 %v6237_v24  ;;  %1154 = vmatprep.subr.bf16.mxu0 %v6331_v59 }
  0xdb   :  { %1155 = vmatpush1.bf16.msra.mxu0 %v6335_v61 }
  0xdc   :  { %1238 = vmatprep.subr.bf16.mxu0 %v6139_v4 }
  0xdd   :  { %910 = vmatpush1.bf16.msra.mxu1 %v6240_v25 }
  0xde   :  { %1181 = vmatprep.subr.bf16.mxu1 %v6249_v29 }
  0xe0   :  { %928 = vmatmul.mubr.bf16.vlgmr.msra.gmra.mrb[32].mxu1 %v8219_v0 }
  0xe1   :  { %1213 = vmatprep.mubr.bf16.mxu1 %v8219_v0  ;;  %1182 = vmatpush1.bf16.msra.mxu1 %v6253_v33  ;;  %v6337_v0 = vld [vmem:[#allocation8 + $0xe8] ss:$16 sps:$4 sm:$0xff]  }
  0xe2   :  { %1183 = vmatprep.subr.bf16.mxu1 %v6261_v35  ;;  %8495 = vst [vmem:[#allocation41_spill] sm:$0xff] %v6337_v0 }
  0xe5   :  { %1184 = vmatpush1.bf16.msra.mxu1 %v6265_v38 }
  0xe6   :  { %1185 = vmatprep.subr.bf16.mxu1 %v6273_v40 }
  0xe9   :  { %1186 = vmatpush1.bf16.msra.mxu1 %v6277_v42 }
  0xea   :  { %1187 = vmatprep.subr.bf16.mxu1 %v6285_v44 }
  0xed   :  { %1188 = vmatpush1.bf16.msra.mxu1 %v6289_v46 }
  0xee   :  { %1189 = vmatprep.subr.bf16.mxu1 %v6297_v48 }
  0xf1   :  { %1190 = vmatpush1.bf16.msra.mxu1 %v6301_v50 }
  0xf2   :  { %1191 = vmatprep.subr.bf16.mxu1 %v6307_v52 }
  0xf5   :  { %1192 = vmatpush1.bf16.msra.mxu1 %v6313_v54 }
  0xf6   :  { %1193 = vmatprep.subr.bf16.mxu1 %v6319_v56 }
  0xf9   :  { %1194 = vmatpush1.bf16.msra.mxu1 %v6325_v58  ;;  %v642_v58 = vlaneseq }
  0xfa   :  { %1195 = vmatprep.subr.bf16.mxu1 %v6333_v60 }
  0xfb   :  { %v643_v57 = vshrl.u32 %v642_v58, 7 }
  0xfd   :  { %1196 = vmatpush1.bf16.msra.mxu1 %v6337_v0  ;;  %v6345_v56 = vsub.s32 0, %v643_v57  ;;  %v6350_v54 = vsub.s32 1, %v643_v57 }
  0xfe   :  { %1279 = vmatprep.subr.bf16.mxu1 %v6192_v62 }
  0xff   :  { %8496 = vst [vmem:[#allocation42_spill] sm:$0xff] %v6345_v56  ;;  %8497 = vst [vmem:[#allocation43_spill] sm:$0xff] %v6350_v54  ;;  %v645_v60 = vrot.slane %v205_v55, %v6345_v56  ;;  %v649_v61 = vrot.slane %v205_v55, %v6350_v54 }
 0x173   :  { %v529_v59 = vpop.f32.mrb[0].mxu1 }
 0x174   :  { %v662_v0 = vadd.f32 %v645_v60, %v529_v59  ;;  %v531_v53 = vpop.f32.mrb[1].mxu1 }
 0x175   :  { %v663_v4 = vadd.f32 %v649_v61, %v531_v53  ;;  %v533_v52 = vpop.f32.mrb[2].mxu1  ;;  %v888_v62 = vpop.f32.mrb[0].mxu0 }
 0x176   :  { %v6354_v51 = vadd.f32 %v645_v60, %v533_v52  ;;  %v936_v58 = vadd.f32 %v888_v62, %v662_v0  ;;  %v535_v50 = vpop.f32.mrb[3].mxu1  ;;  %v890_v49 = vpop.f32.mrb[1].mxu0 }
 0x177   :  { %v6356_v48 = vadd.f32 %v649_v61, %v535_v50  ;;  %v937_v47 = vadd.f32 %v890_v49, %v663_v4  ;;  %v892_v46 = vpop.f32.mrb[2].mxu0 }
 0x178   :  { %8498 = vst [vmem:[#allocation44_spill] sm:$0xff] %v6354_v51  ;;  %v893_v45 = vpop.f32.mrb[3].mxu0 }
 0x179   :  { %8499 = vst [vmem:[#allocation45_spill] sm:$0xff] %v6356_v48  ;;  %5276 = vtanh.f32 %v937_v47 }
 0x17a   :  { %5278 = vtanh.f32 %v936_v58 }
 0x17b   :  { %v539_v44 = vpop.f32.mrb[4].mxu1 }
 0x17c   :  { %v6358_v56 = vadd.f32 %v645_v60, %v539_v44  ;;  %v541_v54 = vpop.f32.mrb[5].mxu1 }
 0x17d   :  { %v6360_v43 = vadd.f32 %v649_v61, %v541_v54  ;;  %v543_v59 = vpop.f32.mrb[6].mxu1 }
 0x17e   :  { %8500 = vst [vmem:[#allocation46_spill] sm:$0xff] %v6358_v56  ;;  %v6362_v53 = vadd.f32 %v645_v60, %v543_v59  ;;  %v545_v42 = vpop.f32.mrb[7].mxu1 }
 0x17f   :  { %8501 = vst [vmem:[#allocation47_spill] sm:$0xff] %v6360_v43  ;;  %v6364_v52 = vadd.f32 %v649_v61, %v545_v42 }
 0x180   :  { %8502 = vst [vmem:[#allocation48_spill] sm:$0xff] %v6362_v53 }
 0x181   :  { %8503 = vst [vmem:[#allocation49_spill] sm:$0xff] %v6364_v52 }
 0x183   :  { %v549_v0 = vpop.f32.mrb[8].mxu1  ;;  %v5277_v47 = vpop.eup %5276 }
 0x184   :  { %v6366_v62 = vadd.f32 %v645_v60, %v549_v0  ;;  %v551_v50 = vpop.f32.mrb[9].mxu1 }
 0x185   :  { %v6368_v48 = vadd.f32 %v649_v61, %v551_v50  ;;  %v553_v46 = vpop.f32.mrb[10].mxu1  ;;  %v6382_v50 = vsub.s32 2, %v643_v57 }
 0x186   :  { %8504 = vst [vmem:[#allocation50_spill] sm:$0xff] %v6366_v62  ;;  %v6370_v45 = vadd.f32 %v645_v60, %v553_v46  ;;  %v555_v44 = vpop.f32.mrb[11].mxu1 }
 0x187   :  { %8505 = vst [vmem:[#allocation51_spill] sm:$0xff] %v6368_v48  ;;  %v6372_v49 = vadd.f32 %v649_v61, %v555_v44  ;;  %8512 = vst [vmem:[#allocation58_spill] sm:$0xff] %v6382_v50  ;;  %v6384_v48 = vsub.s32 3, %v643_v57  ;;  %v653_v44 = vrot.slane %v205_v55, %v6382_v50 }
 0x188   :  { %8506 = vst [vmem:[#allocation52_spill] sm:$0xff] %v6370_v45 }
 0x189   :  { %8507 = vst [vmem:[#allocation53_spill] sm:$0xff] %v6372_v49  ;;  %8513 = vst [vmem:[#allocation59_spill] sm:$0xff] %v6384_v48 }
 0x18b   :  { %v559_v54 = vpop.f32.mrb[12].mxu1 }
 0x18c   :  { %v6374_v4 = vadd.f32 %v645_v60, %v559_v54  ;;  %v561_v59 = vpop.f32.mrb[13].mxu1  ;;  %v657_v54 = vrot.slane %v205_v55, %v6384_v48 }
 0x18d   :  { %v6376_v53 = vadd.f32 %v649_v61, %v561_v59  ;;  %v563_v42 = vpop.f32.mrb[14].mxu1 }
 0x18e   :  { %8508 = vst [vmem:[#allocation54_spill] sm:$0xff] %v6374_v4  ;;  %v6378_v52 = vadd.f32 %v645_v60, %v563_v42  ;;  %v565_v0 = vpop.f32.mrb[15].mxu1 }
 0x18f   :  { %8509 = vst [vmem:[#allocation55_spill] sm:$0xff] %v6376_v53  ;;  %v6380_v62 = vadd.f32 %v649_v61, %v565_v0 }
 0x190   :  { %8510 = vst [vmem:[#allocation56_spill] sm:$0xff] %v6378_v52 }
 0x191   :  { %8511 = vst [vmem:[#allocation57_spill] sm:$0xff] %v6380_v62 }
 0x193   :  { %v602_v46 = vpop.f32.mrb[16].mxu1 }
 0x194   :  { %v604_v49 = vpop.f32.mrb[17].mxu1 }
 0x195   :  { %v606_v4 = vpop.f32.mrb[18].mxu1 }
 0x196   :  { %v6388_v45 = vadd.f32 %v653_v44, %v606_v4  ;;  %v608_v59 = vpop.f32.mrb[19].mxu1 }
 0x197   :  { %v6390_v53 = vadd.f32 %v657_v54, %v608_v59 }
 0x198   :  { %8514 = vst [vmem:[#allocation60_spill] sm:$0xff] %v6388_v45 }
 0x199   :  { %8515 = vst [vmem:[#allocation61_spill] sm:$0xff] %v6390_v53 }
 0x19b   :  { %v612_v60 = vpop.f32.mrb[20].mxu1 }
 0x19c   :  { %v6392_v42 = vadd.f32 %v653_v44, %v612_v60  ;;  %v614_v61 = vpop.f32.mrb[21].mxu1 }
 0x19d   :  { %v6394_v0 = vadd.f32 %v657_v54, %v614_v61  ;;  %v616_v57 = vpop.f32.mrb[22].mxu1 }
 0x19e   :  { %8516 = vst [vmem:[#allocation62_spill] sm:$0xff] %v6392_v42  ;;  %v6396_v62 = vadd.f32 %v653_v44, %v616_v57  ;;  %v618_v52 = vpop.f32.mrb[23].mxu1 }
 0x19f   :  { %8517 = vst [vmem:[#allocation63_spill] sm:$0xff] %v6394_v0  ;;  %v6398_v43 = vadd.f32 %v657_v54, %v618_v52 }
 0x1a0   :  { %8518 = vst [vmem:[#allocation64_spill] sm:$0xff] %v6396_v62 }
 0x1a1   :  { %8519 = vst [vmem:[#allocation65_spill] sm:$0xff] %v6398_v43 }
 0x1a3   :  { %v622_v56 = vpop.f32.mrb[24].mxu1 }
 0x1a4   :  { %v6400_v55 = vadd.f32 %v653_v44, %v622_v56  ;;  %v624_v4 = vpop.f32.mrb[25].mxu1 }
 0x1a5   :  { %v6402_v45 = vadd.f32 %v657_v54, %v624_v4  ;;  %v626_v59 = vpop.f32.mrb[26].mxu1 }
 0x1a6   :  { %8520 = vst [vmem:[#allocation66_spill] sm:$0xff] %v6400_v55  ;;  %v6404_v53 = vadd.f32 %v653_v44, %v626_v59  ;;  %v628_v60 = vpop.f32.mrb[27].mxu1  ;;  %v665_v59 = vadd.f32 %v657_v54, %v604_v49 }
 0x1a7   :  { %8521 = vst [vmem:[#allocation67_spill] sm:$0xff] %v6402_v45  ;;  %v6406_v42 = vadd.f32 %v657_v54, %v628_v60  ;;  %v664_v45 = vadd.f32 %v653_v44, %v602_v46  ;;  %v956_v46 = vpop.permute.xlu0 %955 }
 0x1a8   :  { %8522 = vst [vmem:[#allocation68_spill] sm:$0xff] %v6404_v53 }
 0x1a9   :  { %8523 = vst [vmem:[#allocation69_spill] sm:$0xff] %v6406_v42 }
 0x1ab   :  { %v632_v61 = vpop.f32.mrb[28].mxu1 }
 0x1ac   :  { %v6408_v0 = vadd.f32 %v653_v44, %v632_v61  ;;  %v634_v57 = vpop.f32.mrb[29].mxu1 }
 0x1ad   :  { %v6410_v62 = vadd.f32 %v657_v54, %v634_v57  ;;  %v636_v52 = vpop.f32.mrb[30].mxu1  ;;  %v946_v57 = vmul.f32 0.5, %v5277_v47  ;;  %v8549_v47 = vld [vmem:[#allocation41_spill] sm:$0xff] }
 0x1ae   :  { %8524 = vst [vmem:[#allocation70_spill] sm:$0xff] %v6408_v0  ;;  %v6412_v56 = vadd.f32 %v653_v44, %v636_v52  ;;  %v638_v55 = vpop.f32.mrb[31].mxu1  ;;  %v5279_v0 = vpop.eup %5278 }
 0x1af   :  { %8525 = vst [vmem:[#allocation71_spill] sm:$0xff] %v6410_v62  ;;  %v6414_v4 = vadd.f32 %v657_v54, %v638_v55  ;;  %v944_v62 = vmul.f32 0.5, %v5279_v0  ;;  %v947_v48 = vadd.f32 0.5, %v946_v57  ;;  %v8545_v0 = vld [vmem:[#allocation37_spill] sm:$0xff]  ;;  %v8551_v57 = vld [vmem:[#allocation20_spill] sm:$0xff] }
 0x1b0   :  { %8526 = vst [vmem:[#allocation72_spill] sm:$0xff] %v6412_v56 }
 0x1b1   :  { %8527 = vst [vmem:[#allocation73_spill] sm:$0xff] %v6414_v4  ;;  %v945_v58 = vadd.f32 0.5, %v944_v62  ;;  %v950_v56 = vmul.f32 0.0, %v947_v48  ;;  %v8528_v48 = vmov 0   ;;  %v8543_v62 = vld [vmem:[#allocation35_spill] sm:$0xff] }
 0x1b3   :  { %v929_v53 = vpop.f32.mrb[32].mxu1 }
 0x1b4   :  { %v938_v43 = vadd.f32 %v929_v53, %v664_v45  ;;  %v931_v60 = vpop.f32.mrb[33].mxu1 }
 0x1b5   :  { %v939_v42 = vadd.f32 %v931_v60, %v665_v59  ;;  %v933_v51 = vpop.f32.mrb[34].mxu1  ;;  %v8547_v59 = vld [vmem:[#allocation39_spill] sm:$0xff]  ;;  %v8548_v60 = vld [vmem:[#allocation40_spill] sm:$0xff] }
 0x1b6   :  { %5280 = vtanh.f32 %v938_v43  ;;  %v934_v61 = vpop.f32.mrb[35].mxu1 }
 0x1b7   :  { %5282 = vtanh.f32 %v939_v42  ;;  %v8544_v42 = vld [vmem:[#allocation36_spill] sm:$0xff] }
 0x1b8   :  { %v6485_v61 = vld [vmem:[#allocation7 + $0x4] ss:$16 sps:$4 sm:$0xff]  }
 0x1c0   :  { %v5281_v52 = vpop.eup %5280 }
 0x1c1   :  { %v951_v55 = vmul.f32 %v5281_v52, %v945_v58  ;;  %v5283_v53 = vpop.eup %5282  ;;  %v238_v58 = vld [vmem:[%s8210_s5] sm:$0xf]  ;;  %v8552_v52 = vld [vmem:[#allocation42_spill] sm:$0xff] }
 0x1c2   :  { %v948_v45 = vmul.f32 0.5, %v5283_v53  ;;  %v8554_v53 = vld [vmem:[#allocation43_spill] sm:$0xff] }
 0x1c3   :  { %v6416_v4 = vadd.f32 %v951_v55, %v950_v56  ;;  %v8546_v56 = vld [vmem:[#allocation38_spill] sm:$0xff]  ;;  %v6493_v55 = vrot.slane %v238_v58, %v8552_v52 }
 0x1c4   :  { %v949_v49 = vadd.f32 0.5, %v948_v45  ;;  %v6496_v45 = vrot.slane %v238_v58, %v8554_v53  ;;  %v8557_v53 = vld [vmem:[#allocation59_spill] sm:$0xff] }
 0x1c5   :  { %5284 = vtanh.f32 %v6416_v4 }
 0x1cf   :  { %v5285_v51 = vpop.eup %5284 }
 0x1d0   :  { %v954_v43 = vmul.f32 %v5285_v51, %v949_v49  ;;  %v6499_v49 = vrot.slane %v238_v58, %v6382_v50  ;;  %v6505_v50 = vrot.slane %v238_v58, %v8557_v53  ;;  %v8561_v53 = vld [vmem:[#allocation60_spill] sm:$0xff] }
 0x1d2   :  { %v957_v44 = vadd.f32 %v956_v46, %v954_v43 }
 0x1d4   :  { %v958_v54 = vpack.c.bf16 %v957_v44, %v957_v44 }
 0x1d6   :  { %1173 = vmatmul.mubr.bf16.vlgmr.msra.gmra.mrb[4].mxu0 %v958_v54  ;;  %1214 = vmatmul.mubr.bf16.vlgmr.msra.gmra.mrb[36].mxu1 %v958_v54 }
 0x1d7   :  { %1239 = vmatpush1.bf16.msra.mxu0 %v6141_v5  ;;  %1280 = vmatpush1.bf16.msra.mxu1 %v6195_v63  ;;  %v1237_v5 = vpack.c.bf16 %v954_v43, %v954_v43 }
 0x1d8   :  { %1240 = vmatprep.subr.bf16.mxu0 %v6144_v8  ;;  %1281 = vmatprep.subr.bf16.mxu1 %v6197_v1  ;;  %v8529_v8 = vld [vmem:[#allocation21_spill] sm:$0xff] }
 0x1d9   :  { %1270 = vmatprep.mubr.bf16.mxu0 %v8528_v48  ;;  %1311 = vmatprep.mubr.bf16.mxu1 %v8528_v48  ;;  %8550 = vst [vmem:[#allocation21_spill] sm:$0xff] %v6485_v61 }
 0x1db   :  { %1241 = vmatpush1.bf16.msra.mxu0 %v6147_v9  ;;  %1282 = vmatpush1.bf16.msra.mxu1 %v6200_v2  ;;  %v8530_v9 = vld [vmem:[#allocation22_spill] sm:$0xff] }
 0x1dc   :  { %1242 = vmatprep.subr.bf16.mxu0 %v6150_v12  ;;  %1283 = vmatprep.subr.bf16.mxu1 %v6202_v3  ;;  %v8531_v12 = vld [vmem:[#allocation23_spill] sm:$0xff]  ;;  %8553 = vst [vmem:[#allocation22_spill] sm:$0xff] %v6493_v55 }
 0x1dd   :  { %8555 = vst [vmem:[#allocation23_spill] sm:$0xff] %v6496_v45 }
 0x1df   :  { %1243 = vmatpush1.bf16.msra.mxu0 %v6153_v14  ;;  %1284 = vmatpush1.bf16.msra.mxu1 %v6207_v6  ;;  %v8532_v14 = vld [vmem:[#allocation24_spill] sm:$0xff] }
 0x1e0   :  { %1244 = vmatprep.subr.bf16.mxu0 %v6156_v15  ;;  %1285 = vmatprep.subr.bf16.mxu1 %v6209_v7  ;;  %v8533_v15 = vld [vmem:[#allocation25_spill] sm:$0xff]  ;;  %8556 = vst [vmem:[#allocation24_spill] sm:$0xff] %v6499_v49 }
 0x1e1   :  { %8558 = vst [vmem:[#allocation25_spill] sm:$0xff] %v6505_v50 }
 0x1e3   :  { %1245 = vmatpush1.bf16.msra.mxu0 %v6159_v18  ;;  %1286 = vmatpush1.bf16.msra.mxu1 %v6213_v10  ;;  %v8534_v18 = vld [vmem:[#allocation26_spill] sm:$0xff] }
 0x1e4   :  { %1246 = vmatprep.subr.bf16.mxu0 %v6162_v19  ;;  %1287 = vmatprep.subr.bf16.mxu1 %v6215_v11  ;;  %v8535_v19 = vld [vmem:[#allocation27_spill] sm:$0xff] }
 0x1e7   :  { %1247 = vmatpush1.bf16.msra.mxu0 %v6165_v22  ;;  %1288 = vmatpush1.bf16.msra.mxu1 %v6220_v13  ;;  %v8536_v22 = vld [vmem:[#allocation28_spill] sm:$0xff] }
 0x1e8   :  { %1248 = vmatprep.subr.bf16.mxu0 %v6168_v23  ;;  %1289 = vmatprep.subr.bf16.mxu1 %v6222_v16  ;;  %v8537_v23 = vld [vmem:[#allocation29_spill] sm:$0xff] }
 0x1eb   :  { %1249 = vmatpush1.bf16.msra.mxu0 %v6171_v26  ;;  %1290 = vmatpush1.bf16.msra.mxu1 %v6227_v17  ;;  %v8538_v26 = vld [vmem:[#allocation30_spill] sm:$0xff] }
 0x1ec   :  { %1250 = vmatprep.subr.bf16.mxu0 %v6174_v27  ;;  %1291 = vmatprep.subr.bf16.mxu1 %v6231_v20  ;;  %v8539_v27 = vld [vmem:[#allocation31_spill] sm:$0xff] }
 0x1ef   :  { %1251 = vmatpush1.bf16.msra.mxu0 %v6177_v30  ;;  %1292 = vmatpush1.bf16.msra.mxu1 %v6234_v21  ;;  %v8540_v30 = vld [vmem:[#allocation32_spill] sm:$0xff] }
 0x1f0   :  { %1252 = vmatprep.subr.bf16.mxu0 %v6180_v32  ;;  %1293 = vmatprep.subr.bf16.mxu1 %v6237_v24  ;;  %v8541_v32 = vld [vmem:[#allocation33_spill] sm:$0xff] }
 0x1f3   :  { %1253 = vmatpush1.bf16.msra.mxu0 %v6183_v36  ;;  %1294 = vmatpush1.bf16.msra.mxu1 %v6240_v25  ;;  %v8542_v36 = vld [vmem:[#allocation34_spill] sm:$0xff] }
 0x1f4   :  { %1343 = vmatprep.subr.bf16.mxu0 %v6247_v28  ;;  %1384 = vmatprep.subr.bf16.mxu1 %v6249_v29 }
 0x1f6   :  { %1271 = vmatmul.mubr.bf16.vlgmr.msra.gmra.mrb[8].mxu0 %v1237_v5  ;;  %1312 = vmatmul.mubr.bf16.vlgmr.msra.gmra.mrb[40].mxu1 %v1237_v5 }
 0x1f7   :  { %1344 = vmatpush1.bf16.msra.mxu0 %v6251_v31  ;;  %1385 = vmatpush1.bf16.msra.mxu1 %v6253_v33 }
 0x1f8   :  { %1345 = vmatprep.subr.bf16.mxu0 %v6259_v34  ;;  %1386 = vmatprep.subr.bf16.mxu1 %v6261_v35 }
 0x1f9   :  { %1375 = vmatprep.mubr.bf16.mxu0 %v8528_v48  ;;  %1416 = vmatprep.mubr.bf16.mxu1 %v8528_v48 }
 0x1fb   :  { %1346 = vmatpush1.bf16.msra.mxu0 %v6263_v37  ;;  %1387 = vmatpush1.bf16.msra.mxu1 %v6265_v38 }
 0x1fc   :  { %1347 = vmatprep.subr.bf16.mxu0 %v6271_v39  ;;  %1388 = vmatprep.subr.bf16.mxu1 %v6273_v40 }
 0x1ff   :  { %1348 = vmatpush1.bf16.msra.mxu0 %v6275_v41  ;;  %1389 = vmatpush1.bf16.msra.mxu1 %v8529_v8 }
 0x200   :  { %1349 = vmatprep.subr.bf16.mxu0 %v8530_v9  ;;  %1390 = vmatprep.subr.bf16.mxu1 %v8531_v12 }
 0x203   :  { %1350 = vmatpush1.bf16.msra.mxu0 %v8532_v14  ;;  %1391 = vmatpush1.bf16.msra.mxu1 %v8533_v15 }
 0x204   :  { %1351 = vmatprep.subr.bf16.mxu0 %v8534_v18  ;;  %1392 = vmatprep.subr.bf16.mxu1 %v8535_v19 }
 0x207   :  { %1352 = vmatpush1.bf16.msra.mxu0 %v8536_v22  ;;  %1393 = vmatpush1.bf16.msra.mxu1 %v8537_v23 }
 0x208   :  { %1353 = vmatprep.subr.bf16.mxu0 %v8538_v26  ;;  %1394 = vmatprep.subr.bf16.mxu1 %v8539_v27 }
 0x20b   :  { %1354 = vmatpush1.bf16.msra.mxu0 %v8540_v30  ;;  %1395 = vmatpush1.bf16.msra.mxu1 %v8541_v32 }
 0x20c   :  { %1355 = vmatprep.subr.bf16.mxu0 %v8542_v36  ;;  %1396 = vmatprep.subr.bf16.mxu1 %v8543_v62 }
 0x20f   :  { %1356 = vmatpush1.bf16.msra.mxu0 %v8544_v42  ;;  %1397 = vmatpush1.bf16.msra.mxu1 %v8545_v0 }
 0x210   :  { %1357 = vmatprep.subr.bf16.mxu0 %v8546_v56  ;;  %1398 = vmatprep.subr.bf16.mxu1 %v8547_v59 }
 0x213   :  { %1358 = vmatpush1.bf16.msra.mxu0 %v8548_v60  ;;  %1399 = vmatpush1.bf16.msra.mxu1 %v8549_v47 }
 0x214   :  { %1441 = vmatprep.subr.bf16.mxu0 %v6485_v61  ;;  %1482 = vmatprep.subr.bf16.mxu1 %v8551_v57 }
 0x2a9   :  { %v1174_v51 = vpop.f32.mrb[4].mxu0  ;;  %v1215_v46 = vpop.f32.mrb[36].mxu1 }
 0x2aa   :  { %v1175_v43 = vadd.f32 %v1174_v51, %v6493_v55  ;;  %v1176_v44 = vpop.f32.mrb[5].mxu0  ;;  %v1217_v54 = vpop.f32.mrb[37].mxu1  ;;  %v1216_v52 = vadd.f32 %v1215_v46, %v6499_v49  ;;  %v8562_v49 = vld [vmem:[#allocation45_spill] sm:$0xff] }
 0x2ab   :  { %v1177_v5 = vadd.f32 %v1176_v44, %v6496_v45  ;;  %v1178_v57 = vpop.f32.mrb[6].mxu0  ;;  %v1219_v61 = vpop.f32.mrb[38].mxu1  ;;  %v1218_v59 = vadd.f32 %v1217_v54, %v6505_v50 }
 0x2ac   :  { %5286 = vtanh.f32 %v1175_v43  ;;  %v1179_v47 = vpop.f32.mrb[7].mxu0  ;;  %v1220_v60 = vpop.f32.mrb[39].mxu1 }
 0x2ad   :  { %5288 = vtanh.f32 %v1177_v5  ;;  %v8560_v5 = vld [vmem:[#allocation44_spill] sm:$0xff] }
 0x2ae   :  { %5290 = vtanh.f32 %v1216_v52 }
 0x2af   :  { %5292 = vtanh.f32 %v1218_v59 }
 0x2b6   :  { %v5287_v56 = vpop.eup %5286 }
 0x2b7   :  { %v1226_v51 = vmul.f32 0.5, %v5287_v56  ;;  %v5289_v55 = vpop.eup %5288 }
 0x2b8   :  { %v1228_v42 = vmul.f32 0.5, %v5289_v55  ;;  %v5291_v44 = vpop.eup %5290 }
 0x2b9   :  { %v1227_v0 = vadd.f32 0.5, %v1226_v51  ;;  %v5293_v60 = vpop.eup %5292 }
 0x2ba   :  { %v1229_v61 = vadd.f32 0.5, %v1228_v42  ;;  %v1230_v47 = vmul.f32 0.5, %v5293_v60 }
 0x2bb   :  { %v1233_v43 = vmul.f32 %v5291_v44, %v1227_v0  ;;  %v8563_v0 = vld [vmem:[#allocation61_spill] sm:$0xff] }
 0x2bc   :  { %v1232_v57 = vmul.f32 0.0, %v1229_v61  ;;  %v1231_v55 = vadd.f32 0.5, %v1230_v47 }
 0x2be   :  { %v6508_v46 = vadd.f32 %v1233_v43, %v1232_v57 }
 0x2c0   :  { %8559 = vst [vmem:[#allocation26_spill] sm:$0xff] %v6508_v46  ;;  %5294 = vtanh.f32 %v6508_v46 }
 0x2c9   :  { %v1272_v58 = vpop.f32.mrb[8].mxu0  ;;  %v1313_v52 = vpop.f32.mrb[40].mxu1 }
 0x2ca   :  { %v1320_v54 = vadd.f32 %v1272_v58, %v8560_v5  ;;  %v1322_v56 = vadd.f32 %v1313_v52, %v8561_v53  ;;  %v1274_v50 = vpop.f32.mrb[9].mxu0  ;;  %v1315_v51 = vpop.f32.mrb[41].mxu1 }
 0x2cb   :  { %v5295_v59 = vpop.eup %5294  ;;  %v1321_v42 = vadd.f32 %v1274_v50, %v8562_v49  ;;  %v1323_v44 = vadd.f32 %v1315_v51, %v8563_v0  ;;  %v1276_v61 = vpop.f32.mrb[10].mxu0 }
 0x2cc   :  { %v1317_v43 = vpop.f32.mrb[42].mxu1  ;;  %5296 = vtanh.f32 %v1320_v54  ;;  %v1277_v57 = vpop.f32.mrb[11].mxu0  ;;  %v1236_v60 = vmul.f32 %v5295_v59, %v1231_v55 }
 0x2cd   :  { %v1318_v46 = vpop.f32.mrb[43].mxu1  ;;  %5298 = vtanh.f32 %v1321_v42  ;;  %v6520_v43 = vld [vmem:[#allocation7] ss:$16 sps:$4 sm:$0xff]  }
 0x2ce   :  { %1339 = vrot.lane.b32.xlu0 %v1236_v60, %s5950_s6  ;;  %5300 = vtanh.f32 %v1322_v56  ;;  %v8564_v60 = vld [vmem:[#allocation35_spill] sm:$0xff] }
 0x2cf   :  { %5302 = vtanh.f32 %v1323_v44  ;;  %v6546_v44 = vld [vmem:[#allocation7 + $0x60] ss:$16 sps:$4 sm:$0xff]  }
 0x2d6   :  { %v5297_v58 = vpop.eup %5296 }
 0x2d7   :  { %v1328_v53 = vmul.f32 0.5, %v5297_v58  ;;  %v5299_v52 = vpop.eup %5298  ;;  %v8565_v58 = vld [vmem:[#allocation36_spill] sm:$0xff] }
 0x2d8   :  { %v1330_v47 = vmul.f32 0.5, %v5299_v52  ;;  %v5301_v45 = vpop.eup %5300  ;;  %v8567_v52 = vld [vmem:[#allocation38_spill] sm:$0xff] }
 0x2d9   :  { %v1329_v5 = vadd.f32 0.5, %v1328_v53  ;;  %v5303_v46 = vpop.eup %5302  ;;  %v8566_v53 = vld [vmem:[#allocation37_spill] sm:$0xff] }
 0x2da   :  { %v1331_v62 = vadd.f32 0.5, %v1330_v47  ;;  %v1332_v54 = vmul.f32 0.5, %v5303_v46  ;;  %v8569_v47 = vld [vmem:[#allocation40_spill] sm:$0xff]  ;;  %v6617_v46 = vld [vmem:[#allocation7 + $0xc] ss:$16 sps:$4 sm:$0xff]  }
 0x2db   :  { %v1335_v50 = vmul.f32 %v5301_v45, %v1329_v5  ;;  %v6534_v45 = vld [vmem:[#allocation7 + $0x44] ss:$16 sps:$4 sm:$0xff]   ;;  %v8568_v5 = vld [vmem:[#allocation39_spill] sm:$0xff]  ;;  %8572 = vst [vmem:[#allocation27_spill] sm:$0xff] %v6617_v46 }
 0x2dc   :  { %v1334_v49 = vmul.f32 %v1331_v62, %v6416_v4  ;;  %v1333_v59 = vadd.f32 0.5, %v1332_v54  ;;  %v6524_v4 = vld [vmem:[#allocation7 + $0x24] ss:$16 sps:$4 sm:$0xff]   ;;  %v6530_v62 = vld [vmem:[#allocation7 + $0x20] ss:$16 sps:$4 sm:$0xff]  }
 0x2de   :  { %v6517_v51 = vadd.f32 %v1335_v50, %v1334_v49  ;;  %v8570_v50 = vld [vmem:[#allocation41_spill] sm:$0xff] }
 0x2df   :  { %v8571_v49 = vld [vmem:[#allocation21_spill] sm:$0xff] }
 0x2e0   :  { %5304 = vtanh.f32 %v6517_v51 }
 0x2ea   :  { %v5305_v55 = vpop.eup %5304 }
 0x2eb   :  { %v1338_v56 = vmul.f32 %v5305_v55, %v1333_v59  ;;  %v8573_v59 = vld [vmem:[#allocation22_spill] sm:$0xff] }
 0x2ed   :  { %v1440_v57 = vpack.c.bf16 %v1338_v56, %v1338_v56 }
 0x340   :  { %v1340_v42 = vpop.permute.xlu0 %1339 }
 0x341   :  { %v1341_v0 = vadd.f32 %v1340_v42, %v1338_v56 }
 0x343   :  { %v1342_v61 = vpack.c.bf16 %v1341_v0, %v1341_v0 }
 0x345   :  { %1376 = vmatmul.mubr.bf16.vlgmr.msra.gmra.mrb[12].mxu0 %v1342_v61  ;;  %1417 = vmatmul.mubr.bf16.vlgmr.msra.gmra.mrb[44].mxu1 %v1342_v61  ;;  %v8574_v61 = vld [vmem:[#allocation23_spill] sm:$0xff] }
 0x346   :  { %1442 = vmatpush1.bf16.msra.mxu0 %v6520_v43  ;;  %1483 = vmatpush1.bf16.msra.mxu1 %v6195_v63  ;;  %v6538_v63 = vld [vmem:[#allocation7 + $0x40] ss:$16 sps:$4 sm:$0xff]  }
 0x347   :  { %1443 = vmatprep.subr.bf16.mxu0 %v6524_v4  ;;  %1484 = vmatprep.subr.bf16.mxu1 %v6197_v1  ;;  %v6542_v1 = vld [vmem:[#allocation7 + $0x64] ss:$16 sps:$4 sm:$0xff]  }
 0x348   :  { %1473 = vmatprep.mubr.bf16.mxu0 %v8528_v48  ;;  %1514 = vmatprep.mubr.bf16.mxu1 %v8528_v48 }
 0x34a   :  { %1444 = vmatpush1.bf16.msra.mxu0 %v6530_v62  ;;  %1485 = vmatpush1.bf16.msra.mxu1 %v6200_v2  ;;  %v6550_v2 = vld [vmem:[#allocation7 + $0x84] ss:$16 sps:$4 sm:$0xff]  }
 0x34b   :  { %1445 = vmatprep.subr.bf16.mxu0 %v6534_v45  ;;  %1486 = vmatprep.subr.bf16.mxu1 %v6202_v3  ;;  %v6554_v3 = vld [vmem:[#allocation7 + $0x80] ss:$16 sps:$4 sm:$0xff]  }
 0x34e   :  { %1446 = vmatpush1.bf16.msra.mxu0 %v6538_v63  ;;  %1487 = vmatpush1.bf16.msra.mxu1 %v6207_v6  ;;  %v6558_v6 = vld [vmem:[#allocation7 + $0xa4] ss:$16 sps:$4 sm:$0xff]  }
 0x34f   :  { %1447 = vmatprep.subr.bf16.mxu0 %v6542_v1  ;;  %1488 = vmatprep.subr.bf16.mxu1 %v6209_v7  ;;  %v6562_v7 = vld [vmem:[#allocation7 + $0xa0] ss:$16 sps:$4 sm:$0xff]  }
 0x352   :  { %1448 = vmatpush1.bf16.msra.mxu0 %v6546_v44  ;;  %1489 = vmatpush1.bf16.msra.mxu1 %v6213_v10  ;;  %v6566_v10 = vld [vmem:[#allocation7 + $0xc4] ss:$16 sps:$4 sm:$0xff]  }
 0x353   :  { %1449 = vmatprep.subr.bf16.mxu0 %v6550_v2  ;;  %1490 = vmatprep.subr.bf16.mxu1 %v6215_v11  ;;  %v6570_v11 = vld [vmem:[#allocation7 + $0xc0] ss:$16 sps:$4 sm:$0xff]  }
 0x356   :  { %1450 = vmatpush1.bf16.msra.mxu0 %v6554_v3  ;;  %1491 = vmatpush1.bf16.msra.mxu1 %v6220_v13  ;;  %v6574_v13 = vld [vmem:[#allocation7 + $0xe4] ss:$16 sps:$4 sm:$0xff]  }
 0x357   :  { %1451 = vmatprep.subr.bf16.mxu0 %v6558_v6  ;;  %1492 = vmatprep.subr.bf16.mxu1 %v6222_v16  ;;  %v6578_v16 = vld [vmem:[#allocation7 + $0xe0] ss:$16 sps:$4 sm:$0xff]  }
 0x35a   :  { %1452 = vmatpush1.bf16.msra.mxu0 %v6562_v7  ;;  %1493 = vmatpush1.bf16.msra.mxu1 %v6227_v17 }
 0x35b   :  { %1453 = vmatprep.subr.bf16.mxu0 %v6566_v10  ;;  %1494 = vmatprep.subr.bf16.mxu1 %v6231_v20 }
 0x35e   :  { %1454 = vmatpush1.bf16.msra.mxu0 %v6570_v11  ;;  %1495 = vmatpush1.bf16.msra.mxu1 %v6234_v21 }
 0x35f   :  { %1455 = vmatprep.subr.bf16.mxu0 %v6574_v13  ;;  %1496 = vmatprep.subr.bf16.mxu1 %v6237_v24 }
 0x362   :  { %1456 = vmatpush1.bf16.msra.mxu0 %v6578_v16  ;;  %1497 = vmatpush1.bf16.msra.mxu1 %v6240_v25 }
 0x363   :  { %1546 = vmatprep.subr.bf16.mxu0 %v6247_v28  ;;  %1587 = vmatprep.subr.bf16.mxu1 %v6249_v29 }
 0x365   :  { %1474 = vmatmul.mubr.bf16.vlgmr.msra.gmra.mrb[16].mxu0 %v1440_v57  ;;  %1515 = vmatmul.mubr.bf16.vlgmr.msra.gmra.mrb[48].mxu1 %v1440_v57 }
 0x366   :  { %1547 = vmatpush1.bf16.msra.mxu0 %v6251_v31  ;;  %1588 = vmatpush1.bf16.msra.mxu1 %v6253_v33 }
 0x367   :  { %1548 = vmatprep.subr.bf16.mxu0 %v6259_v34  ;;  %1589 = vmatprep.subr.bf16.mxu1 %v6261_v35 }
 0x368   :  { %1578 = vmatprep.mubr.bf16.mxu0 %v8528_v48  ;;  %1619 = vmatprep.mubr.bf16.mxu1 %v8528_v48 }
 0x36a   :  { %1549 = vmatpush1.bf16.msra.mxu0 %v6263_v37  ;;  %1590 = vmatpush1.bf16.msra.mxu1 %v6265_v38 }
 0x36b   :  { %1550 = vmatprep.subr.bf16.mxu0 %v6271_v39  ;;  %1591 = vmatprep.subr.bf16.mxu1 %v6273_v40 }
 0x36e   :  { %1551 = vmatpush1.bf16.msra.mxu0 %v6275_v41  ;;  %1592 = vmatpush1.bf16.msra.mxu1 %v8529_v8 }
 0x36f   :  { %1552 = vmatprep.subr.bf16.mxu0 %v8530_v9  ;;  %1593 = vmatprep.subr.bf16.mxu1 %v8531_v12 }
 0x372   :  { %1553 = vmatpush1.bf16.msra.mxu0 %v8532_v14  ;;  %1594 = vmatpush1.bf16.msra.mxu1 %v8533_v15 }
 0x373   :  { %1554 = vmatprep.subr.bf16.mxu0 %v8534_v18  ;;  %1595 = vmatprep.subr.bf16.mxu1 %v8535_v19 }
 0x376   :  { %1555 = vmatpush1.bf16.msra.mxu0 %v8536_v22  ;;  %1596 = vmatpush1.bf16.msra.mxu1 %v8537_v23 }
 0x377   :  { %1556 = vmatprep.subr.bf16.mxu0 %v8538_v26  ;;  %1597 = vmatprep.subr.bf16.mxu1 %v8539_v27 }
 0x37a   :  { %1557 = vmatpush1.bf16.msra.mxu0 %v8540_v30  ;;  %1598 = vmatpush1.bf16.msra.mxu1 %v8541_v32 }
 0x37b   :  { %1558 = vmatprep.subr.bf16.mxu0 %v8542_v36  ;;  %1599 = vmatprep.subr.bf16.mxu1 %v8564_v60 }
 0x37e   :  { %1559 = vmatpush1.bf16.msra.mxu0 %v8565_v58  ;;  %1600 = vmatpush1.bf16.msra.mxu1 %v8566_v53 }
 0x37f   :  { %1560 = vmatprep.subr.bf16.mxu0 %v8567_v52  ;;  %1601 = vmatprep.subr.bf16.mxu1 %v8568_v5 }
 0x382   :  { %1561 = vmatpush1.bf16.msra.mxu0 %v8569_v47  ;;  %1602 = vmatpush1.bf16.msra.mxu1 %v8570_v50  ;;  %v8575_v47 = vld [vmem:[#allocation24_spill] sm:$0xff] }
 0x383   :  { %1644 = vmatprep.subr.bf16.mxu0 %v8571_v49  ;;  %1685 = vmatprep.subr.bf16.mxu1 %v6617_v46  ;;  %v8576_v49 = vld [vmem:[#allocation25_spill] sm:$0xff] }
 0x418   :  { %v1377_v54 = vpop.f32.mrb[12].mxu0  ;;  %v1418_v55 = vpop.f32.mrb[44].mxu1 }
 0x419   :  { %v1378_v56 = vadd.f32 %v1377_v54, %v8573_v59  ;;  %v1379_v42 = vpop.f32.mrb[13].mxu0  ;;  %v1420_v0 = vpop.f32.mrb[45].mxu1  ;;  %v1419_v53 = vadd.f32 %v1418_v55, %v8575_v47 }
 0x41a   :  { %v1380_v57 = vadd.f32 %v1379_v42, %v8574_v61  ;;  %v1381_v52 = vpop.f32.mrb[14].mxu0  ;;  %v1422_v5 = vpop.f32.mrb[46].mxu1  ;;  %v1421_v60 = vadd.f32 %v1420_v0, %v8576_v49  ;;  %v8579_v0 = vld [vmem:[#allocation46_spill] sm:$0xff] }
 0x41b   :  { %5306 = vtanh.f32 %v1378_v56  ;;  %v1382_v50 = vpop.f32.mrb[15].mxu0  ;;  %v1423_v58 = vpop.f32.mrb[47].mxu1  ;;  %v8577_v52 = vld [vmem:[#allocation26_spill] sm:$0xff] }
 0x41c   :  { %5308 = vtanh.f32 %v1380_v57 }
 0x41d   :  { %5310 = vtanh.f32 %v1419_v53 }
 0x41e   :  { %5312 = vtanh.f32 %v1421_v60 }
 0x425   :  { %v5307_v46 = vpop.eup %5306 }
 0x426   :  { %v1429_v36 = vmul.f32 0.5, %v5307_v46  ;;  %v5309_v32 = vpop.eup %5308  ;;  %v8580_v46 = vld [vmem:[#allocation62_spill] sm:$0xff] }
 0x427   :  { %v1431_v54 = vmul.f32 0.5, %v5309_v32  ;;  %v5311_v59 = vpop.eup %5310 }
 0x428   :  { %v1430_v30 = vadd.f32 0.5, %v1429_v36  ;;  %v5313_v58 = vpop.eup %5312 }
 0x429   :  { %v1432_v27 = vadd.f32 0.5, %v1431_v54  ;;  %v1433_v50 = vmul.f32 0.5, %v5313_v58  ;;  %v8581_v54 = vld [vmem:[#allocation47_spill] sm:$0xff] }
 0x42a   :  { %v1436_v42 = vmul.f32 %v5311_v59, %v1430_v30  ;;  %v8582_v59 = vld [vmem:[#allocation63_spill] sm:$0xff] }
 0x42b   :  { %v1435_v5 = vmul.f32 %v1432_v27, %v8577_v52  ;;  %v1434_v60 = vadd.f32 0.5, %v1433_v50 }
 0x42d   :  { %v6625_v56 = vadd.f32 %v1436_v42, %v1435_v5 }
 0x42f   :  { %8578 = vst [vmem:[#allocation28_spill] sm:$0xff] %v6625_v56  ;;  %5314 = vtanh.f32 %v6625_v56 }
 0x438   :  { %v1475_v53 = vpop.f32.mrb[16].mxu0  ;;  %v1516_v55 = vpop.f32.mrb[48].mxu1 }
 0x439   :  { %v1523_v57 = vadd.f32 %v1475_v53, %v8579_v0  ;;  %v1525_v49 = vadd.f32 %v1516_v55, %v8580_v46  ;;  %v1477_v36 = vpop.f32.mrb[17].mxu0  ;;  %v1518_v32 = vpop.f32.mrb[49].mxu1 }
 0x43a   :  { %v5315_v47 = vpop.eup %5314  ;;  %v1524_v30 = vadd.f32 %v1477_v36, %v8581_v54  ;;  %v1526_v27 = vadd.f32 %v1518_v32, %v8582_v59  ;;  %v1479_v42 = vpop.f32.mrb[18].mxu0 }
 0x43b   :  { %v1520_v52 = vpop.f32.mrb[50].mxu1  ;;  %5316 = vtanh.f32 %v1523_v57  ;;  %v1480_v5 = vpop.f32.mrb[19].mxu0  ;;  %v1439_v58 = vmul.f32 %v5315_v47, %v1434_v60 }
 0x43c   :  { %v1521_v56 = vpop.f32.mrb[51].mxu1  ;;  %5318 = vtanh.f32 %v1524_v30  ;;  %v6656_v52 = vld [vmem:[#allocation7 + $0x48] ss:$16 sps:$4 sm:$0xff]   ;;  %v6660_v5 = vld [vmem:[#allocation7 + $0x6c] ss:$16 sps:$4 sm:$0xff]  }
 0x43d   :  { %1542 = vrot.lane.b32.xlu1 %v1439_v58, %s5950_s6  ;;  %5320 = vtanh.f32 %v1525_v49  ;;  %v6664_v58 = vld [vmem:[#allocation7 + $0x68] ss:$16 sps:$4 sm:$0xff]  }
 0x43e   :  { %5322 = vtanh.f32 %v1526_v27  ;;  %v6652_v27 = vld [vmem:[#allocation7 + $0x4c] ss:$16 sps:$4 sm:$0xff]  }
 0x445   :  { %v5317_v53 = vpop.eup %5316 }
 0x446   :  { %v1531_v55 = vmul.f32 0.5, %v5317_v53  ;;  %v5319_v0 = vpop.eup %5318  ;;  %v6668_v53 = vld [vmem:[#allocation7 + $0x8c] ss:$16 sps:$4 sm:$0xff]  }
 0x447   :  { %v1533_v50 = vmul.f32 0.5, %v5319_v0  ;;  %v5321_v61 = vpop.eup %5320  ;;  %v6676_v0 = vld [vmem:[#allocation7 + $0xac] ss:$16 sps:$4 sm:$0xff]  }
 0x448   :  { %v1532_v46 = vadd.f32 0.5, %v1531_v55  ;;  %v5323_v47 = vpop.eup %5322  ;;  %v6672_v55 = vld [vmem:[#allocation7 + $0x88] ss:$16 sps:$4 sm:$0xff]  }
 0x449   :  { %v1534_v26 = vadd.f32 0.5, %v1533_v50  ;;  %v1535_v56 = vmul.f32 0.5, %v5323_v47  ;;  %v8600_v47 = vld [vmem:[#allocation25_spill] sm:$0xff] }
 0x44a   :  { %v1538_v36 = vmul.f32 %v5321_v61, %v1532_v46  ;;  %v6638_v61 = vld [vmem:[#allocation7 + $0x8] ss:$16 sps:$4 sm:$0xff]  }
 0x44b   :  { %v1537_v32 = vmul.f32 %v1534_v26, %v6517_v51  ;;  %v1536_v60 = vadd.f32 0.5, %v1535_v56  ;;  %v6642_v26 = vld [vmem:[#allocation7 + $0x2c] ss:$16 sps:$4 sm:$0xff]   ;;  %v6648_v51 = vld [vmem:[#allocation7 + $0x28] ss:$16 sps:$4 sm:$0xff]  }
 0x44d   :  { %v6634_v54 = vadd.f32 %v1538_v36, %v1537_v32 }
 0x44f   :  { %5324 = vtanh.f32 %v6634_v54 }
 0x459   :  { %v5325_v57 = vpop.eup %5324 }
 0x45a   :  { %v1541_v49 = vmul.f32 %v5325_v57, %v1536_v60 }
 0x45c   :  { %v1643_v46 = vpack.c.bf16 %v1541_v49, %v1541_v49 }
 0x4af   :  { %v1543_v30 = vpop.permute.xlu1 %1542 }
 0x4b0   :  { %v1544_v59 = vadd.f32 %v1543_v30, %v1541_v49 }
 0x4b2   :  { %v1545_v42 = vpack.c.bf16 %v1544_v59, %v1544_v59 }
 0x4b4   :  { %1579 = vmatmul.mubr.bf16.vlgmr.msra.gmra.mrb[20].mxu0 %v1545_v42  ;;  %1620 = vmatmul.mubr.bf16.vlgmr.msra.gmra.mrb[52].mxu1 %v1545_v42 }
 0x4b5   :  { %1645 = vmatpush1.bf16.msra.mxu0 %v6520_v43  ;;  %1686 = vmatpush1.bf16.msra.mxu1 %v6638_v61 }
 0x4b6   :  { %1646 = vmatprep.subr.bf16.mxu0 %v6524_v4  ;;  %1687 = vmatprep.subr.bf16.mxu1 %v6642_v26 }
 0x4b7   :  { %1676 = vmatprep.mubr.bf16.mxu0 %v8528_v48  ;;  %1717 = vmatprep.mubr.bf16.mxu1 %v8528_v48 }
 0x4b9   :  { %1647 = vmatpush1.bf16.msra.mxu0 %v6530_v62  ;;  %1688 = vmatpush1.bf16.msra.mxu1 %v6648_v51 }
 0x4ba   :  { %1648 = vmatprep.subr.bf16.mxu0 %v6534_v45  ;;  %1689 = vmatprep.subr.bf16.mxu1 %v6652_v27 }
 0x4bd   :  { %1649 = vmatpush1.bf16.msra.mxu0 %v6538_v63  ;;  %1690 = vmatpush1.bf16.msra.mxu1 %v6656_v52 }
 0x4be   :  { %1650 = vmatprep.subr.bf16.mxu0 %v6542_v1  ;;  %1691 = vmatprep.subr.bf16.mxu1 %v6660_v5 }
 0x4c1   :  { %1651 = vmatpush1.bf16.msra.mxu0 %v6546_v44  ;;  %1692 = vmatpush1.bf16.msra.mxu1 %v6664_v58 }
 0x4c2   :  { %1652 = vmatprep.subr.bf16.mxu0 %v6550_v2  ;;  %1693 = vmatprep.subr.bf16.mxu1 %v6668_v53 }
 0x4c5   :  { %1653 = vmatpush1.bf16.msra.mxu0 %v6554_v3  ;;  %1694 = vmatpush1.bf16.msra.mxu1 %v6672_v55 }
 0x4c6   :  { %1654 = vmatprep.subr.bf16.mxu0 %v6558_v6  ;;  %1695 = vmatprep.subr.bf16.mxu1 %v6676_v0 }
 0x4c9   :  { %1655 = vmatpush1.bf16.msra.mxu0 %v6562_v7  ;;  %1696 = vmatpush1.bf16.msra.mxu1 %v6227_v17  ;;  %v8583_v17 = vld [vmem:[#allocation30_spill] sm:$0xff] }
 0x4ca   :  { %1656 = vmatprep.subr.bf16.mxu0 %v6566_v10  ;;  %1697 = vmatprep.subr.bf16.mxu1 %v6231_v20  ;;  %v8584_v20 = vld [vmem:[#allocation31_spill] sm:$0xff] }
 0x4cd   :  { %1657 = vmatpush1.bf16.msra.mxu0 %v6570_v11  ;;  %1698 = vmatpush1.bf16.msra.mxu1 %v6234_v21  ;;  %v8585_v21 = vld [vmem:[#allocation32_spill] sm:$0xff] }
 0x4ce   :  { %1658 = vmatprep.subr.bf16.mxu0 %v6574_v13  ;;  %1699 = vmatprep.subr.bf16.mxu1 %v6237_v24  ;;  %v8586_v24 = vld [vmem:[#allocation33_spill] sm:$0xff] }
 0x4d1   :  { %1659 = vmatpush1.bf16.msra.mxu0 %v6578_v16  ;;  %1700 = vmatpush1.bf16.msra.mxu1 %v6240_v25  ;;  %v8587_v25 = vld [vmem:[#allocation34_spill] sm:$0xff] }
 0x4d2   :  { %1749 = vmatprep.subr.bf16.mxu0 %v6247_v28  ;;  %1790 = vmatprep.subr.bf16.mxu1 %v6249_v29  ;;  %v8588_v28 = vld [vmem:[#allocation35_spill] sm:$0xff]  ;;  %v8589_v29 = vld [vmem:[#allocation36_spill] sm:$0xff] }
 0x4d4   :  { %1677 = vmatmul.mubr.bf16.vlgmr.msra.gmra.mrb[24].mxu0 %v1643_v46  ;;  %1718 = vmatmul.mubr.bf16.vlgmr.msra.gmra.mrb[56].mxu1 %v1643_v46 }
 0x4d5   :  { %1750 = vmatpush1.bf16.msra.mxu0 %v6251_v31  ;;  %1791 = vmatpush1.bf16.msra.mxu1 %v6253_v33  ;;  %v8590_v31 = vld [vmem:[#allocation37_spill] sm:$0xff]  ;;  %v8591_v33 = vld [vmem:[#allocation38_spill] sm:$0xff] }
 0x4d6   :  { %1751 = vmatprep.subr.bf16.mxu0 %v6259_v34  ;;  %1792 = vmatprep.subr.bf16.mxu1 %v6261_v35  ;;  %v8592_v34 = vld [vmem:[#allocation39_spill] sm:$0xff]  ;;  %v8593_v35 = vld [vmem:[#allocation40_spill] sm:$0xff] }
 0x4d7   :  { %1781 = vmatprep.mubr.bf16.mxu0 %v8528_v48  ;;  %1822 = vmatprep.mubr.bf16.mxu1 %v8528_v48 }
 0x4d9   :  { %1752 = vmatpush1.bf16.msra.mxu0 %v6263_v37  ;;  %1793 = vmatpush1.bf16.msra.mxu1 %v6265_v38  ;;  %v8594_v37 = vld [vmem:[#allocation41_spill] sm:$0xff] }
 0x4da   :  { %1753 = vmatprep.subr.bf16.mxu0 %v6271_v39  ;;  %1794 = vmatprep.subr.bf16.mxu1 %v6273_v40  ;;  %v8595_v38 = vld [vmem:[#allocation21_spill] sm:$0xff]  ;;  %v8596_v39 = vld [vmem:[#allocation27_spill] sm:$0xff] }
 0x4dd   :  { %1754 = vmatpush1.bf16.msra.mxu0 %v6275_v41  ;;  %1795 = vmatpush1.bf16.msra.mxu1 %v8529_v8  ;;  %v8597_v8 = vld [vmem:[#allocation22_spill] sm:$0xff] }
 0x4de   :  { %1755 = vmatprep.subr.bf16.mxu0 %v8530_v9  ;;  %1796 = vmatprep.subr.bf16.mxu1 %v8531_v12 }
 0x4e1   :  { %1756 = vmatpush1.bf16.msra.mxu0 %v8532_v14  ;;  %1797 = vmatpush1.bf16.msra.mxu1 %v8533_v15  ;;  %v8598_v15 = vld [vmem:[#allocation23_spill] sm:$0xff] }
 0x4e2   :  { %1757 = vmatprep.subr.bf16.mxu0 %v8534_v18  ;;  %1798 = vmatprep.subr.bf16.mxu1 %v8535_v19 }
 0x4e5   :  { %1758 = vmatpush1.bf16.msra.mxu0 %v8536_v22  ;;  %1799 = vmatpush1.bf16.msra.mxu1 %v8537_v23  ;;  %v8599_v23 = vld [vmem:[#allocation24_spill] sm:$0xff] }
 0x4e6   :  { %1759 = vmatprep.subr.bf16.mxu0 %v8583_v17  ;;  %1800 = vmatprep.subr.bf16.mxu1 %v8584_v20  ;;  %v8601_v20 = vld [vmem:[#allocation28_spill] sm:$0xff] }
 0x4e9   :  { %1760 = vmatpush1.bf16.msra.mxu0 %v8585_v21  ;;  %1801 = vmatpush1.bf16.msra.mxu1 %v8586_v24 }
 0x4ea   :  { %1761 = vmatprep.subr.bf16.mxu0 %v8587_v25  ;;  %1802 = vmatprep.subr.bf16.mxu1 %v8588_v28 }
 0x4ed   :  { %1762 = vmatpush1.bf16.msra.mxu0 %v8589_v29  ;;  %1803 = vmatpush1.bf16.msra.mxu1 %v8590_v31 }
 0x4ee   :  { %1763 = vmatprep.subr.bf16.mxu0 %v8591_v33  ;;  %1804 = vmatprep.subr.bf16.mxu1 %v8592_v34  ;;  %v8602_v33 = vld [vmem:[#allocation48_spill] sm:$0xff] }
 0x4f1   :  { %1764 = vmatpush1.bf16.msra.mxu0 %v8593_v35  ;;  %1805 = vmatpush1.bf16.msra.mxu1 %v8594_v37  ;;  %v8603_v35 = vld [vmem:[#allocation64_spill] sm:$0xff] }
 0x4f2   :  { %1847 = vmatprep.subr.bf16.mxu0 %v8595_v38  ;;  %1888 = vmatprep.subr.bf16.mxu1 %v8596_v39 }
 0x587   :  { %v1580_v40 = vpop.f32.mrb[20].mxu0  ;;  %v1621_v41 = vpop.f32.mrb[52].mxu1 }
 0x588   :  { %v1581_v9 = vadd.f32 %v1580_v40, %v8597_v8  ;;  %v1582_v12 = vpop.f32.mrb[21].mxu0  ;;  %v1623_v14 = vpop.f32.mrb[53].mxu1  ;;  %v1622_v50 = vadd.f32 %v1621_v41, %v8599_v23 }
 0x589   :  { %v1583_v18 = vadd.f32 %v1582_v12, %v8598_v15  ;;  %v1584_v19 = vpop.f32.mrb[22].mxu0  ;;  %v1625_v22 = vpop.f32.mrb[54].mxu1  ;;  %v1624_v56 = vadd.f32 %v1623_v14, %v8600_v47  ;;  %v8604_v14 = vld [vmem:[#allocation49_spill] sm:$0xff] }
 0x58a   :  { %5326 = vtanh.f32 %v1581_v9  ;;  %v1585_v36 = vpop.f32.mrb[23].mxu0  ;;  %v1626_v32 = vpop.f32.mrb[55].mxu1  ;;  %v8605_v19 = vld [vmem:[#allocation65_spill] sm:$0xff] }
 0x58b   :  { %5328 = vtanh.f32 %v1583_v18 }
 0x58c   :  { %5330 = vtanh.f32 %v1622_v50 }
 0x58d   :  { %5332 = vtanh.f32 %v1624_v56 }
 0x594   :  { %v5327_v57 = vpop.eup %5326 }
 0x595   :  { %v1632_v60 = vmul.f32 0.5, %v5327_v57  ;;  %v5329_v49 = vpop.eup %5328 }
 0x596   :  { %v1634_v59 = vmul.f32 0.5, %v5329_v49  ;;  %v5331_v42 = vpop.eup %5330 }
 0x597   :  { %v1633_v30 = vadd.f32 0.5, %v1632_v60  ;;  %v5333_v25 = vpop.eup %5332 }
 0x598   :  { %v1635_v46 = vadd.f32 0.5, %v1634_v59  ;;  %v1636_v28 = vmul.f32 0.5, %v5333_v25 }
 0x599   :  { %v1639_v17 = vmul.f32 %v5331_v42, %v1633_v30 }
 0x59a   :  { %v1638_v21 = vmul.f32 %v1635_v46, %v8601_v20  ;;  %v1637_v9 = vadd.f32 0.5, %v1636_v28 }
 0x59c   :  { %v6730_v24 = vadd.f32 %v1639_v17, %v1638_v21 }
 0x59e   :  { %5334 = vtanh.f32 %v6730_v24 }
 0x5a7   :  { %v1678_v29 = vpop.f32.mrb[24].mxu0  ;;  %v1719_v31 = vpop.f32.mrb[56].mxu1 }
 0x5a8   :  { %v1726_v34 = vadd.f32 %v1678_v29, %v8602_v33  ;;  %v1728_v37 = vadd.f32 %v1719_v31, %v8603_v35  ;;  %v1680_v40 = vpop.f32.mrb[25].mxu0  ;;  %v1721_v41 = vpop.f32.mrb[57].mxu1 }
 0x5a9   :  { %v5335_v12 = vpop.eup %5334  ;;  %v1727_v18 = vadd.f32 %v1680_v40, %v8604_v14  ;;  %v1729_v22 = vadd.f32 %v1721_v41, %v8605_v19  ;;  %v1682_v50 = vpop.f32.mrb[26].mxu0  ;;  %v6769_v41 = vld [vmem:[#allocation7 + $0xcc] ss:$16 sps:$4 sm:$0xff]   ;;  %v6781_v14 = vld [vmem:[#allocation7 + $0xe8] ss:$16 sps:$4 sm:$0xff]  }
 0x5aa   :  { %v1723_v36 = vpop.f32.mrb[58].mxu1  ;;  %5336 = vtanh.f32 %v1726_v34  ;;  %v1683_v32 = vpop.f32.mrb[27].mxu0  ;;  %v1642_v57 = vmul.f32 %v5335_v12, %v1637_v9  ;;  %v6773_v9 = vld [vmem:[#allocation7 + $0xc8] ss:$16 sps:$4 sm:$0xff]   ;;  %v6777_v12 = vld [vmem:[#allocation7 + $0xec] ss:$16 sps:$4 sm:$0xff]  }
 0x5ab   :  { %v1724_v56 = vpop.f32.mrb[59].mxu1  ;;  %5338 = vtanh.f32 %v1727_v18  ;;  %v6784_v19 = vld [vmem:[#allocation8 + $0x4] ss:$16 sps:$4 sm:$0xff]   ;;  %v6790_v50 = vld [vmem:[#allocation8] ss:$16 sps:$4 sm:$0xff]  }
 0x5ac   :  { %1745 = vrot.lane.b32.xlu1 %v1642_v57, %s5950_s6  ;;  %5340 = vtanh.f32 %v1728_v37  ;;  %v6793_v36 = vld [vmem:[#allocation8 + $0x8] ss:$16 sps:$4 sm:$0xff]   ;;  %v6796_v32 = vld [vmem:[#allocation8 + $0x24] ss:$16 sps:$4 sm:$0xff]   ;;  %v6799_v56 = vld [vmem:[#allocation8 + $0x2c] ss:$16 sps:$4 sm:$0xff]  }
 0x5ad   :  { %5342 = vtanh.f32 %v1729_v22  ;;  %v6787_v22 = vld [vmem:[#allocation8 + $0xc] ss:$16 sps:$4 sm:$0xff]   ;;  %v6804_v57 = vld [vmem:[#allocation8 + $0x20] ss:$16 sps:$4 sm:$0xff]  }
 0x5b4   :  { %v5337_v60 = vpop.eup %5336 }
 0x5b5   :  { %v1734_v49 = vmul.f32 0.5, %v5337_v60  ;;  %v5339_v30 = vpop.eup %5338  ;;  %v6807_v60 = vld [vmem:[#allocation8 + $0x28] ss:$16 sps:$4 sm:$0xff]  }
 0x5b6   :  { %v1736_v42 = vmul.f32 0.5, %v5339_v30  ;;  %v5341_v46 = vpop.eup %5340  ;;  %v6813_v30 = vld [vmem:[#allocation8 + $0x4c] ss:$16 sps:$4 sm:$0xff]  }
 0x5b7   :  { %v1735_v59 = vadd.f32 0.5, %v1734_v49  ;;  %v5343_v28 = vpop.eup %5342  ;;  %v6810_v49 = vld [vmem:[#allocation8 + $0x44] ss:$16 sps:$4 sm:$0xff]  }
 0x5b8   :  { %v1737_v17 = vadd.f32 0.5, %v1736_v42  ;;  %v1738_v29 = vmul.f32 0.5, %v5343_v28  ;;  %v6819_v42 = vld [vmem:[#allocation8 + $0x48] ss:$16 sps:$4 sm:$0xff]   ;;  %v6834_v28 = vld [vmem:[#allocation8 + $0x84] ss:$16 sps:$4 sm:$0xff]  }
 0x5b9   :  { %v1741_v20 = vmul.f32 %v5341_v46, %v1735_v59  ;;  %v6816_v59 = vld [vmem:[#allocation8 + $0x40] ss:$16 sps:$4 sm:$0xff]   ;;  %8607 = vst [vmem:[#allocation20_spill] sm:$0xff] %v6819_v42  ;;  %v6822_v46 = vld [vmem:[#allocation8 + $0x64] ss:$16 sps:$4 sm:$0xff]   ;;  %8612 = vst [vmem:[#allocation26_spill] sm:$0xff] %v6834_v28 }
 0x5ba   :  { %v1740_v21 = vmul.f32 %v1737_v17, %v6634_v54  ;;  %v1739_v33 = vadd.f32 0.5, %v1738_v29  ;;  %v6765_v54 = vld [vmem:[#allocation7 + $0xa8] ss:$16 sps:$4 sm:$0xff]   ;;  %8606 = vst [vmem:[#allocation29_spill] sm:$0xff] %v6816_v59  ;;  %8608 = vst [vmem:[#allocation44_spill] sm:$0xff] %v6822_v46 }
 0x5bb   :  { %v6825_v17 = vld [vmem:[#allocation8 + $0x6c] ss:$16 sps:$4 sm:$0xff]  }
 0x5bc   :  { %v6739_v25 = vadd.f32 %v1741_v20, %v1740_v21  ;;  %8609 = vst [vmem:[#allocation60_spill] sm:$0xff] %v6825_v17  ;;  %v6828_v20 = vld [vmem:[#allocation8 + $0x60] ss:$16 sps:$4 sm:$0xff]   ;;  %v6831_v21 = vld [vmem:[#allocation8 + $0x68] ss:$16 sps:$4 sm:$0xff]  }
 0x5bd   :  { %8610 = vst [vmem:[#allocation45_spill] sm:$0xff] %v6828_v20  ;;  %8611 = vst [vmem:[#allocation61_spill] sm:$0xff] %v6831_v21  ;;  %v6837_v29 = vld [vmem:[#allocation8 + $0x8c] ss:$16 sps:$4 sm:$0xff]  }
 0x5be   :  { %5344 = vtanh.f32 %v6739_v25  ;;  %8613 = vst [vmem:[#allocation46_spill] sm:$0xff] %v6837_v29 }
 0x5c8   :  { %v5345_v31 = vpop.eup %5344 }
 0x5c9   :  { %v1744_v34 = vmul.f32 %v5345_v31, %v1739_v33  ;;  %v6840_v31 = vld [vmem:[#allocation8 + $0x80] ss:$16 sps:$4 sm:$0xff]   ;;  %v6843_v33 = vld [vmem:[#allocation8 + $0x88] ss:$16 sps:$4 sm:$0xff]  }
 0x5ca   :  { %8614 = vst [vmem:[#allocation62_spill] sm:$0xff] %v6840_v31  ;;  %8615 = vst [vmem:[#allocation47_spill] sm:$0xff] %v6843_v33 }
 0x5cb   :  { %v1846_v18 = vpack.c.bf16 %v1744_v34, %v1744_v34 }
 0x61e   :  { %v1746_v35 = vpop.permute.xlu1 %1745 }
 0x61f   :  { %v1747_v37 = vadd.f32 %v1746_v35, %v1744_v34  ;;  %v6846_v34 = vld [vmem:[#allocation8 + $0xa4] ss:$16 sps:$4 sm:$0xff]   ;;  %v6849_v35 = vld [vmem:[#allocation8 + $0xac] ss:$16 sps:$4 sm:$0xff]  }
 0x620   :  { %8616 = vst [vmem:[#allocation63_spill] sm:$0xff] %v6846_v34  ;;  %8617 = vst [vmem:[#allocation30_spill] sm:$0xff] %v6849_v35 }
 0x621   :  { %v1748_v40 = vpack.c.bf16 %v1747_v37, %v1747_v37  ;;  %v6852_v37 = vld [vmem:[#allocation8 + $0xa0] ss:$16 sps:$4 sm:$0xff]  }
 0x622   :  { %8618 = vst [vmem:[#allocation31_spill] sm:$0xff] %v6852_v37 }
 0x623   :  { %1782 = vmatmul.mubr.bf16.vlgmr.msra.gmra.mrb[28].mxu0 %v1748_v40  ;;  %1823 = vmatmul.mubr.bf16.vlgmr.msra.gmra.mrb[60].mxu1 %v1748_v40  ;;  %v6855_v40 = vld [vmem:[#allocation8 + $0xa8] ss:$16 sps:$4 sm:$0xff]  }
 0x624   :  { %1848 = vmatpush1.bf16.msra.mxu0 %v6520_v43  ;;  %1889 = vmatpush1.bf16.msra.mxu1 %v6638_v61  ;;  %8619 = vst [vmem:[#allocation32_spill] sm:$0xff] %v6855_v40 }
 0x625   :  { %1849 = vmatprep.subr.bf16.mxu0 %v6524_v4  ;;  %1890 = vmatprep.subr.bf16.mxu1 %v6642_v26 }
 0x626   :  { %1879 = vmatprep.mubr.bf16.mxu0 %v8528_v48  ;;  %1920 = vmatprep.mubr.bf16.mxu1 %v8528_v48 }
 0x628   :  { %1850 = vmatpush1.bf16.msra.mxu0 %v6530_v62  ;;  %1891 = vmatpush1.bf16.msra.mxu1 %v6648_v51 }
 0x629   :  { %1851 = vmatprep.subr.bf16.mxu0 %v6534_v45  ;;  %1892 = vmatprep.subr.bf16.mxu1 %v6652_v27 }
 0x62c   :  { %1852 = vmatpush1.bf16.msra.mxu0 %v6538_v63  ;;  %1893 = vmatpush1.bf16.msra.mxu1 %v6656_v52 }
 0x62d   :  { %1853 = vmatprep.subr.bf16.mxu0 %v6542_v1  ;;  %1894 = vmatprep.subr.bf16.mxu1 %v6660_v5 }
 0x630   :  { %1854 = vmatpush1.bf16.msra.mxu0 %v6546_v44  ;;  %1895 = vmatpush1.bf16.msra.mxu1 %v6664_v58 }
 0x631   :  { %1855 = vmatprep.subr.bf16.mxu0 %v6550_v2  ;;  %1896 = vmatprep.subr.bf16.mxu1 %v6668_v53 }
 0x634   :  { %1856 = vmatpush1.bf16.msra.mxu0 %v6554_v3  ;;  %1897 = vmatpush1.bf16.msra.mxu1 %v6672_v55 }
 0x635   :  { %1857 = vmatprep.subr.bf16.mxu0 %v6558_v6  ;;  %1898 = vmatprep.subr.bf16.mxu1 %v6676_v0 }
 0x638   :  { %1858 = vmatpush1.bf16.msra.mxu0 %v6562_v7  ;;  %1899 = vmatpush1.bf16.msra.mxu1 %v6765_v54 }
 0x639   :  { %1859 = vmatprep.subr.bf16.mxu0 %v6566_v10  ;;  %1900 = vmatprep.subr.bf16.mxu1 %v6769_v41 }
 0x63c   :  { %1860 = vmatpush1.bf16.msra.mxu0 %v6570_v11  ;;  %1901 = vmatpush1.bf16.msra.mxu1 %v6773_v9 }
 0x63d   :  { %1861 = vmatprep.subr.bf16.mxu0 %v6574_v13  ;;  %1902 = vmatprep.subr.bf16.mxu1 %v6777_v12 }
 0x640   :  { %1862 = vmatpush1.bf16.msra.mxu0 %v6578_v16  ;;  %1903 = vmatpush1.bf16.msra.mxu1 %v6781_v14 }
 0x641   :  { %1952 = vmatprep.subr.bf16.mxu0 %v6784_v19  ;;  %1993 = vmatprep.subr.bf16.mxu1 %v6787_v22 }
 0x643   :  { %1880 = vmatmul.mubr.bf16.vlgmr.msra.gmra.mrb[32].mxu0 %v1846_v18  ;;  %1921 = vmatmul.mubr.bf16.vlgmr.msra.gmra.mrb[64].mxu1 %v1846_v18  ;;  %v6858_v18 = vld [vmem:[#allocation8 + $0xc4] ss:$16 sps:$4 sm:$0xff]  }
 0x644   :  { %1953 = vmatpush1.bf16.msra.mxu0 %v6790_v50  ;;  %1994 = vmatpush1.bf16.msra.mxu1 %v6793_v36  ;;  %8620 = vst [vmem:[#allocation33_spill] sm:$0xff] %v6858_v18 }
 0x645   :  { %1954 = vmatprep.subr.bf16.mxu0 %v6796_v32  ;;  %1995 = vmatprep.subr.bf16.mxu1 %v6799_v56 }
 0x646   :  { %1984 = vmatprep.mubr.bf16.mxu0 %v8528_v48  ;;  %2025 = vmatprep.mubr.bf16.mxu1 %v8528_v48 }
 0x648   :  { %1955 = vmatpush1.bf16.msra.mxu0 %v6804_v57  ;;  %1996 = vmatpush1.bf16.msra.mxu1 %v6807_v60 }
 0x649   :  { %1956 = vmatprep.subr.bf16.mxu0 %v6810_v49  ;;  %1997 = vmatprep.subr.bf16.mxu1 %v6813_v30 }
 0x64c   :  { %1957 = vmatpush1.bf16.msra.mxu0 %v6816_v59  ;;  %1998 = vmatpush1.bf16.msra.mxu1 %v6819_v42 }
 0x64d   :  { %1958 = vmatprep.subr.bf16.mxu0 %v6822_v46  ;;  %1999 = vmatprep.subr.bf16.mxu1 %v6825_v17 }
 0x650   :  { %1959 = vmatpush1.bf16.msra.mxu0 %v6828_v20  ;;  %2000 = vmatpush1.bf16.msra.mxu1 %v6831_v21 }
 0x651   :  { %1960 = vmatprep.subr.bf16.mxu0 %v6834_v28  ;;  %2001 = vmatprep.subr.bf16.mxu1 %v6837_v29 }
 0x654   :  { %1961 = vmatpush1.bf16.msra.mxu0 %v6840_v31  ;;  %2002 = vmatpush1.bf16.msra.mxu1 %v6843_v33  ;;  %v6861_v33 = vld [vmem:[#allocation8 + $0xcc] ss:$16 sps:$4 sm:$0xff]  }
 0x655   :  { %1962 = vmatprep.subr.bf16.mxu0 %v6846_v34  ;;  %2003 = vmatprep.subr.bf16.mxu1 %v6849_v35  ;;  %8621 = vst [vmem:[#allocation34_spill] sm:$0xff] %v6861_v33  ;;  %v6864_v34 = vld [vmem:[#allocation8 + $0xc0] ss:$16 sps:$4 sm:$0xff]   ;;  %v6867_v35 = vld [vmem:[#allocation8 + $0xc8] ss:$16 sps:$4 sm:$0xff]  }
 0x656   :  { %8622 = vst [vmem:[#allocation35_spill] sm:$0xff] %v6864_v34  ;;  %8623 = vst [vmem:[#allocation36_spill] sm:$0xff] %v6867_v35 }
 0x658   :  { %1963 = vmatpush1.bf16.msra.mxu0 %v6852_v37  ;;  %2004 = vmatpush1.bf16.msra.mxu1 %v6855_v40  ;;  %v6870_v37 = vld [vmem:[#allocation8 + $0xe4] ss:$16 sps:$4 sm:$0xff]   ;;  %v6873_v40 = vld [vmem:[#allocation8 + $0xec] ss:$16 sps:$4 sm:$0xff]  }
 0x659   :  { %1964 = vmatprep.subr.bf16.mxu0 %v6858_v18  ;;  %2005 = vmatprep.subr.bf16.mxu1 %v6861_v33  ;;  %8624 = vst [vmem:[#allocation37_spill] sm:$0xff] %v6870_v37  ;;  %8625 = vst [vmem:[#allocation38_spill] sm:$0xff] %v6873_v40  ;;  %v6876_v18 = vld [vmem:[#allocation8 + $0xe0] ss:$16 sps:$4 sm:$0xff]   ;;  %v6879_v33 = vld [vmem:[#allocation8 + $0xe8] ss:$16 sps:$4 sm:$0xff]  }
 0x65a   :  { %8626 = vst [vmem:[#allocation39_spill] sm:$0xff] %v6876_v18  ;;  %8627 = vst [vmem:[#allocation40_spill] sm:$0xff] %v6879_v33 }
 0x65c   :  { %1965 = vmatpush1.bf16.msra.mxu0 %v6864_v34  ;;  %2006 = vmatpush1.bf16.msra.mxu1 %v6867_v35 }
 0x65d   :  { %1966 = vmatprep.subr.bf16.mxu0 %v6870_v37  ;;  %2007 = vmatprep.subr.bf16.mxu1 %v6873_v40 }
 0x660   :  { %1967 = vmatpush1.bf16.msra.mxu0 %v6876_v18  ;;  %2008 = vmatpush1.bf16.msra.mxu1 %v6879_v33 }
 0x661   :  { %2050 = vmatprep.subr.bf16.mxu0 %v8595_v38  ;;  %2091 = vmatprep.subr.bf16.mxu1 %v8596_v39 }
 0x6f6   :  { %v1783_v35 = vpop.f32.mrb[28].mxu0  ;;  %v1824_v34 = vpop.f32.mrb[60].mxu1 }
 0x6f7   :  { %v1784_v37 = vadd.f32 %v1783_v35, %v8597_v8  ;;  %v1785_v31 = vpop.f32.mrb[29].mxu0  ;;  %v1826_v29 = vpop.f32.mrb[61].mxu1  ;;  %v1825_v18 = vadd.f32 %v1824_v34, %v8599_v23 }
 0x6f8   :  { %v1786_v40 = vadd.f32 %v1785_v31, %v8598_v15  ;;  %v1787_v28 = vpop.f32.mrb[30].mxu0  ;;  %v1828_v21 = vpop.f32.mrb[62].mxu1  ;;  %v1827_v38 = vadd.f32 %v1826_v29, %v8600_v47  ;;  %v8629_v29 = vld [vmem:[#allocation50_spill] sm:$0xff] }
 0x6f9   :  { %5346 = vtanh.f32 %v1784_v37  ;;  %v1788_v20 = vpop.f32.mrb[31].mxu0  ;;  %v1829_v17 = vpop.f32.mrb[63].mxu1 }
 0x6fa   :  { %5348 = vtanh.f32 %v1786_v40 }
 0x6fb   :  { %5350 = vtanh.f32 %v1825_v18 }
 0x6fc   :  { %5352 = vtanh.f32 %v1827_v38 }
 0x703   :  { %v5347_v39 = vpop.eup %5346 }
 0x704   :  { %v1835_v33 = vmul.f32 0.5, %v5347_v39  ;;  %v5349_v46 = vpop.eup %5348  ;;  %v8630_v39 = vld [vmem:[#allocation66_spill] sm:$0xff] }
 0x705   :  { %v1837_v35 = vmul.f32 0.5, %v5349_v46  ;;  %v5351_v8 = vpop.eup %5350 }
 0x706   :  { %v1836_v42 = vadd.f32 0.5, %v1835_v33  ;;  %v5353_v17 = vpop.eup %5352 }
 0x707   :  { %v1838_v59 = vadd.f32 0.5, %v1837_v35  ;;  %v1839_v20 = vmul.f32 0.5, %v5353_v17  ;;  %v8631_v35 = vld [vmem:[#allocation51_spill] sm:$0xff] }
 0x708   :  { %v1842_v31 = vmul.f32 %v5351_v8, %v1836_v42  ;;  %v8632_v42 = vld [vmem:[#allocation67_spill] sm:$0xff] }
 0x709   :  { %v1841_v21 = vmul.f32 %v1838_v59, %v6730_v24  ;;  %v1840_v38 = vadd.f32 0.5, %v1839_v20 }
 0x70b   :  { %v6889_v28 = vadd.f32 %v1842_v31, %v1841_v21 }
 0x70d   :  { %8628 = vst [vmem:[#allocation41_spill] sm:$0xff] %v6889_v28  ;;  %5354 = vtanh.f32 %v6889_v28 }
 0x716   :  { %v1881_v34 = vpop.f32.mrb[32].mxu0  ;;  %v1922_v37 = vpop.f32.mrb[64].mxu1 }
 0x717   :  { %v1929_v40 = vadd.f32 %v1881_v34, %v8629_v29  ;;  %v1931_v18 = vadd.f32 %v1922_v37, %v8630_v39  ;;  %v1883_v33 = vpop.f32.mrb[33].mxu0  ;;  %v1924_v46 = vpop.f32.mrb[65].mxu1 }
 0x718   :  { %v5355_v47 = vpop.eup %5354  ;;  %v1930_v8 = vadd.f32 %v1883_v33, %v8631_v35  ;;  %v1932_v24 = vadd.f32 %v1924_v46, %v8632_v42  ;;  %v1885_v59 = vpop.f32.mrb[34].mxu0 }
 0x719   :  { %v1926_v31 = vpop.f32.mrb[66].mxu1  ;;  %5356 = vtanh.f32 %v1929_v40  ;;  %v1886_v21 = vpop.f32.mrb[35].mxu0  ;;  %v1845_v17 = vmul.f32 %v5355_v47, %v1840_v38 }
 0x71a   :  { %v1927_v28 = vpop.f32.mrb[67].mxu1  ;;  %5358 = vtanh.f32 %v1930_v8  ;;  %v8651_v31 = vld [vmem:[#allocation37_spill] sm:$0xff]  ;;  %v8652_v21 = vld [vmem:[#allocation38_spill] sm:$0xff] }
 0x71b   :  { %1948 = vrot.lane.b32.xlu0 %v1845_v17, %s5950_s6  ;;  %5360 = vtanh.f32 %v1931_v18  ;;  %v8653_v17 = vld [vmem:[#allocation39_spill] sm:$0xff] }
 0x71c   :  { %5362 = vtanh.f32 %v1932_v24  ;;  %v8650_v24 = vld [vmem:[#allocation36_spill] sm:$0xff] }
 0x723   :  { %v5357_v34 = vpop.eup %5356 }
 0x724   :  { %v1937_v37 = vmul.f32 0.5, %v5357_v34  ;;  %v5359_v29 = vpop.eup %5358  ;;  %v8654_v34 = vld [vmem:[#allocation40_spill] sm:$0xff] }
 0x725   :  { %v1939_v20 = vmul.f32 0.5, %v5359_v29  ;;  %v5361_v23 = vpop.eup %5360  ;;  %v8656_v29 = vld [vmem:[#allocation27_spill] sm:$0xff] }
 0x726   :  { %v1938_v39 = vadd.f32 0.5, %v1937_v37  ;;  %v5363_v47 = vpop.eup %5362  ;;  %v6967_v37 = vld [vmem:[#allocation7 + $0x4] ss:$16 sps:$4 sm:$0xff]  }
 0x727   :  { %v1940_v15 = vadd.f32 0.5, %v1939_v20  ;;  %v1941_v28 = vmul.f32 0.5, %v5363_v47  ;;  %8655 = vst [vmem:[#allocation21_spill] sm:$0xff] %v6967_v37 }
 0x728   :  { %v1944_v33 = vmul.f32 %v5361_v23, %v1938_v39  ;;  %v8648_v23 = vld [vmem:[#allocation34_spill] sm:$0xff] }
 0x729   :  { %v1943_v46 = vmul.f32 %v1940_v15, %v6739_v25  ;;  %v1942_v38 = vadd.f32 0.5, %v1941_v28  ;;  %v8647_v15 = vld [vmem:[#allocation33_spill] sm:$0xff]  ;;  %v8649_v25 = vld [vmem:[#allocation35_spill] sm:$0xff] }
 0x72b   :  { %v6898_v35 = vadd.f32 %v1944_v33, %v1943_v46  ;;  %v8657_v33 = vld [vmem:[#allocation22_spill] sm:$0xff] }
 0x72d   :  { %5364 = vtanh.f32 %v6898_v35 }
 0x737   :  { %v5365_v40 = vpop.eup %5364 }
 0x738   :  { %v1947_v18 = vmul.f32 %v5365_v40, %v1942_v38  ;;  %v8658_v40 = vld [vmem:[#allocation23_spill] sm:$0xff] }
 0x78d   :  { %v1949_v8 = vpop.permute.xlu0 %1948 }
 0x78e   :  { %v1950_v42 = vadd.f32 %v1949_v8, %v1947_v18 }
 0x790   :  { %v1951_v59 = vpack.c.bf16 %v1950_v42, %v1950_v42  ;;  %v8659_v42 = vld [vmem:[#allocation24_spill] sm:$0xff] }
 0x792   :  { %1985 = vmatmul.mubr.bf16.vlgmr.msra.gmra.mrb[36].mxu0 %v1951_v59  ;;  %2026 = vmatmul.mubr.bf16.vlgmr.msra.gmra.mrb[68].mxu1 %v1951_v59 }
 0x793   :  { %2051 = vmatpush1.bf16.msra.mxu0 %v6520_v43  ;;  %2092 = vmatpush1.bf16.msra.mxu1 %v6638_v61  ;;  %v2049_v43 = vpack.c.bf16 %v1947_v18, %v1947_v18 }
 0x794   :  { %2052 = vmatprep.subr.bf16.mxu0 %v6524_v4  ;;  %2093 = vmatprep.subr.bf16.mxu1 %v6642_v26  ;;  %v8633_v4 = vld [vmem:[#allocation29_spill] sm:$0xff] }
 0x795   :  { %2082 = vmatprep.mubr.bf16.mxu0 %v8528_v48  ;;  %2123 = vmatprep.mubr.bf16.mxu1 %v8528_v48 }
 0x797   :  { %2053 = vmatpush1.bf16.msra.mxu0 %v6530_v62  ;;  %2094 = vmatpush1.bf16.msra.mxu1 %v6648_v51  ;;  %v8634_v62 = vld [vmem:[#allocation20_spill] sm:$0xff] }
 0x798   :  { %2054 = vmatprep.subr.bf16.mxu0 %v6534_v45  ;;  %2095 = vmatprep.subr.bf16.mxu1 %v6652_v27  ;;  %v8635_v45 = vld [vmem:[#allocation44_spill] sm:$0xff] }
 0x79b   :  { %2055 = vmatpush1.bf16.msra.mxu0 %v6538_v63  ;;  %2096 = vmatpush1.bf16.msra.mxu1 %v6656_v52  ;;  %v8636_v63 = vld [vmem:[#allocation60_spill] sm:$0xff] }
 0x79c   :  { %2056 = vmatprep.subr.bf16.mxu0 %v6542_v1  ;;  %2097 = vmatprep.subr.bf16.mxu1 %v6660_v5  ;;  %v8637_v1 = vld [vmem:[#allocation45_spill] sm:$0xff] }
 0x79f   :  { %2057 = vmatpush1.bf16.msra.mxu0 %v6546_v44  ;;  %2098 = vmatpush1.bf16.msra.mxu1 %v6664_v58  ;;  %v8638_v44 = vld [vmem:[#allocation61_spill] sm:$0xff] }
 0x7a0   :  { %2058 = vmatprep.subr.bf16.mxu0 %v6550_v2  ;;  %2099 = vmatprep.subr.bf16.mxu1 %v6668_v53  ;;  %v8639_v2 = vld [vmem:[#allocation26_spill] sm:$0xff] }
 0x7a3   :  { %2059 = vmatpush1.bf16.msra.mxu0 %v6554_v3  ;;  %2100 = vmatpush1.bf16.msra.mxu1 %v6672_v55  ;;  %v8640_v3 = vld [vmem:[#allocation46_spill] sm:$0xff] }
 0x7a4   :  { %2060 = vmatprep.subr.bf16.mxu0 %v6558_v6  ;;  %2101 = vmatprep.subr.bf16.mxu1 %v6676_v0  ;;  %v8641_v6 = vld [vmem:[#allocation62_spill] sm:$0xff] }
 0x7a7   :  { %2061 = vmatpush1.bf16.msra.mxu0 %v6562_v7  ;;  %2102 = vmatpush1.bf16.msra.mxu1 %v6765_v54  ;;  %v8642_v7 = vld [vmem:[#allocation47_spill] sm:$0xff] }
 0x7a8   :  { %2062 = vmatprep.subr.bf16.mxu0 %v6566_v10  ;;  %2103 = vmatprep.subr.bf16.mxu1 %v6769_v41  ;;  %v8643_v10 = vld [vmem:[#allocation63_spill] sm:$0xff] }
 0x7ab   :  { %2063 = vmatpush1.bf16.msra.mxu0 %v6570_v11  ;;  %2104 = vmatpush1.bf16.msra.mxu1 %v6773_v9  ;;  %v8644_v11 = vld [vmem:[#allocation30_spill] sm:$0xff] }
 0x7ac   :  { %2064 = vmatprep.subr.bf16.mxu0 %v6574_v13  ;;  %2105 = vmatprep.subr.bf16.mxu1 %v6777_v12  ;;  %v8645_v13 = vld [vmem:[#allocation31_spill] sm:$0xff] }
 0x7af   :  { %2065 = vmatpush1.bf16.msra.mxu0 %v6578_v16  ;;  %2106 = vmatpush1.bf16.msra.mxu1 %v6781_v14  ;;  %v8646_v16 = vld [vmem:[#allocation32_spill] sm:$0xff] }
 0x7b0   :  { %2155 = vmatprep.subr.bf16.mxu0 %v6784_v19  ;;  %2196 = vmatprep.subr.bf16.mxu1 %v6787_v22 }
 0x7b2   :  { %2083 = vmatmul.mubr.bf16.vlgmr.msra.gmra.mrb[40].mxu0 %v2049_v43  ;;  %2124 = vmatmul.mubr.bf16.vlgmr.msra.gmra.mrb[72].mxu1 %v2049_v43 }
 0x7b3   :  { %2156 = vmatpush1.bf16.msra.mxu0 %v6790_v50  ;;  %2197 = vmatpush1.bf16.msra.mxu1 %v6793_v36 }
 0x7b4   :  { %2157 = vmatprep.subr.bf16.mxu0 %v6796_v32  ;;  %2198 = vmatprep.subr.bf16.mxu1 %v6799_v56 }
 0x7b5   :  { %2187 = vmatprep.mubr.bf16.mxu0 %v8528_v48  ;;  %2228 = vmatprep.mubr.bf16.mxu1 %v8528_v48 }
 0x7b7   :  { %2158 = vmatpush1.bf16.msra.mxu0 %v6804_v57  ;;  %2199 = vmatpush1.bf16.msra.mxu1 %v6807_v60 }
 0x7b8   :  { %2159 = vmatprep.subr.bf16.mxu0 %v6810_v49  ;;  %2200 = vmatprep.subr.bf16.mxu1 %v6813_v30 }
 0x7bb   :  { %2160 = vmatpush1.bf16.msra.mxu0 %v8633_v4  ;;  %2201 = vmatpush1.bf16.msra.mxu1 %v8634_v62 }
 0x7bc   :  { %2161 = vmatprep.subr.bf16.mxu0 %v8635_v45  ;;  %2202 = vmatprep.subr.bf16.mxu1 %v8636_v63 }
 0x7bf   :  { %2162 = vmatpush1.bf16.msra.mxu0 %v8637_v1  ;;  %2203 = vmatpush1.bf16.msra.mxu1 %v8638_v44 }
 0x7c0   :  { %2163 = vmatprep.subr.bf16.mxu0 %v8639_v2  ;;  %2204 = vmatprep.subr.bf16.mxu1 %v8640_v3 }
 0x7c3   :  { %2164 = vmatpush1.bf16.msra.mxu0 %v8641_v6  ;;  %2205 = vmatpush1.bf16.msra.mxu1 %v8642_v7 }
 0x7c4   :  { %2165 = vmatprep.subr.bf16.mxu0 %v8643_v10  ;;  %2206 = vmatprep.subr.bf16.mxu1 %v8644_v11 }
 0x7c7   :  { %2166 = vmatpush1.bf16.msra.mxu0 %v8645_v13  ;;  %2207 = vmatpush1.bf16.msra.mxu1 %v8646_v16 }
 0x7c8   :  { %2167 = vmatprep.subr.bf16.mxu0 %v8647_v15  ;;  %2208 = vmatprep.subr.bf16.mxu1 %v8648_v23 }
 0x7cb   :  { %2168 = vmatpush1.bf16.msra.mxu0 %v8649_v25  ;;  %2209 = vmatpush1.bf16.msra.mxu1 %v8650_v24 }
 0x7cc   :  { %2169 = vmatprep.subr.bf16.mxu0 %v8651_v31  ;;  %2210 = vmatprep.subr.bf16.mxu1 %v8652_v21 }
 0x7cf   :  { %2170 = vmatpush1.bf16.msra.mxu0 %v8653_v17  ;;  %2211 = vmatpush1.bf16.msra.mxu1 %v8654_v34 }
 0x7d0   :  { %2253 = vmatprep.subr.bf16.mxu0 %v6967_v37  ;;  %2294 = vmatprep.subr.bf16.mxu1 %v8656_v29  ;;  %v8660_v37 = vld [vmem:[#allocation25_spill] sm:$0xff] }
 0x865   :  { %v1986_v39 = vpop.f32.mrb[36].mxu0  ;;  %v2027_v20 = vpop.f32.mrb[68].mxu1 }
 0x866   :  { %v1987_v46 = vadd.f32 %v1986_v39, %v8657_v33  ;;  %v1988_v47 = vpop.f32.mrb[37].mxu0  ;;  %v2029_v28 = vpop.f32.mrb[69].mxu1  ;;  %v2028_v59 = vadd.f32 %v2027_v20, %v8659_v42 }
 0x867   :  { %v1989_v38 = vadd.f32 %v1988_v47, %v8658_v40  ;;  %v1990_v18 = vpop.f32.mrb[38].mxu0  ;;  %v2031_v8 = vpop.f32.mrb[70].mxu1  ;;  %v2030_v17 = vadd.f32 %v2029_v28, %v8660_v37  ;;  %v8663_v28 = vld [vmem:[#allocation52_spill] sm:$0xff] }
 0x868   :  { %5366 = vtanh.f32 %v1987_v46  ;;  %v1991_v43 = vpop.f32.mrb[39].mxu0  ;;  %v2032_v34 = vpop.f32.mrb[71].mxu1  ;;  %v8661_v18 = vld [vmem:[#allocation41_spill] sm:$0xff] }
 0x869   :  { %5368 = vtanh.f32 %v1989_v38 }
 0x86a   :  { %5370 = vtanh.f32 %v2028_v59 }
 0x86b   :  { %5372 = vtanh.f32 %v2030_v17 }
 0x872   :  { %v5367_v29 = vpop.eup %5366 }
 0x873   :  { %v2038_v21 = vmul.f32 0.5, %v5367_v29  ;;  %v5369_v31 = vpop.eup %5368  ;;  %v8664_v29 = vld [vmem:[#allocation68_spill] sm:$0xff] }
 0x874   :  { %v2040_v39 = vmul.f32 0.5, %v5369_v31  ;;  %v5371_v33 = vpop.eup %5370 }
 0x875   :  { %v2039_v24 = vadd.f32 0.5, %v2038_v21  ;;  %v5373_v34 = vpop.eup %5372 }
 0x876   :  { %v2041_v25 = vadd.f32 0.5, %v2040_v39  ;;  %v2042_v20 = vmul.f32 0.5, %v5373_v34  ;;  %v8665_v39 = vld [vmem:[#allocation53_spill] sm:$0xff] }
 0x877   :  { %v2045_v47 = vmul.f32 %v5371_v33, %v2039_v24  ;;  %v8666_v33 = vld [vmem:[#allocation69_spill] sm:$0xff] }
 0x878   :  { %v2044_v8 = vmul.f32 %v2041_v25, %v8661_v18  ;;  %v2043_v17 = vadd.f32 0.5, %v2042_v20 }
 0x87a   :  { %v6976_v46 = vadd.f32 %v2045_v47, %v2044_v8 }
 0x87c   :  { %8662 = vst [vmem:[#allocation28_spill] sm:$0xff] %v6976_v46  ;;  %5374 = vtanh.f32 %v6976_v46 }
 0x885   :  { %v2084_v38 = vpop.f32.mrb[40].mxu0  ;;  %v2125_v59 = vpop.f32.mrb[72].mxu1 }
 0x886   :  { %v2132_v43 = vadd.f32 %v2084_v38, %v8663_v28  ;;  %v2134_v37 = vadd.f32 %v2125_v59, %v8664_v29  ;;  %v2086_v21 = vpop.f32.mrb[41].mxu0  ;;  %v2127_v31 = vpop.f32.mrb[73].mxu1 }
 0x887   :  { %v5375_v42 = vpop.eup %5374  ;;  %v2133_v24 = vadd.f32 %v2086_v21, %v8665_v39  ;;  %v2135_v25 = vadd.f32 %v2127_v31, %v8666_v33  ;;  %v2088_v47 = vpop.f32.mrb[42].mxu0 }
 0x888   :  { %v2129_v18 = vpop.f32.mrb[74].mxu1  ;;  %5376 = vtanh.f32 %v2132_v43  ;;  %v2089_v8 = vpop.f32.mrb[43].mxu0  ;;  %v2048_v34 = vmul.f32 %v5375_v42, %v2043_v17 }
 0x889   :  { %v2130_v46 = vpop.f32.mrb[75].mxu1  ;;  %5378 = vtanh.f32 %v2133_v24  ;;  %v6988_v18 = vld [vmem:[#allocation7] ss:$16 sps:$4 sm:$0xff]  }
 0x88a   :  { %2151 = vrot.lane.b32.xlu1 %v2048_v34, %s5950_s6  ;;  %5380 = vtanh.f32 %v2134_v37  ;;  %v8667_v34 = vld [vmem:[#allocation34_spill] sm:$0xff] }
 0x88b   :  { %5382 = vtanh.f32 %v2135_v25  ;;  %v7014_v25 = vld [vmem:[#allocation7 + $0x60] ss:$16 sps:$4 sm:$0xff]  }
 0x892   :  { %v5377_v38 = vpop.eup %5376 }
 0x893   :  { %v2140_v59 = vmul.f32 0.5, %v5377_v38  ;;  %v5379_v28 = vpop.eup %5378  ;;  %v8668_v38 = vld [vmem:[#allocation35_spill] sm:$0xff] }
 0x894   :  { %v2142_v20 = vmul.f32 0.5, %v5379_v28  ;;  %v5381_v40 = vpop.eup %5380  ;;  %v8670_v28 = vld [vmem:[#allocation37_spill] sm:$0xff] }
 0x895   :  { %v2141_v29 = vadd.f32 0.5, %v2140_v59  ;;  %v5383_v42 = vpop.eup %5382  ;;  %v8669_v59 = vld [vmem:[#allocation36_spill] sm:$0xff] }
 0x896   :  { %v2143_v23 = vadd.f32 0.5, %v2142_v20  ;;  %v2144_v46 = vmul.f32 0.5, %v5383_v42  ;;  %v8672_v20 = vld [vmem:[#allocation39_spill] sm:$0xff] }
 0x897   :  { %v2147_v21 = vmul.f32 %v5381_v40, %v2141_v29  ;;  %v7002_v40 = vld [vmem:[#allocation7 + $0x44] ss:$16 sps:$4 sm:$0xff]   ;;  %v5676_v42 = vld [vmem:[#allocation7 + $0xc] ss:$16 sps:$4 sm:$0xff]  }
 0x898   :  { %v2146_v31 = vmul.f32 %v2143_v23, %v6898_v35  ;;  %v2145_v17 = vadd.f32 0.5, %v2144_v46  ;;  %v6992_v35 = vld [vmem:[#allocation7 + $0x24] ss:$16 sps:$4 sm:$0xff]   ;;  %v6998_v23 = vld [vmem:[#allocation7 + $0x20] ss:$16 sps:$4 sm:$0xff]  }
 0x899   :  { %v8671_v29 = vld [vmem:[#allocation38_spill] sm:$0xff] }
 0x89a   :  { %v6985_v39 = vadd.f32 %v2147_v21, %v2146_v31  ;;  %v8673_v21 = vld [vmem:[#allocation40_spill] sm:$0xff]  ;;  %v8674_v31 = vld [vmem:[#allocation21_spill] sm:$0xff] }
 0x89c   :  { %5384 = vtanh.f32 %v6985_v39 }
 0x8a6   :  { %v5385_v43 = vpop.eup %5384 }
 0x8a7   :  { %v2150_v37 = vmul.f32 %v5385_v43, %v2145_v17  ;;  %v8675_v17 = vld [vmem:[#allocation22_spill] sm:$0xff] }
 0x8a9   :  { %v2252_v8 = vpack.c.bf16 %v2150_v37, %v2150_v37 }
 0x8fc   :  { %v2152_v24 = vpop.permute.xlu1 %2151 }
 0x8fd   :  { %v2153_v33 = vadd.f32 %v2152_v24, %v2150_v37 }
 0x8ff   :  { %v2154_v47 = vpack.c.bf16 %v2153_v33, %v2153_v33 }
 0x901   :  { %2188 = vmatmul.mubr.bf16.vlgmr.msra.gmra.mrb[44].mxu0 %v2154_v47  ;;  %2229 = vmatmul.mubr.bf16.vlgmr.msra.gmra.mrb[76].mxu1 %v2154_v47  ;;  %v8676_v47 = vld [vmem:[#allocation23_spill] sm:$0xff] }
 0x902   :  { %2254 = vmatpush1.bf16.msra.mxu0 %v6988_v18  ;;  %2295 = vmatpush1.bf16.msra.mxu1 %v6638_v61  ;;  %v7006_v61 = vld [vmem:[#allocation7 + $0x40] ss:$16 sps:$4 sm:$0xff]  }
 0x903   :  { %2255 = vmatprep.subr.bf16.mxu0 %v6992_v35  ;;  %2296 = vmatprep.subr.bf16.mxu1 %v6642_v26  ;;  %v7010_v26 = vld [vmem:[#allocation7 + $0x64] ss:$16 sps:$4 sm:$0xff]  }
 0x904   :  { %2285 = vmatprep.mubr.bf16.mxu0 %v8528_v48  ;;  %2326 = vmatprep.mubr.bf16.mxu1 %v8528_v48 }
 0x906   :  { %2256 = vmatpush1.bf16.msra.mxu0 %v6998_v23  ;;  %2297 = vmatpush1.bf16.msra.mxu1 %v6648_v51  ;;  %v7018_v51 = vld [vmem:[#allocation7 + $0x84] ss:$16 sps:$4 sm:$0xff]  }
 0x907   :  { %2257 = vmatprep.subr.bf16.mxu0 %v7002_v40  ;;  %2298 = vmatprep.subr.bf16.mxu1 %v6652_v27  ;;  %v7022_v27 = vld [vmem:[#allocation7 + $0x80] ss:$16 sps:$4 sm:$0xff]  }
 0x90a   :  { %2258 = vmatpush1.bf16.msra.mxu0 %v7006_v61  ;;  %2299 = vmatpush1.bf16.msra.mxu1 %v6656_v52  ;;  %v7026_v52 = vld [vmem:[#allocation7 + $0xa4] ss:$16 sps:$4 sm:$0xff]  }
 0x90b   :  { %2259 = vmatprep.subr.bf16.mxu0 %v7010_v26  ;;  %2300 = vmatprep.subr.bf16.mxu1 %v6660_v5  ;;  %v7030_v5 = vld [vmem:[#allocation7 + $0xa0] ss:$16 sps:$4 sm:$0xff]  }
 0x90e   :  { %2260 = vmatpush1.bf16.msra.mxu0 %v7014_v25  ;;  %2301 = vmatpush1.bf16.msra.mxu1 %v6664_v58  ;;  %v7034_v58 = vld [vmem:[#allocation7 + $0xc4] ss:$16 sps:$4 sm:$0xff]  }
 0x90f   :  { %2261 = vmatprep.subr.bf16.mxu0 %v7018_v51  ;;  %2302 = vmatprep.subr.bf16.mxu1 %v6668_v53  ;;  %v7038_v53 = vld [vmem:[#allocation7 + $0xc0] ss:$16 sps:$4 sm:$0xff]  }
 0x912   :  { %2262 = vmatpush1.bf16.msra.mxu0 %v7022_v27  ;;  %2303 = vmatpush1.bf16.msra.mxu1 %v6672_v55  ;;  %v7042_v55 = vld [vmem:[#allocation7 + $0xe4] ss:$16 sps:$4 sm:$0xff]  }
 0x913   :  { %2263 = vmatprep.subr.bf16.mxu0 %v7026_v52  ;;  %2304 = vmatprep.subr.bf16.mxu1 %v6676_v0  ;;  %v7046_v0 = vld [vmem:[#allocation7 + $0xe0] ss:$16 sps:$4 sm:$0xff]  }
 0x916   :  { %2264 = vmatpush1.bf16.msra.mxu0 %v7030_v5  ;;  %2305 = vmatpush1.bf16.msra.mxu1 %v6765_v54 }
 0x917   :  { %2265 = vmatprep.subr.bf16.mxu0 %v7034_v58  ;;  %2306 = vmatprep.subr.bf16.mxu1 %v6769_v41 }
 0x91a   :  { %2266 = vmatpush1.bf16.msra.mxu0 %v7038_v53  ;;  %2307 = vmatpush1.bf16.msra.mxu1 %v6773_v9 }
 0x91b   :  { %2267 = vmatprep.subr.bf16.mxu0 %v7042_v55  ;;  %2308 = vmatprep.subr.bf16.mxu1 %v6777_v12 }
 0x91e   :  { %2268 = vmatpush1.bf16.msra.mxu0 %v7046_v0  ;;  %2309 = vmatpush1.bf16.msra.mxu1 %v6781_v14 }
 0x91f   :  { %2358 = vmatprep.subr.bf16.mxu0 %v6784_v19  ;;  %2399 = vmatprep.subr.bf16.mxu1 %v6787_v22 }
 0x921   :  { %2286 = vmatmul.mubr.bf16.vlgmr.msra.gmra.mrb[48].mxu0 %v2252_v8  ;;  %2327 = vmatmul.mubr.bf16.vlgmr.msra.gmra.mrb[80].mxu1 %v2252_v8 }
 0x922   :  { %2359 = vmatpush1.bf16.msra.mxu0 %v6790_v50  ;;  %2400 = vmatpush1.bf16.msra.mxu1 %v6793_v36 }
 0x923   :  { %2360 = vmatprep.subr.bf16.mxu0 %v6796_v32  ;;  %2401 = vmatprep.subr.bf16.mxu1 %v6799_v56 }
 0x924   :  { %2390 = vmatprep.mubr.bf16.mxu0 %v8528_v48  ;;  %2431 = vmatprep.mubr.bf16.mxu1 %v8528_v48 }
 0x926   :  { %2361 = vmatpush1.bf16.msra.mxu0 %v6804_v57  ;;  %2402 = vmatpush1.bf16.msra.mxu1 %v6807_v60 }
 0x927   :  { %2362 = vmatprep.subr.bf16.mxu0 %v6810_v49  ;;  %2403 = vmatprep.subr.bf16.mxu1 %v6813_v30 }
 0x92a   :  { %2363 = vmatpush1.bf16.msra.mxu0 %v8633_v4  ;;  %2404 = vmatpush1.bf16.msra.mxu1 %v8634_v62 }
 0x92b   :  { %2364 = vmatprep.subr.bf16.mxu0 %v8635_v45  ;;  %2405 = vmatprep.subr.bf16.mxu1 %v8636_v63 }
 0x92e   :  { %2365 = vmatpush1.bf16.msra.mxu0 %v8637_v1  ;;  %2406 = vmatpush1.bf16.msra.mxu1 %v8638_v44 }
 0x92f   :  { %2366 = vmatprep.subr.bf16.mxu0 %v8639_v2  ;;  %2407 = vmatprep.subr.bf16.mxu1 %v8640_v3 }
 0x932   :  { %2367 = vmatpush1.bf16.msra.mxu0 %v8641_v6  ;;  %2408 = vmatpush1.bf16.msra.mxu1 %v8642_v7 }
 0x933   :  { %2368 = vmatprep.subr.bf16.mxu0 %v8643_v10  ;;  %2409 = vmatprep.subr.bf16.mxu1 %v8644_v11 }
 0x936   :  { %2369 = vmatpush1.bf16.msra.mxu0 %v8645_v13  ;;  %2410 = vmatpush1.bf16.msra.mxu1 %v8646_v16 }
 0x937   :  { %2370 = vmatprep.subr.bf16.mxu0 %v8647_v15  ;;  %2411 = vmatprep.subr.bf16.mxu1 %v8667_v34 }
 0x93a   :  { %2371 = vmatpush1.bf16.msra.mxu0 %v8668_v38  ;;  %2412 = vmatpush1.bf16.msra.mxu1 %v8669_v59 }
 0x93b   :  { %2372 = vmatprep.subr.bf16.mxu0 %v8670_v28  ;;  %2413 = vmatprep.subr.bf16.mxu1 %v8671_v29  ;;  %v8677_v29 = vld [vmem:[#allocation24_spill] sm:$0xff] }
 0x93e   :  { %2373 = vmatpush1.bf16.msra.mxu0 %v8672_v20  ;;  %2414 = vmatpush1.bf16.msra.mxu1 %v8673_v21 }
 0x93f   :  { %2456 = vmatprep.subr.bf16.mxu0 %v8674_v31  ;;  %2497 = vmatprep.subr.bf16.mxu1 %v5676_v42  ;;  %v8678_v31 = vld [vmem:[#allocation25_spill] sm:$0xff] }
 0x9d4   :  { %v2189_v46 = vpop.f32.mrb[44].mxu0  ;;  %v2230_v43 = vpop.f32.mrb[76].mxu1 }
 0x9d5   :  { %v2190_v37 = vadd.f32 %v2189_v46, %v8675_v17  ;;  %v2191_v24 = vpop.f32.mrb[45].mxu0  ;;  %v2232_v33 = vpop.f32.mrb[77].mxu1  ;;  %v2231_v38 = vadd.f32 %v2230_v43, %v8677_v29 }
 0x9d6   :  { %v2192_v8 = vadd.f32 %v2191_v24, %v8676_v47  ;;  %v2193_v59 = vpop.f32.mrb[46].mxu0  ;;  %v2234_v28 = vpop.f32.mrb[78].mxu1  ;;  %v2233_v21 = vadd.f32 %v2232_v33, %v8678_v31  ;;  %v8681_v33 = vld [vmem:[#allocation54_spill] sm:$0xff] }
 0x9d7   :  { %5386 = vtanh.f32 %v2190_v37  ;;  %v2194_v20 = vpop.f32.mrb[47].mxu0  ;;  %v2235_v34 = vpop.f32.mrb[79].mxu1  ;;  %v8679_v59 = vld [vmem:[#allocation28_spill] sm:$0xff] }
 0x9d8   :  { %5388 = vtanh.f32 %v2192_v8 }
 0x9d9   :  { %5390 = vtanh.f32 %v2231_v38 }
 0x9da   :  { %5392 = vtanh.f32 %v2233_v21 }
 0x9e1   :  { %v5387_v42 = vpop.eup %5386 }
 0x9e2   :  { %v2241_v15 = vmul.f32 0.5, %v5387_v42  ;;  %v5389_v16 = vpop.eup %5388  ;;  %v8682_v42 = vld [vmem:[#allocation70_spill] sm:$0xff] }
 0x9e3   :  { %v2243_v46 = vmul.f32 0.5, %v5389_v16  ;;  %v5391_v17 = vpop.eup %5390 }
 0x9e4   :  { %v2242_v13 = vadd.f32 0.5, %v2241_v15  ;;  %v5393_v34 = vpop.eup %5392 }
 0x9e5   :  { %v2244_v11 = vadd.f32 0.5, %v2243_v46  ;;  %v2245_v20 = vmul.f32 0.5, %v5393_v34  ;;  %v8683_v46 = vld [vmem:[#allocation55_spill] sm:$0xff] }
 0x9e6   :  { %v2248_v24 = vmul.f32 %v5391_v17, %v2242_v13  ;;  %v8684_v17 = vld [vmem:[#allocation71_spill] sm:$0xff] }
 0x9e7   :  { %v2247_v28 = vmul.f32 %v2244_v11, %v8679_v59  ;;  %v2246_v21 = vadd.f32 0.5, %v2245_v20 }
 0x9e9   :  { %v7090_v37 = vadd.f32 %v2248_v24, %v2247_v28 }
 0x9eb   :  { %8680 = vst [vmem:[#allocation48_spill] sm:$0xff] %v7090_v37  ;;  %5394 = vtanh.f32 %v7090_v37 }
 0x9f4   :  { %v2287_v38 = vpop.f32.mrb[48].mxu0  ;;  %v2328_v43 = vpop.f32.mrb[80].mxu1 }
 0x9f5   :  { %v2335_v8 = vadd.f32 %v2287_v38, %v8681_v33  ;;  %v2337_v31 = vadd.f32 %v2328_v43, %v8682_v42  ;;  %v2289_v15 = vpop.f32.mrb[49].mxu0  ;;  %v2330_v16 = vpop.f32.mrb[81].mxu1 }
 0x9f6   :  { %v5395_v29 = vpop.eup %5394  ;;  %v2336_v13 = vadd.f32 %v2289_v15, %v8683_v46  ;;  %v2338_v11 = vadd.f32 %v2330_v16, %v8684_v17  ;;  %v2291_v24 = vpop.f32.mrb[50].mxu0 }
 0x9f7   :  { %v2332_v59 = vpop.f32.mrb[82].mxu1  ;;  %5396 = vtanh.f32 %v2335_v8  ;;  %v2292_v28 = vpop.f32.mrb[51].mxu0  ;;  %v2251_v34 = vmul.f32 %v5395_v29, %v2246_v21 }
 0x9f8   :  { %v2333_v37 = vpop.f32.mrb[83].mxu1  ;;  %5398 = vtanh.f32 %v2336_v13  ;;  %v5683_v59 = vld [vmem:[#allocation7 + $0x68] ss:$16 sps:$4 sm:$0xff]  }
 0x9f9   :  { %2354 = vrot.lane.b32.xlu0 %v2251_v34, %s5950_s6  ;;  %5400 = vtanh.f32 %v2337_v31 }
 0x9fa   :  { %5402 = vtanh.f32 %v2338_v11  ;;  %v5680_v11 = vld [vmem:[#allocation7 + $0x4c] ss:$16 sps:$4 sm:$0xff]  }
 0xa01   :  { %v5397_v38 = vpop.eup %5396 }
 0xa02   :  { %v2343_v43 = vmul.f32 0.5, %v5397_v38  ;;  %v5399_v33 = vpop.eup %5398  ;;  %v8701_v38 = vld [vmem:[#allocation48_spill] sm:$0xff] }
 0xa03   :  { %v2345_v20 = vmul.f32 0.5, %v5399_v33  ;;  %v5401_v47 = vpop.eup %5400 }
 0xa04   :  { %v2344_v42 = vadd.f32 0.5, %v2343_v43  ;;  %v5403_v29 = vpop.eup %5402 }
 0xa05   :  { %v2346_v10 = vadd.f32 0.5, %v2345_v20  ;;  %v2347_v37 = vmul.f32 0.5, %v5403_v29  ;;  %v7166_v20 = vld [vmem:[#allocation10 + $0x4] ss:$16 sps:$4 sm:$0xff]  }
 0xa06   :  { %v2350_v15 = vmul.f32 %v5401_v47, %v2344_v42  ;;  %v5677_v47 = vld [vmem:[#allocation7 + $0x8] ss:$16 sps:$4 sm:$0xff]   ;;  %8702 = vst [vmem:[#allocation64_spill] sm:$0xff] %v7166_v20 }
 0xa07   :  { %v2349_v16 = vmul.f32 %v2346_v10, %v6985_v39  ;;  %v2348_v21 = vadd.f32 0.5, %v2347_v37  ;;  %v5678_v10 = vld [vmem:[#allocation7 + $0x2c] ss:$16 sps:$4 sm:$0xff]   ;;  %v5679_v39 = vld [vmem:[#allocation7 + $0x28] ss:$16 sps:$4 sm:$0xff]  }
 0xa09   :  { %v7099_v46 = vadd.f32 %v2350_v15, %v2349_v16  ;;  %v7168_v15 = vld [vmem:[#allocation10 + $0xc] ss:$16 sps:$4 sm:$0xff]  }
 0xa0a   :  { %8703 = vst [vmem:[#allocation49_spill] sm:$0xff] %v7168_v15 }
 0xa0b   :  { %5404 = vtanh.f32 %v7099_v46 }
 0xa15   :  { %v5405_v8 = vpop.eup %5404 }
 0xa16   :  { %v2353_v31 = vmul.f32 %v5405_v8, %v2348_v21  ;;  %v8704_v8 = vld [vmem:[#allocation56_spill] sm:$0xff] }
 0xa6b   :  { %v2355_v13 = vpop.permute.xlu0 %2354 }
 0xa6c   :  { %v2356_v17 = vadd.f32 %v2355_v13, %v2353_v31 }
 0xa6e   :  { %v2357_v24 = vpack.c.bf16 %v2356_v17, %v2356_v17 }
 0xa70   :  { %2391 = vmatmul.mubr.bf16.vlgmr.msra.gmra.mrb[52].mxu0 %v2357_v24  ;;  %2432 = vmatmul.mubr.bf16.vlgmr.msra.gmra.mrb[84].mxu1 %v2357_v24 }
 0xa71   :  { %2457 = vmatpush1.bf16.msra.mxu0 %v6988_v18  ;;  %2498 = vmatpush1.bf16.msra.mxu1 %v5677_v47  ;;  %v5681_v18 = vld [vmem:[#allocation7 + $0x48] ss:$16 sps:$4 sm:$0xff]  }
 0xa72   :  { %2458 = vmatprep.subr.bf16.mxu0 %v6992_v35  ;;  %2499 = vmatprep.subr.bf16.mxu1 %v5678_v10  ;;  %v5682_v35 = vld [vmem:[#allocation7 + $0x6c] ss:$16 sps:$4 sm:$0xff]  }
 0xa73   :  { %2488 = vmatprep.mubr.bf16.mxu0 %v8528_v48  ;;  %2529 = vmatprep.mubr.bf16.mxu1 %v8528_v48 }
 0xa75   :  { %2459 = vmatpush1.bf16.msra.mxu0 %v6998_v23  ;;  %2500 = vmatpush1.bf16.msra.mxu1 %v5679_v39  ;;  %v5684_v23 = vld [vmem:[#allocation7 + $0x8c] ss:$16 sps:$4 sm:$0xff]  }
 0xa76   :  { %2460 = vmatprep.subr.bf16.mxu0 %v7002_v40  ;;  %2501 = vmatprep.subr.bf16.mxu1 %v5680_v11  ;;  %v5685_v40 = vld [vmem:[#allocation7 + $0x88] ss:$16 sps:$4 sm:$0xff]  }
 0xa77   :  { %v8706_v39 = vld [vmem:[#allocation57_spill] sm:$0xff] }
 0xa79   :  { %2461 = vmatpush1.bf16.msra.mxu0 %v7006_v61  ;;  %2502 = vmatpush1.bf16.msra.mxu1 %v5681_v18  ;;  %v5686_v61 = vld [vmem:[#allocation7 + $0xac] ss:$16 sps:$4 sm:$0xff]  }
 0xa7a   :  { %2462 = vmatprep.subr.bf16.mxu0 %v7010_v26  ;;  %2503 = vmatprep.subr.bf16.mxu1 %v5682_v35  ;;  %v2455_v26 = vpack.c.bf16 %v2353_v31, %v2353_v31  ;;  %v8705_v31 = vld [vmem:[#allocation72_spill] sm:$0xff]  ;;  %v8707_v18 = vld [vmem:[#allocation73_spill] sm:$0xff] }
 0xa7d   :  { %2463 = vmatpush1.bf16.msra.mxu0 %v7014_v25  ;;  %2504 = vmatpush1.bf16.msra.mxu1 %v5683_v59 }
 0xa7e   :  { %2464 = vmatprep.subr.bf16.mxu0 %v7018_v51  ;;  %2505 = vmatprep.subr.bf16.mxu1 %v5684_v23  ;;  %v8700_v51 = vld [vmem:[#allocation25_spill] sm:$0xff] }
 0xa81   :  { %2465 = vmatpush1.bf16.msra.mxu0 %v7022_v27  ;;  %2506 = vmatpush1.bf16.msra.mxu1 %v5685_v40 }
 0xa82   :  { %2466 = vmatprep.subr.bf16.mxu0 %v7026_v52  ;;  %2507 = vmatprep.subr.bf16.mxu1 %v5686_v61 }
 0xa85   :  { %2467 = vmatpush1.bf16.msra.mxu0 %v7030_v5  ;;  %2508 = vmatpush1.bf16.msra.mxu1 %v6765_v54  ;;  %v8685_v54 = vld [vmem:[#allocation63_spill] sm:$0xff] }
 0xa86   :  { %2468 = vmatprep.subr.bf16.mxu0 %v7034_v58  ;;  %2509 = vmatprep.subr.bf16.mxu1 %v6769_v41  ;;  %v8686_v41 = vld [vmem:[#allocation30_spill] sm:$0xff] }
 0xa89   :  { %2469 = vmatpush1.bf16.msra.mxu0 %v7038_v53  ;;  %2510 = vmatpush1.bf16.msra.mxu1 %v6773_v9  ;;  %v8687_v9 = vld [vmem:[#allocation31_spill] sm:$0xff] }
 0xa8a   :  { %2470 = vmatprep.subr.bf16.mxu0 %v7042_v55  ;;  %2511 = vmatprep.subr.bf16.mxu1 %v6777_v12  ;;  %v8688_v12 = vld [vmem:[#allocation32_spill] sm:$0xff] }
 0xa8d   :  { %2471 = vmatpush1.bf16.msra.mxu0 %v7046_v0  ;;  %2512 = vmatpush1.bf16.msra.mxu1 %v6781_v14  ;;  %v8689_v14 = vld [vmem:[#allocation33_spill] sm:$0xff] }
 0xa8e   :  { %2561 = vmatprep.subr.bf16.mxu0 %v6784_v19  ;;  %2602 = vmatprep.subr.bf16.mxu1 %v6787_v22  ;;  %v8690_v19 = vld [vmem:[#allocation34_spill] sm:$0xff]  ;;  %v8691_v22 = vld [vmem:[#allocation35_spill] sm:$0xff] }
 0xa90   :  { %2489 = vmatmul.mubr.bf16.vlgmr.msra.gmra.mrb[56].mxu0 %v2455_v26  ;;  %2530 = vmatmul.mubr.bf16.vlgmr.msra.gmra.mrb[88].mxu1 %v2455_v26 }
 0xa91   :  { %2562 = vmatpush1.bf16.msra.mxu0 %v6790_v50  ;;  %2603 = vmatpush1.bf16.msra.mxu1 %v6793_v36  ;;  %v8692_v50 = vld [vmem:[#allocation36_spill] sm:$0xff]  ;;  %v8693_v36 = vld [vmem:[#allocation37_spill] sm:$0xff] }
 0xa92   :  { %2563 = vmatprep.subr.bf16.mxu0 %v6796_v32  ;;  %2604 = vmatprep.subr.bf16.mxu1 %v6799_v56  ;;  %v8694_v32 = vld [vmem:[#allocation38_spill] sm:$0xff]  ;;  %v8695_v56 = vld [vmem:[#allocation39_spill] sm:$0xff] }
 0xa93   :  { %2593 = vmatprep.mubr.bf16.mxu0 %v8528_v48  ;;  %2634 = vmatprep.mubr.bf16.mxu1 %v8528_v48 }
 0xa95   :  { %2564 = vmatpush1.bf16.msra.mxu0 %v6804_v57  ;;  %2605 = vmatpush1.bf16.msra.mxu1 %v6807_v60  ;;  %v8696_v57 = vld [vmem:[#allocation40_spill] sm:$0xff] }
 0xa96   :  { %2565 = vmatprep.subr.bf16.mxu0 %v6810_v49  ;;  %2606 = vmatprep.subr.bf16.mxu1 %v6813_v30  ;;  %v8697_v30 = vld [vmem:[#allocation22_spill] sm:$0xff] }
 0xa99   :  { %2566 = vmatpush1.bf16.msra.mxu0 %v8633_v4  ;;  %2607 = vmatpush1.bf16.msra.mxu1 %v8634_v62 }
 0xa9a   :  { %2567 = vmatprep.subr.bf16.mxu0 %v8635_v45  ;;  %2608 = vmatprep.subr.bf16.mxu1 %v8636_v63  ;;  %v8698_v63 = vld [vmem:[#allocation23_spill] sm:$0xff] }
 0xa9d   :  { %2568 = vmatpush1.bf16.msra.mxu0 %v8637_v1  ;;  %2609 = vmatpush1.bf16.msra.mxu1 %v8638_v44 }
 0xa9e   :  { %2569 = vmatprep.subr.bf16.mxu0 %v8639_v2  ;;  %2610 = vmatprep.subr.bf16.mxu1 %v8640_v3  ;;  %v8699_v3 = vld [vmem:[#allocation24_spill] sm:$0xff] }
 0xaa1   :  { %2570 = vmatpush1.bf16.msra.mxu0 %v8641_v6  ;;  %2611 = vmatpush1.bf16.msra.mxu1 %v8642_v7 }
 0xaa2   :  { %2571 = vmatprep.subr.bf16.mxu0 %v8685_v54  ;;  %2612 = vmatprep.subr.bf16.mxu1 %v8686_v41 }
 0xaa5   :  { %2572 = vmatpush1.bf16.msra.mxu0 %v8687_v9  ;;  %2613 = vmatpush1.bf16.msra.mxu1 %v8688_v12 }
 0xaa6   :  { %2573 = vmatprep.subr.bf16.mxu0 %v8689_v14  ;;  %2614 = vmatprep.subr.bf16.mxu1 %v8690_v19 }
 0xaa9   :  { %2574 = vmatpush1.bf16.msra.mxu0 %v8691_v22  ;;  %2615 = vmatpush1.bf16.msra.mxu1 %v8692_v50 }
 0xaaa   :  { %2575 = vmatprep.subr.bf16.mxu0 %v8693_v36  ;;  %2616 = vmatprep.subr.bf16.mxu1 %v8694_v32 }
 0xaad   :  { %2576 = vmatpush1.bf16.msra.mxu0 %v8695_v56  ;;  %2617 = vmatpush1.bf16.msra.mxu1 %v8696_v57 }
 0xaae   :  { %2842 = vmatprep.subr.bf16.mxu0 %v7166_v20  ;;  %2883 = vmatprep.subr.bf16.mxu1 %v7168_v15 }
 0xb43   :  { %v2392_v60 = vpop.f32.mrb[52].mxu0  ;;  %v2433_v49 = vpop.f32.mrb[84].mxu1 }
 0xb44   :  { %v2393_v4 = vadd.f32 %v2392_v60, %v8697_v30  ;;  %v2394_v62 = vpop.f32.mrb[53].mxu0  ;;  %v2435_v45 = vpop.f32.mrb[85].mxu1  ;;  %v2434_v6 = vadd.f32 %v2433_v49, %v8699_v3 }
 0xb45   :  { %v2395_v1 = vadd.f32 %v2394_v62, %v8698_v63  ;;  %v2396_v44 = vpop.f32.mrb[54].mxu0  ;;  %v2437_v2 = vpop.f32.mrb[86].mxu1  ;;  %v2436_v27 = vadd.f32 %v2435_v45, %v8700_v51 }
 0xb46   :  { %5406 = vtanh.f32 %v2393_v4  ;;  %v2397_v7 = vpop.f32.mrb[55].mxu0  ;;  %v2438_v25 = vpop.f32.mrb[87].mxu1  ;;  %v7184_v44 = vld [vmem:[#allocation10 + $0x8] ss:$16 sps:$4 sm:$0xff]  }
 0xb47   :  { %5408 = vtanh.f32 %v2395_v1  ;;  %v7182_v1 = vld [vmem:[#allocation10] ss:$16 sps:$4 sm:$0xff]   ;;  %v7194_v25 = vld [vmem:[#allocation10 + $0x28] ss:$16 sps:$4 sm:$0xff]  }
 0xb48   :  { %5410 = vtanh.f32 %v2434_v6  ;;  %v7186_v6 = vld [vmem:[#allocation10 + $0x24] ss:$16 sps:$4 sm:$0xff]   ;;  %v7192_v7 = vld [vmem:[#allocation10 + $0x20] ss:$16 sps:$4 sm:$0xff]  }
 0xb49   :  { %5412 = vtanh.f32 %v2436_v27  ;;  %v7198_v27 = vld [vmem:[#allocation10 + $0x44] ss:$16 sps:$4 sm:$0xff]  }
 0xb50   :  { %v5407_v52 = vpop.eup %5406 }
 0xb51   :  { %v2444_v5 = vmul.f32 0.5, %v5407_v52  ;;  %v5409_v58 = vpop.eup %5408  ;;  %v7200_v52 = vld [vmem:[#allocation10 + $0x4c] ss:$16 sps:$4 sm:$0xff]  }
 0xb52   :  { %v2446_v55 = vmul.f32 0.5, %v5409_v58  ;;  %v5411_v0 = vpop.eup %5410  ;;  %v7208_v58 = vld [vmem:[#allocation10 + $0x48] ss:$16 sps:$4 sm:$0xff]  }
 0xb53   :  { %v2445_v53 = vadd.f32 0.5, %v2444_v5  ;;  %v5413_v42 = vpop.eup %5412  ;;  %v7206_v5 = vld [vmem:[#allocation10 + $0x40] ss:$16 sps:$4 sm:$0xff]  }
 0xb54   :  { %v2447_v28 = vadd.f32 0.5, %v2446_v55  ;;  %v2448_v16 = vmul.f32 0.5, %v5413_v42  ;;  %v7214_v55 = vld [vmem:[#allocation10 + $0x6c] ss:$16 sps:$4 sm:$0xff]   ;;  %v7232_v42 = vld [vmem:[#allocation10 + $0x88] ss:$16 sps:$4 sm:$0xff]  }
 0xb55   :  { %v2451_v34 = vmul.f32 %v5411_v0, %v2445_v53  ;;  %v7212_v53 = vld [vmem:[#allocation10 + $0x64] ss:$16 sps:$4 sm:$0xff]   ;;  %v7218_v0 = vld [vmem:[#allocation10 + $0x60] ss:$16 sps:$4 sm:$0xff]  }
 0xb56   :  { %v2450_v43 = vmul.f32 %v2447_v28, %v8701_v38  ;;  %v2449_v47 = vadd.f32 0.5, %v2448_v16  ;;  %v7220_v28 = vld [vmem:[#allocation10 + $0x68] ss:$16 sps:$4 sm:$0xff]   ;;  %v7226_v38 = vld [vmem:[#allocation10 + $0x8c] ss:$16 sps:$4 sm:$0xff]  }
 0xb57   :  { %v7236_v16 = vld [vmem:[#allocation10 + $0xa4] ss:$16 sps:$4 sm:$0xff]  }
 0xb58   :  { %v7163_v33 = vadd.f32 %v2451_v34, %v2450_v43  ;;  %v7224_v34 = vld [vmem:[#allocation10 + $0x84] ss:$16 sps:$4 sm:$0xff]   ;;  %v7230_v43 = vld [vmem:[#allocation10 + $0x80] ss:$16 sps:$4 sm:$0xff]  }
 0xb5a   :  { %5414 = vtanh.f32 %v7163_v33 }
 0xb63   :  { %v2490_v29 = vpop.f32.mrb[56].mxu0  ;;  %v2531_v37 = vpop.f32.mrb[88].mxu1 }
 0xb64   :  { %v2538_v21 = vadd.f32 %v2490_v29, %v8704_v8  ;;  %v2540_v13 = vadd.f32 %v2531_v37, %v8705_v31  ;;  %v2492_v17 = vpop.f32.mrb[57].mxu0  ;;  %v2533_v24 = vpop.f32.mrb[89].mxu1  ;;  %v7238_v29 = vld [vmem:[#allocation10 + $0xac] ss:$16 sps:$4 sm:$0xff]   ;;  %v7242_v37 = vld [vmem:[#allocation10 + $0xa0] ss:$16 sps:$4 sm:$0xff]  }
 0xb65   :  { %v5415_v10 = vpop.eup %5414  ;;  %v2539_v11 = vadd.f32 %v2492_v17, %v8706_v39  ;;  %v2541_v35 = vadd.f32 %v2533_v24, %v8707_v18  ;;  %v2494_v59 = vpop.f32.mrb[58].mxu0  ;;  %v7244_v8 = vld [vmem:[#allocation10 + $0xa8] ss:$16 sps:$4 sm:$0xff]   ;;  %v7250_v31 = vld [vmem:[#allocation10 + $0xcc] ss:$16 sps:$4 sm:$0xff]  }
 0xb66   :  { %v2535_v23 = vpop.f32.mrb[90].mxu1  ;;  %5416 = vtanh.f32 %v2538_v21  ;;  %v2495_v40 = vpop.f32.mrb[59].mxu0  ;;  %v2454_v26 = vmul.f32 %v5415_v10, %v2449_v47  ;;  %v7248_v21 = vld [vmem:[#allocation10 + $0xc4] ss:$16 sps:$4 sm:$0xff]   ;;  %v7256_v17 = vld [vmem:[#allocation10 + $0xc8] ss:$16 sps:$4 sm:$0xff]  }
 0xb67   :  { %v2536_v61 = vpop.f32.mrb[91].mxu1  ;;  %5418 = vtanh.f32 %v2539_v11  ;;  %v7260_v24 = vld [vmem:[#allocation10 + $0xe4] ss:$16 sps:$4 sm:$0xff]   ;;  %v7262_v47 = vld [vmem:[#allocation10 + $0xec] ss:$16 sps:$4 sm:$0xff]  }
 0xb68   :  { %2557 = vrot.lane.b32.xlu1 %v2454_v26, %s5950_s6  ;;  %5420 = vtanh.f32 %v2540_v13  ;;  %v7254_v13 = vld [vmem:[#allocation10 + $0xc0] ss:$16 sps:$4 sm:$0xff]   ;;  %v7268_v39 = vld [vmem:[#allocation10 + $0xe8] ss:$16 sps:$4 sm:$0xff]   ;;  %v7278_v59 = vld [vmem:[#allocation11 + $0xc] ss:$16 sps:$4 sm:$0xff]  }
 0xb69   :  { %5422 = vtanh.f32 %v2541_v35  ;;  %v7266_v10 = vld [vmem:[#allocation10 + $0xe0] ss:$16 sps:$4 sm:$0xff]   ;;  %v7276_v35 = vld [vmem:[#allocation11 + $0x4] ss:$16 sps:$4 sm:$0xff]   ;;  %v7282_v40 = vld [vmem:[#allocation11 + $0x8] ss:$16 sps:$4 sm:$0xff]  }
 0xb6a   :  { %v7280_v23 = vld [vmem:[#allocation11] ss:$16 sps:$4 sm:$0xff]   ;;  %v7284_v61 = vld [vmem:[#allocation11 + $0x24] ss:$16 sps:$4 sm:$0xff]   ;;  %v7286_v26 = vld [vmem:[#allocation11 + $0x2c] ss:$16 sps:$4 sm:$0xff]  }
 0xb6b   :  { %8708 = vst [vmem:[#allocation65_spill] sm:$0xff] %v7284_v61  ;;  %8709 = vst [vmem:[#allocation50_spill] sm:$0xff] %v7286_v26 }
 0xb70   :  { %v5417_v54 = vpop.eup %5416 }
 0xb71   :  { %v2546_v41 = vmul.f32 0.5, %v5417_v54  ;;  %v5419_v9 = vpop.eup %5418  ;;  %v7292_v54 = vld [vmem:[#allocation11 + $0x20] ss:$16 sps:$4 sm:$0xff]  }
 0xb72   :  { %v2548_v14 = vmul.f32 0.5, %v5419_v9  ;;  %v5421_v19 = vpop.eup %5420  ;;  %8710 = vst [vmem:[#allocation66_spill] sm:$0xff] %v7292_v54  ;;  %v7298_v9 = vld [vmem:[#allocation11 + $0x44] ss:$16 sps:$4 sm:$0xff]  }
 0xb73   :  { %v2547_v12 = vadd.f32 0.5, %v2546_v41  ;;  %v5423_v56 = vpop.eup %5422  ;;  %v7294_v41 = vld [vmem:[#allocation11 + $0x28] ss:$16 sps:$4 sm:$0xff]   ;;  %8712 = vst [vmem:[#allocation67_spill] sm:$0xff] %v7298_v9 }
 0xb74   :  { %v2549_v22 = vadd.f32 0.5, %v2548_v14  ;;  %v2550_v57 = vmul.f32 0.5, %v5423_v56  ;;  %8711 = vst [vmem:[#allocation51_spill] sm:$0xff] %v7294_v41  ;;  %v7304_v14 = vld [vmem:[#allocation11 + $0x40] ss:$16 sps:$4 sm:$0xff]  }
 0xb75   :  { %v2553_v50 = vmul.f32 %v5421_v19, %v2547_v12  ;;  %v7300_v12 = vld [vmem:[#allocation11 + $0x4c] ss:$16 sps:$4 sm:$0xff]   ;;  %8714 = vst [vmem:[#allocation20_spill] sm:$0xff] %v7304_v14  ;;  %v7306_v19 = vld [vmem:[#allocation11 + $0x48] ss:$16 sps:$4 sm:$0xff]  }
 0xb76   :  { %v2552_v36 = vmul.f32 %v2549_v22, %v7099_v46  ;;  %v2551_v60 = vadd.f32 0.5, %v2550_v57  ;;  %v7188_v46 = vld [vmem:[#allocation10 + $0x2c] ss:$16 sps:$4 sm:$0xff]   ;;  %8713 = vst [vmem:[#allocation29_spill] sm:$0xff] %v7300_v12  ;;  %8715 = vst [vmem:[#allocation44_spill] sm:$0xff] %v7306_v19 }
 0xb77   :  { %v7310_v22 = vld [vmem:[#allocation11 + $0x64] ss:$16 sps:$4 sm:$0xff]   ;;  %v7318_v56 = vld [vmem:[#allocation11 + $0x68] ss:$16 sps:$4 sm:$0xff]  }
 0xb78   :  { %v7178_v32 = vadd.f32 %v2553_v50, %v2552_v36  ;;  %8716 = vst [vmem:[#allocation60_spill] sm:$0xff] %v7310_v22  ;;  %v7312_v50 = vld [vmem:[#allocation11 + $0x6c] ss:$16 sps:$4 sm:$0xff]   ;;  %v7316_v36 = vld [vmem:[#allocation11 + $0x60] ss:$16 sps:$4 sm:$0xff]   ;;  %8719 = vst [vmem:[#allocation26_spill] sm:$0xff] %v7318_v56 }
 0xb79   :  { %8717 = vst [vmem:[#allocation45_spill] sm:$0xff] %v7312_v50  ;;  %8718 = vst [vmem:[#allocation61_spill] sm:$0xff] %v7316_v36  ;;  %v7322_v57 = vld [vmem:[#allocation11 + $0x84] ss:$16 sps:$4 sm:$0xff]  }
 0xb7a   :  { %5424 = vtanh.f32 %v7178_v32  ;;  %8720 = vst [vmem:[#allocation46_spill] sm:$0xff] %v7322_v57 }
 0xb84   :  { %v5425_v49 = vpop.eup %5424 }
 0xb85   :  { %v2556_v4 = vmul.f32 %v5425_v49, %v2551_v60  ;;  %v7324_v60 = vld [vmem:[#allocation11 + $0x8c] ss:$16 sps:$4 sm:$0xff]   ;;  %v7328_v49 = vld [vmem:[#allocation11 + $0x80] ss:$16 sps:$4 sm:$0xff]  }
 0xb86   :  { %8721 = vst [vmem:[#allocation62_spill] sm:$0xff] %v7324_v60  ;;  %8722 = vst [vmem:[#allocation47_spill] sm:$0xff] %v7328_v49 }
 0xb87   :  { %2658 = vrot.lane.b32.xlu0 %v2556_v4, %s5950_s6 }
 0xbda   :  { %v2558_v62 = vpop.permute.xlu1 %2557 }
 0xbdb   :  { %v2559_v45 = vadd.f32 %v2558_v62, %v2556_v4  ;;  %v7330_v4 = vld [vmem:[#allocation11 + $0x88] ss:$16 sps:$4 sm:$0xff]   ;;  %v7334_v62 = vld [vmem:[#allocation11 + $0xa4] ss:$16 sps:$4 sm:$0xff]  }
 0xbdc   :  { %8723 = vst [vmem:[#allocation27_spill] sm:$0xff] %v7330_v4  ;;  %8724 = vst [vmem:[#allocation41_spill] sm:$0xff] %v7334_v62 }
 0xbdd   :  { %v2560_v2 = vpack.c.bf16 %v2559_v45, %v2559_v45  ;;  %v7336_v45 = vld [vmem:[#allocation11 + $0xac] ss:$16 sps:$4 sm:$0xff]  }
 0xbde   :  { %8725 = vst [vmem:[#allocation52_spill] sm:$0xff] %v7336_v45 }
 0xbdf   :  { %2594 = vmatmul.mubr.bf16.vlgmr.msra.gmra.mrb[60].mxu0 %v2560_v2  ;;  %2635 = vmatmul.mubr.bf16.vlgmr.msra.gmra.mrb[92].mxu1 %v2560_v2  ;;  %v7340_v2 = vld [vmem:[#allocation11 + $0xa0] ss:$16 sps:$4 sm:$0xff]  }
 0xbe0   :  { %2843 = vmatpush1.bf16.msra.mxu0 %v7182_v1  ;;  %2884 = vmatpush1.bf16.msra.mxu1 %v7184_v44  ;;  %8726 = vst [vmem:[#allocation68_spill] sm:$0xff] %v7340_v2 }
 0xbe1   :  { %2844 = vmatprep.subr.bf16.mxu0 %v7186_v6  ;;  %2885 = vmatprep.subr.bf16.mxu1 %v7188_v46 }
 0xbe2   :  { %2874 = vmatprep.mubr.bf16.mxu0 %v8528_v48  ;;  %2915 = vmatprep.mubr.bf16.mxu1 %v8528_v48 }
 0xbe4   :  { %2845 = vmatpush1.bf16.msra.mxu0 %v7192_v7  ;;  %2886 = vmatpush1.bf16.msra.mxu1 %v7194_v25 }
 0xbe5   :  { %2846 = vmatprep.subr.bf16.mxu0 %v7198_v27  ;;  %2887 = vmatprep.subr.bf16.mxu1 %v7200_v52 }
 0xbe8   :  { %2847 = vmatpush1.bf16.msra.mxu0 %v7206_v5  ;;  %2888 = vmatpush1.bf16.msra.mxu1 %v7208_v58 }
 0xbe9   :  { %2848 = vmatprep.subr.bf16.mxu0 %v7212_v53  ;;  %2889 = vmatprep.subr.bf16.mxu1 %v7214_v55 }
 0xbec   :  { %2849 = vmatpush1.bf16.msra.mxu0 %v7218_v0  ;;  %2890 = vmatpush1.bf16.msra.mxu1 %v7220_v28 }
 0xbed   :  { %2850 = vmatprep.subr.bf16.mxu0 %v7224_v34  ;;  %2891 = vmatprep.subr.bf16.mxu1 %v7226_v38 }
 0xbf0   :  { %2851 = vmatpush1.bf16.msra.mxu0 %v7230_v43  ;;  %2892 = vmatpush1.bf16.msra.mxu1 %v7232_v42 }
 0xbf1   :  { %2852 = vmatprep.subr.bf16.mxu0 %v7236_v16  ;;  %2893 = vmatprep.subr.bf16.mxu1 %v7238_v29 }
 0xbf4   :  { %2853 = vmatpush1.bf16.msra.mxu0 %v7242_v37  ;;  %2894 = vmatpush1.bf16.msra.mxu1 %v7244_v8 }
 0xbf5   :  { %2854 = vmatprep.subr.bf16.mxu0 %v7248_v21  ;;  %2895 = vmatprep.subr.bf16.mxu1 %v7250_v31 }
 0xbf8   :  { %2855 = vmatpush1.bf16.msra.mxu0 %v7254_v13  ;;  %2896 = vmatpush1.bf16.msra.mxu1 %v7256_v17 }
 0xbf9   :  { %2856 = vmatprep.subr.bf16.mxu0 %v7260_v24  ;;  %2897 = vmatprep.subr.bf16.mxu1 %v7262_v47  ;;  %v2659_v11 = vpop.permute.xlu0 %2658 }
 0xbfa   :  { %v2660_v18 = vpack.c.bf16 %v2659_v11, %v2659_v11  ;;  %v7342_v11 = vld [vmem:[#allocation11 + $0xa8] ss:$16 sps:$4 sm:$0xff]  }
 0xbfb   :  { %8727 = vst [vmem:[#allocation53_spill] sm:$0xff] %v7342_v11 }
 0xbfc   :  { %2857 = vmatpush1.bf16.msra.mxu0 %v7266_v10  ;;  %2898 = vmatpush1.bf16.msra.mxu1 %v7268_v39 }
 0xbfd   :  { %3124 = vmatprep.subr.bf16.mxu0 %v7276_v35  ;;  %3165 = vmatprep.subr.bf16.mxu1 %v7278_v59 }
 0xbff   :  { %2875 = vmatmul.mubr.bf16.vlgmr.msra.gmra.mrb[64].mxu0 %v2660_v18  ;;  %2916 = vmatmul.mubr.bf16.vlgmr.msra.gmra.mrb[96].mxu1 %v2660_v18  ;;  %v7346_v18 = vld [vmem:[#allocation11 + $0xc4] ss:$16 sps:$4 sm:$0xff]  }
 0xc00   :  { %3156 = vmatprep.mubr.bf16.mxu0 %v8528_v48  ;;  %3197 = vmatprep.mubr.bf16.mxu1 %v8528_v48  ;;  %8728 = vst [vmem:[#allocation69_spill] sm:$0xff] %v7346_v18 }
 0xc01   :  { %3125 = vmatpush1.bf16.msra.mxu0 %v7280_v23  ;;  %3166 = vmatpush1.bf16.msra.mxu1 %v7282_v40 }
 0xc02   :  { %3126 = vmatprep.subr.bf16.mxu0 %v7284_v61  ;;  %3167 = vmatprep.subr.bf16.mxu1 %v7286_v26 }
 0xc05   :  { %3127 = vmatpush1.bf16.msra.mxu0 %v7292_v54  ;;  %3168 = vmatpush1.bf16.msra.mxu1 %v7294_v41 }
 0xc06   :  { %3128 = vmatprep.subr.bf16.mxu0 %v7298_v9  ;;  %3169 = vmatprep.subr.bf16.mxu1 %v7300_v12 }
 0xc09   :  { %3129 = vmatpush1.bf16.msra.mxu0 %v7304_v14  ;;  %3170 = vmatpush1.bf16.msra.mxu1 %v7306_v19 }
 0xc0a   :  { %3130 = vmatprep.subr.bf16.mxu0 %v7310_v22  ;;  %3171 = vmatprep.subr.bf16.mxu1 %v7312_v50 }
 0xc0d   :  { %3131 = vmatpush1.bf16.msra.mxu0 %v7316_v36  ;;  %3172 = vmatpush1.bf16.msra.mxu1 %v7318_v56 }
 0xc0e   :  { %3132 = vmatprep.subr.bf16.mxu0 %v7322_v57  ;;  %3173 = vmatprep.subr.bf16.mxu1 %v7324_v60  ;;  %v7348_v57 = vld [vmem:[#allocation11 + $0xcc] ss:$16 sps:$4 sm:$0xff]   ;;  %v7352_v60 = vld [vmem:[#allocation11 + $0xc0] ss:$16 sps:$4 sm:$0xff]  }
 0xc0f   :  { %8729 = vst [vmem:[#allocation21_spill] sm:$0xff] %v7348_v57  ;;  %8730 = vst [vmem:[#allocation28_spill] sm:$0xff] %v7352_v60 }
 0xc11   :  { %3133 = vmatpush1.bf16.msra.mxu0 %v7328_v49  ;;  %3174 = vmatpush1.bf16.msra.mxu1 %v7330_v4  ;;  %v7354_v49 = vld [vmem:[#allocation11 + $0xc8] ss:$16 sps:$4 sm:$0xff]  }
 0xc12   :  { %3134 = vmatprep.subr.bf16.mxu0 %v7334_v62  ;;  %3175 = vmatprep.subr.bf16.mxu1 %v7336_v45  ;;  %8731 = vst [vmem:[#allocation54_spill] sm:$0xff] %v7354_v49 }
 0xc15   :  { %3135 = vmatpush1.bf16.msra.mxu0 %v7340_v2  ;;  %3176 = vmatpush1.bf16.msra.mxu1 %v7342_v11 }
 0xc16   :  { %3136 = vmatprep.subr.bf16.mxu0 %v7346_v18  ;;  %3177 = vmatprep.subr.bf16.mxu1 %v7348_v57 }
 0xc19   :  { %3137 = vmatpush1.bf16.msra.mxu0 %v7352_v60  ;;  %3178 = vmatpush1.bf16.msra.mxu1 %v7354_v49 }
 0xcb2   :  { %v2595_v45 = vpop.f32.mrb[60].mxu0  ;;  %v2636_v62 = vpop.f32.mrb[92].mxu1 }
 0xcb3   :  { %v2596_v4 = vadd.f32 %v2595_v45, %v8697_v30  ;;  %v2597_v56 = vpop.f32.mrb[61].mxu0  ;;  %v2638_v2 = vpop.f32.mrb[93].mxu1  ;;  %v2637_v22 = vadd.f32 %v2636_v62, %v8699_v3  ;;  %v7368_v3 = vld [vmem:[#allocation11 + $0xe4] ss:$16 sps:$4 sm:$0xff]  }
 0xcb4   :  { %v2598_v11 = vadd.f32 %v2597_v56, %v8698_v63  ;;  %v2599_v36 = vpop.f32.mrb[62].mxu0  ;;  %v2640_v50 = vpop.f32.mrb[94].mxu1  ;;  %v2639_v60 = vadd.f32 %v2638_v2, %v8700_v51  ;;  %8732 = vst [vmem:[#allocation70_spill] sm:$0xff] %v7368_v3  ;;  %v7372_v51 = vld [vmem:[#allocation11 + $0xe0] ss:$16 sps:$4 sm:$0xff]   ;;  %3138 = vmatprep.subr.bf16.mxu0 %v7368_v3  ;;  %v8739_v3 = vld [vmem:[#allocation59_spill] sm:$0xff] }
 0xcb5   :  { %5426 = vtanh.f32 %v2596_v4  ;;  %v2600_v18 = vpop.f32.mrb[63].mxu0  ;;  %v2641_v19 = vpop.f32.mrb[95].mxu1  ;;  %8734 = vst [vmem:[#allocation71_spill] sm:$0xff] %v7372_v51  ;;  %3139 = vmatpush1.bf16.msra.mxu0 %v7372_v51 }
 0xcb6   :  { %5428 = vtanh.f32 %v2598_v11  ;;  %v7370_v19 = vld [vmem:[#allocation11 + $0xec] ss:$16 sps:$4 sm:$0xff]   ;;  %3246 = vmatprep.subr.bf16.mxu0 %v7166_v20 }
 0xcb7   :  { %5430 = vtanh.f32 %v2637_v22  ;;  %8733 = vst [vmem:[#allocation55_spill] sm:$0xff] %v7370_v19  ;;  %v7374_v22 = vld [vmem:[#allocation11 + $0xe8] ss:$16 sps:$4 sm:$0xff]   ;;  %3179 = vmatprep.subr.bf16.mxu1 %v7370_v19 }
 0xcb8   :  { %5432 = vtanh.f32 %v2639_v60  ;;  %8735 = vst [vmem:[#allocation63_spill] sm:$0xff] %v7374_v22  ;;  %3180 = vmatpush1.bf16.msra.mxu1 %v7374_v22 }
 0xcb9   :  { %3287 = vmatprep.subr.bf16.mxu1 %v7168_v15 }
 0xcbf   :  { %v5427_v49 = vpop.eup %5426 }
 0xcc0   :  { %v2647_v57 = vmul.f32 0.5, %v5427_v49  ;;  %v5429_v14 = vpop.eup %5428  ;;  %v8738_v49 = vld [vmem:[#allocation58_spill] sm:$0xff] }
 0xcc1   :  { %v2649_v30 = vmul.f32 0.5, %v5429_v14  ;;  %v5431_v45 = vpop.eup %5430  ;;  %v271_v14 = vld [vmem:[%s8212_s7] sm:$0xf] }
 0xcc2   :  { %v2648_v12 = vadd.f32 0.5, %v2647_v57  ;;  %v5433_v56 = vpop.eup %5432  ;;  %v8737_v57 = vld [vmem:[#allocation43_spill] sm:$0xff]  ;;  %v2673_v4 = vrot.slane %v271_v14, %v8738_v49  ;;  %v2677_v41 = vrot.slane %v271_v14, %v8739_v3 }
 0xcc3   :  { %v2650_v9 = vadd.f32 0.5, %v2649_v30  ;;  %v2669_v60 = vrot.slane %v271_v14, %v8737_v57 }
 0xcc4   :  { %v2654_v63 = vmul.f32 %v5431_v45, %v2648_v12 }
 0xcc5   :  { %v2653_v50 = vmul.f32 %v2650_v9, %v7163_v33  ;;  %v2651_v33 = vmul.f32 0.5, %v5433_v56  ;;  %v8736_v9 = vld [vmem:[#allocation42_spill] sm:$0xff] }
 0xcc6   :  { %v2665_v12 = vrot.slane %v271_v14, %v8736_v9 }
 0xcc7   :  { %v7365_v36 = vadd.f32 %v2654_v63, %v2653_v50  ;;  %v2652_v45 = vadd.f32 0.5, %v2651_v33 }
 0xcc9   :  { %5434 = vtanh.f32 %v7365_v36 }
 0xcd2   :  { %v2876_v62 = vpop.f32.mrb[64].mxu0  ;;  %v2917_v2 = vpop.f32.mrb[96].mxu1 }
 0xcd3   :  { %v2877_v11 = vadd.f32 %v2876_v62, %v2665_v12  ;;  %v2878_v18 = vpop.f32.mrb[65].mxu0  ;;  %v2919_v30 = vpop.f32.mrb[97].mxu1  ;;  %v2918_v20 = vadd.f32 %v2917_v2, %v2673_v4 }
 0xcd4   :  { %v5435_v63 = vpop.eup %5434  ;;  %v2879_v50 = vadd.f32 %v2878_v18, %v2669_v60  ;;  %v2880_v22 = vpop.f32.mrb[66].mxu0  ;;  %v2920_v54 = vadd.f32 %v2919_v30, %v2677_v41 }
 0xcd5   :  { %v2921_v51 = vpop.f32.mrb[98].mxu1  ;;  %5436 = vtanh.f32 %v2877_v11  ;;  %v2881_v15 = vpop.f32.mrb[67].mxu0  ;;  %v2657_v19 = vmul.f32 %v5435_v63, %v2652_v45 }
 0xcd6   :  { %v2922_v56 = vpop.f32.mrb[99].mxu1  ;;  %5438 = vtanh.f32 %v2879_v50 }
 0xcd7   :  { %2939 = vrot.lane.b32.xlu1 %v2657_v19, %s5950_s6  ;;  %5440 = vtanh.f32 %v2918_v20 }
 0xcd8   :  { %5442 = vtanh.f32 %v2920_v54 }
 0xcdf   :  { %v5437_v12 = vpop.eup %5436 }
 0xce0   :  { %v2928_v62 = vmul.f32 0.5, %v5437_v12  ;;  %v5439_v26 = vpop.eup %5438 }
 0xce1   :  { %v2930_v61 = vmul.f32 0.5, %v5439_v26  ;;  %v5441_v22 = vpop.eup %5440 }
 0xce2   :  { %v2929_v33 = vadd.f32 0.5, %v2928_v62  ;;  %v5443_v19 = vpop.eup %5442 }
 0xce3   :  { %v2931_v51 = vadd.f32 0.5, %v2930_v61  ;;  %v2932_v20 = vmul.f32 0.5, %v5443_v19 }
 0xce4   :  { %v2935_v60 = vmul.f32 %v5441_v22, %v2929_v33 }
 0xce5   :  { %v2934_v15 = vmul.f32 %v2931_v51, %v7178_v32  ;;  %v2933_v2 = vadd.f32 0.5, %v2932_v20  ;;  %v305_v32 = vld [vmem:[%s8215_s10] sm:$0xf] }
 0xce6   :  { %v7433_v61 = vrot.slane %v305_v32, %v8736_v9  ;;  %v7436_v54 = vrot.slane %v305_v32, %v8737_v57  ;;  %v7439_v30 = vrot.slane %v305_v32, %v8738_v49  ;;  %v7445_v19 = vrot.slane %v305_v32, %v8739_v3 }
 0xce7   :  { %v7391_v4 = vadd.f32 %v2935_v60, %v2934_v15 }
 0xce9   :  { %5444 = vtanh.f32 %v7391_v4 }
 0xcf3   :  { %v5445_v14 = vpop.eup %5444 }
 0xcf4   :  { %v2938_v41 = vmul.f32 %v5445_v14, %v2933_v2 }
 0xcf6   :  { %3221 = vrot.lane.b32.xlu0 %v2938_v41, %s5950_s6 }
 0xd49   :  { %v2940_v11 = vpop.permute.xlu1 %2939 }
 0xd4a   :  { %v2941_v18 = vadd.f32 %v2940_v11, %v2938_v41 }
 0xd4c   :  { %v2942_v26 = vpack.c.bf16 %v2941_v18, %v2941_v18 }
 0xd4e   :  { %3157 = vmatmul.mubr.bf16.vlgmr.msra.gmra.mrb[68].mxu0 %v2942_v26  ;;  %3198 = vmatmul.mubr.bf16.vlgmr.msra.gmra.mrb[100].mxu1 %v2942_v26 }
 0xd4f   :  { %3247 = vmatpush1.bf16.msra.mxu0 %v7182_v1  ;;  %3288 = vmatpush1.bf16.msra.mxu1 %v7184_v44 }
 0xd50   :  { %3248 = vmatprep.subr.bf16.mxu0 %v7186_v6  ;;  %3289 = vmatprep.subr.bf16.mxu1 %v7188_v46 }
 0xd51   :  { %3278 = vmatprep.mubr.bf16.mxu0 %v8528_v48  ;;  %3319 = vmatprep.mubr.bf16.mxu1 %v8528_v48 }
 0xd53   :  { %3249 = vmatpush1.bf16.msra.mxu0 %v7192_v7  ;;  %3290 = vmatpush1.bf16.msra.mxu1 %v7194_v25 }
 0xd54   :  { %3250 = vmatprep.subr.bf16.mxu0 %v7198_v27  ;;  %3291 = vmatprep.subr.bf16.mxu1 %v7200_v52 }
 0xd57   :  { %3251 = vmatpush1.bf16.msra.mxu0 %v7206_v5  ;;  %3292 = vmatpush1.bf16.msra.mxu1 %v7208_v58 }
 0xd58   :  { %3252 = vmatprep.subr.bf16.mxu0 %v7212_v53  ;;  %3293 = vmatprep.subr.bf16.mxu1 %v7214_v55 }
 0xd5b   :  { %3253 = vmatpush1.bf16.msra.mxu0 %v7218_v0  ;;  %3294 = vmatpush1.bf16.msra.mxu1 %v7220_v28 }
 0xd5c   :  { %3254 = vmatprep.subr.bf16.mxu0 %v7224_v34  ;;  %3295 = vmatprep.subr.bf16.mxu1 %v7226_v38 }
 0xd5f   :  { %3255 = vmatpush1.bf16.msra.mxu0 %v7230_v43  ;;  %3296 = vmatpush1.bf16.msra.mxu1 %v7232_v42 }
 0xd60   :  { %3256 = vmatprep.subr.bf16.mxu0 %v7236_v16  ;;  %3297 = vmatprep.subr.bf16.mxu1 %v7238_v29 }
 0xd63   :  { %3257 = vmatpush1.bf16.msra.mxu0 %v7242_v37  ;;  %3298 = vmatpush1.bf16.msra.mxu1 %v7244_v8 }
 0xd64   :  { %3258 = vmatprep.subr.bf16.mxu0 %v7248_v21  ;;  %3299 = vmatprep.subr.bf16.mxu1 %v7250_v31 }
 0xd67   :  { %3259 = vmatpush1.bf16.msra.mxu0 %v7254_v13  ;;  %3300 = vmatpush1.bf16.msra.mxu1 %v7256_v17 }
 0xd68   :  { %3260 = vmatprep.subr.bf16.mxu0 %v7260_v24  ;;  %3301 = vmatprep.subr.bf16.mxu1 %v7262_v47 }
 0xd6b   :  { %3261 = vmatpush1.bf16.msra.mxu0 %v7266_v10  ;;  %3302 = vmatpush1.bf16.msra.mxu1 %v7268_v39 }
 0xd6c   :  { %3347 = vmatprep.subr.bf16.mxu0 %v7276_v35  ;;  %3388 = vmatprep.subr.bf16.mxu1 %v7278_v59 }
 0xe21   :  { %v3158_v45 = vpop.f32.mrb[68].mxu0  ;;  %v3199_v63 = vpop.f32.mrb[100].mxu1 }
 0xe22   :  { %v3159_v50 = vadd.f32 %v3158_v45, %v7433_v61  ;;  %v3160_v56 = vpop.f32.mrb[69].mxu0  ;;  %v3201_v12 = vpop.f32.mrb[101].mxu1  ;;  %v3200_v51 = vadd.f32 %v3199_v63, %v7439_v30 }
 0xe23   :  { %v3161_v62 = vadd.f32 %v3160_v56, %v7436_v54  ;;  %v3162_v33 = vpop.f32.mrb[70].mxu0  ;;  %v3203_v22 = vpop.f32.mrb[102].mxu1  ;;  %v3202_v20 = vadd.f32 %v3201_v12, %v7445_v19 }
 0xe24   :  { %5446 = vtanh.f32 %v3159_v50  ;;  %v3163_v60 = vpop.f32.mrb[71].mxu0  ;;  %v3204_v15 = vpop.f32.mrb[103].mxu1 }
 0xe25   :  { %5448 = vtanh.f32 %v3161_v62 }
 0xe26   :  { %5450 = vtanh.f32 %v3200_v51  ;;  %v3222_v51 = vpop.permute.xlu0 %3221 }
 0xe27   :  { %5452 = vtanh.f32 %v3202_v20  ;;  %v8742_v20 = vld [vmem:[#allocation50_spill] sm:$0xff] }
 0xe2e   :  { %v5447_v2 = vpop.eup %5446 }
 0xe2f   :  { %v3210_v14 = vmul.f32 0.5, %v5447_v2  ;;  %v5449_v41 = vpop.eup %5448  ;;  %v8743_v2 = vld [vmem:[#allocation66_spill] sm:$0xff] }
 0xe30   :  { %v3212_v18 = vmul.f32 0.5, %v5449_v41  ;;  %v5451_v26 = vpop.eup %5450  ;;  %v8745_v41 = vld [vmem:[#allocation67_spill] sm:$0xff] }
 0xe31   :  { %v3211_v11 = vadd.f32 0.5, %v3210_v14  ;;  %v5453_v62 = vpop.eup %5452  ;;  %v8744_v14 = vld [vmem:[#allocation51_spill] sm:$0xff] }
 0xe32   :  { %v3213_v45 = vadd.f32 0.5, %v3212_v18  ;;  %v3214_v32 = vmul.f32 0.5, %v5453_v62  ;;  %v8747_v18 = vld [vmem:[#allocation20_spill] sm:$0xff]  ;;  %v8752_v62 = vld [vmem:[#allocation26_spill] sm:$0xff] }
 0xe33   :  { %v3217_v50 = vmul.f32 %v5451_v26, %v3211_v11  ;;  %v8746_v11 = vld [vmem:[#allocation29_spill] sm:$0xff]  ;;  %v8748_v26 = vld [vmem:[#allocation44_spill] sm:$0xff] }
 0xe34   :  { %v3216_v63 = vmul.f32 %v3213_v45, %v7365_v36  ;;  %v3215_v33 = vadd.f32 0.5, %v3214_v32  ;;  %v8741_v36 = vld [vmem:[#allocation65_spill] sm:$0xff]  ;;  %v8749_v45 = vld [vmem:[#allocation60_spill] sm:$0xff]  ;;  %v8753_v32 = vld [vmem:[#allocation46_spill] sm:$0xff] }
 0xe36   :  { %v7449_v56 = vadd.f32 %v3217_v50, %v3216_v63  ;;  %v8750_v50 = vld [vmem:[#allocation45_spill] sm:$0xff] }
 0xe37   :  { %v8751_v63 = vld [vmem:[#allocation61_spill] sm:$0xff] }
 0xe38   :  { %5454 = vtanh.f32 %v7449_v56 }
 0xe42   :  { %v5455_v22 = vpop.eup %5454 }
 0xe43   :  { %v7452_v12 = vmul.f32 %v5455_v22, %v3215_v33  ;;  %v8754_v33 = vld [vmem:[#allocation62_spill] sm:$0xff]  ;;  %v8755_v22 = vld [vmem:[#allocation47_spill] sm:$0xff] }
 0xe45   :  { %8740 = vst [vmem:[#allocation30_spill] sm:$0xff] %v7452_v12  ;;  %3343 = vrot.lane.b32.xlu1 %v7452_v12, %s5950_s6  ;;  %v3223_v60 = vadd.f32 %v3222_v51, %v7452_v12  ;;  %v8756_v51 = vld [vmem:[#allocation27_spill] sm:$0xff]  ;;  %v8759_v12 = vld [vmem:[#allocation68_spill] sm:$0xff] }
 0xe47   :  { %v3224_v15 = vpack.c.bf16 %v3223_v60, %v3223_v60  ;;  %v8757_v60 = vld [vmem:[#allocation41_spill] sm:$0xff] }
 0xe49   :  { %3279 = vmatmul.mubr.bf16.vlgmr.msra.gmra.mrb[72].mxu0 %v3224_v15  ;;  %3320 = vmatmul.mubr.bf16.vlgmr.msra.gmra.mrb[104].mxu1 %v3224_v15  ;;  %v8758_v15 = vld [vmem:[#allocation52_spill] sm:$0xff] }
 0xe4a   :  { %3348 = vmatpush1.bf16.msra.mxu0 %v7280_v23  ;;  %3389 = vmatpush1.bf16.msra.mxu1 %v7282_v40 }
 0xe4b   :  { %3349 = vmatprep.subr.bf16.mxu0 %v8741_v36  ;;  %3390 = vmatprep.subr.bf16.mxu1 %v8742_v20 }
 0xe4c   :  { %3379 = vmatprep.mubr.bf16.mxu0 %v8528_v48  ;;  %3420 = vmatprep.mubr.bf16.mxu1 %v8528_v48 }
 0xe4e   :  { %3350 = vmatpush1.bf16.msra.mxu0 %v8743_v2  ;;  %3391 = vmatpush1.bf16.msra.mxu1 %v8744_v14 }
 0xe4f   :  { %3351 = vmatprep.subr.bf16.mxu0 %v8745_v41  ;;  %3392 = vmatprep.subr.bf16.mxu1 %v8746_v11 }
 0xe52   :  { %3352 = vmatpush1.bf16.msra.mxu0 %v8747_v18  ;;  %3393 = vmatpush1.bf16.msra.mxu1 %v8748_v26 }
 0xe53   :  { %3353 = vmatprep.subr.bf16.mxu0 %v8749_v45  ;;  %3394 = vmatprep.subr.bf16.mxu1 %v8750_v50  ;;  %v8760_v45 = vld [vmem:[#allocation53_spill] sm:$0xff] }
 0xe54   :  { %v8761_v50 = vld [vmem:[#allocation69_spill] sm:$0xff] }
 0xe56   :  { %3354 = vmatpush1.bf16.msra.mxu0 %v8751_v63  ;;  %3395 = vmatpush1.bf16.msra.mxu1 %v8752_v62  ;;  %v8762_v63 = vld [vmem:[#allocation21_spill] sm:$0xff]  ;;  %v8763_v62 = vld [vmem:[#allocation28_spill] sm:$0xff] }
 0xe57   :  { %3355 = vmatprep.subr.bf16.mxu0 %v8753_v32  ;;  %3396 = vmatprep.subr.bf16.mxu1 %v8754_v33  ;;  %v8764_v32 = vld [vmem:[#allocation54_spill] sm:$0xff] }
 0xe58   :  { %v8765_v33 = vld [vmem:[#allocation70_spill] sm:$0xff] }
 0xe5a   :  { %3356 = vmatpush1.bf16.msra.mxu0 %v8755_v22  ;;  %3397 = vmatpush1.bf16.msra.mxu1 %v8756_v51  ;;  %v8766_v22 = vld [vmem:[#allocation55_spill] sm:$0xff] }
 0xe5b   :  { %3357 = vmatprep.subr.bf16.mxu0 %v8757_v60  ;;  %3398 = vmatprep.subr.bf16.mxu1 %v8758_v15  ;;  %v8767_v51 = vld [vmem:[#allocation71_spill] sm:$0xff]  ;;  %v8769_v15 = vld [vmem:[#allocation64_spill] sm:$0xff] }
 0xe5c   :  { %v8768_v60 = vld [vmem:[#allocation63_spill] sm:$0xff] }
 0xe5e   :  { %3358 = vmatpush1.bf16.msra.mxu0 %v8759_v12  ;;  %3399 = vmatpush1.bf16.msra.mxu1 %v8760_v45  ;;  %v8770_v12 = vld [vmem:[#allocation49_spill] sm:$0xff] }
 0xe5f   :  { %3359 = vmatprep.subr.bf16.mxu0 %v8761_v50  ;;  %3400 = vmatprep.subr.bf16.mxu1 %v8762_v63  ;;  %v272_v63 = vld [vmem:[%s8213_s8] sm:$0xf] }
 0xe62   :  { %3360 = vmatpush1.bf16.msra.mxu0 %v8763_v62  ;;  %3401 = vmatpush1.bf16.msra.mxu1 %v8764_v32  ;;  %v7495_v62 = vrot.slane %v272_v63, %v8736_v9  ;;  %v7498_v32 = vrot.slane %v272_v63, %v8737_v57  ;;  %v7507_v57 = vrot.slane %v272_v63, %v8739_v3 }
 0xe63   :  { %3361 = vmatprep.subr.bf16.mxu0 %v8765_v33  ;;  %3402 = vmatprep.subr.bf16.mxu1 %v8766_v22  ;;  %v7501_v22 = vrot.slane %v272_v63, %v8738_v49 }
 0xe64   :  { %8771 = vst [vmem:[#allocation31_spill] sm:$0xff] %v7495_v62 }
 0xe66   :  { %3362 = vmatpush1.bf16.msra.mxu0 %v8767_v51  ;;  %3403 = vmatpush1.bf16.msra.mxu1 %v8768_v60 }
 0xe67   :  { %3448 = vmatprep.subr.bf16.mxu0 %v8769_v15  ;;  %3489 = vmatprep.subr.bf16.mxu1 %v8770_v12 }
 0xf1c   :  { %v3280_v51 = vpop.f32.mrb[72].mxu0  ;;  %v3321_v33 = vpop.f32.mrb[104].mxu1 }
 0xf1d   :  { %v3281_v60 = vadd.f32 %v3280_v51, %v7495_v62  ;;  %v3282_v15 = vpop.f32.mrb[73].mxu0  ;;  %v3323_v50 = vpop.f32.mrb[105].mxu1  ;;  %v3322_v9 = vadd.f32 %v3321_v33, %v7501_v22 }
 0xf1e   :  { %v3283_v12 = vadd.f32 %v3282_v15, %v7498_v32  ;;  %v3284_v45 = vpop.f32.mrb[74].mxu0  ;;  %v3325_v26 = vpop.f32.mrb[106].mxu1  ;;  %v3324_v49 = vadd.f32 %v3323_v50, %v7507_v57 }
 0xf1f   :  { %5456 = vtanh.f32 %v3281_v60  ;;  %v3285_v18 = vpop.f32.mrb[75].mxu0  ;;  %v3326_v11 = vpop.f32.mrb[107].mxu1 }
 0xf20   :  { %5458 = vtanh.f32 %v3283_v12  ;;  %v3344_v12 = vpop.permute.xlu1 %3343 }
 0xf21   :  { %5460 = vtanh.f32 %v3322_v9 }
 0xf22   :  { %5462 = vtanh.f32 %v3324_v49 }
 0xf29   :  { %v5457_v41 = vpop.eup %5456 }
 0xf2a   :  { %v3332_v51 = vmul.f32 0.5, %v5457_v41  ;;  %v5459_v62 = vpop.eup %5458 }
 0xf2b   :  { %v3334_v2 = vmul.f32 0.5, %v5459_v62  ;;  %v5461_v45 = vpop.eup %5460 }
 0xf2c   :  { %v3333_v14 = vadd.f32 0.5, %v3332_v51  ;;  %v5463_v11 = vpop.eup %5462 }
 0xf2d   :  { %v3335_v26 = vadd.f32 0.5, %v3334_v2  ;;  %v3336_v3 = vmul.f32 0.5, %v5463_v11 }
 0xf2e   :  { %v3339_v60 = vmul.f32 %v5461_v45, %v3333_v14 }
 0xf2f   :  { %v3338_v33 = vmul.f32 %v3335_v26, %v7391_v4  ;;  %v3337_v63 = vadd.f32 0.5, %v3336_v3 }
 0xf31   :  { %v7511_v18 = vadd.f32 %v3339_v60, %v3338_v33 }
 0xf33   :  { %5464 = vtanh.f32 %v7511_v18 }
 0xf3d   :  { %v5465_v15 = vpop.eup %5464 }
 0xf3e   :  { %v3342_v50 = vmul.f32 %v5465_v15, %v3337_v63 }
 0xf40   :  { %3444 = vrot.lane.b32.xlu0 %v3342_v50, %s5950_s6  ;;  %v3345_v41 = vadd.f32 %v3344_v12, %v3342_v50 }
 0xf42   :  { %v3346_v62 = vpack.c.bf16 %v3345_v41, %v3345_v41 }
 0xf44   :  { %3380 = vmatmul.mubr.bf16.vlgmr.msra.gmra.mrb[76].mxu0 %v3346_v62  ;;  %3421 = vmatmul.mubr.bf16.vlgmr.msra.gmra.mrb[108].mxu1 %v3346_v62 }
 0xf45   :  { %3449 = vmatpush1.bf16.msra.mxu0 %v7182_v1  ;;  %3490 = vmatpush1.bf16.msra.mxu1 %v7184_v44 }
 0xf46   :  { %3450 = vmatprep.subr.bf16.mxu0 %v7186_v6  ;;  %3491 = vmatprep.subr.bf16.mxu1 %v7188_v46 }
 0xf47   :  { %3480 = vmatprep.mubr.bf16.mxu0 %v8528_v48  ;;  %3521 = vmatprep.mubr.bf16.mxu1 %v8528_v48 }
 0xf49   :  { %3451 = vmatpush1.bf16.msra.mxu0 %v7192_v7  ;;  %3492 = vmatpush1.bf16.msra.mxu1 %v7194_v25 }
 0xf4a   :  { %3452 = vmatprep.subr.bf16.mxu0 %v7198_v27  ;;  %3493 = vmatprep.subr.bf16.mxu1 %v7200_v52 }
 0xf4d   :  { %3453 = vmatpush1.bf16.msra.mxu0 %v7206_v5  ;;  %3494 = vmatpush1.bf16.msra.mxu1 %v7208_v58 }
 0xf4e   :  { %3454 = vmatprep.subr.bf16.mxu0 %v7212_v53  ;;  %3495 = vmatprep.subr.bf16.mxu1 %v7214_v55 }
 0xf51   :  { %3455 = vmatpush1.bf16.msra.mxu0 %v7218_v0  ;;  %3496 = vmatpush1.bf16.msra.mxu1 %v7220_v28 }
 0xf52   :  { %3456 = vmatprep.subr.bf16.mxu0 %v7224_v34  ;;  %3497 = vmatprep.subr.bf16.mxu1 %v7226_v38 }
 0xf55   :  { %3457 = vmatpush1.bf16.msra.mxu0 %v7230_v43  ;;  %3498 = vmatpush1.bf16.msra.mxu1 %v7232_v42 }
 0xf56   :  { %3458 = vmatprep.subr.bf16.mxu0 %v7236_v16  ;;  %3499 = vmatprep.subr.bf16.mxu1 %v7238_v29 }
 0xf59   :  { %3459 = vmatpush1.bf16.msra.mxu0 %v7242_v37  ;;  %3500 = vmatpush1.bf16.msra.mxu1 %v7244_v8 }
 0xf5a   :  { %3460 = vmatprep.subr.bf16.mxu0 %v7248_v21  ;;  %3501 = vmatprep.subr.bf16.mxu1 %v7250_v31 }
 0xf5d   :  { %3461 = vmatpush1.bf16.msra.mxu0 %v7254_v13  ;;  %3502 = vmatpush1.bf16.msra.mxu1 %v7256_v17 }
 0xf5e   :  { %3462 = vmatprep.subr.bf16.mxu0 %v7260_v24  ;;  %3503 = vmatprep.subr.bf16.mxu1 %v7262_v47 }
 0xf61   :  { %3463 = vmatpush1.bf16.msra.mxu0 %v7266_v10  ;;  %3504 = vmatpush1.bf16.msra.mxu1 %v7268_v39 }
 0xf62   :  { %3549 = vmatprep.subr.bf16.mxu0 %v7276_v35  ;;  %3590 = vmatprep.subr.bf16.mxu1 %v7278_v59 }
0x1017   :  { %v3381_v4 = vpop.f32.mrb[76].mxu0  ;;  %v3422_v2 = vpop.f32.mrb[108].mxu1 }
0x1018   :  { %v3382_v14 = vadd.f32 %v3381_v4, %v7433_v61  ;;  %v3383_v9 = vpop.f32.mrb[77].mxu0  ;;  %v3424_v49 = vpop.f32.mrb[109].mxu1  ;;  %v3423_v60 = vadd.f32 %v3422_v2, %v7439_v30 }
0x1019   :  { %v3384_v51 = vadd.f32 %v3383_v9, %v7436_v54  ;;  %v3385_v45 = vpop.f32.mrb[78].mxu0  ;;  %v3426_v26 = vpop.f32.mrb[110].mxu1  ;;  %v3425_v3 = vadd.f32 %v3424_v49, %v7445_v19 }
0x101a   :  { %5466 = vtanh.f32 %v3382_v14  ;;  %v3386_v33 = vpop.f32.mrb[79].mxu0  ;;  %v3427_v11 = vpop.f32.mrb[111].mxu1 }
0x101b   :  { %5468 = vtanh.f32 %v3384_v51  ;;  %v3445_v33 = vpop.permute.xlu0 %3444 }
0x101c   :  { %5470 = vtanh.f32 %v3423_v60 }
0x101d   :  { %5472 = vtanh.f32 %v3425_v3 }
0x1024   :  { %v5467_v63 = vpop.eup %5466 }
0x1025   :  { %v3433_v15 = vmul.f32 0.5, %v5467_v63  ;;  %v5469_v50 = vpop.eup %5468  ;;  %v8774_v63 = vld [vmem:[#allocation51_spill] sm:$0xff] }
0x1026   :  { %v3435_v41 = vmul.f32 0.5, %v5469_v50  ;;  %v5471_v62 = vpop.eup %5470  ;;  %v8776_v50 = vld [vmem:[#allocation29_spill] sm:$0xff] }
0x1027   :  { %v3434_v12 = vadd.f32 0.5, %v3433_v15  ;;  %v5473_v2 = vpop.eup %5472  ;;  %v8775_v15 = vld [vmem:[#allocation67_spill] sm:$0xff] }
0x1028   :  { %v3436_v4 = vadd.f32 0.5, %v3435_v41  ;;  %v3437_v51 = vmul.f32 0.5, %v5473_v2  ;;  %v8778_v41 = vld [vmem:[#allocation44_spill] sm:$0xff]  ;;  %v8783_v2 = vld [vmem:[#allocation46_spill] sm:$0xff] }
0x1029   :  { %v3440_v9 = vmul.f32 %v5471_v62, %v3434_v12  ;;  %v8777_v12 = vld [vmem:[#allocation20_spill] sm:$0xff] }
0x102a   :  { %v3439_v45 = vmul.f32 %v3436_v4, %v7449_v56  ;;  %v3438_v26 = vadd.f32 0.5, %v3437_v51  ;;  %v8773_v56 = vld [vmem:[#allocation66_spill] sm:$0xff]  ;;  %v8779_v62 = vld [vmem:[#allocation60_spill] sm:$0xff]  ;;  %v8780_v4 = vld [vmem:[#allocation45_spill] sm:$0xff] }
0x102b   :  { %v8784_v51 = vld [vmem:[#allocation62_spill] sm:$0xff] }
0x102c   :  { %v7554_v14 = vadd.f32 %v3440_v9, %v3439_v45  ;;  %v8781_v9 = vld [vmem:[#allocation61_spill] sm:$0xff]  ;;  %v8782_v45 = vld [vmem:[#allocation26_spill] sm:$0xff] }
0x102e   :  { %5474 = vtanh.f32 %v7554_v14 }
0x1038   :  { %v5475_v60 = vpop.eup %5474 }
0x1039   :  { %v7557_v49 = vmul.f32 %v5475_v60, %v3438_v26  ;;  %v8785_v26 = vld [vmem:[#allocation47_spill] sm:$0xff] }
0x103a   :  { %v8786_v60 = vld [vmem:[#allocation27_spill] sm:$0xff] }
0x103b   :  { %8772 = vst [vmem:[#allocation32_spill] sm:$0xff] %v7557_v49  ;;  %3545 = vrot.lane.b32.xlu1 %v7557_v49, %s5950_s6  ;;  %v3446_v11 = vadd.f32 %v3445_v33, %v7557_v49  ;;  %v8787_v33 = vld [vmem:[#allocation41_spill] sm:$0xff] }
0x103c   :  { %v8790_v49 = vld [vmem:[#allocation53_spill] sm:$0xff] }
0x103d   :  { %v3447_v3 = vpack.c.bf16 %v3446_v11, %v3446_v11  ;;  %v8788_v11 = vld [vmem:[#allocation52_spill] sm:$0xff] }
0x103f   :  { %3481 = vmatmul.mubr.bf16.vlgmr.msra.gmra.mrb[80].mxu0 %v3447_v3  ;;  %3522 = vmatmul.mubr.bf16.vlgmr.msra.gmra.mrb[112].mxu1 %v3447_v3  ;;  %v8789_v3 = vld [vmem:[#allocation68_spill] sm:$0xff] }
0x1040   :  { %3550 = vmatpush1.bf16.msra.mxu0 %v7280_v23  ;;  %3591 = vmatpush1.bf16.msra.mxu1 %v7282_v40 }
0x1041   :  { %3551 = vmatprep.subr.bf16.mxu0 %v8741_v36  ;;  %3592 = vmatprep.subr.bf16.mxu1 %v8742_v20 }
0x1042   :  { %3581 = vmatprep.mubr.bf16.mxu0 %v8528_v48  ;;  %3622 = vmatprep.mubr.bf16.mxu1 %v8528_v48 }
0x1044   :  { %3552 = vmatpush1.bf16.msra.mxu0 %v8773_v56  ;;  %3593 = vmatpush1.bf16.msra.mxu1 %v8774_v63 }
0x1045   :  { %3553 = vmatprep.subr.bf16.mxu0 %v8775_v15  ;;  %3594 = vmatprep.subr.bf16.mxu1 %v8776_v50 }
0x1048   :  { %3554 = vmatpush1.bf16.msra.mxu0 %v8777_v12  ;;  %3595 = vmatpush1.bf16.msra.mxu1 %v8778_v41 }
0x1049   :  { %3555 = vmatprep.subr.bf16.mxu0 %v8779_v62  ;;  %3596 = vmatprep.subr.bf16.mxu1 %v8780_v4  ;;  %v8791_v4 = vld [vmem:[#allocation69_spill] sm:$0xff] }
0x104c   :  { %3556 = vmatpush1.bf16.msra.mxu0 %v8781_v9  ;;  %3597 = vmatpush1.bf16.msra.mxu1 %v8782_v45  ;;  %v8792_v9 = vld [vmem:[#allocation21_spill] sm:$0xff]  ;;  %v8793_v45 = vld [vmem:[#allocation28_spill] sm:$0xff] }
0x104d   :  { %3557 = vmatprep.subr.bf16.mxu0 %v8783_v2  ;;  %3598 = vmatprep.subr.bf16.mxu1 %v8784_v51  ;;  %v8794_v2 = vld [vmem:[#allocation54_spill] sm:$0xff] }
0x104e   :  { %v8795_v51 = vld [vmem:[#allocation70_spill] sm:$0xff] }
0x1050   :  { %3558 = vmatpush1.bf16.msra.mxu0 %v8785_v26  ;;  %3599 = vmatpush1.bf16.msra.mxu1 %v8786_v60  ;;  %v8796_v26 = vld [vmem:[#allocation55_spill] sm:$0xff] }
0x1051   :  { %3559 = vmatprep.subr.bf16.mxu0 %v8787_v33  ;;  %3600 = vmatprep.subr.bf16.mxu1 %v8788_v11  ;;  %v8797_v60 = vld [vmem:[#allocation71_spill] sm:$0xff]  ;;  %v7594_v11 = vld [vmem:[#allocation10 + $0x4] ss:$16 sps:$4 sm:$0xff]  }
0x1052   :  { %v8798_v33 = vld [vmem:[#allocation63_spill] sm:$0xff]  ;;  %8799 = vst [vmem:[#allocation33_spill] sm:$0xff] %v7594_v11 }
0x1054   :  { %3560 = vmatpush1.bf16.msra.mxu0 %v8789_v3  ;;  %3601 = vmatpush1.bf16.msra.mxu1 %v8790_v49  ;;  %v7597_v49 = vld [vmem:[#allocation10 + $0xc] ss:$16 sps:$4 sm:$0xff]  }
0x1055   :  { %3561 = vmatprep.subr.bf16.mxu0 %v8791_v4  ;;  %3602 = vmatprep.subr.bf16.mxu1 %v8792_v9  ;;  %8800 = vst [vmem:[#allocation34_spill] sm:$0xff] %v7597_v49  ;;  %v8801_v4 = vld [vmem:[#allocation31_spill] sm:$0xff] }
0x1058   :  { %3562 = vmatpush1.bf16.msra.mxu0 %v8793_v45  ;;  %3603 = vmatpush1.bf16.msra.mxu1 %v8794_v2 }
0x1059   :  { %3563 = vmatprep.subr.bf16.mxu0 %v8795_v51  ;;  %3604 = vmatprep.subr.bf16.mxu1 %v8796_v26 }
0x105c   :  { %3564 = vmatpush1.bf16.msra.mxu0 %v8797_v60  ;;  %3605 = vmatpush1.bf16.msra.mxu1 %v8798_v33 }
0x105d   :  { %3650 = vmatprep.subr.bf16.mxu0 %v7594_v11  ;;  %3691 = vmatprep.subr.bf16.mxu1 %v7597_v49 }
0x1112   :  { %v3482_v9 = vpop.f32.mrb[80].mxu0  ;;  %v3523_v45 = vpop.f32.mrb[112].mxu1 }
0x1113   :  { %v3483_v2 = vadd.f32 %v3482_v9, %v8801_v4  ;;  %v3484_v3 = vpop.f32.mrb[81].mxu0  ;;  %v3525_v51 = vpop.f32.mrb[113].mxu1  ;;  %v3524_v33 = vadd.f32 %v3523_v45, %v7501_v22 }
0x1114   :  { %v3485_v26 = vadd.f32 %v3484_v3, %v7498_v32  ;;  %v3486_v62 = vpop.f32.mrb[82].mxu0  ;;  %v3527_v60 = vpop.f32.mrb[114].mxu1  ;;  %v3526_v11 = vadd.f32 %v3525_v51, %v7507_v57 }
0x1115   :  { %5476 = vtanh.f32 %v3483_v2  ;;  %v3487_v41 = vpop.f32.mrb[83].mxu0  ;;  %v3528_v12 = vpop.f32.mrb[115].mxu1 }
0x1116   :  { %5478 = vtanh.f32 %v3485_v26  ;;  %v3546_v60 = vpop.permute.xlu1 %3545 }
0x1117   :  { %5480 = vtanh.f32 %v3524_v33  ;;  %v8815_v33 = vld [vmem:[#allocation47_spill] sm:$0xff] }
0x1118   :  { %5482 = vtanh.f32 %v3526_v11  ;;  %v8816_v11 = vld [vmem:[#allocation27_spill] sm:$0xff] }
0x111f   :  { %v5477_v49 = vpop.eup %5476 }
0x1120   :  { %v3534_v50 = vmul.f32 0.5, %v5477_v49  ;;  %v5479_v15 = vpop.eup %5478 }
0x1121   :  { %v3536_v9 = vmul.f32 0.5, %v5479_v15  ;;  %v5481_v4 = vpop.eup %5480 }
0x1122   :  { %v3535_v63 = vadd.f32 0.5, %v3534_v50  ;;  %v5483_v12 = vpop.eup %5482  ;;  %v8813_v50 = vld [vmem:[#allocation46_spill] sm:$0xff] }
0x1123   :  { %v3537_v56 = vadd.f32 0.5, %v3536_v9  ;;  %v3538_v41 = vmul.f32 0.5, %v5483_v12  ;;  %v8817_v9 = vld [vmem:[#allocation41_spill] sm:$0xff] }
0x1124   :  { %v3541_v3 = vmul.f32 %v5481_v4, %v3535_v63  ;;  %v8812_v63 = vld [vmem:[#allocation26_spill] sm:$0xff]  ;;  %v8820_v12 = vld [vmem:[#allocation53_spill] sm:$0xff] }
0x1125   :  { %v3540_v62 = vmul.f32 %v3537_v56, %v7511_v18  ;;  %v3539_v45 = vadd.f32 0.5, %v3538_v41  ;;  %v8805_v18 = vld [vmem:[#allocation67_spill] sm:$0xff]  ;;  %v8807_v56 = vld [vmem:[#allocation20_spill] sm:$0xff]  ;;  %v8814_v4 = vld [vmem:[#allocation62_spill] sm:$0xff] }
0x1126   :  { %v8821_v41 = vld [vmem:[#allocation69_spill] sm:$0xff] }
0x1127   :  { %v7605_v2 = vadd.f32 %v3541_v3, %v3540_v62  ;;  %v8818_v3 = vld [vmem:[#allocation52_spill] sm:$0xff] }
0x1128   :  { %v8819_v62 = vld [vmem:[#allocation68_spill] sm:$0xff] }
0x1129   :  { %5484 = vtanh.f32 %v7605_v2 }
0x1133   :  { %v5485_v26 = vpop.eup %5484 }
0x1134   :  { %v3544_v51 = vmul.f32 %v5485_v26, %v3539_v45  ;;  %v8822_v45 = vld [vmem:[#allocation21_spill] sm:$0xff]  ;;  %v8823_v26 = vld [vmem:[#allocation28_spill] sm:$0xff] }
0x1136   :  { %3646 = vrot.lane.b32.xlu0 %v3544_v51, %s5950_s6  ;;  %v3547_v49 = vadd.f32 %v3546_v60, %v3544_v51  ;;  %v8824_v51 = vld [vmem:[#allocation54_spill] sm:$0xff] }
0x1137   :  { %v8825_v60 = vld [vmem:[#allocation70_spill] sm:$0xff] }
0x1138   :  { %v3548_v15 = vpack.c.bf16 %v3547_v49, %v3547_v49  ;;  %v8826_v49 = vld [vmem:[#allocation55_spill] sm:$0xff] }
0x113a   :  { %3582 = vmatmul.mubr.bf16.vlgmr.msra.gmra.mrb[84].mxu0 %v3548_v15  ;;  %3623 = vmatmul.mubr.bf16.vlgmr.msra.gmra.mrb[116].mxu1 %v3548_v15  ;;  %v8827_v15 = vld [vmem:[#allocation71_spill] sm:$0xff] }
0x113b   :  { %3651 = vmatpush1.bf16.msra.mxu0 %v7182_v1  ;;  %3692 = vmatpush1.bf16.msra.mxu1 %v7184_v44 }
0x113c   :  { %3652 = vmatprep.subr.bf16.mxu0 %v7186_v6  ;;  %3693 = vmatprep.subr.bf16.mxu1 %v7188_v46 }
0x113d   :  { %3682 = vmatprep.mubr.bf16.mxu0 %v8528_v48  ;;  %3723 = vmatprep.mubr.bf16.mxu1 %v8528_v48 }
0x113f   :  { %3653 = vmatpush1.bf16.msra.mxu0 %v7192_v7  ;;  %3694 = vmatpush1.bf16.msra.mxu1 %v7194_v25 }
0x1140   :  { %3654 = vmatprep.subr.bf16.mxu0 %v7198_v27  ;;  %3695 = vmatprep.subr.bf16.mxu1 %v7200_v52 }
0x1143   :  { %3655 = vmatpush1.bf16.msra.mxu0 %v7206_v5  ;;  %3696 = vmatpush1.bf16.msra.mxu1 %v7208_v58 }
0x1144   :  { %3656 = vmatprep.subr.bf16.mxu0 %v7212_v53  ;;  %3697 = vmatprep.subr.bf16.mxu1 %v7214_v55 }
0x1147   :  { %3657 = vmatpush1.bf16.msra.mxu0 %v7218_v0  ;;  %3698 = vmatpush1.bf16.msra.mxu1 %v7220_v28 }
0x1148   :  { %3658 = vmatprep.subr.bf16.mxu0 %v7224_v34  ;;  %3699 = vmatprep.subr.bf16.mxu1 %v7226_v38 }
0x114b   :  { %3659 = vmatpush1.bf16.msra.mxu0 %v7230_v43  ;;  %3700 = vmatpush1.bf16.msra.mxu1 %v7232_v42 }
0x114c   :  { %3660 = vmatprep.subr.bf16.mxu0 %v7236_v16  ;;  %3701 = vmatprep.subr.bf16.mxu1 %v7238_v29 }
0x114f   :  { %3661 = vmatpush1.bf16.msra.mxu0 %v7242_v37  ;;  %3702 = vmatpush1.bf16.msra.mxu1 %v7244_v8 }
0x1150   :  { %3662 = vmatprep.subr.bf16.mxu0 %v7248_v21  ;;  %3703 = vmatprep.subr.bf16.mxu1 %v7250_v31 }
0x1153   :  { %3663 = vmatpush1.bf16.msra.mxu0 %v7254_v13  ;;  %3704 = vmatpush1.bf16.msra.mxu1 %v7256_v17 }
0x1154   :  { %3664 = vmatprep.subr.bf16.mxu0 %v7260_v24  ;;  %3705 = vmatprep.subr.bf16.mxu1 %v7262_v47 }
0x1157   :  { %3665 = vmatpush1.bf16.msra.mxu0 %v7266_v10  ;;  %3706 = vmatpush1.bf16.msra.mxu1 %v7268_v39 }
0x1158   :  { %3751 = vmatprep.subr.bf16.mxu0 %v7276_v35  ;;  %3792 = vmatprep.subr.bf16.mxu1 %v7278_v59  ;;  %v8803_v35 = vld [vmem:[#allocation66_spill] sm:$0xff]  ;;  %v8804_v59 = vld [vmem:[#allocation51_spill] sm:$0xff] }
0x11a8   :  { %v3647_v47 = vpop.permute.xlu0 %3646 }
0x120d   :  { %v3583_v1 = vpop.f32.mrb[84].mxu0  ;;  %v3624_v44 = vpop.f32.mrb[116].mxu1 }
0x120e   :  { %v3584_v6 = vadd.f32 %v3583_v1, %v7433_v61  ;;  %v3585_v46 = vpop.f32.mrb[85].mxu0  ;;  %v3626_v7 = vpop.f32.mrb[117].mxu1  ;;  %v3625_v5 = vadd.f32 %v3624_v44, %v7439_v30  ;;  %v8828_v1 = vld [vmem:[#allocation63_spill] sm:$0xff]  ;;  %v8829_v44 = vld [vmem:[#allocation33_spill] sm:$0xff] }
0x120f   :  { %v3586_v25 = vadd.f32 %v3585_v46, %v7436_v54  ;;  %v3587_v27 = vpop.f32.mrb[86].mxu0  ;;  %v3628_v52 = vpop.f32.mrb[118].mxu1  ;;  %v3627_v55 = vadd.f32 %v3626_v7, %v7445_v19 }
0x1210   :  { %5486 = vtanh.f32 %v3584_v6  ;;  %v3588_v58 = vpop.f32.mrb[87].mxu0  ;;  %v3629_v53 = vpop.f32.mrb[119].mxu1  ;;  %v8830_v6 = vld [vmem:[#allocation34_spill] sm:$0xff] }
0x1211   :  { %5488 = vtanh.f32 %v3586_v25  ;;  %v8831_v25 = vld [vmem:[#allocation31_spill] sm:$0xff] }
0x1212   :  { %5490 = vtanh.f32 %v3625_v5 }
0x1213   :  { %5492 = vtanh.f32 %v3627_v55 }
0x121a   :  { %v5487_v0 = vpop.eup %5486 }
0x121b   :  { %v3635_v28 = vmul.f32 0.5, %v5487_v0  ;;  %v5489_v34 = vpop.eup %5488 }
0x121c   :  { %v3637_v43 = vmul.f32 0.5, %v5489_v34  ;;  %v5491_v42 = vpop.eup %5490 }
0x121d   :  { %v3636_v38 = vadd.f32 0.5, %v3635_v28  ;;  %v5493_v21 = vpop.eup %5492 }
0x121e   :  { %v3638_v16 = vadd.f32 0.5, %v3637_v43  ;;  %v3639_v31 = vmul.f32 0.5, %v5493_v21 }
0x121f   :  { %v3642_v29 = vmul.f32 %v5491_v42, %v3636_v38 }
0x1220   :  { %v3641_v37 = vmul.f32 %v3638_v16, %v7554_v14  ;;  %v3640_v13 = vadd.f32 0.5, %v3639_v31  ;;  %v8806_v14 = vld [vmem:[#allocation29_spill] sm:$0xff] }
0x1222   :  { %v7648_v8 = vadd.f32 %v3642_v29, %v3641_v37 }
0x1224   :  { %5494 = vtanh.f32 %v7648_v8 }
0x122e   :  { %v5495_v17 = vpop.eup %5494 }
0x122f   :  { %v7651_v24 = vmul.f32 %v5495_v17, %v3640_v13 }
0x1231   :  { %8802 = vst [vmem:[#allocation35_spill] sm:$0xff] %v7651_v24  ;;  %3747 = vrot.lane.b32.xlu1 %v7651_v24, %s5950_s6  ;;  %v3648_v10 = vadd.f32 %v3647_v47, %v7651_v24  ;;  %v7863_v24 = vld [vmem:[#allocation11 + $0x88] ss:$16 sps:$4 sm:$0xff]  }
0x1232   :  { %8846 = vst [vmem:[#allocation42_spill] sm:$0xff] %v7863_v24 }
0x1233   :  { %v3649_v39 = vpack.c.bf16 %v3648_v10, %v3648_v10 }
0x1235   :  { %3683 = vmatmul.mubr.bf16.vlgmr.msra.gmra.mrb[88].mxu0 %v3649_v39  ;;  %3724 = vmatmul.mubr.bf16.vlgmr.msra.gmra.mrb[120].mxu1 %v3649_v39 }
0x1236   :  { %3752 = vmatpush1.bf16.msra.mxu0 %v7280_v23  ;;  %3793 = vmatpush1.bf16.msra.mxu1 %v7282_v40  ;;  %v8808_v23 = vld [vmem:[#allocation44_spill] sm:$0xff] }
0x1237   :  { %3753 = vmatprep.subr.bf16.mxu0 %v8741_v36  ;;  %3794 = vmatprep.subr.bf16.mxu1 %v8742_v20  ;;  %v8809_v40 = vld [vmem:[#allocation60_spill] sm:$0xff]  ;;  %v8810_v36 = vld [vmem:[#allocation45_spill] sm:$0xff] }
0x1238   :  { %3783 = vmatprep.mubr.bf16.mxu0 %v8528_v48  ;;  %3824 = vmatprep.mubr.bf16.mxu1 %v8528_v48  ;;  %v8811_v20 = vld [vmem:[#allocation61_spill] sm:$0xff] }
0x123a   :  { %3754 = vmatpush1.bf16.msra.mxu0 %v8803_v35  ;;  %3795 = vmatpush1.bf16.msra.mxu1 %v8804_v59 }
0x123b   :  { %3755 = vmatprep.subr.bf16.mxu0 %v8805_v18  ;;  %3796 = vmatprep.subr.bf16.mxu1 %v8806_v14 }
0x123e   :  { %3756 = vmatpush1.bf16.msra.mxu0 %v8807_v56  ;;  %3797 = vmatpush1.bf16.msra.mxu1 %v8808_v23 }
0x123f   :  { %3757 = vmatprep.subr.bf16.mxu0 %v8809_v40  ;;  %3798 = vmatprep.subr.bf16.mxu1 %v8810_v36  ;;  %v7699_v40 = vld [vmem:[#allocation10] ss:$16 sps:$4 sm:$0xff]   ;;  %v7705_v36 = vld [vmem:[#allocation10 + $0x24] ss:$16 sps:$4 sm:$0xff]  }
0x1242   :  { %3758 = vmatpush1.bf16.msra.mxu0 %v8811_v20  ;;  %3799 = vmatpush1.bf16.msra.mxu1 %v8812_v63  ;;  %v7708_v20 = vld [vmem:[#allocation10 + $0x2c] ss:$16 sps:$4 sm:$0xff]   ;;  %v7713_v63 = vld [vmem:[#allocation10 + $0x20] ss:$16 sps:$4 sm:$0xff]  }
0x1243   :  { %3759 = vmatprep.subr.bf16.mxu0 %v8813_v50  ;;  %3800 = vmatprep.subr.bf16.mxu1 %v8814_v4  ;;  %v7716_v50 = vld [vmem:[#allocation10 + $0x28] ss:$16 sps:$4 sm:$0xff]   ;;  %v7719_v4 = vld [vmem:[#allocation10 + $0x44] ss:$16 sps:$4 sm:$0xff]  }
0x1246   :  { %3760 = vmatpush1.bf16.msra.mxu0 %v8815_v33  ;;  %3801 = vmatpush1.bf16.msra.mxu1 %v8816_v11  ;;  %v7722_v33 = vld [vmem:[#allocation10 + $0x4c] ss:$16 sps:$4 sm:$0xff]   ;;  %v7725_v11 = vld [vmem:[#allocation10 + $0x40] ss:$16 sps:$4 sm:$0xff]  }
0x1247   :  { %3761 = vmatprep.subr.bf16.mxu0 %v8817_v9  ;;  %3802 = vmatprep.subr.bf16.mxu1 %v8818_v3  ;;  %v7728_v9 = vld [vmem:[#allocation10 + $0x48] ss:$16 sps:$4 sm:$0xff]   ;;  %v7731_v3 = vld [vmem:[#allocation10 + $0x64] ss:$16 sps:$4 sm:$0xff]  }
0x124a   :  { %3762 = vmatpush1.bf16.msra.mxu0 %v8819_v62  ;;  %3803 = vmatpush1.bf16.msra.mxu1 %v8820_v12  ;;  %v7734_v62 = vld [vmem:[#allocation10 + $0x6c] ss:$16 sps:$4 sm:$0xff]   ;;  %v7737_v12 = vld [vmem:[#allocation10 + $0x60] ss:$16 sps:$4 sm:$0xff]  }
0x124b   :  { %3763 = vmatprep.subr.bf16.mxu0 %v8821_v41  ;;  %3804 = vmatprep.subr.bf16.mxu1 %v8822_v45  ;;  %v7740_v41 = vld [vmem:[#allocation10 + $0x68] ss:$16 sps:$4 sm:$0xff]   ;;  %v7743_v45 = vld [vmem:[#allocation10 + $0x84] ss:$16 sps:$4 sm:$0xff]  }
0x124e   :  { %3764 = vmatpush1.bf16.msra.mxu0 %v8823_v26  ;;  %3805 = vmatpush1.bf16.msra.mxu1 %v8824_v51  ;;  %v7746_v26 = vld [vmem:[#allocation10 + $0x8c] ss:$16 sps:$4 sm:$0xff]   ;;  %v7749_v51 = vld [vmem:[#allocation10 + $0x80] ss:$16 sps:$4 sm:$0xff]  }
0x124f   :  { %3765 = vmatprep.subr.bf16.mxu0 %v8825_v60  ;;  %3806 = vmatprep.subr.bf16.mxu1 %v8826_v49  ;;  %v7752_v60 = vld [vmem:[#allocation10 + $0x88] ss:$16 sps:$4 sm:$0xff]   ;;  %v7755_v49 = vld [vmem:[#allocation10 + $0xa4] ss:$16 sps:$4 sm:$0xff]  }
0x1252   :  { %3766 = vmatpush1.bf16.msra.mxu0 %v8827_v15  ;;  %3807 = vmatpush1.bf16.msra.mxu1 %v8828_v1  ;;  %v7758_v15 = vld [vmem:[#allocation10 + $0xac] ss:$16 sps:$4 sm:$0xff]   ;;  %v7761_v1 = vld [vmem:[#allocation10 + $0xa0] ss:$16 sps:$4 sm:$0xff]  }
0x1253   :  { %3852 = vmatprep.subr.bf16.mxu0 %v8829_v44  ;;  %3893 = vmatprep.subr.bf16.mxu1 %v8830_v6 }
0x12a3   :  { %v3748_v14 = vpop.permute.xlu1 %3747 }
0x1308   :  { %v3684_v46 = vpop.f32.mrb[88].mxu0  ;;  %v3725_v7 = vpop.f32.mrb[120].mxu1 }
0x1309   :  { %v3685_v27 = vadd.f32 %v3684_v46, %v8831_v25  ;;  %v3686_v52 = vpop.f32.mrb[89].mxu0  ;;  %v3727_v5 = vpop.f32.mrb[121].mxu1  ;;  %v3726_v0 = vadd.f32 %v3725_v7, %v7501_v22  ;;  %v7764_v46 = vld [vmem:[#allocation10 + $0xa8] ss:$16 sps:$4 sm:$0xff]   ;;  %v7767_v7 = vld [vmem:[#allocation10 + $0xc4] ss:$16 sps:$4 sm:$0xff]  }
0x130a   :  { %v3687_v58 = vadd.f32 %v3686_v52, %v7498_v32  ;;  %v3688_v53 = vpop.f32.mrb[90].mxu0  ;;  %v3729_v55 = vpop.f32.mrb[122].mxu1  ;;  %v3728_v38 = vadd.f32 %v3727_v5, %v7507_v57  ;;  %v7773_v52 = vld [vmem:[#allocation10 + $0xc0] ss:$16 sps:$4 sm:$0xff]   ;;  %v7776_v5 = vld [vmem:[#allocation10 + $0xc8] ss:$16 sps:$4 sm:$0xff]  }
0x130b   :  { %5496 = vtanh.f32 %v3685_v27  ;;  %v3689_v28 = vpop.f32.mrb[91].mxu0  ;;  %v3730_v34 = vpop.f32.mrb[123].mxu1  ;;  %v7770_v27 = vld [vmem:[#allocation10 + $0xcc] ss:$16 sps:$4 sm:$0xff]   ;;  %v7785_v55 = vld [vmem:[#allocation10 + $0xe0] ss:$16 sps:$4 sm:$0xff]  }
0x130c   :  { %5498 = vtanh.f32 %v3687_v58  ;;  %v7779_v58 = vld [vmem:[#allocation10 + $0xe4] ss:$16 sps:$4 sm:$0xff]   ;;  %v7782_v53 = vld [vmem:[#allocation10 + $0xec] ss:$16 sps:$4 sm:$0xff]  }
0x130d   :  { %5500 = vtanh.f32 %v3726_v0  ;;  %v7788_v0 = vld [vmem:[#allocation10 + $0xe8] ss:$16 sps:$4 sm:$0xff]   ;;  %v7791_v28 = vld [vmem:[#allocation11 + $0x4] ss:$16 sps:$4 sm:$0xff]   ;;  %v7794_v34 = vld [vmem:[#allocation11 + $0xc] ss:$16 sps:$4 sm:$0xff]  }
0x130e   :  { %5502 = vtanh.f32 %v3728_v38 }
0x1315   :  { %v5497_v43 = vpop.eup %5496 }
0x1316   :  { %v3736_v42 = vmul.f32 0.5, %v5497_v43  ;;  %v5499_v16 = vpop.eup %5498 }
0x1317   :  { %v3738_v37 = vmul.f32 0.5, %v5499_v16  ;;  %v5501_v21 = vpop.eup %5500 }
0x1318   :  { %v3737_v29 = vadd.f32 0.5, %v3736_v42  ;;  %v5503_v10 = vpop.eup %5502 }
0x1319   :  { %v3739_v31 = vadd.f32 0.5, %v3738_v37  ;;  %v3740_v39 = vmul.f32 0.5, %v5503_v10 }
0x131a   :  { %v3743_v13 = vmul.f32 %v5501_v21, %v3737_v29 }
0x131b   :  { %v3742_v17 = vmul.f32 %v3739_v31, %v7605_v2  ;;  %v3741_v35 = vadd.f32 0.5, %v3740_v39  ;;  %v7702_v2 = vld [vmem:[#allocation10 + $0x8] ss:$16 sps:$4 sm:$0xff]  }
0x131d   :  { %v7695_v47 = vadd.f32 %v3743_v13, %v3742_v17 }
0x131f   :  { %5504 = vtanh.f32 %v7695_v47 }
0x1329   :  { %v5505_v59 = vpop.eup %5504 }
0x132a   :  { %v3746_v18 = vmul.f32 %v5505_v59, %v3741_v35 }
0x132c   :  { %3848 = vrot.lane.b32.xlu0 %v3746_v18, %s5950_s6  ;;  %v3749_v56 = vadd.f32 %v3748_v14, %v3746_v18 }
0x132e   :  { %v3750_v23 = vpack.c.bf16 %v3749_v56, %v3749_v56 }
0x1330   :  { %3784 = vmatmul.mubr.bf16.vlgmr.msra.gmra.mrb[92].mxu0 %v3750_v23  ;;  %3825 = vmatmul.mubr.bf16.vlgmr.msra.gmra.mrb[124].mxu1 %v3750_v23 }
0x1331   :  { %3853 = vmatpush1.bf16.msra.mxu0 %v7699_v40  ;;  %3894 = vmatpush1.bf16.msra.mxu1 %v7702_v2 }
0x1332   :  { %3854 = vmatprep.subr.bf16.mxu0 %v7705_v36  ;;  %3895 = vmatprep.subr.bf16.mxu1 %v7708_v20 }
0x1333   :  { %3884 = vmatprep.mubr.bf16.mxu0 %v8528_v48  ;;  %3925 = vmatprep.mubr.bf16.mxu1 %v8528_v48 }
0x1335   :  { %3855 = vmatpush1.bf16.msra.mxu0 %v7713_v63  ;;  %3896 = vmatpush1.bf16.msra.mxu1 %v7716_v50 }
0x1336   :  { %3856 = vmatprep.subr.bf16.mxu0 %v7719_v4  ;;  %3897 = vmatprep.subr.bf16.mxu1 %v7722_v33 }
0x1339   :  { %3857 = vmatpush1.bf16.msra.mxu0 %v7725_v11  ;;  %3898 = vmatpush1.bf16.msra.mxu1 %v7728_v9 }
0x133a   :  { %3858 = vmatprep.subr.bf16.mxu0 %v7731_v3  ;;  %3899 = vmatprep.subr.bf16.mxu1 %v7734_v62 }
0x133d   :  { %3859 = vmatpush1.bf16.msra.mxu0 %v7737_v12  ;;  %3900 = vmatpush1.bf16.msra.mxu1 %v7740_v41 }
0x133e   :  { %3860 = vmatprep.subr.bf16.mxu0 %v7743_v45  ;;  %3901 = vmatprep.subr.bf16.mxu1 %v7746_v26 }
0x1341   :  { %3861 = vmatpush1.bf16.msra.mxu0 %v7749_v51  ;;  %3902 = vmatpush1.bf16.msra.mxu1 %v7752_v60 }
0x1342   :  { %3862 = vmatprep.subr.bf16.mxu0 %v7755_v49  ;;  %3903 = vmatprep.subr.bf16.mxu1 %v7758_v15 }
0x1345   :  { %3863 = vmatpush1.bf16.msra.mxu0 %v7761_v1  ;;  %3904 = vmatpush1.bf16.msra.mxu1 %v7764_v46 }
0x1346   :  { %3864 = vmatprep.subr.bf16.mxu0 %v7767_v7  ;;  %3905 = vmatprep.subr.bf16.mxu1 %v7770_v27 }
0x1349   :  { %3865 = vmatpush1.bf16.msra.mxu0 %v7773_v52  ;;  %3906 = vmatpush1.bf16.msra.mxu1 %v7776_v5 }
0x134a   :  { %3866 = vmatprep.subr.bf16.mxu0 %v7779_v58  ;;  %3907 = vmatprep.subr.bf16.mxu1 %v7782_v53 }
0x134d   :  { %3867 = vmatpush1.bf16.msra.mxu0 %v7785_v55  ;;  %3908 = vmatpush1.bf16.msra.mxu1 %v7788_v0 }
0x134e   :  { %3953 = vmatprep.subr.bf16.mxu0 %v7791_v28  ;;  %3994 = vmatprep.subr.bf16.mxu1 %v7794_v34 }
0x1403   :  { %v3785_v38 = vpop.f32.mrb[92].mxu0  ;;  %v3826_v43 = vpop.f32.mrb[124].mxu1 }
0x1404   :  { %v3786_v42 = vadd.f32 %v3785_v38, %v7433_v61  ;;  %v3787_v16 = vpop.f32.mrb[93].mxu0  ;;  %v3828_v29 = vpop.f32.mrb[125].mxu1  ;;  %v3827_v13 = vadd.f32 %v3826_v43, %v7439_v30 }
0x1405   :  { %v3788_v37 = vadd.f32 %v3787_v16, %v7436_v54  ;;  %v3789_v21 = vpop.f32.mrb[94].mxu0  ;;  %v3830_v31 = vpop.f32.mrb[126].mxu1  ;;  %v3829_v39 = vadd.f32 %v3828_v29, %v7445_v19 }
0x1406   :  { %5506 = vtanh.f32 %v3786_v42  ;;  %v3790_v17 = vpop.f32.mrb[95].mxu0  ;;  %v3831_v10 = vpop.f32.mrb[127].mxu1 }
0x1407   :  { %5508 = vtanh.f32 %v3788_v37  ;;  %v3849_v17 = vpop.permute.xlu0 %3848 }
0x1408   :  { %5510 = vtanh.f32 %v3827_v13 }
0x1409   :  { %5512 = vtanh.f32 %v3829_v39 }
0x1410   :  { %v5507_v35 = vpop.eup %5506 }
0x1411   :  { %v3837_v59 = vmul.f32 0.5, %v5507_v35  ;;  %v5509_v18 = vpop.eup %5508  ;;  %v7813_v35 = vld [vmem:[#allocation11 + $0x8] ss:$16 sps:$4 sm:$0xff]  }
0x1412   :  { %v3839_v56 = vmul.f32 0.5, %v5509_v18  ;;  %v5511_v23 = vpop.eup %5510  ;;  %v7819_v18 = vld [vmem:[#allocation11 + $0x2c] ss:$16 sps:$4 sm:$0xff]  }
0x1413   :  { %v3838_v14 = vadd.f32 0.5, %v3837_v59  ;;  %v5513_v43 = vpop.eup %5512  ;;  %v7816_v59 = vld [vmem:[#allocation11 + $0x24] ss:$16 sps:$4 sm:$0xff]  }
0x1414   :  { %v3840_v38 = vadd.f32 0.5, %v3839_v56  ;;  %v3841_v37 = vmul.f32 0.5, %v5513_v43  ;;  %v7827_v56 = vld [vmem:[#allocation11 + $0x28] ss:$16 sps:$4 sm:$0xff]   ;;  %v7842_v43 = vld [vmem:[#allocation11 + $0x64] ss:$16 sps:$4 sm:$0xff]  }
0x1415   :  { %v3844_v16 = vmul.f32 %v5511_v23, %v3838_v14  ;;  %v7824_v14 = vld [vmem:[#allocation11 + $0x20] ss:$16 sps:$4 sm:$0xff]   ;;  %8834 = vst [vmem:[#allocation38_spill] sm:$0xff] %v7827_v56  ;;  %v7830_v23 = vld [vmem:[#allocation11 + $0x44] ss:$16 sps:$4 sm:$0xff]   ;;  %8839 = vst [vmem:[#allocation24_spill] sm:$0xff] %v7842_v43 }
0x1416   :  { %v3843_v21 = vmul.f32 %v3840_v38, %v7648_v8  ;;  %v3842_v31 = vadd.f32 0.5, %v3841_v37  ;;  %v7810_v8 = vld [vmem:[#allocation11] ss:$16 sps:$4 sm:$0xff]   ;;  %8833 = vst [vmem:[#allocation37_spill] sm:$0xff] %v7824_v14  ;;  %8835 = vst [vmem:[#allocation39_spill] sm:$0xff] %v7830_v23 }
0x1417   :  { %v7833_v38 = vld [vmem:[#allocation11 + $0x4c] ss:$16 sps:$4 sm:$0xff]  }
0x1418   :  { %v7802_v42 = vadd.f32 %v3844_v16, %v3843_v21  ;;  %8836 = vst [vmem:[#allocation40_spill] sm:$0xff] %v7833_v38  ;;  %v7836_v16 = vld [vmem:[#allocation11 + $0x40] ss:$16 sps:$4 sm:$0xff]   ;;  %v7839_v21 = vld [vmem:[#allocation11 + $0x48] ss:$16 sps:$4 sm:$0xff]  }
0x1419   :  { %8837 = vst [vmem:[#allocation22_spill] sm:$0xff] %v7836_v16  ;;  %8838 = vst [vmem:[#allocation23_spill] sm:$0xff] %v7839_v21  ;;  %v7845_v37 = vld [vmem:[#allocation11 + $0x6c] ss:$16 sps:$4 sm:$0xff]  }
0x141a   :  { %5514 = vtanh.f32 %v7802_v42  ;;  %8840 = vst [vmem:[#allocation25_spill] sm:$0xff] %v7845_v37 }
0x1424   :  { %v5515_v13 = vpop.eup %5514 }
0x1425   :  { %v7805_v29 = vmul.f32 %v5515_v13, %v3842_v31  ;;  %v7848_v31 = vld [vmem:[#allocation11 + $0x60] ss:$16 sps:$4 sm:$0xff]   ;;  %v7851_v13 = vld [vmem:[#allocation11 + $0x68] ss:$16 sps:$4 sm:$0xff]  }
0x1426   :  { %8841 = vst [vmem:[#allocation48_spill] sm:$0xff] %v7848_v31  ;;  %8842 = vst [vmem:[#allocation56_spill] sm:$0xff] %v7851_v13 }
0x1427   :  { %8832 = vst [vmem:[#allocation36_spill] sm:$0xff] %v7805_v29  ;;  %3949 = vrot.lane.b32.xlu1 %v7805_v29, %s5950_s6  ;;  %v3850_v10 = vadd.f32 %v3849_v17, %v7805_v29  ;;  %v7854_v17 = vld [vmem:[#allocation11 + $0x84] ss:$16 sps:$4 sm:$0xff]  }
0x1428   :  { %8843 = vst [vmem:[#allocation72_spill] sm:$0xff] %v7854_v17  ;;  %v7866_v29 = vld [vmem:[#allocation11 + $0xa4] ss:$16 sps:$4 sm:$0xff]  }
0x1429   :  { %v3851_v39 = vpack.c.bf16 %v3850_v10, %v3850_v10  ;;  %v7857_v10 = vld [vmem:[#allocation11 + $0x8c] ss:$16 sps:$4 sm:$0xff]   ;;  %8847 = vst [vmem:[#allocation43_spill] sm:$0xff] %v7866_v29 }
0x142a   :  { %8844 = vst [vmem:[#allocation57_spill] sm:$0xff] %v7857_v10 }
0x142b   :  { %3885 = vmatmul.mubr.bf16.vlgmr.msra.gmra.mrb[96].mxu0 %v3851_v39  ;;  %3926 = vmatmul.mubr.bf16.vlgmr.msra.gmra.mrb[128].mxu1 %v3851_v39  ;;  %v7860_v39 = vld [vmem:[#allocation11 + $0x80] ss:$16 sps:$4 sm:$0xff]  }
0x142c   :  { %3954 = vmatpush1.bf16.msra.mxu0 %v7810_v8  ;;  %3995 = vmatpush1.bf16.msra.mxu1 %v7813_v35  ;;  %8845 = vst [vmem:[#allocation73_spill] sm:$0xff] %v7860_v39 }
0x142d   :  { %3955 = vmatprep.subr.bf16.mxu0 %v7816_v59  ;;  %3996 = vmatprep.subr.bf16.mxu1 %v7819_v18 }
0x142e   :  { %3985 = vmatprep.mubr.bf16.mxu0 %v8528_v48  ;;  %4026 = vmatprep.mubr.bf16.mxu1 %v8528_v48 }
0x1430   :  { %3956 = vmatpush1.bf16.msra.mxu0 %v7824_v14  ;;  %3997 = vmatpush1.bf16.msra.mxu1 %v7827_v56 }
0x1431   :  { %3957 = vmatprep.subr.bf16.mxu0 %v7830_v23  ;;  %3998 = vmatprep.subr.bf16.mxu1 %v7833_v38 }
0x1434   :  { %3958 = vmatpush1.bf16.msra.mxu0 %v7836_v16  ;;  %3999 = vmatpush1.bf16.msra.mxu1 %v7839_v21 }
0x1435   :  { %3959 = vmatprep.subr.bf16.mxu0 %v7842_v43  ;;  %4000 = vmatprep.subr.bf16.mxu1 %v7845_v37 }
0x1438   :  { %3960 = vmatpush1.bf16.msra.mxu0 %v7848_v31  ;;  %4001 = vmatpush1.bf16.msra.mxu1 %v7851_v13  ;;  %v7869_v13 = vld [vmem:[#allocation11 + $0xac] ss:$16 sps:$4 sm:$0xff]  }
0x1439   :  { %3961 = vmatprep.subr.bf16.mxu0 %v7854_v17  ;;  %4002 = vmatprep.subr.bf16.mxu1 %v7857_v10  ;;  %8848 = vst [vmem:[#allocation58_spill] sm:$0xff] %v7869_v13  ;;  %v7872_v17 = vld [vmem:[#allocation11 + $0xa0] ss:$16 sps:$4 sm:$0xff]   ;;  %v7875_v10 = vld [vmem:[#allocation11 + $0xa8] ss:$16 sps:$4 sm:$0xff]  }
0x143a   :  { %8849 = vst [vmem:[#allocation59_spill] sm:$0xff] %v7872_v17  ;;  %8850 = vst [vmem:[#allocation65_spill] sm:$0xff] %v7875_v10 }
0x143c   :  { %3962 = vmatpush1.bf16.msra.mxu0 %v7860_v39  ;;  %4003 = vmatpush1.bf16.msra.mxu1 %v7863_v24  ;;  %v7878_v39 = vld [vmem:[#allocation11 + $0xc4] ss:$16 sps:$4 sm:$0xff]   ;;  %v7881_v24 = vld [vmem:[#allocation11 + $0xcc] ss:$16 sps:$4 sm:$0xff]  }
0x143d   :  { %3963 = vmatprep.subr.bf16.mxu0 %v7866_v29  ;;  %4004 = vmatprep.subr.bf16.mxu1 %v7869_v13  ;;  %8851 = vst [vmem:[#allocation50_spill] sm:$0xff] %v7878_v39  ;;  %8852 = vst [vmem:[#allocation64_spill] sm:$0xff] %v7881_v24  ;;  %v7884_v29 = vld [vmem:[#allocation11 + $0xc0] ss:$16 sps:$4 sm:$0xff]   ;;  %v7887_v13 = vld [vmem:[#allocation11 + $0xc8] ss:$16 sps:$4 sm:$0xff]  }
0x143e   :  { %8853 = vst [vmem:[#allocation49_spill] sm:$0xff] %v7884_v29  ;;  %8854 = vst [vmem:[#allocation66_spill] sm:$0xff] %v7887_v13 }
0x1440   :  { %3964 = vmatpush1.bf16.msra.mxu0 %v7872_v17  ;;  %4005 = vmatpush1.bf16.msra.mxu1 %v7875_v10  ;;  %v7890_v17 = vld [vmem:[#allocation11 + $0xe4] ss:$16 sps:$4 sm:$0xff]   ;;  %v7893_v10 = vld [vmem:[#allocation11 + $0xec] ss:$16 sps:$4 sm:$0xff]  }
0x1441   :  { %3965 = vmatprep.subr.bf16.mxu0 %v7878_v39  ;;  %4006 = vmatprep.subr.bf16.mxu1 %v7881_v24  ;;  %8855 = vst [vmem:[#allocation51_spill] sm:$0xff] %v7890_v17  ;;  %8856 = vst [vmem:[#allocation67_spill] sm:$0xff] %v7893_v10  ;;  %v7896_v39 = vld [vmem:[#allocation11 + $0xe0] ss:$16 sps:$4 sm:$0xff]   ;;  %v7899_v24 = vld [vmem:[#allocation11 + $0xe8] ss:$16 sps:$4 sm:$0xff]  }
0x1442   :  { %8857 = vst [vmem:[#allocation29_spill] sm:$0xff] %v7896_v39  ;;  %8858 = vst [vmem:[#allocation20_spill] sm:$0xff] %v7899_v24 }
0x1444   :  { %3966 = vmatpush1.bf16.msra.mxu0 %v7884_v29  ;;  %4007 = vmatpush1.bf16.msra.mxu1 %v7887_v13 }
0x1445   :  { %3967 = vmatprep.subr.bf16.mxu0 %v7890_v17  ;;  %4008 = vmatprep.subr.bf16.mxu1 %v7893_v10 }
0x1448   :  { %3968 = vmatpush1.bf16.msra.mxu0 %v7896_v39  ;;  %4009 = vmatpush1.bf16.msra.mxu1 %v7899_v24 }
0x1449   :  { %4054 = vmatprep.subr.bf16.mxu0 %v8829_v44  ;;  %4095 = vmatprep.subr.bf16.mxu1 %v8830_v6 }
0x14fe   :  { %v3886_v13 = vpop.f32.mrb[96].mxu0  ;;  %v3927_v29 = vpop.f32.mrb[128].mxu1 }
0x14ff   :  { %v3887_v17 = vadd.f32 %v3886_v13, %v8831_v25  ;;  %v3888_v31 = vpop.f32.mrb[97].mxu0  ;;  %v3929_v37 = vpop.f32.mrb[129].mxu1  ;;  %v3928_v39 = vadd.f32 %v3927_v29, %v7501_v22 }
0x1500   :  { %v3889_v10 = vadd.f32 %v3888_v31, %v7498_v32  ;;  %v3890_v43 = vpop.f32.mrb[98].mxu0  ;;  %v3931_v21 = vpop.f32.mrb[130].mxu1  ;;  %v3930_v44 = vadd.f32 %v3929_v37, %v7507_v57 }
0x1501   :  { %5516 = vtanh.f32 %v3887_v17  ;;  %v3891_v16 = vpop.f32.mrb[99].mxu0  ;;  %v3932_v38 = vpop.f32.mrb[131].mxu1 }
0x1502   :  { %5518 = vtanh.f32 %v3889_v10  ;;  %v3950_v10 = vpop.permute.xlu1 %3949 }
0x1503   :  { %5520 = vtanh.f32 %v3928_v39 }
0x1504   :  { %5522 = vtanh.f32 %v3930_v44 }
0x150b   :  { %v5517_v6 = vpop.eup %5516 }
0x150c   :  { %v3938_v24 = vmul.f32 0.5, %v5517_v6  ;;  %v5519_v23 = vpop.eup %5518 }
0x150d   :  { %v3940_v13 = vmul.f32 0.5, %v5519_v23  ;;  %v5521_v25 = vpop.eup %5520 }
0x150e   :  { %v3939_v56 = vadd.f32 0.5, %v3938_v24  ;;  %v5523_v29 = vpop.eup %5522 }
0x150f   :  { %v3941_v14 = vadd.f32 0.5, %v3940_v13  ;;  %v3942_v38 = vmul.f32 0.5, %v5523_v29 }
0x1510   :  { %v3945_v31 = vmul.f32 %v5521_v25, %v3939_v56 }
0x1511   :  { %v3944_v21 = vmul.f32 %v3941_v14, %v7695_v47  ;;  %v3943_v16 = vadd.f32 0.5, %v3942_v38 }
0x1513   :  { %v7909_v43 = vadd.f32 %v3945_v31, %v3944_v21 }
0x1515   :  { %5524 = vtanh.f32 %v7909_v43 }
0x151f   :  { %v5525_v17 = vpop.eup %5524 }
0x1520   :  { %v3948_v37 = vmul.f32 %v5525_v17, %v3943_v16 }
0x1522   :  { %4050 = vrot.lane.b32.xlu0 %v3948_v37, %s5950_s6  ;;  %v3951_v24 = vadd.f32 %v3950_v10, %v3948_v37 }
0x1524   :  { %v3952_v6 = vpack.c.bf16 %v3951_v24, %v3951_v24 }
0x1526   :  { %3986 = vmatmul.mubr.bf16.vlgmr.msra.gmra.mrb[100].mxu0 %v3952_v6  ;;  %4027 = vmatmul.mubr.bf16.vlgmr.msra.gmra.mrb[132].mxu1 %v3952_v6 }
0x1527   :  { %4055 = vmatpush1.bf16.msra.mxu0 %v7699_v40  ;;  %4096 = vmatpush1.bf16.msra.mxu1 %v7702_v2 }
0x1528   :  { %4056 = vmatprep.subr.bf16.mxu0 %v7705_v36  ;;  %4097 = vmatprep.subr.bf16.mxu1 %v7708_v20 }
0x1529   :  { %4086 = vmatprep.mubr.bf16.mxu0 %v8528_v48  ;;  %4127 = vmatprep.mubr.bf16.mxu1 %v8528_v48 }
0x152b   :  { %4057 = vmatpush1.bf16.msra.mxu0 %v7713_v63  ;;  %4098 = vmatpush1.bf16.msra.mxu1 %v7716_v50 }
0x152c   :  { %4058 = vmatprep.subr.bf16.mxu0 %v7719_v4  ;;  %4099 = vmatprep.subr.bf16.mxu1 %v7722_v33 }
0x152f   :  { %4059 = vmatpush1.bf16.msra.mxu0 %v7725_v11  ;;  %4100 = vmatpush1.bf16.msra.mxu1 %v7728_v9 }
0x1530   :  { %4060 = vmatprep.subr.bf16.mxu0 %v7731_v3  ;;  %4101 = vmatprep.subr.bf16.mxu1 %v7734_v62 }
0x1533   :  { %4061 = vmatpush1.bf16.msra.mxu0 %v7737_v12  ;;  %4102 = vmatpush1.bf16.msra.mxu1 %v7740_v41 }
0x1534   :  { %4062 = vmatprep.subr.bf16.mxu0 %v7743_v45  ;;  %4103 = vmatprep.subr.bf16.mxu1 %v7746_v26 }
0x1537   :  { %4063 = vmatpush1.bf16.msra.mxu0 %v7749_v51  ;;  %4104 = vmatpush1.bf16.msra.mxu1 %v7752_v60 }
0x1538   :  { %4064 = vmatprep.subr.bf16.mxu0 %v7755_v49  ;;  %4105 = vmatprep.subr.bf16.mxu1 %v7758_v15 }
0x153b   :  { %4065 = vmatpush1.bf16.msra.mxu0 %v7761_v1  ;;  %4106 = vmatpush1.bf16.msra.mxu1 %v7764_v46 }
0x153c   :  { %4066 = vmatprep.subr.bf16.mxu0 %v7767_v7  ;;  %4107 = vmatprep.subr.bf16.mxu1 %v7770_v27 }
0x153f   :  { %4067 = vmatpush1.bf16.msra.mxu0 %v7773_v52  ;;  %4108 = vmatpush1.bf16.msra.mxu1 %v7776_v5 }
0x1540   :  { %4068 = vmatprep.subr.bf16.mxu0 %v7779_v58  ;;  %4109 = vmatprep.subr.bf16.mxu1 %v7782_v53 }
0x1543   :  { %4069 = vmatpush1.bf16.msra.mxu0 %v7785_v55  ;;  %4110 = vmatpush1.bf16.msra.mxu1 %v7788_v0 }
0x1544   :  { %4155 = vmatprep.subr.bf16.mxu0 %v7791_v28  ;;  %4196 = vmatprep.subr.bf16.mxu1 %v7794_v34 }
0x15f9   :  { %v3987_v44 = vpop.f32.mrb[100].mxu0  ;;  %v4028_v25 = vpop.f32.mrb[132].mxu1 }
0x15fa   :  { %v3988_v47 = vadd.f32 %v3987_v44, %v7433_v61  ;;  %v3989_v14 = vpop.f32.mrb[101].mxu0  ;;  %v4030_v56 = vpop.f32.mrb[133].mxu1  ;;  %v4029_v31 = vadd.f32 %v4028_v25, %v7439_v30 }
0x15fb   :  { %v3990_v23 = vadd.f32 %v3989_v14, %v7436_v54  ;;  %v3991_v39 = vpop.f32.mrb[102].mxu0  ;;  %v4032_v13 = vpop.f32.mrb[134].mxu1  ;;  %v4031_v38 = vadd.f32 %v4030_v56, %v7445_v19 }
0x15fc   :  { %5526 = vtanh.f32 %v3988_v47  ;;  %v3992_v21 = vpop.f32.mrb[103].mxu0  ;;  %v4033_v29 = vpop.f32.mrb[135].mxu1 }
0x15fd   :  { %5528 = vtanh.f32 %v3990_v23  ;;  %v4051_v21 = vpop.permute.xlu0 %4050 }
0x15fe   :  { %5530 = vtanh.f32 %v4029_v31 }
0x15ff   :  { %5532 = vtanh.f32 %v4031_v38 }
0x1606   :  { %v5527_v16 = vpop.eup %5526 }
0x1607   :  { %v4039_v17 = vmul.f32 0.5, %v5527_v16  ;;  %v5529_v37 = vpop.eup %5528  ;;  %v8861_v16 = vld [vmem:[#allocation38_spill] sm:$0xff] }
0x1608   :  { %v4041_v24 = vmul.f32 0.5, %v5529_v37  ;;  %v5531_v6 = vpop.eup %5530  ;;  %v8863_v37 = vld [vmem:[#allocation40_spill] sm:$0xff] }
0x1609   :  { %v4040_v10 = vadd.f32 0.5, %v4039_v17  ;;  %v5533_v25 = vpop.eup %5532  ;;  %v8862_v17 = vld [vmem:[#allocation39_spill] sm:$0xff] }
0x160a   :  { %v4042_v44 = vadd.f32 0.5, %v4041_v24  ;;  %v4043_v23 = vmul.f32 0.5, %v5533_v25  ;;  %v8865_v24 = vld [vmem:[#allocation23_spill] sm:$0xff]  ;;  %v8870_v25 = vld [vmem:[#allocation72_spill] sm:$0xff] }
0x160b   :  { %v4046_v14 = vmul.f32 %v5531_v6, %v4040_v10  ;;  %v8864_v10 = vld [vmem:[#allocation22_spill] sm:$0xff]  ;;  %v8866_v6 = vld [vmem:[#allocation24_spill] sm:$0xff] }
0x160c   :  { %v4045_v39 = vmul.f32 %v4042_v44, %v7802_v42  ;;  %v4044_v13 = vadd.f32 0.5, %v4043_v23  ;;  %v8860_v42 = vld [vmem:[#allocation37_spill] sm:$0xff] }
0x160d   :  { %v8867_v44 = vld [vmem:[#allocation25_spill] sm:$0xff] }
0x160e   :  { %v7952_v47 = vadd.f32 %v4046_v14, %v4045_v39  ;;  %v8868_v14 = vld [vmem:[#allocation48_spill] sm:$0xff]  ;;  %v8871_v23 = vld [vmem:[#allocation57_spill] sm:$0xff] }
0x160f   :  { %v8869_v39 = vld [vmem:[#allocation56_spill] sm:$0xff] }
0x1610   :  { %5534 = vtanh.f32 %v7952_v47 }
0x161a   :  { %v5535_v31 = vpop.eup %5534 }
0x161b   :  { %v7955_v56 = vmul.f32 %v5535_v31, %v4044_v13  ;;  %v8872_v13 = vld [vmem:[#allocation73_spill] sm:$0xff]  ;;  %v8873_v31 = vld [vmem:[#allocation42_spill] sm:$0xff] }
0x161d   :  { %8859 = vst [vmem:[#allocation44_spill] sm:$0xff] %v7955_v56  ;;  %4151 = vrot.lane.b32.xlu1 %v7955_v56, %s5950_s6  ;;  %v4052_v29 = vadd.f32 %v4051_v21, %v7955_v56  ;;  %v8874_v21 = vld [vmem:[#allocation43_spill] sm:$0xff]  ;;  %v8877_v56 = vld [vmem:[#allocation65_spill] sm:$0xff] }
0x161f   :  { %v4053_v38 = vpack.c.bf16 %v4052_v29, %v4052_v29  ;;  %v8875_v29 = vld [vmem:[#allocation58_spill] sm:$0xff] }
0x1621   :  { %4087 = vmatmul.mubr.bf16.vlgmr.msra.gmra.mrb[104].mxu0 %v4053_v38  ;;  %4128 = vmatmul.mubr.bf16.vlgmr.msra.gmra.mrb[136].mxu1 %v4053_v38  ;;  %v8876_v38 = vld [vmem:[#allocation59_spill] sm:$0xff] }
0x1622   :  { %4156 = vmatpush1.bf16.msra.mxu0 %v7810_v8  ;;  %4197 = vmatpush1.bf16.msra.mxu1 %v7813_v35 }
0x1623   :  { %4157 = vmatprep.subr.bf16.mxu0 %v7816_v59  ;;  %4198 = vmatprep.subr.bf16.mxu1 %v7819_v18 }
0x1624   :  { %4187 = vmatprep.mubr.bf16.mxu0 %v8528_v48  ;;  %4228 = vmatprep.mubr.bf16.mxu1 %v8528_v48 }
0x1626   :  { %4158 = vmatpush1.bf16.msra.mxu0 %v8860_v42  ;;  %4199 = vmatpush1.bf16.msra.mxu1 %v8861_v16 }
0x1627   :  { %4159 = vmatprep.subr.bf16.mxu0 %v8862_v17  ;;  %4200 = vmatprep.subr.bf16.mxu1 %v8863_v37 }
0x162a   :  { %4160 = vmatpush1.bf16.msra.mxu0 %v8864_v10  ;;  %4201 = vmatpush1.bf16.msra.mxu1 %v8865_v24 }
0x162b   :  { %4161 = vmatprep.subr.bf16.mxu0 %v8866_v6  ;;  %4202 = vmatprep.subr.bf16.mxu1 %v8867_v44  ;;  %v8878_v44 = vld [vmem:[#allocation50_spill] sm:$0xff]  ;;  %v8888_v6 = vld [vmem:[#allocation31_spill] sm:$0xff] }
0x162e   :  { %4162 = vmatpush1.bf16.msra.mxu0 %v8868_v14  ;;  %4203 = vmatpush1.bf16.msra.mxu1 %v8869_v39  ;;  %v8879_v14 = vld [vmem:[#allocation64_spill] sm:$0xff]  ;;  %v8880_v39 = vld [vmem:[#allocation49_spill] sm:$0xff] }
0x162f   :  { %4163 = vmatprep.subr.bf16.mxu0 %v8870_v25  ;;  %4204 = vmatprep.subr.bf16.mxu1 %v8871_v23  ;;  %v8881_v25 = vld [vmem:[#allocation66_spill] sm:$0xff]  ;;  %v8882_v23 = vld [vmem:[#allocation51_spill] sm:$0xff] }
0x1632   :  { %4164 = vmatpush1.bf16.msra.mxu0 %v8872_v13  ;;  %4205 = vmatpush1.bf16.msra.mxu1 %v8873_v31  ;;  %v8883_v13 = vld [vmem:[#allocation67_spill] sm:$0xff]  ;;  %v8884_v31 = vld [vmem:[#allocation29_spill] sm:$0xff] }
0x1633   :  { %4165 = vmatprep.subr.bf16.mxu0 %v8874_v21  ;;  %4206 = vmatprep.subr.bf16.mxu1 %v8875_v29  ;;  %v8885_v21 = vld [vmem:[#allocation20_spill] sm:$0xff]  ;;  %v8886_v29 = vld [vmem:[#allocation33_spill] sm:$0xff] }
0x1636   :  { %4166 = vmatpush1.bf16.msra.mxu0 %v8876_v38  ;;  %4207 = vmatpush1.bf16.msra.mxu1 %v8877_v56  ;;  %v8887_v38 = vld [vmem:[#allocation34_spill] sm:$0xff] }
0x1637   :  { %4167 = vmatprep.subr.bf16.mxu0 %v8878_v44  ;;  %4208 = vmatprep.subr.bf16.mxu1 %v8879_v14 }
0x163a   :  { %4168 = vmatpush1.bf16.msra.mxu0 %v8880_v39  ;;  %4209 = vmatpush1.bf16.msra.mxu1 %v8881_v25 }
0x163b   :  { %4169 = vmatprep.subr.bf16.mxu0 %v8882_v23  ;;  %4210 = vmatprep.subr.bf16.mxu1 %v8883_v13 }
0x163e   :  { %4170 = vmatpush1.bf16.msra.mxu0 %v8884_v31  ;;  %4211 = vmatpush1.bf16.msra.mxu1 %v8885_v21 }
0x163f   :  { %4256 = vmatprep.subr.bf16.mxu0 %v8886_v29  ;;  %4297 = vmatprep.subr.bf16.mxu1 %v8887_v38 }
0x16f4   :  { %v4088_v56 = vpop.f32.mrb[104].mxu0  ;;  %v4129_v44 = vpop.f32.mrb[136].mxu1 }
0x16f5   :  { %v4089_v14 = vadd.f32 %v4088_v56, %v8888_v6  ;;  %v4090_v24 = vpop.f32.mrb[105].mxu0  ;;  %v4131_v39 = vpop.f32.mrb[137].mxu1  ;;  %v4130_v13 = vadd.f32 %v4129_v44, %v7501_v22 }
0x16f6   :  { %v4091_v25 = vadd.f32 %v4090_v24, %v7498_v32  ;;  %v4092_v10 = vpop.f32.mrb[106].mxu0  ;;  %v4133_v23 = vpop.f32.mrb[138].mxu1  ;;  %v4132_v29 = vadd.f32 %v4131_v39, %v7507_v57 }
0x16f7   :  { %5536 = vtanh.f32 %v4089_v14  ;;  %v4093_v31 = vpop.f32.mrb[107].mxu0  ;;  %v4134_v37 = vpop.f32.mrb[139].mxu1 }
0x16f8   :  { %5538 = vtanh.f32 %v4091_v25 }
0x16f9   :  { %5540 = vtanh.f32 %v4130_v13  ;;  %v4152_v13 = vpop.permute.xlu1 %4151 }
0x16fa   :  { %5542 = vtanh.f32 %v4132_v29 }
0x1701   :  { %v5537_v38 = vpop.eup %5536 }
0x1702   :  { %v4140_v21 = vmul.f32 0.5, %v5537_v38  ;;  %v5539_v17 = vpop.eup %5538 }
0x1703   :  { %v4142_v56 = vmul.f32 0.5, %v5539_v17  ;;  %v5541_v6 = vpop.eup %5540 }
0x1704   :  { %v4141_v16 = vadd.f32 0.5, %v4140_v21  ;;  %v5543_v37 = vpop.eup %5542 }
0x1705   :  { %v4143_v42 = vadd.f32 0.5, %v4142_v56  ;;  %v4144_v44 = vmul.f32 0.5, %v5543_v37 }
0x1706   :  { %v4147_v24 = vmul.f32 %v5541_v6, %v4141_v16 }
0x1707   :  { %v4146_v10 = vmul.f32 %v4143_v42, %v7909_v43  ;;  %v4145_v25 = vadd.f32 0.5, %v4144_v44 }
0x1709   :  { %v7999_v14 = vadd.f32 %v4147_v24, %v4146_v10 }
0x170b   :  { %5544 = vtanh.f32 %v7999_v14 }
0x1715   :  { %v5545_v23 = vpop.eup %5544 }
0x1716   :  { %v4150_v39 = vmul.f32 %v5545_v23, %v4145_v25 }
0x1718   :  { %4252 = vrot.lane.b32.xlu0 %v4150_v39, %s5950_s6  ;;  %v4153_v31 = vadd.f32 %v4152_v13, %v4150_v39 }
0x171a   :  { %v4154_v17 = vpack.c.bf16 %v4153_v31, %v4153_v31 }
0x171c   :  { %4188 = vmatmul.mubr.bf16.vlgmr.msra.gmra.mrb[108].mxu0 %v4154_v17  ;;  %4229 = vmatmul.mubr.bf16.vlgmr.msra.gmra.mrb[140].mxu1 %v4154_v17 }
0x171d   :  { %4257 = vmatpush1.bf16.msra.mxu0 %v7699_v40  ;;  %4298 = vmatpush1.bf16.msra.mxu1 %v7702_v2 }
0x171e   :  { %4258 = vmatprep.subr.bf16.mxu0 %v7705_v36  ;;  %4299 = vmatprep.subr.bf16.mxu1 %v7708_v20 }
0x171f   :  { %4288 = vmatprep.mubr.bf16.mxu0 %v8528_v48  ;;  %4329 = vmatprep.mubr.bf16.mxu1 %v8528_v48 }
0x1721   :  { %4259 = vmatpush1.bf16.msra.mxu0 %v7713_v63  ;;  %4300 = vmatpush1.bf16.msra.mxu1 %v7716_v50 }
0x1722   :  { %4260 = vmatprep.subr.bf16.mxu0 %v7719_v4  ;;  %4301 = vmatprep.subr.bf16.mxu1 %v7722_v33 }
0x1725   :  { %4261 = vmatpush1.bf16.msra.mxu0 %v7725_v11  ;;  %4302 = vmatpush1.bf16.msra.mxu1 %v7728_v9 }
0x1726   :  { %4262 = vmatprep.subr.bf16.mxu0 %v7731_v3  ;;  %4303 = vmatprep.subr.bf16.mxu1 %v7734_v62 }
0x1729   :  { %4263 = vmatpush1.bf16.msra.mxu0 %v7737_v12  ;;  %4304 = vmatpush1.bf16.msra.mxu1 %v7740_v41 }
0x172a   :  { %4264 = vmatprep.subr.bf16.mxu0 %v7743_v45  ;;  %4305 = vmatprep.subr.bf16.mxu1 %v7746_v26 }
0x172d   :  { %4265 = vmatpush1.bf16.msra.mxu0 %v7749_v51  ;;  %4306 = vmatpush1.bf16.msra.mxu1 %v7752_v60 }
0x172e   :  { %4266 = vmatprep.subr.bf16.mxu0 %v7755_v49  ;;  %4307 = vmatprep.subr.bf16.mxu1 %v7758_v15 }
0x1731   :  { %4267 = vmatpush1.bf16.msra.mxu0 %v7761_v1  ;;  %4308 = vmatpush1.bf16.msra.mxu1 %v7764_v46 }
0x1732   :  { %4268 = vmatprep.subr.bf16.mxu0 %v7767_v7  ;;  %4309 = vmatprep.subr.bf16.mxu1 %v7770_v27 }
0x1735   :  { %4269 = vmatpush1.bf16.msra.mxu0 %v7773_v52  ;;  %4310 = vmatpush1.bf16.msra.mxu1 %v7776_v5 }
0x1736   :  { %4270 = vmatprep.subr.bf16.mxu0 %v7779_v58  ;;  %4311 = vmatprep.subr.bf16.mxu1 %v7782_v53 }
0x1739   :  { %4271 = vmatpush1.bf16.msra.mxu0 %v7785_v55  ;;  %4312 = vmatpush1.bf16.msra.mxu1 %v7788_v0 }
0x173a   :  { %4357 = vmatprep.subr.bf16.mxu0 %v7791_v28  ;;  %4398 = vmatprep.subr.bf16.mxu1 %v7794_v34 }
0x17ef   :  { %v4189_v43 = vpop.f32.mrb[108].mxu0  ;;  %v4230_v42 = vpop.f32.mrb[140].mxu1 }
0x17f0   :  { %v4190_v16 = vadd.f32 %v4189_v43, %v7433_v61  ;;  %v4191_v6 = vpop.f32.mrb[109].mxu0  ;;  %v4232_v21 = vpop.f32.mrb[141].mxu1  ;;  %v4231_v24 = vadd.f32 %v4230_v42, %v7439_v30 }
0x17f1   :  { %v4192_v29 = vadd.f32 %v4191_v6, %v7436_v54  ;;  %v4193_v38 = vpop.f32.mrb[110].mxu0  ;;  %v4234_v56 = vpop.f32.mrb[142].mxu1  ;;  %v4233_v44 = vadd.f32 %v4232_v21, %v7445_v19 }
0x17f2   :  { %5546 = vtanh.f32 %v4190_v16  ;;  %v4194_v10 = vpop.f32.mrb[111].mxu0  ;;  %v4235_v37 = vpop.f32.mrb[143].mxu1 }
0x17f3   :  { %5548 = vtanh.f32 %v4192_v29  ;;  %v4253_v10 = vpop.permute.xlu0 %4252 }
0x17f4   :  { %5550 = vtanh.f32 %v4231_v24 }
0x17f5   :  { %5552 = vtanh.f32 %v4233_v44 }
0x17fc   :  { %v5547_v25 = vpop.eup %5546 }
0x17fd   :  { %v4241_v23 = vmul.f32 0.5, %v5547_v25  ;;  %v5549_v39 = vpop.eup %5548  ;;  %v8891_v25 = vld [vmem:[#allocation38_spill] sm:$0xff] }
0x17fe   :  { %v4243_v31 = vmul.f32 0.5, %v5549_v39  ;;  %v5551_v17 = vpop.eup %5550  ;;  %v8893_v39 = vld [vmem:[#allocation40_spill] sm:$0xff] }
0x17ff   :  { %v4242_v13 = vadd.f32 0.5, %v4241_v23  ;;  %v5553_v42 = vpop.eup %5552  ;;  %v8892_v23 = vld [vmem:[#allocation39_spill] sm:$0xff] }
0x1800   :  { %v4244_v43 = vadd.f32 0.5, %v4243_v31  ;;  %v4245_v29 = vmul.f32 0.5, %v5553_v42  ;;  %v8895_v31 = vld [vmem:[#allocation23_spill] sm:$0xff]  ;;  %v8900_v42 = vld [vmem:[#allocation72_spill] sm:$0xff] }
0x1801   :  { %v4248_v6 = vmul.f32 %v5551_v17, %v4242_v13  ;;  %v8894_v13 = vld [vmem:[#allocation22_spill] sm:$0xff]  ;;  %v8896_v17 = vld [vmem:[#allocation24_spill] sm:$0xff] }
0x1802   :  { %v4247_v38 = vmul.f32 %v4244_v43, %v7952_v47  ;;  %v4246_v56 = vadd.f32 0.5, %v4245_v29  ;;  %v8890_v47 = vld [vmem:[#allocation37_spill] sm:$0xff] }
0x1803   :  { %v8897_v43 = vld [vmem:[#allocation25_spill] sm:$0xff] }
0x1804   :  { %v8042_v16 = vadd.f32 %v4248_v6, %v4247_v38  ;;  %v8898_v6 = vld [vmem:[#allocation48_spill] sm:$0xff]  ;;  %v8901_v29 = vld [vmem:[#allocation57_spill] sm:$0xff] }
0x1805   :  { %v8899_v38 = vld [vmem:[#allocation56_spill] sm:$0xff] }
0x1806   :  { %5554 = vtanh.f32 %v8042_v16 }
0x1810   :  { %v5555_v24 = vpop.eup %5554 }
0x1811   :  { %v8045_v21 = vmul.f32 %v5555_v24, %v4246_v56  ;;  %v8902_v56 = vld [vmem:[#allocation73_spill] sm:$0xff]  ;;  %v8903_v24 = vld [vmem:[#allocation42_spill] sm:$0xff] }
0x1813   :  { %8889 = vst [vmem:[#allocation60_spill] sm:$0xff] %v8045_v21  ;;  %4353 = vrot.lane.b32.xlu1 %v8045_v21, %s5950_s6  ;;  %v4254_v37 = vadd.f32 %v4253_v10, %v8045_v21  ;;  %v8904_v10 = vld [vmem:[#allocation43_spill] sm:$0xff]  ;;  %v8907_v21 = vld [vmem:[#allocation65_spill] sm:$0xff] }
0x1815   :  { %v4255_v44 = vpack.c.bf16 %v4254_v37, %v4254_v37  ;;  %v8905_v37 = vld [vmem:[#allocation58_spill] sm:$0xff] }
0x1817   :  { %4289 = vmatmul.mubr.bf16.vlgmr.msra.gmra.mrb[112].mxu0 %v4255_v44  ;;  %4330 = vmatmul.mubr.bf16.vlgmr.msra.gmra.mrb[144].mxu1 %v4255_v44  ;;  %v8906_v44 = vld [vmem:[#allocation59_spill] sm:$0xff] }
0x1818   :  { %4358 = vmatpush1.bf16.msra.mxu0 %v7810_v8  ;;  %4399 = vmatpush1.bf16.msra.mxu1 %v7813_v35 }
0x1819   :  { %4359 = vmatprep.subr.bf16.mxu0 %v7816_v59  ;;  %4400 = vmatprep.subr.bf16.mxu1 %v7819_v18 }
0x181a   :  { %4389 = vmatprep.mubr.bf16.mxu0 %v8528_v48  ;;  %4430 = vmatprep.mubr.bf16.mxu1 %v8528_v48 }
0x181c   :  { %4360 = vmatpush1.bf16.msra.mxu0 %v8890_v47  ;;  %4401 = vmatpush1.bf16.msra.mxu1 %v8891_v25 }
0x181d   :  { %4361 = vmatprep.subr.bf16.mxu0 %v8892_v23  ;;  %4402 = vmatprep.subr.bf16.mxu1 %v8893_v39 }
0x1820   :  { %4362 = vmatpush1.bf16.msra.mxu0 %v8894_v13  ;;  %4403 = vmatpush1.bf16.msra.mxu1 %v8895_v31 }
0x1821   :  { %4363 = vmatprep.subr.bf16.mxu0 %v8896_v17  ;;  %4404 = vmatprep.subr.bf16.mxu1 %v8897_v43  ;;  %v8908_v43 = vld [vmem:[#allocation50_spill] sm:$0xff]  ;;  %v8916_v17 = vld [vmem:[#allocation31_spill] sm:$0xff] }
0x1824   :  { %4364 = vmatpush1.bf16.msra.mxu0 %v8898_v6  ;;  %4405 = vmatpush1.bf16.msra.mxu1 %v8899_v38  ;;  %v8909_v6 = vld [vmem:[#allocation64_spill] sm:$0xff]  ;;  %v8910_v38 = vld [vmem:[#allocation49_spill] sm:$0xff] }
0x1825   :  { %4365 = vmatprep.subr.bf16.mxu0 %v8900_v42  ;;  %4406 = vmatprep.subr.bf16.mxu1 %v8901_v29  ;;  %v8911_v42 = vld [vmem:[#allocation66_spill] sm:$0xff]  ;;  %v8912_v29 = vld [vmem:[#allocation51_spill] sm:$0xff] }
0x1828   :  { %4366 = vmatpush1.bf16.msra.mxu0 %v8902_v56  ;;  %4407 = vmatpush1.bf16.msra.mxu1 %v8903_v24  ;;  %v8913_v56 = vld [vmem:[#allocation67_spill] sm:$0xff]  ;;  %v8914_v24 = vld [vmem:[#allocation29_spill] sm:$0xff] }
0x1829   :  { %4367 = vmatprep.subr.bf16.mxu0 %v8904_v10  ;;  %4408 = vmatprep.subr.bf16.mxu1 %v8905_v37  ;;  %v8915_v10 = vld [vmem:[#allocation20_spill] sm:$0xff] }
0x182a   :  { %v5751_v37 = vld [vmem:[#allocation10 + $0x4] ss:$16 sps:$4 sm:$0xff]  }
0x182c   :  { %4368 = vmatpush1.bf16.msra.mxu0 %v8906_v44  ;;  %4409 = vmatpush1.bf16.msra.mxu1 %v8907_v21  ;;  %v5752_v44 = vld [vmem:[#allocation10 + $0xc] ss:$16 sps:$4 sm:$0xff]  }
0x182d   :  { %4369 = vmatprep.subr.bf16.mxu0 %v8908_v43  ;;  %4410 = vmatprep.subr.bf16.mxu1 %v8909_v6 }
0x1830   :  { %4370 = vmatpush1.bf16.msra.mxu0 %v8910_v38  ;;  %4411 = vmatpush1.bf16.msra.mxu1 %v8911_v42 }
0x1831   :  { %4371 = vmatprep.subr.bf16.mxu0 %v8912_v29  ;;  %4412 = vmatprep.subr.bf16.mxu1 %v8913_v56 }
0x1834   :  { %4372 = vmatpush1.bf16.msra.mxu0 %v8914_v24  ;;  %4413 = vmatpush1.bf16.msra.mxu1 %v8915_v10 }
0x1835   :  { %4458 = vmatprep.subr.bf16.mxu0 %v5751_v37  ;;  %4499 = vmatprep.subr.bf16.mxu1 %v5752_v44 }
0x18ea   :  { %v4290_v21 = vpop.f32.mrb[112].mxu0  ;;  %v4331_v43 = vpop.f32.mrb[144].mxu1 }
0x18eb   :  { %v4291_v6 = vadd.f32 %v4290_v21, %v8916_v17  ;;  %v4292_v31 = vpop.f32.mrb[113].mxu0  ;;  %v4333_v38 = vpop.f32.mrb[145].mxu1  ;;  %v4332_v56 = vadd.f32 %v4331_v43, %v7501_v22 }
0x18ec   :  { %v4293_v42 = vadd.f32 %v4292_v31, %v7498_v32  ;;  %v4294_v13 = vpop.f32.mrb[114].mxu0  ;;  %v4335_v29 = vpop.f32.mrb[146].mxu1  ;;  %v4334_v37 = vadd.f32 %v4333_v38, %v7507_v57 }
0x18ed   :  { %5556 = vtanh.f32 %v4291_v6  ;;  %v4295_v24 = vpop.f32.mrb[115].mxu0  ;;  %v4336_v39 = vpop.f32.mrb[147].mxu1 }
0x18ee   :  { %5558 = vtanh.f32 %v4293_v42 }
0x18ef   :  { %5560 = vtanh.f32 %v4332_v56  ;;  %v4354_v56 = vpop.permute.xlu1 %4353 }
0x18f0   :  { %5562 = vtanh.f32 %v4334_v37  ;;  %v8930_v37 = vld [vmem:[#allocation42_spill] sm:$0xff] }
0x18f7   :  { %v5557_v44 = vpop.eup %5556 }
0x18f8   :  { %v4342_v10 = vmul.f32 0.5, %v5557_v44  ;;  %v5559_v23 = vpop.eup %5558  ;;  %v8931_v44 = vld [vmem:[#allocation43_spill] sm:$0xff] }
0x18f9   :  { %v4344_v21 = vmul.f32 0.5, %v5559_v23  ;;  %v5561_v17 = vpop.eup %5560 }
0x18fa   :  { %v4343_v25 = vadd.f32 0.5, %v4342_v10  ;;  %v5563_v39 = vpop.eup %5562  ;;  %v8929_v10 = vld [vmem:[#allocation73_spill] sm:$0xff] }
0x18fb   :  { %v4345_v47 = vadd.f32 0.5, %v4344_v21  ;;  %v4346_v43 = vmul.f32 0.5, %v5563_v39  ;;  %v8932_v21 = vld [vmem:[#allocation58_spill] sm:$0xff] }
0x18fc   :  { %v4349_v31 = vmul.f32 %v5561_v17, %v4343_v25  ;;  %v8926_v25 = vld [vmem:[#allocation56_spill] sm:$0xff]  ;;  %v8928_v17 = vld [vmem:[#allocation57_spill] sm:$0xff]  ;;  %v8935_v39 = vld [vmem:[#allocation50_spill] sm:$0xff] }
0x18fd   :  { %v4348_v13 = vmul.f32 %v4345_v47, %v7999_v14  ;;  %v4347_v42 = vadd.f32 0.5, %v4346_v43  ;;  %v8919_v14 = vld [vmem:[#allocation39_spill] sm:$0xff]  ;;  %v8921_v47 = vld [vmem:[#allocation22_spill] sm:$0xff]  ;;  %v8936_v43 = vld [vmem:[#allocation64_spill] sm:$0xff] }
0x18ff   :  { %v8087_v6 = vadd.f32 %v4349_v31, %v4348_v13  ;;  %v8933_v31 = vld [vmem:[#allocation59_spill] sm:$0xff]  ;;  %v8934_v13 = vld [vmem:[#allocation65_spill] sm:$0xff] }
0x1901   :  { %5564 = vtanh.f32 %v8087_v6 }
0x190b   :  { %v5565_v29 = vpop.eup %5564 }
0x190c   :  { %v4352_v38 = vmul.f32 %v5565_v29, %v4347_v42  ;;  %v8937_v42 = vld [vmem:[#allocation49_spill] sm:$0xff]  ;;  %v8938_v29 = vld [vmem:[#allocation66_spill] sm:$0xff] }
0x190e   :  { %4454 = vrot.lane.b32.xlu0 %v4352_v38, %s5950_s6  ;;  %v4355_v24 = vadd.f32 %v4354_v56, %v4352_v38  ;;  %v8939_v38 = vld [vmem:[#allocation51_spill] sm:$0xff] }
0x190f   :  { %v8940_v56 = vld [vmem:[#allocation67_spill] sm:$0xff] }
0x1910   :  { %v4356_v23 = vpack.c.bf16 %v4355_v24, %v4355_v24  ;;  %v8941_v24 = vld [vmem:[#allocation29_spill] sm:$0xff] }
0x1912   :  { %4390 = vmatmul.mubr.bf16.vlgmr.msra.gmra.mrb[116].mxu0 %v4356_v23  ;;  %4431 = vmatmul.mubr.bf16.vlgmr.msra.gmra.mrb[148].mxu1 %v4356_v23  ;;  %v8942_v23 = vld [vmem:[#allocation20_spill] sm:$0xff] }
0x1913   :  { %4459 = vmatpush1.bf16.msra.mxu0 %v7699_v40  ;;  %4500 = vmatpush1.bf16.msra.mxu1 %v7702_v2 }
0x1914   :  { %4460 = vmatprep.subr.bf16.mxu0 %v7705_v36  ;;  %4501 = vmatprep.subr.bf16.mxu1 %v7708_v20 }
0x1915   :  { %4490 = vmatprep.mubr.bf16.mxu0 %v8528_v48  ;;  %4531 = vmatprep.mubr.bf16.mxu1 %v8528_v48 }
0x1917   :  { %4461 = vmatpush1.bf16.msra.mxu0 %v7713_v63  ;;  %4502 = vmatpush1.bf16.msra.mxu1 %v7716_v50 }
0x1918   :  { %4462 = vmatprep.subr.bf16.mxu0 %v7719_v4  ;;  %4503 = vmatprep.subr.bf16.mxu1 %v7722_v33 }
0x191b   :  { %4463 = vmatpush1.bf16.msra.mxu0 %v7725_v11  ;;  %4504 = vmatpush1.bf16.msra.mxu1 %v7728_v9 }
0x191c   :  { %4464 = vmatprep.subr.bf16.mxu0 %v7731_v3  ;;  %4505 = vmatprep.subr.bf16.mxu1 %v7734_v62 }
0x191f   :  { %4465 = vmatpush1.bf16.msra.mxu0 %v7737_v12  ;;  %4506 = vmatpush1.bf16.msra.mxu1 %v7740_v41 }
0x1920   :  { %4466 = vmatprep.subr.bf16.mxu0 %v7743_v45  ;;  %4507 = vmatprep.subr.bf16.mxu1 %v7746_v26 }
0x1923   :  { %4467 = vmatpush1.bf16.msra.mxu0 %v7749_v51  ;;  %4508 = vmatpush1.bf16.msra.mxu1 %v7752_v60 }
0x1924   :  { %4468 = vmatprep.subr.bf16.mxu0 %v7755_v49  ;;  %4509 = vmatprep.subr.bf16.mxu1 %v7758_v15 }
0x1927   :  { %4469 = vmatpush1.bf16.msra.mxu0 %v7761_v1  ;;  %4510 = vmatpush1.bf16.msra.mxu1 %v7764_v46 }
0x1928   :  { %4470 = vmatprep.subr.bf16.mxu0 %v7767_v7  ;;  %4511 = vmatprep.subr.bf16.mxu1 %v7770_v27 }
0x192b   :  { %4471 = vmatpush1.bf16.msra.mxu0 %v7773_v52  ;;  %4512 = vmatpush1.bf16.msra.mxu1 %v7776_v5 }
0x192c   :  { %4472 = vmatprep.subr.bf16.mxu0 %v7779_v58  ;;  %4513 = vmatprep.subr.bf16.mxu1 %v7782_v53 }
0x192f   :  { %4473 = vmatpush1.bf16.msra.mxu0 %v7785_v55  ;;  %4514 = vmatpush1.bf16.msra.mxu1 %v7788_v0 }
0x1930   :  { %4559 = vmatprep.subr.bf16.mxu0 %v7791_v28  ;;  %4600 = vmatprep.subr.bf16.mxu1 %v7794_v34  ;;  %v8917_v28 = vld [vmem:[#allocation37_spill] sm:$0xff]  ;;  %v8918_v34 = vld [vmem:[#allocation38_spill] sm:$0xff] }
0x1980   :  { %v4455_v53 = vpop.permute.xlu0 %4454 }
0x19e5   :  { %v4391_v40 = vpop.f32.mrb[116].mxu0  ;;  %v4432_v2 = vpop.f32.mrb[148].mxu1 }
0x19e6   :  { %v4392_v36 = vadd.f32 %v4391_v40, %v7433_v61  ;;  %v4393_v20 = vpop.f32.mrb[117].mxu0  ;;  %v4434_v63 = vpop.f32.mrb[149].mxu1  ;;  %v4433_v11 = vadd.f32 %v4432_v2, %v7439_v30 }
0x19e7   :  { %v4394_v50 = vadd.f32 %v4393_v20, %v7436_v54  ;;  %v4395_v4 = vpop.f32.mrb[118].mxu0  ;;  %v4436_v33 = vpop.f32.mrb[150].mxu1  ;;  %v4435_v62 = vadd.f32 %v4434_v63, %v7445_v19 }
0x19e8   :  { %5566 = vtanh.f32 %v4392_v36  ;;  %v4396_v9 = vpop.f32.mrb[119].mxu0  ;;  %v4437_v3 = vpop.f32.mrb[151].mxu1  ;;  %v8943_v36 = vld [vmem:[#allocation31_spill] sm:$0xff] }
0x19e9   :  { %5568 = vtanh.f32 %v4394_v50 }
0x19ea   :  { %5570 = vtanh.f32 %v4433_v11 }
0x19eb   :  { %5572 = vtanh.f32 %v4435_v62 }
0x19f2   :  { %v5567_v12 = vpop.eup %5566 }
0x19f3   :  { %v4443_v41 = vmul.f32 0.5, %v5567_v12  ;;  %v5569_v45 = vpop.eup %5568 }
0x19f4   :  { %v4445_v51 = vmul.f32 0.5, %v5569_v45  ;;  %v5571_v60 = vpop.eup %5570 }
0x19f5   :  { %v4444_v26 = vadd.f32 0.5, %v4443_v41  ;;  %v5573_v7 = vpop.eup %5572 }
0x19f6   :  { %v4446_v49 = vadd.f32 0.5, %v4445_v51  ;;  %v4447_v27 = vmul.f32 0.5, %v5573_v7 }
0x19f7   :  { %v4450_v15 = vmul.f32 %v5571_v60, %v4444_v26 }
0x19f8   :  { %v4449_v1 = vmul.f32 %v4446_v49, %v8042_v16  ;;  %v4448_v52 = vadd.f32 0.5, %v4447_v27  ;;  %v8920_v16 = vld [vmem:[#allocation40_spill] sm:$0xff] }
0x19fa   :  { %v8130_v46 = vadd.f32 %v4450_v15, %v4449_v1 }
0x19fc   :  { %5574 = vtanh.f32 %v8130_v46 }
0x1a06   :  { %v5575_v5 = vpop.eup %5574 }
0x1a07   :  { %v8133_v58 = vmul.f32 %v5575_v5, %v4448_v52 }
0x1a09   :  { %4555 = vrot.lane.b32.xlu1 %v8133_v58, %s5950_s6  ;;  %v4456_v55 = vadd.f32 %v4455_v53, %v8133_v58 }
0x1a0b   :  { %v4457_v0 = vpack.c.bf16 %v4456_v55, %v4456_v55 }
0x1a0d   :  { %4491 = vmatmul.mubr.bf16.vlgmr.msra.gmra.mrb[120].mxu0 %v4457_v0  ;;  %4532 = vmatmul.mubr.bf16.vlgmr.msra.gmra.mrb[152].mxu1 %v4457_v0 }
0x1a0e   :  { %4560 = vmatpush1.bf16.msra.mxu0 %v7810_v8  ;;  %4601 = vmatpush1.bf16.msra.mxu1 %v7813_v35  ;;  %v8922_v8 = vld [vmem:[#allocation23_spill] sm:$0xff]  ;;  %v8923_v35 = vld [vmem:[#allocation24_spill] sm:$0xff] }
0x1a0f   :  { %4561 = vmatprep.subr.bf16.mxu0 %v7816_v59  ;;  %4602 = vmatprep.subr.bf16.mxu1 %v7819_v18  ;;  %v8924_v59 = vld [vmem:[#allocation25_spill] sm:$0xff]  ;;  %v8925_v18 = vld [vmem:[#allocation48_spill] sm:$0xff] }
0x1a10   :  { %4591 = vmatprep.mubr.bf16.mxu0 %v8528_v48  ;;  %4632 = vmatprep.mubr.bf16.mxu1 %v8528_v48  ;;  %v8927_v48 = vld [vmem:[#allocation72_spill] sm:$0xff] }
0x1a12   :  { %4562 = vmatpush1.bf16.msra.mxu0 %v8917_v28  ;;  %4603 = vmatpush1.bf16.msra.mxu1 %v8918_v34  ;;  %v5268_v28 = vld [vmem:[#allocation13] sm:$0xff]   ;;  %v5269_v34 = vld [vmem:[#allocation13 + $0x8] sm:$0xff]  }
0x1a13   :  { %4563 = vmatprep.subr.bf16.mxu0 %v8919_v14  ;;  %4604 = vmatprep.subr.bf16.mxu1 %v8920_v16  ;;  %v5270_v14 = vld [vmem:[#allocation13 + $0x10] sm:$0xff]   ;;  %v5272_v16 = vld [vmem:[#allocation13 + $0x20] sm:$0xff]  }
0x1a16   :  { %4564 = vmatpush1.bf16.msra.mxu0 %v8921_v47  ;;  %4605 = vmatpush1.bf16.msra.mxu1 %v8922_v8  ;;  %v5273_v47 = vld [vmem:[#allocation13 + $0x28] sm:$0xff]   ;;  %v5274_v8 = vld [vmem:[#allocation13 + $0x30] sm:$0xff]  }
0x1a17   :  { %4565 = vmatprep.subr.bf16.mxu0 %v8923_v35  ;;  %4606 = vmatprep.subr.bf16.mxu1 %v8924_v59  ;;  %v5275_v35 = vld [vmem:[#allocation13 + $0x38] sm:$0xff]  }
0x1a1a   :  { %4566 = vmatpush1.bf16.msra.mxu0 %v8925_v18  ;;  %4607 = vmatpush1.bf16.msra.mxu1 %v8926_v25 }
0x1a1b   :  { %4567 = vmatprep.subr.bf16.mxu0 %v8927_v48  ;;  %4608 = vmatprep.subr.bf16.mxu1 %v8928_v17 }
0x1a1e   :  { %4568 = vmatpush1.bf16.msra.mxu0 %v8929_v10  ;;  %4609 = vmatpush1.bf16.msra.mxu1 %v8930_v37 }
0x1a1f   :  { %4569 = vmatprep.subr.bf16.mxu0 %v8931_v44  ;;  %4610 = vmatprep.subr.bf16.mxu1 %v8932_v21 }
0x1a22   :  { %4570 = vmatpush1.bf16.msra.mxu0 %v8933_v31  ;;  %4611 = vmatpush1.bf16.msra.mxu1 %v8934_v13 }
0x1a23   :  { %4571 = vmatprep.subr.bf16.mxu0 %v8935_v39  ;;  %4612 = vmatprep.subr.bf16.mxu1 %v8936_v43 }
0x1a26   :  { %4572 = vmatpush1.bf16.msra.mxu0 %v8937_v42  ;;  %4613 = vmatpush1.bf16.msra.mxu1 %v8938_v29 }
0x1a27   :  { %4573 = vmatprep.subr.bf16.mxu0 %v8939_v38  ;;  %4614 = vmatprep.subr.bf16.mxu1 %v8940_v56 }
0x1a2a   :  { %4574 = vmatpush1.bf16.msra.mxu0 %v8941_v24  ;;  %4615 = vmatpush1.bf16.msra.mxu1 %v8942_v23 }
0x1a2b   :  { %4988 = vmatprep.subr.bf16.mxu0 %v5268_v28 }
0x1a7b   :  { %v4556_v55 = vpop.permute.xlu1 %4555 }
0x1ae0   :  { %v4492_v40 = vpop.f32.mrb[120].mxu0  ;;  %v4533_v2 = vpop.f32.mrb[152].mxu1 }
0x1ae1   :  { %v4493_v20 = vadd.f32 %v4492_v40, %v8943_v36  ;;  %v4494_v63 = vpop.f32.mrb[121].mxu0  ;;  %v4535_v50 = vpop.f32.mrb[153].mxu1  ;;  %v4534_v9 = vadd.f32 %v4533_v2, %v7501_v22 }
0x1ae2   :  { %v4495_v4 = vadd.f32 %v4494_v63, %v7498_v32  ;;  %v4496_v33 = vpop.f32.mrb[122].mxu0  ;;  %v4537_v11 = vpop.f32.mrb[154].mxu1  ;;  %v4536_v12 = vadd.f32 %v4535_v50, %v7507_v57  ;;  %v8944_v50 = vld [vmem:[#allocation60_spill] sm:$0xff] }
0x1ae3   :  { %5576 = vtanh.f32 %v4493_v20  ;;  %v4497_v3 = vpop.f32.mrb[123].mxu0  ;;  %v4538_v62 = vpop.f32.mrb[155].mxu1  ;;  %v8946_v11 = vld [vmem:[#allocation36_spill] sm:$0xff] }
0x1ae4   :  { %5578 = vtanh.f32 %v4495_v4  ;;  %v8945_v4 = vld [vmem:[#allocation44_spill] sm:$0xff] }
0x1ae5   :  { %5580 = vtanh.f32 %v4534_v9  ;;  %v4657_v33 = vpack.c.bf16 %v8945_v4, %v8944_v50  ;;  %v8947_v9 = vld [vmem:[#allocation35_spill] sm:$0xff]  ;;  %v8948_v62 = vld [vmem:[#allocation32_spill] sm:$0xff] }
0x1ae6   :  { %5582 = vtanh.f32 %v4536_v12  ;;  %v4658_v3 = vpack.c.bf16 %v8947_v9, %v8946_v11 }
0x1aed   :  { %v5577_v41 = vpop.eup %5576 }
0x1aee   :  { %v4544_v45 = vmul.f32 0.5, %v5577_v41  ;;  %v5579_v26 = vpop.eup %5578  ;;  %v4967_v41 = vld [vmem:[%s8217_s12] ss:$0 sm:$0xff]  ;;  %s5907_s12 = scalar_lea.vmem %s4793_s26, 1024 }
0x1aef   :  { %v4546_v60 = vmul.f32 0.5, %v5579_v26  ;;  %v5581_v49 = vpop.eup %5580  ;;  %p5908_p0 = scmp.ne.s32.totalorder %s4793_s26, %s5907_s12  ;;  %p5913_p2 = scmp.lt.s32.totalorder %s5907_s12, %s5907_s12 }
0x1af0   :  { %v4545_v51 = vadd.f32 0.5, %v4544_v45  ;;  %v5583_v22 = vpop.eup %5582 }
0x1af1   :  { %v4547_v15 = vadd.f32 0.5, %v4546_v60  ;;  %v4548_v27 = vmul.f32 0.5, %v5583_v22  ;;  %p5914_p3 = por %p5913_p2, %p5912_p1 }
0x1af2   :  { %v4551_v32 = vmul.f32 %v5581_v49, %v4545_v51 }
0x1af3   :  { %v4550_v1 = vmul.f32 %v4547_v15, %v8087_v6  ;;  %v4549_v52 = vadd.f32 0.5, %v4548_v27  ;;  %v5271_v6 = vld [vmem:[#allocation13 + $0x18] sm:$0xff]   ;;  %p5915_p4 = pnand %p5914_p3, %p5908_p0 }
0x1af5   :  { %v4552_v7 = vadd.f32 %v4551_v32, %v4550_v1 }
0x1af7   :  { %5584 = vtanh.f32 %v4552_v7 }
0x1b01   :  { %v5585_v5 = vpop.eup %5584 }
0x1b02   :  { %v4554_v53 = vmul.f32 %v5585_v5, %v4549_v52 }
0x1b04   :  { %v4557_v57 = vadd.f32 %v4556_v55, %v4554_v53 }
0x1b06   :  { %v4558_v0 = vpack.c.bf16 %v4557_v57, %v4557_v57 }
0x1b08   :  { %4592 = vmatmul.mubr.bf16.vlgmr.msra.gmra.mrb[124].mxu0 %v4558_v0  ;;  %4633 = vmatmul.mubr.bf16.vlgmr.msra.gmra.mrb[156].mxu1 %v4558_v0 }
0x1b09   :  { %4989 = vmatpush3.bf16.msra.mxu0 %v5268_v28 }
0x1b0a   :  { %4990 = vmatprep.subr.bf16.mxu0 %v5269_v34 }
0x1b0d   :  { %4991 = vmatpush3.bf16.msra.mxu0 %v5269_v34 }
0x1b0e   :  { %4992 = vmatprep.subr.bf16.mxu0 %v5270_v14 }
0x1b11   :  { %4993 = vmatpush3.bf16.msra.mxu0 %v5270_v14 }
0x1b12   :  { %4994 = vmatprep.subr.bf16.mxu0 %v5271_v6 }
0x1b15   :  { %4995 = vmatpush3.bf16.msra.mxu0 %v5271_v6 }
0x1b16   :  { %4996 = vmatprep.subr.bf16.mxu0 %v5272_v16 }
0x1b19   :  { %4997 = vmatpush3.bf16.msra.mxu0 %v5272_v16 }
0x1b1a   :  { %4998 = vmatprep.subr.bf16.mxu0 %v5273_v47 }
0x1b1d   :  { %4999 = vmatpush3.bf16.msra.mxu0 %v5273_v47 }
0x1b1e   :  { %5000 = vmatprep.subr.bf16.mxu0 %v5274_v8 }
0x1b21   :  { %5001 = vmatpush3.bf16.msra.mxu0 %v5274_v8 }
0x1b22   :  { %5002 = vmatprep.subr.bf16.mxu0 %v5275_v35 }
0x1b25   :  { %5003 = vmatpush3.bf16.msra.mxu0 %v5275_v35 }
0x1bdb   :  { %v4593_v59 = vpop.f32.mrb[124].mxu0  ;;  %v4634_v18 = vpop.f32.mrb[156].mxu1 }
0x1bdc   :  { %v4594_v25 = vadd.f32 %v4593_v59, %v7433_v61  ;;  %v4595_v48 = vpop.f32.mrb[125].mxu0  ;;  %v4636_v17 = vpop.f32.mrb[157].mxu1  ;;  %v4635_v21 = vadd.f32 %v4634_v18, %v7439_v30 }
0x1bdd   :  { %v4596_v10 = vadd.f32 %v4595_v48, %v7436_v54  ;;  %v4597_v37 = vpop.f32.mrb[126].mxu0  ;;  %v4638_v44 = vpop.f32.mrb[158].mxu1  ;;  %v4637_v39 = vadd.f32 %v4636_v17, %v7445_v19 }
0x1bde   :  { %5586 = vtanh.f32 %v4594_v25  ;;  %v4598_v31 = vpop.f32.mrb[127].mxu0  ;;  %v4639_v13 = vpop.f32.mrb[159].mxu1 }
0x1bdf   :  { %5588 = vtanh.f32 %v4596_v10 }
0x1be0   :  { %5590 = vtanh.f32 %v4635_v21 }
0x1be1   :  { %5592 = vtanh.f32 %v4637_v39 }
0x1be8   :  { %v5587_v43 = vpop.eup %5586 }
0x1be9   :  { %v4645_v42 = vmul.f32 0.5, %v5587_v43  ;;  %v5589_v29 = vpop.eup %5588 }
0x1bea   :  { %v4647_v61 = vmul.f32 0.5, %v5589_v29  ;;  %v5591_v56 = vpop.eup %5590 }
0x1beb   :  { %v4646_v38 = vadd.f32 0.5, %v4645_v42  ;;  %v5593_v30 = vpop.eup %5592 }
0x1bec   :  { %v4648_v24 = vadd.f32 0.5, %v4647_v61  ;;  %v4649_v2 = vmul.f32 0.5, %v5593_v30 }
0x1bed   :  { %v4652_v54 = vmul.f32 %v5591_v56, %v4646_v38 }
0x1bee   :  { %v4651_v23 = vmul.f32 %v4648_v24, %v8130_v46  ;;  %v4650_v36 = vadd.f32 0.5, %v4649_v2  ;;  %v8949_v46 = vld [vmem:[#allocation30_spill] sm:$0xff] }
0x1bef   :  { %v4659_v12 = vpack.c.bf16 %v8949_v46, %v8948_v62 }
0x1bf0   :  { %v4653_v40 = vadd.f32 %v4652_v54, %v4651_v23 }
0x1bf2   :  { %5594 = vtanh.f32 %v4653_v40 }
0x1bfc   :  { %v5595_v20 = vpop.eup %5594 }
0x1bfd   :  { %v4655_v63 = vmul.f32 %v5595_v20, %v4650_v36 }
0x1bff   :  { %v4656_v19 = vpack.c.bf16 %v8133_v58, %v4655_v63 }
0x1c01   :  { %5004 = vmatprep.mubr.bf16.mxu0 %v4656_v19 }
0x1c02   :  { %5005 = vmatmul.mubr.bf16.vlgmr.msra.gmra.mrb[128].mxu0 %v4657_v33 }
0x1c03   :  { %5008 = vmatprep.mubr.bf16.mxu0 %v4658_v3 }
0x1c0a   :  { %5009 = vmatmul.mubr.bf16.gmra.mrb[132].mxu0 %v4659_v12 }
0x1cd5   :  { %v5006_v45 = vpop.f32.mrb[128].mxu0 }
0x1cd6   :  { %v4757_v26 = vadd.f32 %v5006_v45, %v4967_v41  ;;  %v4748_v58 = vpop.f32.mrb[129].mxu0 }
0x1cd7   :  { %v4749_v51 = vadd.f32 %v4967_v41, %v4748_v58  ;;  %v5007_v60 = vpop.f32.mrb[130].mxu0 }
0x1cd8   :  { %4781 = vst [vmem:[#allocation14 + $0x10] sm:$0xff] %v4757_v26  ;;  %v4760_v49 = vadd.f32 %v5007_v60, %v4967_v41  ;;  %v4751_v15 = vpop.f32.mrb[131].mxu0 }
0x1cd9   :  { %4779 = vst [vmem:[#allocation14] sm:$0xff] %v4749_v51  ;;  %v4752_v32 = vadd.f32 %v4967_v41, %v4751_v15 }
0x1cda   :  { %4782 = vst [vmem:[#allocation14 + $0x18] sm:$0xff] %v4760_v49 }
0x1cdb   :  { %4780 = vst [vmem:[#allocation14 + $0x8] sm:$0xff] %v4752_v32 }
0x1cdd   :  { %v5010_v1 = vpop.f32.mrb[132].mxu0 }
0x1cde   :  { %v4773_v7 = vadd.f32 %v5010_v1, %v4967_v41  ;;  %v4764_v22 = vpop.f32.mrb[133].mxu0 }
0x1cdf   :  { %v4765_v27 = vadd.f32 %v4967_v41, %v4764_v22  ;;  %v5011_v52 = vpop.f32.mrb[134].mxu0 }
0x1ce0   :  { %4785 = vst [vmem:[#allocation14 + $0x30] sm:$0xff] %v4773_v7  ;;  %v4776_v5 = vadd.f32 %v5011_v52, %v4967_v41  ;;  %v4767_v53 = vpop.f32.mrb[135].mxu0 }
0x1ce1   :  { %4783 = vst [vmem:[#allocation14 + $0x20] sm:$0xff] %v4765_v27  ;;  %v4768_v55 = vadd.f32 %v4967_v41, %v4767_v53 }
0x1ce2   :  { %4786 = vst [vmem:[#allocation14 + $0x38] sm:$0xff] %v4776_v5 }
0x1ce3   :  { %4784 = vst [vmem:[#allocation14 + $0x28] sm:$0xff] %v4768_v55 }
0x1ce4   :  { %5918 = shalt.err (!%p5915_p4)
}
0x1ce5   :  { %s5919_s21 = scalar_lea.hbm %s8218_s13, 1024 }
0x1ce6   :  { %p5920_p5 = scmp.ne.s32.totalorder %s8218_s13, %s5919_s21  ;;  %p5923_p6 = scmp.lt.u32.totalorder %s5919_s21, %s8218_s13 }
0x1ce8   :  { %p5925_p7 = pnand %p5923_p6, %p5920_p5 }
0x1cea   :  { %5928 = shalt.err (!%p5925_p7)
}
0x1ceb   :  { %4798 = dma.vmem_to_hbm [thread:$0]  %s4793_s26, 1024, %s8218_s13, [#allocation4], %s5945_s9, %s5945_s9, %s5946_s25  }
0x1cec   :  { %5937 = dma.done.wait [#allocation4], 1024  }
0x1ced   :  { %5938 = vsyncadd [#allocation4], 4294966272 }
0x1cee   :  { %4802 = vsyncpa [#allocation3], 1 }
0x1cef   :  { %4803 = vsyncpa [#allocation6], 1 }
0x1cf0   :  { %4804 = vsyncpa [#allocation9], 1 }
0x1cf1   :  { %4805 = vsyncpa [#allocation12], 1 }
0x1cf2   :  { %4806 = vsyncpa [#allocation4], 1 }

</bundles_post_ra>
